<compile_context>
chip_gen: v7x
topology: tpu7x:2x2x1
jax: 0.10.0
libtpu: 0.0.40
codegen_flags: <defaults>
</compile_context>

<pallas_src>
import functools

import jax
import jax.numpy as jnp
from jax.experimental import pallas as pl
from jax.experimental.pallas import tpu as pltpu


ALEX_TK = 512          # K-tile (streamed dim) for the alex-stub matmul
SUBLANE = 8            # f32 sublane tile
LANE = 128             # lane tile


# -----------------------------------------------------------------------------
# helpers
# -----------------------------------------------------------------------------
def _round_up(x, m):
    return (x + m - 1) // m * m


def _pad_to(x, shape):
    pads = [(0, t - s) for s, t in zip(x.shape, shape)]
    return jnp.pad(x, pads)


def _pairwise_cumsum_mask(n):
    # M[j, i] = 1 iff j <= i and j, i have the same parity  (cumsum over
    # (step, 2) pairs expressed as a matmul, so it rides the MXU).
    row = jax.lax.broadcasted_iota(jnp.int32, (n, n), 0)
    col = jax.lax.broadcasted_iota(jnp.int32, (n, n), 1)
    return jnp.where((row <= col) & ((row & 1) == (col & 1)),
                     1.0, 0.0).astype(jnp.float32)


# -----------------------------------------------------------------------------
# Kernels
# -----------------------------------------------------------------------------
def _fused_kernel(x_img_ref, x_traj_ref, cur_ref,
                  w_alex_ref, b_alex_ref,
                  w_imgemb_ref, b_imgemb_ref,
                  w_trajemb_ref, b_trajemb_ref,
                  w_fus_img_ref, w_fus_traj_ref, b_fus_ref,
                  w_pred_ref, b_pred_ref,
                  rel_ref, pos_ref,
                  acc_ref):
    f32 = jnp.float32
    k = pl.program_id(0)

    @pl.when(k == 0)
    def _():
        acc_ref[...] = jnp.zeros_like(acc_ref)

    # AlexNet-stub matmul, K-tiled: bf16 x bf16 -> f32 accumulate on the MXU.
    acc_ref[...] += jnp.dot(x_img_ref[...], w_alex_ref[...],
                            preferred_element_type=f32)

    @pl.when(k == pl.num_programs(0) - 1)
    def _():
        img4096 = jnp.maximum(acc_ref[...] + b_alex_ref[...], 0.0)
        image_feat = (jnp.dot(img4096, w_imgemb_ref[...],
                              preferred_element_type=f32)
                      + b_imgemb_ref[...])
        traj_feat = (jnp.dot(x_traj_ref[...], w_trajemb_ref[...],
                             preferred_element_type=f32)
                     + b_trajemb_ref[...])
        # fusion(cat([image_feat, traj_feat])) ==
        #   image_feat @ Wf_img + traj_feat @ Wf_traj + b
        fused = (jnp.dot(image_feat, w_fus_img_ref[...],
                         preferred_element_type=f32)
                 + jnp.dot(traj_feat, w_fus_traj_ref[...],
                           preferred_element_type=f32)
                 + b_fus_ref[...])
        rel = (jnp.dot(fused, w_pred_ref[...], preferred_element_type=f32)
               + b_pred_ref[...])
        rel_ref[...] = rel

        # cumsum over (pred_steps, 2) pairs + current location
        csum = _pairwise_cumsum_mask(rel.shape[-1])
        pos_ref[...] = (jnp.dot(rel, csum, preferred_element_type=f32)
                        + cur_ref[...])


def _traj_only_kernel(x_traj_ref, cur_ref,
                      w_trajemb_ref, b_trajemb_ref,
                      w_pred_ref, b_pred_ref,
                      rel_ref, pos_ref):
    f32 = jnp.float32
    traj_feat = (jnp.dot(x_traj_ref[...], w_trajemb_ref[...],
                         preferred_element_type=f32)
                 + b_trajemb_ref[...])
    rel = (jnp.dot(traj_feat, w_pred_ref[...], preferred_element_type=f32)
           + b_pred_ref[...])
    rel_ref[...] = rel
    csum = _pairwise_cumsum_mask(rel.shape[-1])
    pos_ref[...] = (jnp.dot(rel, csum, preferred_element_type=f32)
                    + cur_ref[...])


# -----------------------------------------------------------------------------
# Parameter init (torch nn.Linear layout: W [out, in], b [out]) + one-time repack
# -----------------------------------------------------------------------------
def init_params(key, prev_steps, pred_steps, n_hid, img_flat_dim):
    def linear(k, fan_in, fan_out):
        kw, kb = jax.random.split(k)
        bound = 1.0 / jnp.sqrt(jnp.float32(fan_in))
        w = jax.random.uniform(kw, (fan_out, fan_in), jnp.float32, -bound, bound)
        b = jax.random.uniform(kb, (fan_out,), jnp.float32, -bound, bound)
        return w, b

    ks = jax.random.split(key, 5)
    return {
        "alex": linear(ks[0], img_flat_dim, 4096),     # AlexNet stub (see TODO)
        "image_emb": linear(ks[1], 4096, n_hid),
        "prev_traj_emb": linear(ks[2], prev_steps * 2, n_hid),
        "fusion": linear(ks[3], n_hid * 2, n_hid),
        "pred_fc": linear(ks[4], n_hid, pred_steps * 2),
    }


def prepare_params(params, img_shape):
    """One-time host-side repack: transpose to [in, out], fold NHWC->NCHW into
    the alex weight rows, pad to lane-aligned sizes, cast the big alex weight
    to bf16, and pad K to a multiple of the K-tile."""
    H, W, C = img_shape
    n_hid = params["image_emb"][0].shape[0]
    pred2 = params["pred_fc"][0].shape[0]
    NH = _round_up(max(n_hid, LANE), LANE)
    NP = _round_up(max(pred2, LANE), LANE)

    w_alex, b_alex = params["alex"]                 # [4096, C*H*W] (NCHW order)
    K = C * H * W
    w_alex_io = w_alex.T                            # [K (c,h,w), 4096]
    # reorder rows so the kernel consumes flattened NHWC images directly
    w_alex_nhwc = (w_alex_io.reshape(C, H, W, 4096)
                   .transpose(1, 2, 0, 3).reshape(K, 4096))
    K_pad = _round_up(K, LANE)
    tk = min(ALEX_TK, K_pad)
    K_pad = _round_up(K_pad, tk)
    w_alex_p = _pad_to(w_alex_nhwc, (K_pad, 4096)).astype(jnp.bfloat16)

    w_ie, b_ie = params["image_emb"]                # [n_hid, 4096]
    w_te, b_te = params["prev_traj_emb"]            # [n_hid, prev*2]
    w_fu, b_fu = params["fusion"]                   # [n_hid, 2*n_hid]
    w_pr, b_pr = params["pred_fc"]                  # [pred2, n_hid]

    return {
        "w_alex": w_alex_p,                                         # bf16
        "b_alex": b_alex[None, :].astype(jnp.float32),              # (1, 4096)
        "w_imgemb": _pad_to(w_ie.T, (4096, NH)),
        "b_imgemb": _pad_to(b_ie[None, :], (1, NH)),
        "w_trajemb": _pad_to(w_te.T, (w_te.shape[1], NH)),
        "b_trajemb": _pad_to(b_te[None, :], (1, NH)),
        "w_fus_img": _pad_to(w_fu[:, :n_hid].T, (NH, NH)),
        "w_fus_traj": _pad_to(w_fu[:, n_hid:].T, (NH, NH)),
        "b_fus": _pad_to(b_fu[None, :], (1, NH)),
        "w_pred": _pad_to(w_pr.T, (NH, NP)),
        "b_pred": _pad_to(b_pr[None, :], (1, NP)),
    }


# -----------------------------------------------------------------------------
# Forward wrapper (jitted so glue ops fuse with the pallas_call)
# -----------------------------------------------------------------------------
@functools.partial(jax.jit, static_argnames=("pred_steps",))
def alex_encoder_forward(prepped, rasterized_image, prev_ego_centers,
                         pred_steps=30):
    B, prev_steps, _ = prev_ego_centers.shape
    two_p = pred_steps * 2
    B_pad = _round_up(max(B, SUBLANE), SUBLANE)

    w_traj = prepped["w_trajemb"]
    b_traj = prepped["b_trajemb"]
    w_pred = prepped["w_pred"]
    b_pred = prepped["b_pred"]
    NP = w_pred.shape[1]                       # padded 2*pred_steps (>=128)

    # glue: rel_pos diff + current-location expansion (fused under jit)
    rel_pos = jnp.concatenate(
        [jnp.zeros((B, 1, 2), prev_ego_centers.dtype),
         prev_ego_centers[:, 1:, :] - prev_ego_centers[:, :-1, :]], axis=1)
    x_traj = _pad_to(rel_pos.reshape(B, prev_steps * 2),
                     (B_pad, prev_steps * 2)).astype(jnp.float32)
    current_loc = jnp.broadcast_to(
        prev_ego_centers[:, -1][:, None, :], (B, pred_steps, 2)).reshape(B, two_p)
    cur = _pad_to(current_loc, (B_pad, NP)).astype(jnp.float32)

    def const2(k):
        return (0, 0)

    if rasterized_image is not None:
        Bi, H, W, C = rasterized_image.shape
        K = H * W * C
        w_alex = prepped["w_alex"]
        b_alex = prepped["b_alex"]
        K_pad = w_alex.shape[0]
        tk = min(ALEX_TK, K_pad)
        n_k = K_pad // tk

        # flatten NHWC directly; the NCHW permute is folded into w_alex rows
        x_img = _pad_to(rasterized_image.reshape(Bi, K),
                        (B_pad, K_pad)).astype(jnp.bfloat16)

        inputs = (x_img, x_traj, cur,
                  w_alex, b_alex,
                  prepped["w_imgemb"], prepped["b_imgemb"],
                  w_traj, b_traj,
                  prepped["w_fus_img"], prepped["w_fus_traj"], prepped["b_fus"],
                  w_pred, b_pred)

        in_specs = [
            pl.BlockSpec((B_pad, tk), lambda k: (0, k)),   # x_img: K-tiled
            pl.BlockSpec(x_traj.shape, const2),
            pl.BlockSpec(cur.shape, const2),
            pl.BlockSpec((tk, 4096), lambda k: (k, 0)),    # w_alex: K-tiled
            pl.BlockSpec(b_alex.shape, const2),
            pl.BlockSpec(prepped["w_imgemb"].shape, const2),
            pl.BlockSpec(prepped["b_imgemb"].shape, const2),
            pl.BlockSpec(w_traj.shape, const2),
            pl.BlockSpec(b_traj.shape, const2),
            pl.BlockSpec(prepped["w_fus_img"].shape, const2),
            pl.BlockSpec(prepped["w_fus_traj"].shape, const2),
            pl.BlockSpec(prepped["b_fus"].shape, const2),
            pl.BlockSpec(w_pred.shape, const2),
            pl.BlockSpec(b_pred.shape, const2),
        ]
        out_specs = (pl.BlockSpec((B_pad, NP), const2),
                     pl.BlockSpec((B_pad, NP), const2))

        rel_p, pos_p = pl.pallas_call(
            _fused_kernel,
            out_shape=(jax.ShapeDtypeStruct((B_pad, NP), jnp.float32),
                       jax.ShapeDtypeStruct((B_pad, NP), jnp.float32)),
            grid=(n_k,),
            in_specs=in_specs,
            out_specs=out_specs,
            scratch_shapes=[pltpu.VMEM((B_pad, 4096), jnp.float32)],
            compiler_params=pltpu.CompilerParams(
                dimension_semantics=("arbitrary",),
                vmem_limit_bytes=32 << 20),
        )(*inputs)
    else:
        inputs = (x_traj, cur, w_traj, b_traj, w_pred, b_pred)
        in_specs = [pl.BlockSpec(x.shape, const2) for x in inputs]
        out_specs = (pl.BlockSpec((B_pad, NP), const2),
                     pl.BlockSpec((B_pad, NP), const2))
        rel_p, pos_p = pl.pallas_call(
            _traj_only_kernel,
            out_shape=(jax.ShapeDtypeStruct((B_pad, NP), jnp.float32),
                       jax.ShapeDtypeStruct((B_pad, NP), jnp.float32)),
            grid=(1,),
            in_specs=in_specs,
            out_specs=out_specs,
            compiler_params=pltpu.CompilerParams(
                dimension_semantics=("arbitrary",)),
        )(*inputs)

    return rel_p[:B, :two_p], pos_p[:B, :two_p]


# -----------------------------------------------------------------------------
# Pure-JAX reference (mirrors the module; alex-stub matmul in bf16 like kernel)
# -----------------------------------------------------------------------------
def alex_encoder_reference(params, rasterized_image, prev_ego_centers,
                           pred_steps=30):
    B, prev_steps, _ = prev_ego_centers.shape
    rel_pos = jnp.zeros_like(prev_ego_centers)
    rel_pos = rel_pos.at[:, 1:, :].set(
        prev_ego_centers[:, 1:, :] - prev_ego_centers[:, :-1, :])
    rel_pos_flat = rel_pos.reshape(B, -1)
    current_loc = jnp.broadcast_to(
        prev_ego_centers[:, -1][:, None, :], (B, pred_steps, 2)).reshape(B, -1)

    w_traj, b_traj = params["prev_traj_emb"]
    traj_feat = rel_pos_flat @ w_traj.T + b_traj

    if rasterized_image is not None:
        x_img = jnp.transpose(rasterized_image, (0, 3, 1, 2)).reshape(B, -1)
        w_alex, b_alex = params["alex"]
        img4096 = jnp.maximum(
            jnp.dot(x_img.astype(jnp.bfloat16), w_alex.T.astype(jnp.bfloat16),
                    preferred_element_type=jnp.float32) + b_alex, 0.0)
        w_imgemb, b_imgemb = params["image_emb"]
        image_feat = img4096 @ w_imgemb.T + b_imgemb
        w_fus, b_fus = params["fusion"]
        fused = jnp.concatenate([image_feat, traj_feat], axis=1) @ w_fus.T + b_fus
    else:
        fused = traj_feat

    w_pred, b_pred = params["pred_fc"]
    rel = fused @ w_pred.T + b_pred
    pos = jnp.cumsum(rel.reshape(B, -1, 2), axis=1).reshape(B, -1) + current_loc
    return rel, pos


# -----------------------------------------------------------------------------
if __name__ == "__main__":
    B = 2
    H = W = 16
    C = 4
    PREV_STEPS = 6
    PRED_STEPS = 30
    N_HID = 32

    key = jax.random.PRNGKey(0)
    k_img, k_traj, k_param = jax.random.split(key, 3)

    rasterized_image = jax.random.normal(k_img, (B, H, W, C), jnp.float32)
    prev_ego_centers = jax.random.normal(k_traj, (B, PREV_STEPS, 2), jnp.float32)

    params = init_params(k_param, PREV_STEPS, PRED_STEPS, N_HID, C * H * W)
    prepped = prepare_params(params, (H, W, C))

    # image + trajectory path
    rel, pos = alex_encoder_forward(prepped, rasterized_image, prev_ego_centers,
                                    pred_steps=PRED_STEPS)
    jax.block_until_ready((rel, pos))
    rel_ref, pos_ref = alex_encoder_reference(params, rasterized_image,
                                              prev_ego_centers,
                                              pred_steps=PRED_STEPS)
    assert rel.shape == (B, PRED_STEPS * 2) and pos.shape == (B, PRED_STEPS * 2)
    assert jnp.allclose(rel, rel_ref, atol=5e-3, rtol=5e-3)
    assert jnp.allclose(pos, pos_ref, atol=5e-3, rtol=5e-3)

    # trajectory-only path (rasterized_image is None)
    rel2, pos2 = alex_encoder_forward(prepped, None, prev_ego_centers,
                                      pred_steps=PRED_STEPS)
    jax.block_until_ready((rel2, pos2))
    rel2_ref, pos2_ref = alex_encoder_reference(params, None, prev_ego_centers,
                                                pred_steps=PRED_STEPS)
    assert jnp.allclose(rel2, rel2_ref, atol=5e-3, rtol=5e-3)
    assert jnp.allclose(pos2, pos2_ref, atol=5e-3, rtol=5e-3)

    print("KERNEL_OK")
</pallas_src>

<mosaic_0001>
module attributes {stable_mosaic.version = 11 : i64} {
  func.func @_fused_kernel(%arg0: i32, %arg1: memref<8x512xbf16, #tpu.memory_space<vmem>>, %arg2: memref<8x12xf32, #tpu.memory_space<vmem>>, %arg3: memref<8x128xf32, #tpu.memory_space<vmem>>, %arg4: memref<512x4096xbf16, #tpu.memory_space<vmem>>, %arg5: memref<1x4096xf32, #tpu.memory_space<vmem>>, %arg6: memref<4096x128xf32, #tpu.memory_space<vmem>>, %arg7: memref<1x128xf32, #tpu.memory_space<vmem>>, %arg8: memref<12x128xf32, #tpu.memory_space<vmem>>, %arg9: memref<1x128xf32, #tpu.memory_space<vmem>>, %arg10: memref<128x128xf32, #tpu.memory_space<vmem>>, %arg11: memref<128x128xf32, #tpu.memory_space<vmem>>, %arg12: memref<1x128xf32, #tpu.memory_space<vmem>>, %arg13: memref<128x128xf32, #tpu.memory_space<vmem>>, %arg14: memref<1x128xf32, #tpu.memory_space<vmem>>, %arg15: memref<8x128xf32, #tpu.memory_space<vmem>>, %arg16: memref<8x128xf32, #tpu.memory_space<vmem>>, %arg17: memref<8x4096xf32, #tpu.memory_space<vmem>>) attributes {dimension_semantics = [#tpu.dimension_semantics<arbitrary>], iteration_bounds = array<i64: 2>, scalar_prefetch = 0 : i64, scratch_operands = 1 : i64, tpu.core_type = #tpu.core_type<tc>, window_params = [{transform_indices = @transform_0, window_bounds = array<i64: 8, 512>}, {pipeline_mode = #tpu.pipeline_mode<synchronous>, transform_indices = @transform_1, window_bounds = array<i64: 8, 12>}, {pipeline_mode = #tpu.pipeline_mode<synchronous>, transform_indices = @transform_2, window_bounds = array<i64: 8, 128>}, {transform_indices = @transform_3, window_bounds = array<i64: 512, 4096>}, {pipeline_mode = #tpu.pipeline_mode<synchronous>, transform_indices = @transform_4, window_bounds = array<i64: 1, 4096>}, {pipeline_mode = #tpu.pipeline_mode<synchronous>, transform_indices = @transform_5, window_bounds = array<i64: 4096, 128>}, {pipeline_mode = #tpu.pipeline_mode<synchronous>, transform_indices = @transform_6, window_bounds = array<i64: 1, 128>}, {pipeline_mode = #tpu.pipeline_mode<synchronous>, transform_indices = @transform_7, window_bounds = array<i64: 12, 128>}, {pipeline_mode = #tpu.pipeline_mode<synchronous>, transform_indices = @transform_8, window_bounds = array<i64: 1, 128>}, {pipeline_mode = #tpu.pipeline_mode<synchronous>, transform_indices = @transform_9, window_bounds = array<i64: 128, 128>}, {pipeline_mode = #tpu.pipeline_mode<synchronous>, transform_indices = @transform_10, window_bounds = array<i64: 128, 128>}, {pipeline_mode = #tpu.pipeline_mode<synchronous>, transform_indices = @transform_11, window_bounds = array<i64: 1, 128>}, {pipeline_mode = #tpu.pipeline_mode<synchronous>, transform_indices = @transform_12, window_bounds = array<i64: 128, 128>}, {pipeline_mode = #tpu.pipeline_mode<synchronous>, transform_indices = @transform_13, window_bounds = array<i64: 1, 128>}, {pipeline_mode = #tpu.pipeline_mode<synchronous>, transform_indices = @transform_14, window_bounds = array<i64: 8, 128>}, {pipeline_mode = #tpu.pipeline_mode<synchronous>, transform_indices = @transform_15, window_bounds = array<i64: 8, 128>}]} {
    %c0_i32 = arith.constant 0 : i32
    %0 = arith.cmpi eq, %arg0, %c0_i32 : i32
    %1 = arith.extui %0 : i1 to i32
    %c0_i32_0 = arith.constant 0 : i32
    %2 = arith.cmpi ne, %1, %c0_i32_0 : i32
    scf.if %2 {
      %cst_9 = arith.constant 0.000000e+00 : f32
      %12 = vector.broadcast %cst_9 : f32 to vector<8x4096xf32>
      %c0_10 = arith.constant 0 : index
      %c0_11 = arith.constant 0 : index
      %13 = vector.load %arg17[%c0_10, %c0_11] : memref<8x4096xf32, #tpu.memory_space<vmem>>, vector<8x4096xf32>
      tpu.vector_store %arg17[%c0_10, %c0_11], %12 {strides = array<i32>} : memref<8x4096xf32, #tpu.memory_space<vmem>>, vector<8x4096xf32>,
    } else {
    }
    %c0 = arith.constant 0 : index
    %c0_1 = arith.constant 0 : index
    %3 = vector.load %arg17[%c0, %c0_1] : memref<8x4096xf32, #tpu.memory_space<vmem>>, vector<8x4096xf32>
    %c0_2 = arith.constant 0 : index
    %c0_3 = arith.constant 0 : index
    %4 = vector.load %arg1[%c0_2, %c0_3] : memref<8x512xbf16, #tpu.memory_space<vmem>>, vector<8x512xbf16>
    %c0_4 = arith.constant 0 : index
    %c0_5 = arith.constant 0 : index
    %5 = vector.load %arg4[%c0_4, %c0_5] : memref<512x4096xbf16, #tpu.memory_space<vmem>>, vector<512x4096xbf16>
    %cst = arith.constant dense<0.000000e+00> : vector<8x4096xf32>
    %6 = tpu.matmul %4, %5, %cst {dimension_numbers = #tpu.dot_dimension_numbers<[1], [0], [0], [1], [0, 0, 1, 1], [], []>} : vector<8x512xbf16>, vector<512x4096xbf16>, vector<8x4096xf32> -> vector<8x4096xf32>
    %7 = arith.addf %3, %6 : vector<8x4096xf32>
    %c0_6 = arith.constant 0 : index
    %c0_7 = arith.constant 0 : index
    %8 = vector.load %arg17[%c0_6, %c0_7] : memref<8x4096xf32, #tpu.memory_space<vmem>>, vector<8x4096xf32>
    tpu.vector_store %arg17[%c0_6, %c0_7], %7 {strides = array<i32>} : memref<8x4096xf32, #tpu.memory_space<vmem>>, vector<8x4096xf32>,
    %c1_i32 = arith.constant 1 : i32
    %9 = arith.cmpi eq, %arg0, %c1_i32 : i32
    %10 = arith.extui %9 : i1 to i32
    %c0_i32_8 = arith.constant 0 : i32
    %11 = arith.cmpi ne, %10, %c0_i32_8 : i32
    scf.if %11 {
      %c0_9 = arith.constant 0 : index
      %c0_10 = arith.constant 0 : index
      %12 = vector.load %arg17[%c0_9, %c0_10] : memref<8x4096xf32, #tpu.memory_space<vmem>>, vector<8x4096xf32>
      %c0_11 = arith.constant 0 : index
      %c0_12 = arith.constant 0 : index
      %13 = vector.load %arg5[%c0_11, %c0_12] : memref<1x4096xf32, #tpu.memory_space<vmem>>, vector<1x4096xf32>
      %14 = vector.broadcast %13 : vector<1x4096xf32> to vector<8x4096xf32>
      %15 = arith.addf %12, %14 : vector<8x4096xf32>
      %cst_13 = arith.constant 0.000000e+00 : f32
      %16 = vector.broadcast %cst_13 : f32 to vector<8x4096xf32>
      %17 = arith.maximumf %15, %16 : vector<8x4096xf32>
      %c0_14 = arith.constant 0 : index
      %c0_15 = arith.constant 0 : index
      %18 = vector.load %arg6[%c0_14, %c0_15] : memref<4096x128xf32, #tpu.memory_space<vmem>>, vector<4096x128xf32>
      %cst_16 = arith.constant dense<0.000000e+00> : vector<8x128xf32>
      %19 = tpu.matmul %17, %18, %cst_16 {dimension_numbers = #tpu.dot_dimension_numbers<[1], [0], [0], [1], [0, 0, 1, 1], [], []>} : vector<8x4096xf32>, vector<4096x128xf32>, vector<8x128xf32> -> vector<8x128xf32>
      %c0_17 = arith.constant 0 : index
      %c0_18 = arith.constant 0 : index
      %20 = vector.load %arg7[%c0_17, %c0_18] : memref<1x128xf32, #tpu.memory_space<vmem>>, vector<1x128xf32>
      %21 = vector.broadcast %20 : vector<1x128xf32> to vector<8x128xf32>
      %22 = arith.addf %19, %21 : vector<8x128xf32>
      %c0_19 = arith.constant 0 : index
      %c0_20 = arith.constant 0 : index
      %23 = vector.load %arg2[%c0_19, %c0_20] : memref<8x12xf32, #tpu.memory_space<vmem>>, vector<8x12xf32>
      %c0_21 = arith.constant 0 : index
      %c0_22 = arith.constant 0 : index
      %24 = vector.load %arg8[%c0_21, %c0_22] : memref<12x128xf32, #tpu.memory_space<vmem>>, vector<12x128xf32>
      %cst_23 = arith.constant dense<0.000000e+00> : vector<8x128xf32>
      %25 = tpu.matmul %23, %24, %cst_23 {dimension_numbers = #tpu.dot_dimension_numbers<[1], [0], [0], [1], [0, 0, 1, 1], [], []>} : vector<8x12xf32>, vector<12x128xf32>, vector<8x128xf32> -> vector<8x128xf32>
      %c0_24 = arith.constant 0 : index
      %c0_25 = arith.constant 0 : index
      %26 = vector.load %arg9[%c0_24, %c0_25] : memref<1x128xf32, #tpu.memory_space<vmem>>, vector<1x128xf32>
      %27 = vector.broadcast %26 : vector<1x128xf32> to vector<8x128xf32>
      %28 = arith.addf %25, %27 : vector<8x128xf32>
      %c0_26 = arith.constant 0 : index
      %c0_27 = arith.constant 0 : index
      %29 = vector.load %arg10[%c0_26, %c0_27] : memref<128x128xf32, #tpu.memory_space<vmem>>, vector<128x128xf32>
      %cst_28 = arith.constant dense<0.000000e+00> : vector<8x128xf32>
      %30 = tpu.matmul %22, %29, %cst_28 {dimension_numbers = #tpu.dot_dimension_numbers<[1], [0], [0], [1], [0, 0, 1, 1], [], []>} : vector<8x128xf32>, vector<128x128xf32>, vector<8x128xf32> -> vector<8x128xf32>
      %c0_29 = arith.constant 0 : index
      %c0_30 = arith.constant 0 : index
      %31 = vector.load %arg11[%c0_29, %c0_30] : memref<128x128xf32, #tpu.memory_space<vmem>>, vector<128x128xf32>
      %cst_31 = arith.constant dense<0.000000e+00> : vector<8x128xf32>
      %32 = tpu.matmul %28, %31, %cst_31 {dimension_numbers = #tpu.dot_dimension_numbers<[1], [0], [0], [1], [0, 0, 1, 1], [], []>} : vector<8x128xf32>, vector<128x128xf32>, vector<8x128xf32> -> vector<8x128xf32>
      %33 = arith.addf %30, %32 : vector<8x128xf32>
      %c0_32 = arith.constant 0 : index
      %c0_33 = arith.constant 0 : index
      %34 = vector.load %arg12[%c0_32, %c0_33] : memref<1x128xf32, #tpu.memory_space<vmem>>, vector<1x128xf32>
      %35 = vector.broadcast %34 : vector<1x128xf32> to vector<8x128xf32>
      %36 = arith.addf %33, %35 : vector<8x128xf32>
      %c0_34 = arith.constant 0 : index
      %c0_35 = arith.constant 0 : index
      %37 = vector.load %arg13[%c0_34, %c0_35] : memref<128x128xf32, #tpu.memory_space<vmem>>, vector<128x128xf32>
      %cst_36 = arith.constant dense<0.000000e+00> : vector<8x128xf32>
      %38 = tpu.matmul %36, %37, %cst_36 {dimension_numbers = #tpu.dot_dimension_numbers<[1], [0], [0], [1], [0, 0, 1, 1], [], []>} : vector<8x128xf32>, vector<128x128xf32>, vector<8x128xf32> -> vector<8x128xf32>
      %c0_37 = arith.constant 0 : index
      %c0_38 = arith.constant 0 : index
      %39 = vector.load %arg14[%c0_37, %c0_38] : memref<1x128xf32, #tpu.memory_space<vmem>>, vector<1x128xf32>
      %40 = vector.broadcast %39 : vector<1x128xf32> to vector<8x128xf32>
      %41 = arith.addf %38, %40 : vector<8x128xf32>
      %c0_39 = arith.constant 0 : index
      %c0_40 = arith.constant 0 : index
      %42 = vector.load %arg15[%c0_39, %c0_40] : memref<8x128xf32, #tpu.memory_space<vmem>>, vector<8x128xf32>
      tpu.vector_store %arg15[%c0_39, %c0_40], %41 {strides = array<i32>} : memref<8x128xf32, #tpu.memory_space<vmem>>, vector<8x128xf32>,
      %43 = tpu.iota {dimensions = array<i32: 0>} : vector<128x128xi32>
      %44 = tpu.iota {dimensions = array<i32: 1>} : vector<128x128xi32>
      %45 = arith.cmpi sle, %43, %44 : vector<128x128xi32>
      %c1_i32_41 = arith.constant 1 : i32
      %46 = vector.broadcast %c1_i32_41 : i32 to vector<128x128xi32>
      %47 = arith.andi %43, %46 : vector<128x128xi32>
      %c1_i32_42 = arith.constant 1 : i32
      %48 = vector.broadcast %c1_i32_42 : i32 to vector<128x128xi32>
      %49 = arith.andi %44, %48 : vector<128x128xi32>
      %50 = arith.cmpi eq, %47, %49 : vector<128x128xi32>
      %51 = arith.andi %45, %50 : vector<128x128xi1>
      %cst_43 = arith.constant 1.000000e+00 : f32
      %cst_44 = arith.constant 0.000000e+00 : f32
      %52 = vector.broadcast %cst_43 : f32 to vector<128x128xf32>
      %53 = vector.broadcast %cst_44 : f32 to vector<128x128xf32>
      %54 = arith.select %51, %52, %53 : vector<128x128xi1>, vector<128x128xf32>
      %cst_45 = arith.constant dense<0.000000e+00> : vector<8x128xf32>
      %55 = tpu.matmul %41, %54, %cst_45 {dimension_numbers = #tpu.dot_dimension_numbers<[1], [0], [0], [1], [0, 0, 1, 1], [], []>} : vector<8x128xf32>, vector<128x128xf32>, vector<8x128xf32> -> vector<8x128xf32>
      %c0_46 = arith.constant 0 : index
      %c0_47 = arith.constant 0 : index
      %56 = vector.load %arg3[%c0_46, %c0_47] : memref<8x128xf32, #tpu.memory_space<vmem>>, vector<8x128xf32>
      %57 = arith.addf %55, %56 : vector<8x128xf32>
      %c0_48 = arith.constant 0 : index
      %c0_49 = arith.constant 0 : index
      %58 = vector.load %arg16[%c0_48, %c0_49] : memref<8x128xf32, #tpu.memory_space<vmem>>, vector<8x128xf32>
      tpu.vector_store %arg16[%c0_48, %c0_49], %57 {strides = array<i32>} : memref<8x128xf32, #tpu.memory_space<vmem>>, vector<8x128xf32>,
    } else {
    }
    return
  }
  func.func @transform_0(%arg0: i32) -> (i32, i32) {
    %c0_i32 = arith.constant 0 : i32
    %c0_i32_0 = arith.constant 0 : i32
    return %c0_i32, %arg0 : i32, i32
  }
  func.func @transform_1(%arg0: i32) -> (i32, i32) {
    %c0_i32 = arith.constant 0 : i32
    %c0_i32_0 = arith.constant 0 : i32
    %c0_i32_1 = arith.constant 0 : i32
    return %c0_i32, %c0_i32_0 : i32, i32
  }
  func.func @transform_2(%arg0: i32) -> (i32, i32) {
    %c0_i32 = arith.constant 0 : i32
    %c0_i32_0 = arith.constant 0 : i32
    %c0_i32_1 = arith.constant 0 : i32
    return %c0_i32, %c0_i32_0 : i32, i32
  }
  func.func @transform_3(%arg0: i32) -> (i32, i32) {
    %c0_i32 = arith.constant 0 : i32
    %c0_i32_0 = arith.constant 0 : i32
    return %arg0, %c0_i32 : i32, i32
  }
  func.func @transform_4(%arg0: i32) -> (i32, i32) {
    %c0_i32 = arith.constant 0 : i32
    %c0_i32_0 = arith.constant 0 : i32
    %c0_i32_1 = arith.constant 0 : i32
    return %c0_i32, %c0_i32_0 : i32, i32
  }
  func.func @transform_5(%arg0: i32) -> (i32, i32) {
    %c0_i32 = arith.constant 0 : i32
    %c0_i32_0 = arith.constant 0 : i32
    %c0_i32_1 = arith.constant 0 : i32
    return %c0_i32, %c0_i32_0 : i32, i32
  }
  func.func @transform_6(%arg0: i32) -> (i32, i32) {
    %c0_i32 = arith.constant 0 : i32
    %c0_i32_0 = arith.constant 0 : i32
    %c0_i32_1 = arith.constant 0 : i32
    return %c0_i32, %c0_i32_0 : i32, i32
  }
  func.func @transform_7(%arg0: i32) -> (i32, i32) {
    %c0_i32 = arith.constant 0 : i32
    %c0_i32_0 = arith.constant 0 : i32
    %c0_i32_1 = arith.constant 0 : i32
    return %c0_i32, %c0_i32_0 : i32, i32
  }
  func.func @transform_8(%arg0: i32) -> (i32, i32) {
    %c0_i32 = arith.constant 0 : i32
    %c0_i32_0 = arith.constant 0 : i32
    %c0_i32_1 = arith.constant 0 : i32
    return %c0_i32, %c0_i32_0 : i32, i32
  }
  func.func @transform_9(%arg0: i32) -> (i32, i32) {
    %c0_i32 = arith.constant 0 : i32
    %c0_i32_0 = arith.constant 0 : i32
    %c0_i32_1 = arith.constant 0 : i32
    return %c0_i32, %c0_i32_0 : i32, i32
  }
  func.func @transform_10(%arg0: i32) -> (i32, i32) {
    %c0_i32 = arith.constant 0 : i32
    %c0_i32_0 = arith.constant 0 : i32
    %c0_i32_1 = arith.constant 0 : i32
    return %c0_i32, %c0_i32_0 : i32, i32
  }
  func.func @transform_11(%arg0: i32) -> (i32, i32) {
    %c0_i32 = arith.constant 0 : i32
    %c0_i32_0 = arith.constant 0 : i32
    %c0_i32_1 = arith.constant 0 : i32
    return %c0_i32, %c0_i32_0 : i32, i32
  }
  func.func @transform_12(%arg0: i32) -> (i32, i32) {
    %c0_i32 = arith.constant 0 : i32
    %c0_i32_0 = arith.constant 0 : i32
    %c0_i32_1 = arith.constant 0 : i32
    return %c0_i32, %c0_i32_0 : i32, i32
  }
  func.func @transform_13(%arg0: i32) -> (i32, i32) {
    %c0_i32 = arith.constant 0 : i32
    %c0_i32_0 = arith.constant 0 : i32
    %c0_i32_1 = arith.constant 0 : i32
    return %c0_i32, %c0_i32_0 : i32, i32
  }
  func.func @transform_14(%arg0: i32) -> (i32, i32) {
    %c0_i32 = arith.constant 0 : i32
    %c0_i32_0 = arith.constant 0 : i32
    %c0_i32_1 = arith.constant 0 : i32
    return %c0_i32, %c0_i32_0 : i32, i32
  }
  func.func @transform_15(%arg0: i32) -> (i32, i32) {
    %c0_i32 = arith.constant 0 : i32
    %c0_i32_0 = arith.constant 0 : i32
    %c0_i32_1 = arith.constant 0 : i32
    return %c0_i32, %c0_i32_0 : i32, i32
  }
}

</mosaic_0001>

<bundles_post_ra>
// kernel: alex_encoder_forward.1
= control target key start
LH: loop header
LB: loop body
LE: loop exit
PB: predicated region body
PF: predicated region fallthrough
CT: control target
= control target key end

     0   :  { %s15690_s0 = inlined_call_operand.vmem [shape: bf16[8,1024], index: 0, kind: input, shape index: {}]   ;;  %s15691_s1 = inlined_call_operand.vmem [shape: f32[8,12], index: 1, kind: input, shape index: {}]   ;;  %s15692_s2 = inlined_call_operand.vmem [shape: f32[8,128], index: 2, kind: input, shape index: {}]   ;;  %s15693_s3 = inlined_call_operand.hbm [shape: bf16[1024,4096], index: 3, kind: input, shape index: {}]   ;;  %s15694_s4 = inlined_call_operand.hbm [shape: f32[1,4096], index: 4, kind: input, shape index: {}]   ;;  %s15695_s5 = inlined_call_operand.hbm [shape: f32[4096,128], index: 5, kind: input, shape index: {}]   ;;  %s15696_s6 = inlined_call_operand.hbm [shape: f32[1,128], index: 6, kind: input, shape index: {}]   ;;  %s15697_s7 = inlined_call_operand.hbm [shape: f32[12,128], index: 7, kind: input, shape index: {}]   ;;  %s15698_s8 = inlined_call_operand.hbm [shape: f32[1,128], index: 8, kind: input, shape index: {}]   ;;  %s15699_s9 = inlined_call_operand.hbm [shape: f32[128,128], index: 9, kind: input, shape index: {}]   ;;  %s15700_s10 = inlined_call_operand.hbm [shape: f32[128,128], index: 10, kind: input, shape index: {}]   ;;  %s15701_s11 = inlined_call_operand.hbm [shape: f32[1,128], index: 11, kind: input, shape index: {}]   ;;  %s15702_s12 = inlined_call_operand.hbm [shape: f32[128,128], index: 12, kind: input, shape index: {}]   ;;  %s15703_s13 = inlined_call_operand.hbm [shape: f32[1,128], index: 13, kind: input, shape index: {}]   ;;  %s15704_s14 = inlined_call_operand.vmem [shape: f32[8,128], index: 14, kind: output, shape index: {0}]   ;;  %s15705_s15 = inlined_call_operand.vmem [shape: f32[8,128], index: 15, kind: output, shape index: {1}]  }
   0x1   :  { %15708 = sst [smem:[#allocation26_spill]] %s15690_s0 }
   0x2   :  { %15709 = sst [smem:[#allocation27_spill]] %s15691_s1 }
   0x3   :  { %15710 = sst [smem:[#allocation28_spill]] %s15692_s2 }
   0x4   :  { %15711 = sst [smem:[#allocation29_spill]] %s15694_s4 }
   0x5   :  { %15712 = sst [smem:[#allocation30_spill]] %s15696_s6 }
   0x6   :  { %15713 = sst [smem:[#allocation31_spill]] %s15698_s8 }
   0x7   :  { %15714 = sst [smem:[#allocation32_spill]] %s15704_s14 }
   0x8   :  { %15715 = sst [smem:[#allocation33_spill]] %s15705_s15 }
   0x9   :  { %21 = vsyncpa [#allocation4], 0 }
   0xa   :  { %23 = vsyncpa [#allocation4 + $0x1], 0 }
   0xb   :  { %24 = vsyncpa [#allocation6], 0 }
   0xc   :  { %25 = vsyncpa [#allocation9], 0 }
   0xd   :  { %26 = vsyncpa [#allocation12], 0 }
   0xe   :  { %27 = vsyncpa [#allocation15], 0 }
   0xf   :  { %28 = vsyncpa [#allocation18], 0  ;;  %s13950_s18 = smov 0   ;;  %s13952_s19 = smov 0  }
  0x10   :  { %s13954_s20 = smov 0   ;;  %s13956_s21 = smov 0  }
  0x11 LB: > { %s13850_s22 = smov [#allocation5]   ;;  %s13971_s24 = sadd.s32 4294967295, %s13848_s21   ;;  %s13848_s21 = sphi %s13956_s21, %s15757_s21   ;;  %s13844_s20 = sphi %s13954_s20, %s15756_s20   ;;  %s13840_s19 = sphi %s13952_s19, %s15755_s19   ;;  %s13836_s18 = sphi %s13950_s18, %s15754_s18  }
  0x12   : > { %s404_s23 = sshll.u32 %s13850_s22, 4  ;;  %p10855_p0 = scmp.ge.s32.totalorder %s13848_s21, 1  ;;  %s405_s23 = int_to_ptr.vmem [resolvable:$true] %s404_s23 }
  0x13   : > { %p15706_p1 = scmp.eq.s32.totalorder %s13971_s24, 0  ;;  %p385_p2 = scmp.lt.s32.totalorder %s13848_s21, 3 }
  0x14   : > { %s13851_s26 = smov [#allocation8]   ;;  %s13852_s28 = smov [#allocation11]  }
  0x15   : > { %p13977_p4 = pnand %p10855_p0, %p385_p2  ;;  %s428_s27 = sshll.u32 %s13851_s26, 4  ;;  %s13983_s27 = int_to_ptr.vmem [resolvable:$true] %s428_s27 }
  0x16   : > { %s452_s29 = sshll.u32 %s13852_s28, 4  ;;  %s15718_s4 = sld [smem:[#allocation29_spill]]  ;;  %s13991_s29 = int_to_ptr.vmem [resolvable:$true] %s452_s29 }
  0x17   : > { %s15716_s25 = scalar_select %p13977_p4, 1, 0 }
  0x18   : > { %p13373_p5 = pneg %p13977_p4 }
  0x1a   : > { %p13987_p6 = pnand %p13373_p5, %p15706_p1 }
  0x1c   : > { %s13484_s22 = scalar_lea.hbm %s15718_s4, 512  ;;  %p14001_p8 = pneg %p13987_p6 }
  0x1d   : > { %p13485_p7 = scmp.ne.s32.totalorder %s15718_s4, %s13484_s22  ;;  %p13491_p11 = scmp.lt.u32.totalorder %s13484_s22, %s15718_s4 }
  0x1f   : > { %p13487_p9 = pnand %p14001_p8, %p13485_p7 }
  0x21   : > { %p13488_p10 = pneg %p13487_p9 }
  0x23   : > { %p13493_p12 = pnand %p13491_p11, %p13488_p10 }
  0x25   : > { %13496 = shalt.err (!%p13493_p12)
}
  0x26   : > { %s13497_s16 = scalar_lea.vmem %s405_s23, 512  ;;  %p13505_p5 = scmp.lt.s32.totalorder %s405_s23, %s405_s23 }
  0x27   : > { %p13498_p13 = scmp.ne.s32.totalorder %s405_s23, %s13497_s16  ;;  %p13506_p3 = scmp.lt.s32.totalorder %s13497_s16, %s13497_s16 }
  0x29   : > { %p13500_p0 = pnand %p13498_p13, %p14001_p8  ;;  %p13507_p1 = por %p13506_p3, %p13505_p5 }
  0x2b   : > { %p13501_p2 = pneg %p13500_p0 }
  0x2d   : > { %p13508_p4 = pnand %p13507_p1, %p13501_p2 }
  0x2f   : > { %13511 = shalt.err (!%p13508_p4)
}
  0x30   : > { %13376 = dma.hbm_to_vmem [thread:$0]  (!%p13987_p6), %s15718_s4, 512, %s405_s23, [#allocation6]  }
  0x31   : > { %s15720_s6 = sld [smem:[#allocation30_spill]] }
  0x37   : > { %s13512_s22 = scalar_lea.hbm %s15720_s6, 16 }
  0x38   : > { %p13513_p7 = scmp.ne.s32.totalorder %s15720_s6, %s13512_s22  ;;  %p13519_p1 = scmp.lt.u32.totalorder %s13512_s22, %s15720_s6 }
  0x3a   : > { %p13515_p9 = pnand %p13513_p7, %p14001_p8 }
  0x3c   : > { %p13516_p3 = pneg %p13515_p9 }
  0x3e   : > { %p13521_p4 = pnand %p13519_p1, %p13516_p3 }
  0x40   : > { %13524 = shalt.err (!%p13521_p4)
}
  0x41   : > { %s13525_s23 = scalar_lea.vmem %s13983_s27, 16  ;;  %s13532_s1 = scalar_lea.vmem %s13983_s27, 32 }
  0x42   : > { %p13526_p10 = scmp.ne.s32.totalorder %s13983_s27, %s13525_s23  ;;  %p13533_p13 = scmp.lt.s32.totalorder %s13983_s27, %s13983_s27 }
  0x43   : > { %p13534_p0 = scmp.lt.s32.totalorder %s13532_s1, %s13525_s23 }
  0x44   : > { %p13528_p11 = pnand %p13526_p10, %p14001_p8 }
  0x45   : > { %p13535_p2 = por %p13534_p0, %p13533_p13 }
  0x46   : > { %p13529_p12 = pneg %p13528_p11 }
  0x48   : > { %p13536_p5 = pnand %p13535_p2, %p13529_p12 }
  0x4a   : > { %13539 = shalt.err (!%p13536_p5)
}
  0x4b   : > { %13382 = dma.hbm_to_vmem [thread:$0]  (!%p13987_p6), %s15720_s6, 16, %s13983_s27, [#allocation9]  }
  0x4c   : > { %s15721_s8 = sld [smem:[#allocation31_spill]] }
  0x52   : > { %s13540_s17 = scalar_lea.hbm %s15721_s8, 16 }
  0x53   : > { %p13541_p7 = scmp.ne.s32.totalorder %s15721_s8, %s13540_s17  ;;  %p13547_p1 = scmp.lt.u32.totalorder %s13540_s17, %s15721_s8 }
  0x55   : > { %p13543_p9 = pnand %p13541_p7, %p14001_p8 }
  0x57   : > { %p13544_p3 = pneg %p13543_p9 }
  0x59   : > { %p13549_p4 = pnand %p13547_p1, %p13544_p3 }
  0x5b   : > { %13552 = shalt.err (!%p13549_p4)
}
  0x5c   : > { %s13553_s27 = scalar_lea.vmem %s13991_s29, 16  ;;  %s13560_s1 = scalar_lea.vmem %s13991_s29, 32 }
  0x5d   : > { %p13554_p10 = scmp.ne.s32.totalorder %s13991_s29, %s13553_s27  ;;  %p13561_p13 = scmp.lt.s32.totalorder %s13991_s29, %s13991_s29 }
  0x5e   : > { %p13562_p0 = scmp.lt.s32.totalorder %s13560_s1, %s13553_s27 }
  0x5f   : > { %p13556_p11 = pnand %p13554_p10, %p14001_p8 }
  0x60   : > { %p13563_p2 = por %p13562_p0, %p13561_p13 }
  0x61   : > { %p13557_p12 = pneg %p13556_p11 }
  0x63   : > { %p13564_p5 = pnand %p13563_p2, %p13557_p12 }
  0x65   : > { %13567 = shalt.err (!%p13564_p5)
}
  0x66   : > { %13388 = dma.hbm_to_vmem [thread:$0]  (!%p13987_p6), %s15721_s8, 16, %s13991_s29, [#allocation12]  }
  0x67   : > { %s13853_s15 = smov [#allocation14]   ;;  %s13854_s17 = smov [#allocation17]  }
  0x68   : > { %s475_s14 = sshll.u32 %s13853_s15, 4  ;;  %s499_s22 = sshll.u32 %s13854_s17, 4  ;;  %s476_s14 = int_to_ptr.vmem [resolvable:$true] %s475_s14  ;;  %s500_s22 = int_to_ptr.vmem [resolvable:$true] %s499_s22 }
  0x69   : > { %s13568_s23 = scalar_lea.hbm %s15700_s10, 2048 }
  0x6a   : > { %p13569_p7 = scmp.ne.s32.totalorder %s15700_s10, %s13568_s23  ;;  %p13575_p1 = scmp.lt.u32.totalorder %s13568_s23, %s15700_s10 }
  0x6c   : > { %p13571_p9 = pnand %p13569_p7, %p14001_p8 }
  0x6e   : > { %p13572_p3 = pneg %p13571_p9 }
  0x70   : > { %p13577_p4 = pnand %p13575_p1, %p13572_p3 }
  0x72   : > { %13580 = shalt.err (!%p13577_p4)
}
  0x73   : > { %s13581_s29 = scalar_lea.vmem %s476_s14, 2048  ;;  %p13589_p13 = scmp.lt.s32.totalorder %s476_s14, %s476_s14 }
  0x74   : > { %p13582_p10 = scmp.ne.s32.totalorder %s476_s14, %s13581_s29  ;;  %p13590_p0 = scmp.lt.s32.totalorder %s13581_s29, %s13581_s29 }
  0x76   : > { %p13584_p11 = pnand %p13582_p10, %p14001_p8  ;;  %p13591_p2 = por %p13590_p0, %p13589_p13 }
  0x78   : > { %p13585_p12 = pneg %p13584_p11 }
  0x7a   : > { %p13592_p5 = pnand %p13591_p2, %p13585_p12 }
  0x7c   : > { %13595 = shalt.err (!%p13592_p5)
}
  0x7d   : > { %s13855_s2 = smov 128   ;;  %s13856_s15 = smov 8  }
  0x7e   : > { %13394 = dma.hbm_to_vmem [thread:$0]  (!%p13987_p6), %s15700_s10, 2048, %s476_s14, [#allocation15], %s13855_s2, %s13855_s2, %s13856_s15  }
  0x7f   : > { %s13596_s23 = scalar_lea.hbm %s15702_s12, 2048 }
  0x80   : > { %p13597_p7 = scmp.ne.s32.totalorder %s15702_s12, %s13596_s23  ;;  %p13603_p1 = scmp.lt.u32.totalorder %s13596_s23, %s15702_s12 }
  0x82   : > { %p13599_p9 = pnand %p13597_p7, %p14001_p8 }
  0x84   : > { %p13600_p3 = pneg %p13599_p9 }
  0x86   : > { %p13605_p4 = pnand %p13603_p1, %p13600_p3 }
  0x88   : > { %13608 = shalt.err (!%p13605_p4)
}
  0x89   : > { %s13609_s4 = scalar_lea.vmem %s500_s22, 2048  ;;  %p13617_p13 = scmp.lt.s32.totalorder %s500_s22, %s500_s22 }
  0x8a   : > { %p13610_p10 = scmp.ne.s32.totalorder %s500_s22, %s13609_s4  ;;  %p13618_p0 = scmp.lt.s32.totalorder %s13609_s4, %s13609_s4 }
  0x8c   : > { %p13612_p11 = pnand %p13610_p10, %p14001_p8  ;;  %p13619_p2 = por %p13618_p0, %p13617_p13 }
  0x8e   : > { %p13613_p12 = pneg %p13612_p11 }
  0x90   : > { %p13620_p5 = pnand %p13619_p2, %p13613_p12 }
  0x92   : > { %13623 = shalt.err (!%p13620_p5)
}
  0x93   : > { %13400 = dma.hbm_to_vmem [thread:$0]  (!%p13987_p6), %s15702_s12, 2048, %s500_s22, [#allocation18], %s13855_s2, %s13855_s2, %s13856_s15  }
  0x94   : > { %s13857_s28 = smov [#allocation7]   ;;  %s13858_s23 = smov [#allocation10]  }
  0x95   : > { %s414_s16 = sshll.u32 %s13857_s28, 4  ;;  %s438_s27 = sshll.u32 %s13858_s23, 4  ;;  %s415_s16 = int_to_ptr.vmem [resolvable:$true] %s414_s16  ;;  %s439_s27 = int_to_ptr.vmem [resolvable:$true] %s438_s27 }
  0x96   : > { %s13624_s29 = scalar_lea.hbm %s15695_s5, 65536 }
  0x97   : > { %p13625_p7 = scmp.ne.s32.totalorder %s15695_s5, %s13624_s29  ;;  %p13631_p1 = scmp.lt.u32.totalorder %s13624_s29, %s15695_s5 }
  0x99   : > { %p13627_p9 = pnand %p13625_p7, %p14001_p8 }
  0x9b   : > { %p13628_p3 = pneg %p13627_p9 }
  0x9d   : > { %p13633_p4 = pnand %p13631_p1, %p13628_p3 }
  0x9f   : > { %13636 = shalt.err (!%p13633_p4)
}
  0xa0   : > { %s13637_s22 = scalar_lea.vmem %s415_s16, 65536  ;;  %p13645_p13 = scmp.lt.s32.totalorder %s415_s16, %s415_s16 }
  0xa1   : > { %p13638_p10 = scmp.ne.s32.totalorder %s415_s16, %s13637_s22  ;;  %p13646_p0 = scmp.lt.s32.totalorder %s13637_s22, %s13637_s22 }
  0xa3   : > { %p13640_p11 = pnand %p13638_p10, %p14001_p8  ;;  %p13647_p2 = por %p13646_p0, %p13645_p13 }
  0xa5   : > { %p13641_p12 = pneg %p13640_p11 }
  0xa7   : > { %p13648_p5 = pnand %p13647_p2, %p13641_p12 }
  0xa9   : > { %13651 = shalt.err (!%p13648_p5)
}
  0xaa   : > { %13379 = dma.hbm_to_vmem [thread:$0]  (!%p13987_p6), %s15695_s5, 65536, %s415_s16, [#allocation6], %s13855_s2, %s13855_s2, %s13856_s15  }
  0xab   : > { %s13652_s23 = scalar_lea.hbm %s15697_s7, 256 }
  0xac   : > { %p13653_p7 = scmp.ne.s32.totalorder %s15697_s7, %s13652_s23  ;;  %p13659_p1 = scmp.lt.u32.totalorder %s13652_s23, %s15697_s7 }
  0xae   : > { %p13655_p9 = pnand %p13653_p7, %p14001_p8 }
  0xb0   : > { %p13656_p3 = pneg %p13655_p9 }
  0xb2   : > { %p13661_p4 = pnand %p13659_p1, %p13656_p3 }
  0xb4   : > { %13664 = shalt.err (!%p13661_p4)
}
  0xb5   : > { %s13665_s14 = scalar_lea.vmem %s439_s27, 256  ;;  %p13673_p13 = scmp.lt.s32.totalorder %s439_s27, %s439_s27 }
  0xb6   : > { %p13666_p10 = scmp.ne.s32.totalorder %s439_s27, %s13665_s14  ;;  %p13674_p0 = scmp.lt.s32.totalorder %s13665_s14, %s13665_s14 }
  0xb8   : > { %p13668_p11 = pnand %p13666_p10, %p14001_p8  ;;  %p13675_p2 = por %p13674_p0, %p13673_p13 }
  0xba   : > { %p13669_p12 = pneg %p13668_p11 }
  0xbc   : > { %p13676_p5 = pnand %p13675_p2, %p13669_p12 }
  0xbe   : > { %13679 = shalt.err (!%p13676_p5)
}
  0xbf   : > { %13385 = dma.hbm_to_vmem [thread:$0]  (!%p13987_p6), %s15697_s7, 256, %s439_s27, [#allocation9], %s13855_s2, %s13855_s2, %s13856_s15  }
  0xc0   : > { %s13859_s6 = smov [#allocation13]   ;;  %s13860_s17 = smov [#allocation16]  }
  0xc1   : > { %s462_s8 = sshll.u32 %s13859_s6, 4  ;;  %s489_s28 = sshll.u32 %s13860_s17, 4  ;;  %s463_s8 = int_to_ptr.vmem [resolvable:$true] %s462_s8  ;;  %s490_s28 = int_to_ptr.vmem [resolvable:$true] %s489_s28 }
  0xc2   : > { %s13680_s0 = scalar_lea.hbm %s15699_s9, 2048 }
  0xc3   : > { %p13681_p7 = scmp.ne.s32.totalorder %s15699_s9, %s13680_s0  ;;  %p13687_p1 = scmp.lt.u32.totalorder %s13680_s0, %s15699_s9 }
  0xc5   : > { %p13683_p9 = pnand %p13681_p7, %p14001_p8 }
  0xc7   : > { %p13684_p3 = pneg %p13683_p9 }
  0xc9   : > { %p13689_p4 = pnand %p13687_p1, %p13684_p3 }
  0xcb   : > { %13692 = shalt.err (!%p13689_p4)
}
  0xcc   : > { %s13693_s27 = scalar_lea.vmem %s463_s8, 2048  ;;  %p13701_p13 = scmp.lt.s32.totalorder %s463_s8, %s463_s8 }
  0xcd   : > { %p13694_p10 = scmp.ne.s32.totalorder %s463_s8, %s13693_s27  ;;  %p13702_p0 = scmp.lt.s32.totalorder %s13693_s27, %s13693_s27 }
  0xcf   : > { %p13696_p11 = pnand %p13694_p10, %p14001_p8  ;;  %p13703_p2 = por %p13702_p0, %p13701_p13 }
  0xd1   : > { %p13697_p12 = pneg %p13696_p11 }
  0xd3   : > { %p13704_p5 = pnand %p13703_p2, %p13697_p12 }
  0xd5   : > { %13707 = shalt.err (!%p13704_p5)
}
  0xd6   : > { %13391 = dma.hbm_to_vmem [thread:$0]  (!%p13987_p6), %s15699_s9, 2048, %s463_s8, [#allocation12], %s13855_s2, %s13855_s2, %s13856_s15  }
  0xd7   : > { %s13708_s1 = scalar_lea.hbm %s15701_s11, 16 }
  0xd8   : > { %p13709_p7 = scmp.ne.s32.totalorder %s15701_s11, %s13708_s1  ;;  %p13715_p1 = scmp.lt.u32.totalorder %s13708_s1, %s15701_s11 }
  0xda   : > { %p13711_p9 = pnand %p13709_p7, %p14001_p8 }
  0xdc   : > { %p13712_p3 = pneg %p13711_p9 }
  0xde   : > { %p13717_p4 = pnand %p13715_p1, %p13712_p3 }
  0xe0   : > { %13720 = shalt.err (!%p13717_p4)
}
  0xe1   : > { %s13721_s16 = scalar_lea.vmem %s490_s28, 16  ;;  %s13728_s15 = scalar_lea.vmem %s490_s28, 32 }
  0xe2   : > { %p13722_p10 = scmp.ne.s32.totalorder %s490_s28, %s13721_s16  ;;  %p13729_p13 = scmp.lt.s32.totalorder %s490_s28, %s490_s28 }
  0xe3   : > { %p13730_p0 = scmp.lt.s32.totalorder %s13728_s15, %s13721_s16 }
  0xe4   : > { %p13724_p11 = pnand %p13722_p10, %p14001_p8 }
  0xe5   : > { %p13731_p2 = por %p13730_p0, %p13729_p13 }
  0xe6   : > { %p13725_p12 = pneg %p13724_p11 }
  0xe8   : > { %p13732_p5 = pnand %p13731_p2, %p13725_p12 }
  0xea   : > { %13735 = shalt.err (!%p13732_p5)
}
  0xeb   : > { %13397 = dma.hbm_to_vmem [thread:$0]  (!%p13987_p6), %s15701_s11, 16, %s490_s28, [#allocation15]  }
  0xec   : > { %s13861_s22 = smov [#allocation19]   ;;  %s13736_s1 = scalar_lea.hbm %s15703_s13, 16 }
  0xed   : > { %s513_s6 = sshll.u32 %s13861_s22, 4  ;;  %p13737_p7 = scmp.ne.s32.totalorder %s15703_s13, %s13736_s1  ;;  %s514_s6 = int_to_ptr.vmem [resolvable:$true] %s513_s6 }
  0xee   : > { %p13743_p1 = scmp.lt.u32.totalorder %s13736_s1, %s15703_s13 }
  0xef   : > { %p13739_p9 = pnand %p13737_p7, %p14001_p8 }
  0xf1   : > { %p13740_p3 = pneg %p13739_p9 }
  0xf3   : > { %p13745_p4 = pnand %p13743_p1, %p13740_p3 }
  0xf5   : > { %13748 = shalt.err (!%p13745_p4)
}
  0xf6   : > { %s13749_s28 = scalar_lea.vmem %s514_s6, 16  ;;  %s13756_s16 = scalar_lea.vmem %s514_s6, 32 }
  0xf7   : > { %p13750_p10 = scmp.ne.s32.totalorder %s514_s6, %s13749_s28  ;;  %p13757_p13 = scmp.lt.s32.totalorder %s514_s6, %s514_s6 }
  0xf8   : > { %p13758_p0 = scmp.lt.s32.totalorder %s13756_s16, %s13749_s28 }
  0xf9   : > { %p13752_p11 = pnand %p13750_p10, %p14001_p8 }
  0xfa   : > { %p13759_p2 = por %p13758_p0, %p13757_p13 }
  0xfb   : > { %p13753_p12 = pneg %p13752_p11 }
  0xfd   : > { %p13760_p5 = pnand %p13759_p2, %p13753_p12 }
  0xff   : > { %13763 = shalt.err (!%p13760_p5)
}
 0x100   : > { %13403 = dma.hbm_to_vmem [thread:$0]  (!%p13987_p6), %s15703_s13, 16, %s514_s6, [#allocation18]  }
 0x101   : > { %s14207_s26 = sadd.s32 1, %s13848_s21   ;;  %s109_s30 = sadd.s32 1, %s13844_s20 }
 0x102   : > { %s106_s27 = ssub.s32 %s13848_s21, %s14207_s26  ;;  %p116_p8 = scmp.ne.s32.totalorder %s13844_s20, %s13840_s19 }
 0x103   : > { %p107_p7 = scmp.eq.s32.totalorder %s106_s27, 0  ;;  %p117_p9 = scmp.eq.s32.totalorder %s13848_s21, 0 }
 0x104   : > { %p122_p3 = scmp.ne.s32.totalorder %s13840_s19, %s13836_s18  ;;  %p13418_p1 = scmp.lt.s32.totalorder %s13848_s21, 2 }
 0x105   : > { %s14219_s22 = scalar_select %p107_p7, %s13844_s20, %s109_s30  }
 0x106   : > { %p118_p4 = por %p117_p9, %p116_p8  ;;  %p15722_p10 = scmp.eq.s32.totalorder %s13971_s24, 0 }
 0x107   : > { %s533_s23 = sand.u32 1, %s13844_s20   ;;  %s11940_s6 = sshll.u32 %s13848_s21, 17 }
 0x108   : > { %p14223_p11 = por %p15722_p10, %p122_p3  ;;  %s10867_s1 = sshll.u32 %s533_s23, 13 }
 0x109   : > { %s14232_s4 = scalar_lea.hbm %s15693_s3, %s11940_s6  ;;  %s537_s18 = scalar_lea.vmem [#allocation3], %s10867_s1 }
 0x10a   : > { %s545_s14 = sshll.u32 %s537_s18, 4  ;;  %p14234_p6 = pnand %p13418_p1, %p118_p4  ;;  %s14238_s14 = int_to_ptr.vmem [resolvable:$true] %s545_s14 }
 0x10b   : > { %s14240_s21 = scalar_lea.sflag [#allocation4], %s533_s23  ;;  %s13764_s16 = scalar_lea.hbm %s14232_s4, 131072 }
 0x10c   : > { %p13765_p12 = scmp.ne.s32.totalorder %s14232_s4, %s13764_s16  ;;  %p13766_p13 = pneg %p14234_p6 }
 0x10d   : > { %s13769_s30 = scalar_lea.hbm %s15693_s3, 262144  ;;  %p13770_p5 = scmp.lt.u32.totalorder %s14232_s4, %s15693_s3 }
 0x10e   : > { %p13767_p0 = pnand %p13766_p13, %p13765_p12  ;;  %p13771_p8 = scmp.lt.u32.totalorder %s13769_s30, %s13764_s16 }
 0x10f   : > { %p13773_p9 = scmp.lt.u32.totalorder %s13764_s16, %s14232_s4 }
 0x110   : > { %p13768_p2 = pneg %p13767_p0  ;;  %p13772_p7 = por %p13771_p8, %p13770_p5 }
 0x112   : > { %p13774_p3 = por %p13773_p9, %p13772_p7 }
 0x114   : > { %p13775_p1 = pnand %p13774_p3, %p13768_p2 }
 0x116   : > { %13778 = shalt.err (!%p13775_p1)
}
 0x117   : > { %s13779_s23 = scalar_lea.vmem %s14238_s14, 131072  ;;  %s13862_s1 = smov [#allocation3]  }
 0x118   : > { %p13780_p4 = scmp.ne.s32.totalorder %s14238_s14, %s13779_s23  ;;  %s13784_s0 = sshll.u32 %s13862_s1, 4  ;;  %s13785_s0 = int_to_ptr.vmem [resolvable:$false] %s13784_s0 }
 0x119   : > { %s13786_s29 = scalar_lea.vmem %s13785_s0, 262144  ;;  %p13787_p0 = scmp.lt.s32.totalorder %s14238_s14, %s13785_s0 }
 0x11a   : > { %p13782_p10 = pnand %p13780_p4, %p13766_p13  ;;  %p13788_p5 = scmp.lt.s32.totalorder %s13786_s29, %s13779_s23 }
 0x11c   : > { %p13783_p12 = pneg %p13782_p10  ;;  %p13789_p8 = por %p13788_p5, %p13787_p0 }
 0x11e   : > { %p13790_p7 = pnand %p13789_p8, %p13783_p12 }
 0x120   : > { %13793 = shalt.err (!%p13790_p7)
}
 0x121   : > { %s13863_s18 = smov 2048   ;;  %p15725_p13 = scmp.ne.s32.totalorder %s15716_s25, 0 }
 0x122   : > { %13407 = dma.hbm_to_vmem [thread:$0]  (!%p14234_p6), %s14232_s4, 131072, %s14238_s14, %s14240_s21, %s13863_s18, %s13863_s18, %s13855_s2  }
 0x123   : > { %557 = sbr.rel (%p15725_p13) target bundleno = 2686 (0xa7e), region = 76  ;;  %s559_s16 = sand.u32 (!%p15725_p13), 1, %s13840_s19  }
 0x124   : > { %s10872_s15 = sshll.u32 (!%p15725_p13), %s559_s16, 13  ;;  %s560_s8 = scalar_lea.sflag (!%p15725_p13), [#allocation4], %s559_s16 }
 0x125   : > { %s14272_s30 = scalar_lea.vmem (!%p15725_p13), [#allocation3], %s10872_s15 }
 0x12a   : > { %13811 = dma.done.wait (%p14223_p11), %s560_s8, 131072  }
 0x12b   : > { %13813 = vsyncadd (%p14223_p11), %s560_s8, 4294836224  ;;  %p15726_p2 = scmp.eq.s32.totalorder %s13971_s24, 0 }
 0x12d   : > { %13815 = dma.done.wait (%p15726_p2), [#allocation6], 66048   ;;  %p15727_p6 = pmov %p15726_p2 }
 0x12e   : > { %p15728_p9 = pmov %p15726_p2 }
 0x12f   : > { %13817 = vsyncadd (%p15727_p6), [#allocation6], 4294901248 }
 0x130   : > { %13819 = dma.done.wait (%p15728_p9), [#allocation9], 272   ;;  %p15729_p3 = pmov %p15726_p2 }
 0x131   : > { %p15730_p1 = pmov %p15726_p2 }
 0x132   : > { %13821 = vsyncadd (%p15729_p3), [#allocation9], 4294967024 }
 0x133   : > { %13823 = dma.done.wait (%p15730_p1), [#allocation12], 2064   ;;  %p15731_p4 = pmov %p15730_p1 }
 0x134   : > { %p15732_p11 = pmov %p15730_p1 }
 0x135   : > { %13825 = vsyncadd (%p15731_p4), [#allocation12], 4294965232 }
 0x136   : > { %13827 = dma.done.wait (%p15732_p11), [#allocation15], 2064   ;;  %p15733_p10 = pmov %p15730_p1 }
 0x137   : > { %p15734_p12 = pmov %p15730_p1 }
 0x138   : > { %13829 = vsyncadd (%p15733_p10), [#allocation15], 4294965232 }
 0x139   : > { %13831 = dma.done.wait (%p15734_p12), [#allocation18], 2064   ;;  %p15735_p0 = pmov %p15730_p1 }
 0x13a   : > { %s10883_s25 = sshll.u32 %s13971_s24, 2  ;;  %s15736_s14 = sld [smem:[#allocation26_spill]] }
 0x13b   : > { %13833 = vsyncadd (%p15735_p0), [#allocation18], 4294965232  ;;  %p651_p5 = scmp.lt.s32.totalorder %s10883_s25, 7  ;;  %p15737_p8 = scmp.ne.s32.totalorder %s13971_s24, 0 }
 0x13c   : > { %v13864_v0 = vmov (!%p15737_p8), 0.0  }
 0x13d   : > { %s15759_s25 = smov (!%p651_p5, %s10883_s25), 7  ;;  %660 = sbr.rel (%p15737_p8) target bundleno = 334 (0x14e), region = 124 }
 0x13e   : > { %s10884_s2 = sshll.u32 %s15759_s25, 2  ;;  %661 = vst [vmem:[#allocation2] sm:$0xff] (!%p15737_p8), %v13864_v0  ;;  %662 = vst [vmem:[#allocation2 + $0x8] sm:$0xff] (!%p15737_p8), %v13864_v0 }
 0x13f   : > { %663 = vst [vmem:[#allocation2 + $0x10] sm:$0xff] (!%p15737_p8), %v13864_v0  ;;  %664 = vst [vmem:[#allocation2 + $0x18] sm:$0xff] (!%p15737_p8), %v13864_v0 }
 0x140   : > { %s14302_s28 = scalar_lea.vmem %s15736_s14, %s10884_s2  ;;  %665 = vst [vmem:[#allocation2 + $0x20] sm:$0xff] (!%p15737_p8), %v13864_v0  ;;  %666 = vst [vmem:[#allocation2 + $0x28] sm:$0xff] (!%p15737_p8), %v13864_v0 }
 0x141   : > { %667 = vst [vmem:[#allocation2 + $0x30] sm:$0xff] (!%p15737_p8), %v13864_v0  ;;  %668 = vst [vmem:[#allocation2 + $0x38] sm:$0xff] (!%p15737_p8), %v13864_v0 }
 0x142   : > { %669 = vst [vmem:[#allocation2 + $0x40] sm:$0xff] (!%p15737_p8), %v13864_v0  ;;  %670 = vst [vmem:[#allocation2 + $0x48] sm:$0xff] (!%p15737_p8), %v13864_v0 }
 0x143   : > { %671 = vst [vmem:[#allocation2 + $0x50] sm:$0xff] (!%p15737_p8), %v13864_v0  ;;  %672 = vst [vmem:[#allocation2 + $0x58] sm:$0xff] (!%p15737_p8), %v13864_v0 }
 0x144   : > { %673 = vst [vmem:[#allocation2 + $0x60] sm:$0xff] %v13864_v0  ;;  %674 = vst [vmem:[#allocation2 + $0x68] sm:$0xff] %v13864_v0 }
 0x145   : > { %675 = vst [vmem:[#allocation2 + $0x70] sm:$0xff] %v13864_v0  ;;  %676 = vst [vmem:[#allocation2 + $0x78] sm:$0xff] %v13864_v0 }
 0x146   : > { %677 = vst [vmem:[#allocation2 + $0x80] sm:$0xff] %v13864_v0  ;;  %678 = vst [vmem:[#allocation2 + $0x88] sm:$0xff] %v13864_v0 }
 0x147   : > { %679 = vst [vmem:[#allocation2 + $0x90] sm:$0xff] %v13864_v0  ;;  %680 = vst [vmem:[#allocation2 + $0x98] sm:$0xff] %v13864_v0 }
 0x148   : > { %681 = vst [vmem:[#allocation2 + $0xa0] sm:$0xff] %v13864_v0  ;;  %682 = vst [vmem:[#allocation2 + $0xa8] sm:$0xff] %v13864_v0 }
 0x149   : > { %683 = vst [vmem:[#allocation2 + $0xb0] sm:$0xff] %v13864_v0  ;;  %684 = vst [vmem:[#allocation2 + $0xb8] sm:$0xff] %v13864_v0 }
 0x14a   : > { %685 = vst [vmem:[#allocation2 + $0xc0] sm:$0xff] %v13864_v0  ;;  %686 = vst [vmem:[#allocation2 + $0xc8] sm:$0xff] %v13864_v0 }
 0x14b   : > { %687 = vst [vmem:[#allocation2 + $0xd0] sm:$0xff] %v13864_v0  ;;  %688 = vst [vmem:[#allocation2 + $0xd8] sm:$0xff] %v13864_v0 }
 0x14c   : > { %689 = vst [vmem:[#allocation2 + $0xe0] sm:$0xff] %v13864_v0  ;;  %690 = vst [vmem:[#allocation2 + $0xe8] sm:$0xff] %v13864_v0 }
 0x14d   : > { %691 = vst [vmem:[#allocation2 + $0xf0] sm:$0xff] %v13864_v0  ;;  %692 = vst [vmem:[#allocation2 + $0xf8] sm:$0xff] %v13864_v0 }
 0x14e PF: > { %v727_v1 = vld [vmem:[%s14272_s30] sm:$0xff]  ;;  %v14338_v55 = vld [vmem:[%s14302_s28 + $0x8] sm:$0xff]  ;;  %p11914_p7 = scmp.ne.s32.totalorder %s13971_s24, 1 }
 0x14f   : > { %v743_v2 = vld [vmem:[%s14272_s30 + $0x80] sm:$0xff]  ;;  %v14348_v60 = vcombine.high %v14338_v55, %v14338_v55  ;;  %vm10182_vm0 = vcmask (!%p11914_p7), 1043456   ;;  %vm13866_vm1 = vmmov (!%p11914_p7), 1   ;;  %s15738_s27 = sld [smem:[#allocation27_spill]] (!%p11914_p7)  ;;  %vm10178_vm3 = vcmask (!%p11914_p7), 97280   ;;  %s15751_s1 = sld [smem:[#allocation32_spill]] (!%p11914_p7) }
 0x150   : > { %v1239_v3 = vld [vmem:[%s14272_s30 + $0x1000] sm:$0xff]  ;;  %v10891_v4 = vcombine.high %v727_v1, %v743_v2  ;;  %v10890_v6 = vcombine.low %v727_v1, %v743_v2  ;;  %vm13233_vm2 = vmpackc.low (!%p11914_p7), %vm10182_vm0, %vm13866_vm1  ;;  %vm13867_vm4 = vmmov (!%p11914_p7), 0   ;;  %s15752_s18 = sld [smem:[#allocation28_spill]] (!%p11914_p7)  ;;  %s15753_s8 = sld [smem:[#allocation33_spill]] (!%p11914_p7) }
 0x151   : > { %v1255_v5 = vld [vmem:[%s14272_s30 + $0x1080] sm:$0xff]  ;;  %6958 = vmatprep.mubr.bf16.mxu1 %v14348_v60 }
 0x152   : > { %v759_v7 = vld [vmem:[%s14272_s30 + $0x100] sm:$0xff]  ;;  %v11403_v9 = vcombine.high %v1239_v3, %v1255_v5  ;;  %v11402_v10 = vcombine.low %v1239_v3, %v1255_v5  ;;  %6885 = vmatprep.subr.bf16.mxu0 %v10891_v4 }
 0x153   : > { %v775_v8 = vld [vmem:[%s14272_s30 + $0x180] sm:$0xff]  ;;  %6886 = vmatpush1.bf16.msra.mxu0 %v10890_v6 }
 0x154   : > { %v10923_v11 = vcombine.high %v759_v7, %v775_v8  ;;  %v1271_v12 = vld [vmem:[%s14272_s30 + $0x1100] sm:$0xff]  ;;  %6926 = vmatprep.subr.bf16.mxu1 %v11403_v9  ;;  %v10922_v19 = vcombine.low %v759_v7, %v775_v8 }
 0x155   : > { %v1287_v13 = vld [vmem:[%s14272_s30 + $0x1180] sm:$0xff]  ;;  %6927 = vmatpush1.bf16.msra.mxu1 %v11402_v10 }
 0x156   : > { %v791_v14 = vld [vmem:[%s14272_s30 + $0x200] sm:$0xff]  ;;  %v11435_v15 = vcombine.high %v1271_v12, %v1287_v13  ;;  %6887 = vmatprep.subr.bf16.mxu0 %v10923_v11  ;;  %v11434_v20 = vcombine.low %v1271_v12, %v1287_v13 }
 0x157   : > { %v807_v16 = vld [vmem:[%s14272_s30 + $0x280] sm:$0xff]  ;;  %6888 = vmatpush1.bf16.msra.mxu0 %v10922_v19 }
 0x158   : > { %v1303_v17 = vld [vmem:[%s14272_s30 + $0x1200] sm:$0xff]  ;;  %v10955_v21 = vcombine.high %v791_v14, %v807_v16  ;;  %6928 = vmatprep.subr.bf16.mxu1 %v11435_v15  ;;  %v10954_v27 = vcombine.low %v791_v14, %v807_v16 }
 0x159   : > { %v1319_v18 = vld [vmem:[%s14272_s30 + $0x1280] sm:$0xff]  ;;  %6929 = vmatpush1.bf16.msra.mxu1 %v11434_v20 }
 0x15a   : > { %v11467_v22 = vcombine.high %v1303_v17, %v1319_v18  ;;  %v823_v23 = vld [vmem:[%s14272_s30 + $0x300] sm:$0xff]  ;;  %6889 = vmatprep.subr.bf16.mxu0 %v10955_v21  ;;  %v11466_v28 = vcombine.low %v1303_v17, %v1319_v18 }
 0x15b   : > { %v839_v24 = vld [vmem:[%s14272_s30 + $0x380] sm:$0xff]  ;;  %6890 = vmatpush1.bf16.msra.mxu0 %v10954_v27 }
 0x15c   : > { %v1335_v25 = vld [vmem:[%s14272_s30 + $0x1300] sm:$0xff]  ;;  %v10987_v29 = vcombine.high %v823_v23, %v839_v24  ;;  %6930 = vmatprep.subr.bf16.mxu1 %v11467_v22  ;;  %v10986_v35 = vcombine.low %v823_v23, %v839_v24 }
 0x15d   : > { %v1351_v26 = vld [vmem:[%s14272_s30 + $0x1380] sm:$0xff]  ;;  %6931 = vmatpush1.bf16.msra.mxu1 %v11466_v28 }
 0x15e   : > { %v11499_v30 = vcombine.high %v1335_v25, %v1351_v26  ;;  %v855_v31 = vld [vmem:[%s14272_s30 + $0x400] sm:$0xff]  ;;  %6891 = vmatprep.subr.bf16.mxu0 %v10987_v29  ;;  %v11498_v36 = vcombine.low %v1335_v25, %v1351_v26 }
 0x15f   : > { %v871_v32 = vld [vmem:[%s14272_s30 + $0x480] sm:$0xff]  ;;  %6892 = vmatpush1.bf16.msra.mxu0 %v10986_v35 }
 0x160   : > { %v1367_v33 = vld [vmem:[%s14272_s30 + $0x1400] sm:$0xff]  ;;  %v11019_v37 = vcombine.high %v855_v31, %v871_v32  ;;  %6932 = vmatprep.subr.bf16.mxu1 %v11499_v30  ;;  %v11018_v43 = vcombine.low %v855_v31, %v871_v32 }
 0x161   : > { %v1383_v34 = vld [vmem:[%s14272_s30 + $0x1480] sm:$0xff]  ;;  %6933 = vmatpush1.bf16.msra.mxu1 %v11498_v36 }
 0x162   : > { %v11531_v38 = vcombine.high %v1367_v33, %v1383_v34  ;;  %v887_v39 = vld [vmem:[%s14272_s30 + $0x500] sm:$0xff]  ;;  %6893 = vmatprep.subr.bf16.mxu0 %v11019_v37  ;;  %v11530_v44 = vcombine.low %v1367_v33, %v1383_v34 }
 0x163   : > { %v903_v40 = vld [vmem:[%s14272_s30 + $0x580] sm:$0xff]  ;;  %6894 = vmatpush1.bf16.msra.mxu0 %v11018_v43 }
 0x164   : > { %v1399_v41 = vld [vmem:[%s14272_s30 + $0x1500] sm:$0xff]  ;;  %v11051_v45 = vcombine.high %v887_v39, %v903_v40  ;;  %6934 = vmatprep.subr.bf16.mxu1 %v11531_v38  ;;  %v11050_v51 = vcombine.low %v887_v39, %v903_v40 }
 0x165   : > { %v1415_v42 = vld [vmem:[%s14272_s30 + $0x1580] sm:$0xff]  ;;  %6935 = vmatpush1.bf16.msra.mxu1 %v11530_v44 }
 0x166   : > { %v11563_v46 = vcombine.high %v1399_v41, %v1415_v42  ;;  %v919_v47 = vld [vmem:[%s14272_s30 + $0x600] sm:$0xff]  ;;  %6895 = vmatprep.subr.bf16.mxu0 %v11051_v45  ;;  %v11562_v52 = vcombine.low %v1399_v41, %v1415_v42 }
 0x167   : > { %v935_v48 = vld [vmem:[%s14272_s30 + $0x680] sm:$0xff]  ;;  %6896 = vmatpush1.bf16.msra.mxu0 %v11050_v51 }
 0x168   : > { %v1431_v49 = vld [vmem:[%s14272_s30 + $0x1600] sm:$0xff]  ;;  %v11083_v53 = vcombine.high %v919_v47, %v935_v48  ;;  %6936 = vmatprep.subr.bf16.mxu1 %v11563_v46  ;;  %v11082_v63 = vcombine.low %v919_v47, %v935_v48 }
 0x169   : > { %v1447_v50 = vld [vmem:[%s14272_s30 + $0x1680] sm:$0xff]  ;;  %6937 = vmatpush1.bf16.msra.mxu1 %v11562_v52 }
 0x16a   : > { %v14335_v54 = vld [vmem:[%s14302_s28] sm:$0xff]  ;;  %v11595_v56 = vcombine.high %v1431_v49, %v1447_v50  ;;  %6897 = vmatprep.subr.bf16.mxu0 %v11083_v53  ;;  %v11594_v0 = vcombine.low %v1431_v49, %v1447_v50 }
 0x16b   : > { %v951_v57 = vld [vmem:[%s14272_s30 + $0x700] sm:$0xff]  ;;  %v14344_v59 = vcombine.high %v14335_v54, %v14335_v54  ;;  %6898 = vmatpush1.bf16.msra.mxu0 %v11082_v63 }
 0x16c   : > { %v967_v58 = vld [vmem:[%s14272_s30 + $0x780] sm:$0xff]  ;;  %6938 = vmatprep.subr.bf16.mxu1 %v11595_v56 }
 0x16d   : > { %v1463_v61 = vld [vmem:[%s14272_s30 + $0x1700] sm:$0xff]  ;;  %6917 = vmatprep.mubr.bf16.mxu0 %v14344_v59  ;;  %v11115_v1 = vcombine.high %v951_v57, %v967_v58  ;;  %v11114_v7 = vcombine.low %v951_v57, %v967_v58  ;;  %6939 = vmatpush1.bf16.msra.mxu1 %v11594_v0 }
 0x16e   : > { %v1479_v62 = vld [vmem:[%s14272_s30 + $0x1780] sm:$0xff] }
 0x16f   : > { %v11627_v2 = vcombine.high %v1463_v61, %v1479_v62  ;;  %v983_v3 = vld [vmem:[%s14272_s30 + $0x800] sm:$0xff]  ;;  %6899 = vmatprep.subr.bf16.mxu0 %v11115_v1  ;;  %v11626_v8 = vcombine.low %v1463_v61, %v1479_v62 }
 0x170   : > { %v999_v4 = vld [vmem:[%s14272_s30 + $0x880] sm:$0xff]  ;;  %6900 = vmatpush1.bf16.msra.mxu0 %v11114_v7  ;;  %v728_v7 = vld [vmem:[%s14272_s30 + $0x8] sm:$0xff] }
 0x171   : > { %v1495_v5 = vld [vmem:[%s14272_s30 + $0x1800] sm:$0xff]  ;;  %v11147_v9 = vcombine.high %v983_v3, %v999_v4  ;;  %6940 = vmatprep.subr.bf16.mxu1 %v11627_v2  ;;  %v11146_v15 = vcombine.low %v983_v3, %v999_v4 }
 0x172   : > { %v1511_v6 = vld [vmem:[%s14272_s30 + $0x1880] sm:$0xff]  ;;  %6941 = vmatpush1.bf16.msra.mxu1 %v11626_v8  ;;  %v744_v8 = vld [vmem:[%s14272_s30 + $0x88] sm:$0xff] }
 0x173   : > { %v11659_v10 = vcombine.high %v1495_v5, %v1511_v6  ;;  %v1015_v11 = vld [vmem:[%s14272_s30 + $0x900] sm:$0xff]  ;;  %6901 = vmatprep.subr.bf16.mxu0 %v11147_v9  ;;  %v11658_v16 = vcombine.low %v1495_v5, %v1511_v6  ;;  %v1240_v9 = vld [vmem:[%s14272_s30 + $0x1008] sm:$0xff] }
 0x174   : > { %v1031_v12 = vld [vmem:[%s14272_s30 + $0x980] sm:$0xff]  ;;  %6902 = vmatpush1.bf16.msra.mxu0 %v11146_v15  ;;  %v760_v15 = vld [vmem:[%s14272_s30 + $0x108] sm:$0xff] }
 0x175   : > { %v1527_v13 = vld [vmem:[%s14272_s30 + $0x1900] sm:$0xff]  ;;  %v11179_v17 = vcombine.high %v1015_v11, %v1031_v12  ;;  %6942 = vmatprep.subr.bf16.mxu1 %v11659_v10  ;;  %v11178_v23 = vcombine.low %v1015_v11, %v1031_v12  ;;  %v1256_v10 = vld [vmem:[%s14272_s30 + $0x1088] sm:$0xff] }
 0x176   : > { %v1543_v14 = vld [vmem:[%s14272_s30 + $0x1980] sm:$0xff]  ;;  %6943 = vmatpush1.bf16.msra.mxu1 %v11658_v16  ;;  %v776_v16 = vld [vmem:[%s14272_s30 + $0x188] sm:$0xff] }
 0x177   : > { %v11691_v18 = vcombine.high %v1527_v13, %v1543_v14  ;;  %v1047_v19 = vld [vmem:[%s14272_s30 + $0xa00] sm:$0xff]  ;;  %6903 = vmatprep.subr.bf16.mxu0 %v11179_v17  ;;  %v11690_v24 = vcombine.low %v1527_v13, %v1543_v14  ;;  %v10893_v13 = vcombine.high %v728_v7, %v744_v8  ;;  %v11405_v14 = vcombine.high %v1240_v9, %v1256_v10 }
 0x178   : > { %v1063_v20 = vld [vmem:[%s14272_s30 + $0xa80] sm:$0xff]  ;;  %6904 = vmatpush1.bf16.msra.mxu0 %v11178_v23  ;;  %v14394_v17 = vcombine.low %v14335_v54, %v14335_v54  ;;  %v10925_v23 = vcombine.high %v760_v15, %v776_v16  ;;  %v808_v54 = vld [vmem:[%s14272_s30 + $0x288] sm:$0xff] }
 0x179   : > { %v1559_v21 = vld [vmem:[%s14272_s30 + $0x1a00] sm:$0xff]  ;;  %v11211_v25 = vcombine.high %v1047_v19, %v1063_v20  ;;  %6944 = vmatprep.subr.bf16.mxu1 %v11691_v18  ;;  %v11210_v31 = vcombine.low %v1047_v19, %v1063_v20  ;;  %v1272_v18 = vld [vmem:[%s14272_s30 + $0x1108] sm:$0xff]  ;;  %v14400_v20 = vcombine.low %v14338_v55, %v14338_v55  ;;  %v10924_v55 = vcombine.low %v760_v15, %v776_v16 }
 0x17a   : > { %v1575_v22 = vld [vmem:[%s14272_s30 + $0x1a80] sm:$0xff]  ;;  %6945 = vmatpush1.bf16.msra.mxu1 %v11690_v24  ;;  %v1288_v19 = vld [vmem:[%s14272_s30 + $0x1188] sm:$0xff] }
 0x17b   : > { %v11723_v26 = vcombine.high %v1559_v21, %v1575_v22  ;;  %v1079_v27 = vld [vmem:[%s14272_s30 + $0xb00] sm:$0xff]  ;;  %6905 = vmatprep.subr.bf16.mxu0 %v11211_v25  ;;  %v11722_v32 = vcombine.low %v1559_v21, %v1575_v22  ;;  %v10892_v21 = vcombine.low %v728_v7, %v744_v8  ;;  %v11404_v22 = vcombine.low %v1240_v9, %v1256_v10  ;;  %v792_v25 = vld [vmem:[%s14272_s30 + $0x208] sm:$0xff] }
 0x17c   : > { %v1095_v28 = vld [vmem:[%s14272_s30 + $0xb80] sm:$0xff]  ;;  %6906 = vmatpush1.bf16.msra.mxu0 %v11210_v31  ;;  %v11437_v24 = vcombine.high %v1272_v18, %v1288_v19  ;;  %v824_v31 = vld [vmem:[%s14272_s30 + $0x308] sm:$0xff] }
 0x17d   : > { %v1591_v29 = vld [vmem:[%s14272_s30 + $0x1b00] sm:$0xff]  ;;  %v11243_v33 = vcombine.high %v1079_v27, %v1095_v28  ;;  %6946 = vmatprep.subr.bf16.mxu1 %v11723_v26  ;;  %v11242_v39 = vcombine.low %v1079_v27, %v1095_v28  ;;  %v1304_v26 = vld [vmem:[%s14272_s30 + $0x1208] sm:$0xff]  ;;  %v11436_v28 = vcombine.low %v1272_v18, %v1288_v19 }
 0x17e   : > { %v1607_v30 = vld [vmem:[%s14272_s30 + $0x1b80] sm:$0xff]  ;;  %6947 = vmatpush1.bf16.msra.mxu1 %v11722_v32  ;;  %v1320_v27 = vld [vmem:[%s14272_s30 + $0x1288] sm:$0xff] }
 0x17f   : > { %v11755_v34 = vcombine.high %v1591_v29, %v1607_v30  ;;  %v1111_v35 = vld [vmem:[%s14272_s30 + $0xc00] sm:$0xff]  ;;  %6907 = vmatprep.subr.bf16.mxu0 %v11243_v33  ;;  %v11754_v40 = vcombine.low %v1591_v29, %v1607_v30  ;;  %v10957_v29 = vcombine.high %v792_v25, %v808_v54  ;;  %v11469_v30 = vcombine.high %v1304_v26, %v1320_v27  ;;  %v840_v32 = vld [vmem:[%s14272_s30 + $0x388] sm:$0xff] }
 0x180   : > { %v1127_v36 = vld [vmem:[%s14272_s30 + $0xc80] sm:$0xff]  ;;  %6908 = vmatpush1.bf16.msra.mxu0 %v11242_v39  ;;  %v1336_v33 = vld [vmem:[%s14272_s30 + $0x1308] sm:$0xff] }
 0x181   : > { %v1623_v37 = vld [vmem:[%s14272_s30 + $0x1c00] sm:$0xff]  ;;  %v11275_v41 = vcombine.high %v1111_v35, %v1127_v36  ;;  %6948 = vmatprep.subr.bf16.mxu1 %v11755_v34  ;;  %v11274_v47 = vcombine.low %v1111_v35, %v1127_v36  ;;  %v1352_v34 = vld [vmem:[%s14272_s30 + $0x1388] sm:$0xff]  ;;  %v10956_v35 = vcombine.low %v792_v25, %v808_v54  ;;  %v11468_v36 = vcombine.low %v1304_v26, %v1320_v27 }
 0x182   : > { %v1639_v38 = vld [vmem:[%s14272_s30 + $0x1c80] sm:$0xff]  ;;  %6949 = vmatpush1.bf16.msra.mxu1 %v11754_v40  ;;  %v856_v39 = vld [vmem:[%s14272_s30 + $0x408] sm:$0xff] }
 0x183   : > { %v11787_v42 = vcombine.high %v1623_v37, %v1639_v38  ;;  %v1143_v43 = vld [vmem:[%s14272_s30 + $0xd00] sm:$0xff]  ;;  %6909 = vmatprep.subr.bf16.mxu0 %v11275_v41  ;;  %v11786_v48 = vcombine.low %v1623_v37, %v1639_v38  ;;  %v10989_v37 = vcombine.high %v824_v31, %v840_v32  ;;  %v11501_v38 = vcombine.high %v1336_v33, %v1352_v34  ;;  %v872_v40 = vld [vmem:[%s14272_s30 + $0x488] sm:$0xff] }
 0x184   : > { %v1159_v44 = vld [vmem:[%s14272_s30 + $0xd80] sm:$0xff]  ;;  %6910 = vmatpush1.bf16.msra.mxu0 %v11274_v47  ;;  %v1368_v41 = vld [vmem:[%s14272_s30 + $0x1408] sm:$0xff] }
 0x185   : > { %v1655_v45 = vld [vmem:[%s14272_s30 + $0x1d00] sm:$0xff]  ;;  %v11307_v49 = vcombine.high %v1143_v43, %v1159_v44  ;;  %6950 = vmatprep.subr.bf16.mxu1 %v11787_v42  ;;  %v11306_v57 = vcombine.low %v1143_v43, %v1159_v44  ;;  %v1384_v42 = vld [vmem:[%s14272_s30 + $0x1488] sm:$0xff]  ;;  %v10988_v43 = vcombine.low %v824_v31, %v840_v32  ;;  %v11500_v44 = vcombine.low %v1336_v33, %v1352_v34 }
 0x186   : > { %v1671_v46 = vld [vmem:[%s14272_s30 + $0x1d80] sm:$0xff]  ;;  %6951 = vmatpush1.bf16.msra.mxu1 %v11786_v48  ;;  %v888_v47 = vld [vmem:[%s14272_s30 + $0x508] sm:$0xff] }
 0x187   : > { %v11819_v50 = vcombine.high %v1655_v45, %v1671_v46  ;;  %v1175_v51 = vld [vmem:[%s14272_s30 + $0xe00] sm:$0xff]  ;;  %6911 = vmatprep.subr.bf16.mxu0 %v11307_v49  ;;  %v11818_v58 = vcombine.low %v1655_v45, %v1671_v46  ;;  %v11021_v45 = vcombine.high %v856_v39, %v872_v40  ;;  %v11533_v46 = vcombine.high %v1368_v41, %v1384_v42  ;;  %v904_v48 = vld [vmem:[%s14272_s30 + $0x588] sm:$0xff] }
 0x188   : > { %v1191_v52 = vld [vmem:[%s14272_s30 + $0xe80] sm:$0xff]  ;;  %6912 = vmatpush1.bf16.msra.mxu0 %v11306_v57  ;;  %v1400_v49 = vld [vmem:[%s14272_s30 + $0x1508] sm:$0xff] }
 0x189   : > { %v1687_v53 = vld [vmem:[%s14272_s30 + $0x1e00] sm:$0xff]  ;;  %v11339_v61 = vcombine.high %v1175_v51, %v1191_v52  ;;  %6952 = vmatprep.subr.bf16.mxu1 %v11819_v50  ;;  %v11338_v3 = vcombine.low %v1175_v51, %v1191_v52  ;;  %v1416_v50 = vld [vmem:[%s14272_s30 + $0x1588] sm:$0xff]  ;;  %v11020_v51 = vcombine.low %v856_v39, %v872_v40  ;;  %v11532_v52 = vcombine.low %v1368_v41, %v1384_v42 }
 0x18a   : > { %v1703_v56 = vld [vmem:[%s14272_s30 + $0x1e80] sm:$0xff]  ;;  %6953 = vmatpush1.bf16.msra.mxu1 %v11818_v58  ;;  %v920_v57 = vld [vmem:[%s14272_s30 + $0x608] sm:$0xff] }
 0x18b   : > { %v11851_v62 = vcombine.high %v1687_v53, %v1703_v56  ;;  %v1207_v63 = vld [vmem:[%s14272_s30 + $0xf00] sm:$0xff]  ;;  %6913 = vmatprep.subr.bf16.mxu0 %v11339_v61  ;;  %v11850_v4 = vcombine.low %v1687_v53, %v1703_v56  ;;  %v11053_v53 = vcombine.high %v888_v47, %v904_v48  ;;  %v11565_v56 = vcombine.high %v1400_v49, %v1416_v50  ;;  %v936_v58 = vld [vmem:[%s14272_s30 + $0x688] sm:$0xff] }
 0x18c   : > { %v1223_v0 = vld [vmem:[%s14272_s30 + $0xf80] sm:$0xff]  ;;  %6914 = vmatpush1.bf16.msra.mxu0 %v11338_v3  ;;  %v1432_v61 = vld [vmem:[%s14272_s30 + $0x1608] sm:$0xff]  ;;  %v11084_v7 = vcombine.low %v920_v57, %v936_v58 }
 0x18d   : > { %v1719_v1 = vld [vmem:[%s14272_s30 + $0x1f00] sm:$0xff]  ;;  %v11371_v5 = vcombine.high %v1207_v63, %v1223_v0  ;;  %6954 = vmatprep.subr.bf16.mxu1 %v11851_v62  ;;  %v11370_v11 = vcombine.low %v1207_v63, %v1223_v0  ;;  %v1448_v62 = vld [vmem:[%s14272_s30 + $0x1688] sm:$0xff]  ;;  %v11052_v63 = vcombine.low %v888_v47, %v904_v48  ;;  %v11564_v0 = vcombine.low %v1400_v49, %v1416_v50 }
 0x18e   : > { %v1735_v2 = vld [vmem:[%s14272_s30 + $0x1f80] sm:$0xff]  ;;  %6955 = vmatpush1.bf16.msra.mxu1 %v11850_v4  ;;  %v952_v3 = vld [vmem:[%s14272_s30 + $0x708] sm:$0xff]  ;;  %v11596_v8 = vcombine.low %v1432_v61, %v1448_v62 }
 0x18f   : > { %v11883_v6 = vcombine.high %v1719_v1, %v1735_v2  ;;  %6915 = vmatprep.subr.bf16.mxu0 %v11371_v5  ;;  %v11882_v12 = vcombine.low %v1719_v1, %v1735_v2  ;;  %v11085_v1 = vcombine.high %v920_v57, %v936_v58  ;;  %v11597_v2 = vcombine.high %v1432_v61, %v1448_v62  ;;  %v968_v4 = vld [vmem:[%s14272_s30 + $0x788] sm:$0xff] }
 0x190   : > { %6916 = vmatpush1.bf16.msra.mxu0 %v11370_v11  ;;  %v1464_v5 = vld [vmem:[%s14272_s30 + $0x1708] sm:$0xff]  ;;  %v11117_v9 = vcombine.high %v952_v3, %v968_v4  ;;  %v11116_v15 = vcombine.low %v952_v3, %v968_v4 }
 0x191   : > { %6956 = vmatprep.subr.bf16.mxu1 %v11883_v6  ;;  %6967 = vmatprep.subr.bf16.mxu0 %v10893_v13  ;;  %v1480_v6 = vld [vmem:[%s14272_s30 + $0x1788] sm:$0xff] }
 0x192   : > { %6957 = vmatpush1.bf16.msra.mxu1 %v11882_v12  ;;  %v11629_v10 = vcombine.high %v1464_v5, %v1480_v6  ;;  %v984_v11 = vld [vmem:[%s14272_s30 + $0x808] sm:$0xff]  ;;  %v11628_v16 = vcombine.low %v1464_v5, %v1480_v6 }
 0x193   : > { %7008 = vmatprep.subr.bf16.mxu1 %v11405_v14  ;;  %6918 = vmatmul.mubr.bf16.vlgmr.msra.gmra.mrb[0].mxu0 %v14394_v17  ;;  %v1000_v12 = vld [vmem:[%s14272_s30 + $0x888] sm:$0xff] }
 0x194   : > { %6968 = vmatpush1.bf16.msra.mxu0 %v10892_v21  ;;  %6999 = vmatprep.mubr.bf16.mxu0 %v14344_v59  ;;  %v1496_v13 = vld [vmem:[%s14272_s30 + $0x1808] sm:$0xff]  ;;  %v11149_v18 = vcombine.high %v984_v11, %v1000_v12  ;;  %v11148_v25 = vcombine.low %v984_v11, %v1000_v12 }
 0x195   : > { %6959 = vmatmul.mubr.bf16.vlgmr.msra.gmra.mrb[0].mxu1 %v14400_v20  ;;  %6969 = vmatprep.subr.bf16.mxu0 %v10925_v23  ;;  %v1512_v14 = vld [vmem:[%s14272_s30 + $0x1888] sm:$0xff] }
 0x196   : > { %7009 = vmatpush1.bf16.msra.mxu1 %v11404_v22  ;;  %7040 = vmatprep.mubr.bf16.mxu1 %v14348_v60  ;;  %v11661_v19 = vcombine.high %v1496_v13, %v1512_v14  ;;  %v1016_v21 = vld [vmem:[%s14272_s30 + $0x908] sm:$0xff]  ;;  %v11660_v54 = vcombine.low %v1496_v13, %v1512_v14 }
 0x197   : > { %7010 = vmatprep.subr.bf16.mxu1 %v11437_v24  ;;  %v1032_v22 = vld [vmem:[%s14272_s30 + $0x988] sm:$0xff] }
 0x198   : > { %6970 = vmatpush1.bf16.msra.mxu0 %v10924_v55  ;;  %v1528_v23 = vld [vmem:[%s14272_s30 + $0x1908] sm:$0xff]  ;;  %v11181_v26 = vcombine.high %v1016_v21, %v1032_v22  ;;  %v11180_v31 = vcombine.low %v1016_v21, %v1032_v22 }
 0x199   : > { %6971 = vmatprep.subr.bf16.mxu0 %v10957_v29  ;;  %v1544_v24 = vld [vmem:[%s14272_s30 + $0x1988] sm:$0xff] }
 0x19a   : > { %7011 = vmatpush1.bf16.msra.mxu1 %v11436_v28  ;;  %v11693_v27 = vcombine.high %v1528_v23, %v1544_v24  ;;  %v1048_v55 = vld [vmem:[%s14272_s30 + $0xa08] sm:$0xff]  ;;  %v11692_v32 = vcombine.low %v1528_v23, %v1544_v24 }
 0x19b   : > { %7012 = vmatprep.subr.bf16.mxu1 %v11469_v30  ;;  %v1064_v28 = vld [vmem:[%s14272_s30 + $0xa88] sm:$0xff] }
 0x19c   : > { %6972 = vmatpush1.bf16.msra.mxu0 %v10956_v35  ;;  %v1560_v29 = vld [vmem:[%s14272_s30 + $0x1a08] sm:$0xff]  ;;  %v11213_v33 = vcombine.high %v1048_v55, %v1064_v28  ;;  %v11212_v39 = vcombine.low %v1048_v55, %v1064_v28 }
 0x19d   : > { %6973 = vmatprep.subr.bf16.mxu0 %v10989_v37  ;;  %v1576_v30 = vld [vmem:[%s14272_s30 + $0x1a88] sm:$0xff] }
 0x19e   : > { %7013 = vmatpush1.bf16.msra.mxu1 %v11468_v36  ;;  %v11725_v34 = vcombine.high %v1560_v29, %v1576_v30  ;;  %v1080_v35 = vld [vmem:[%s14272_s30 + $0xb08] sm:$0xff]  ;;  %v11724_v40 = vcombine.low %v1560_v29, %v1576_v30 }
 0x19f   : > { %7014 = vmatprep.subr.bf16.mxu1 %v11501_v38  ;;  %v1096_v36 = vld [vmem:[%s14272_s30 + $0xb88] sm:$0xff] }
 0x1a0   : > { %6974 = vmatpush1.bf16.msra.mxu0 %v10988_v43  ;;  %v1592_v37 = vld [vmem:[%s14272_s30 + $0x1b08] sm:$0xff]  ;;  %v11245_v41 = vcombine.high %v1080_v35, %v1096_v36  ;;  %v11244_v47 = vcombine.low %v1080_v35, %v1096_v36 }
 0x1a1   : > { %6975 = vmatprep.subr.bf16.mxu0 %v11021_v45  ;;  %v1608_v38 = vld [vmem:[%s14272_s30 + $0x1b88] sm:$0xff] }
 0x1a2   : > { %7015 = vmatpush1.bf16.msra.mxu1 %v11500_v44  ;;  %v11757_v42 = vcombine.high %v1592_v37, %v1608_v38  ;;  %v1112_v43 = vld [vmem:[%s14272_s30 + $0xc08] sm:$0xff]  ;;  %v11756_v48 = vcombine.low %v1592_v37, %v1608_v38 }
 0x1a3   : > { %7016 = vmatprep.subr.bf16.mxu1 %v11533_v46  ;;  %v1128_v44 = vld [vmem:[%s14272_s30 + $0xc88] sm:$0xff] }
 0x1a4   : > { %6976 = vmatpush1.bf16.msra.mxu0 %v11020_v51  ;;  %v1624_v45 = vld [vmem:[%s14272_s30 + $0x1c08] sm:$0xff]  ;;  %v11277_v49 = vcombine.high %v1112_v43, %v1128_v44  ;;  %v11276_v57 = vcombine.low %v1112_v43, %v1128_v44 }
 0x1a5   : > { %6977 = vmatprep.subr.bf16.mxu0 %v11053_v53  ;;  %v1640_v46 = vld [vmem:[%s14272_s30 + $0x1c88] sm:$0xff] }
 0x1a6   : > { %7017 = vmatpush1.bf16.msra.mxu1 %v11532_v52  ;;  %v11789_v50 = vcombine.high %v1624_v45, %v1640_v46  ;;  %v1144_v51 = vld [vmem:[%s14272_s30 + $0xd08] sm:$0xff]  ;;  %v11788_v58 = vcombine.low %v1624_v45, %v1640_v46 }
 0x1a7   : > { %7018 = vmatprep.subr.bf16.mxu1 %v11565_v56  ;;  %v1160_v52 = vld [vmem:[%s14272_s30 + $0xd88] sm:$0xff] }
 0x1a8   : > { %6978 = vmatpush1.bf16.msra.mxu0 %v11052_v63  ;;  %v1656_v53 = vld [vmem:[%s14272_s30 + $0x1d08] sm:$0xff]  ;;  %v11309_v61 = vcombine.high %v1144_v51, %v1160_v52  ;;  %v11308_v3 = vcombine.low %v1144_v51, %v1160_v52 }
 0x1a9   : > { %6979 = vmatprep.subr.bf16.mxu0 %v11085_v1  ;;  %v1672_v56 = vld [vmem:[%s14272_s30 + $0x1d88] sm:$0xff] }
 0x1aa   : > { %7019 = vmatpush1.bf16.msra.mxu1 %v11564_v0  ;;  %v11821_v62 = vcombine.high %v1656_v53, %v1672_v56  ;;  %v1176_v63 = vld [vmem:[%s14272_s30 + $0xe08] sm:$0xff]  ;;  %v11820_v4 = vcombine.low %v1656_v53, %v1672_v56 }
 0x1ab   : > { %7020 = vmatprep.subr.bf16.mxu1 %v11597_v2  ;;  %v1192_v0 = vld [vmem:[%s14272_s30 + $0xe88] sm:$0xff] }
 0x1ac   : > { %6980 = vmatpush1.bf16.msra.mxu0 %v11084_v7  ;;  %v1688_v1 = vld [vmem:[%s14272_s30 + $0x1e08] sm:$0xff]  ;;  %v11341_v5 = vcombine.high %v1176_v63, %v1192_v0  ;;  %v11340_v11 = vcombine.low %v1176_v63, %v1192_v0 }
 0x1ad   : > { %6981 = vmatprep.subr.bf16.mxu0 %v11117_v9  ;;  %v1704_v2 = vld [vmem:[%s14272_s30 + $0x1e88] sm:$0xff] }
 0x1ae   : > { %7021 = vmatpush1.bf16.msra.mxu1 %v11596_v8  ;;  %v11853_v6 = vcombine.high %v1688_v1, %v1704_v2  ;;  %v1208_v7 = vld [vmem:[%s14272_s30 + $0xf08] sm:$0xff]  ;;  %v11852_v12 = vcombine.low %v1688_v1, %v1704_v2 }
 0x1af   : > { %7022 = vmatprep.subr.bf16.mxu1 %v11629_v10  ;;  %v1224_v8 = vld [vmem:[%s14272_s30 + $0xf88] sm:$0xff] }
 0x1b0   : > { %6982 = vmatpush1.bf16.msra.mxu0 %v11116_v15  ;;  %v1720_v9 = vld [vmem:[%s14272_s30 + $0x1f08] sm:$0xff]  ;;  %v11373_v13 = vcombine.high %v1208_v7, %v1224_v8  ;;  %v729_v15 = vld [vmem:[%s14272_s30 + $0x10] sm:$0xff]  ;;  %v11372_v21 = vcombine.low %v1208_v7, %v1224_v8 }
 0x1b1   : > { %6983 = vmatprep.subr.bf16.mxu0 %v11149_v18  ;;  %v1736_v10 = vld [vmem:[%s14272_s30 + $0x1f88] sm:$0xff]  ;;  %v1241_v18 = vld [vmem:[%s14272_s30 + $0x1010] sm:$0xff] }
 0x1b2   : > { %7023 = vmatpush1.bf16.msra.mxu1 %v11628_v16  ;;  %v11885_v14 = vcombine.high %v1720_v9, %v1736_v10  ;;  %v745_v16 = vld [vmem:[%s14272_s30 + $0x90] sm:$0xff]  ;;  %v11884_v22 = vcombine.low %v1720_v9, %v1736_v10 }
 0x1b3   : > { %7024 = vmatprep.subr.bf16.mxu1 %v11661_v19  ;;  %v1257_v19 = vld [vmem:[%s14272_s30 + $0x1090] sm:$0xff]  ;;  %v10895_v23 = vcombine.high %v729_v15, %v745_v16  ;;  %v10894_v55 = vcombine.low %v729_v15, %v745_v16 }
 0x1b4   : > { %6984 = vmatpush1.bf16.msra.mxu0 %v11148_v25  ;;  %v11407_v24 = vcombine.high %v1241_v18, %v1257_v19  ;;  %v761_v25 = vld [vmem:[%s14272_s30 + $0x110] sm:$0xff]  ;;  %v11406_v28 = vcombine.low %v1241_v18, %v1257_v19 }
 0x1b5   : > { %6985 = vmatprep.subr.bf16.mxu0 %v11181_v26  ;;  %v1273_v26 = vld [vmem:[%s14272_s30 + $0x1110] sm:$0xff] }
 0x1b6   : > { %7025 = vmatpush1.bf16.msra.mxu1 %v11660_v54  ;;  %v777_v54 = vld [vmem:[%s14272_s30 + $0x190] sm:$0xff] }
 0x1b7   : > { %7026 = vmatprep.subr.bf16.mxu1 %v11693_v27  ;;  %v1289_v27 = vld [vmem:[%s14272_s30 + $0x1190] sm:$0xff]  ;;  %v10927_v29 = vcombine.high %v761_v25, %v777_v54  ;;  %v10926_v35 = vcombine.low %v761_v25, %v777_v54 }
 0x1b8   : > { %6986 = vmatpush1.bf16.msra.mxu0 %v11180_v31  ;;  %v11439_v30 = vcombine.high %v1273_v26, %v1289_v27  ;;  %v793_v31 = vld [vmem:[%s14272_s30 + $0x210] sm:$0xff]  ;;  %v11438_v36 = vcombine.low %v1273_v26, %v1289_v27 }
 0x1b9   : > { %6987 = vmatprep.subr.bf16.mxu0 %v11213_v33  ;;  %v1305_v33 = vld [vmem:[%s14272_s30 + $0x1210] sm:$0xff] }
 0x1ba   : > { %7027 = vmatpush1.bf16.msra.mxu1 %v11692_v32  ;;  %v809_v32 = vld [vmem:[%s14272_s30 + $0x290] sm:$0xff] }
 0x1bb   : > { %7028 = vmatprep.subr.bf16.mxu1 %v11725_v34  ;;  %v1321_v34 = vld [vmem:[%s14272_s30 + $0x1290] sm:$0xff]  ;;  %v10959_v37 = vcombine.high %v793_v31, %v809_v32  ;;  %v10958_v43 = vcombine.low %v793_v31, %v809_v32 }
 0x1bc   : > { %6988 = vmatpush1.bf16.msra.mxu0 %v11212_v39  ;;  %v11471_v38 = vcombine.high %v1305_v33, %v1321_v34  ;;  %v825_v39 = vld [vmem:[%s14272_s30 + $0x310] sm:$0xff]  ;;  %v11470_v44 = vcombine.low %v1305_v33, %v1321_v34 }
 0x1bd   : > { %6989 = vmatprep.subr.bf16.mxu0 %v11245_v41  ;;  %v1337_v41 = vld [vmem:[%s14272_s30 + $0x1310] sm:$0xff] }
 0x1be   : > { %7029 = vmatpush1.bf16.msra.mxu1 %v11724_v40  ;;  %v841_v40 = vld [vmem:[%s14272_s30 + $0x390] sm:$0xff] }
 0x1bf   : > { %7030 = vmatprep.subr.bf16.mxu1 %v11757_v42  ;;  %v1353_v42 = vld [vmem:[%s14272_s30 + $0x1390] sm:$0xff]  ;;  %v10991_v45 = vcombine.high %v825_v39, %v841_v40  ;;  %v10990_v51 = vcombine.low %v825_v39, %v841_v40 }
 0x1c0   : > { %6990 = vmatpush1.bf16.msra.mxu0 %v11244_v47  ;;  %v11503_v46 = vcombine.high %v1337_v41, %v1353_v42  ;;  %v857_v47 = vld [vmem:[%s14272_s30 + $0x410] sm:$0xff]  ;;  %v11502_v52 = vcombine.low %v1337_v41, %v1353_v42 }
 0x1c1   : > { %6991 = vmatprep.subr.bf16.mxu0 %v11277_v49  ;;  %v1369_v49 = vld [vmem:[%s14272_s30 + $0x1410] sm:$0xff] }
 0x1c2   : > { %7031 = vmatpush1.bf16.msra.mxu1 %v11756_v48  ;;  %v873_v48 = vld [vmem:[%s14272_s30 + $0x490] sm:$0xff] }
 0x1c3   : > { %7032 = vmatprep.subr.bf16.mxu1 %v11789_v50  ;;  %v1385_v50 = vld [vmem:[%s14272_s30 + $0x1490] sm:$0xff]  ;;  %v11023_v53 = vcombine.high %v857_v47, %v873_v48  ;;  %v11022_v63 = vcombine.low %v857_v47, %v873_v48 }
 0x1c4   : > { %6992 = vmatpush1.bf16.msra.mxu0 %v11276_v57  ;;  %v11535_v56 = vcombine.high %v1369_v49, %v1385_v50  ;;  %v889_v57 = vld [vmem:[%s14272_s30 + $0x510] sm:$0xff]  ;;  %v11534_v0 = vcombine.low %v1369_v49, %v1385_v50 }
 0x1c5   : > { %6993 = vmatprep.subr.bf16.mxu0 %v11309_v61  ;;  %v1401_v61 = vld [vmem:[%s14272_s30 + $0x1510] sm:$0xff] }
 0x1c6   : > { %7033 = vmatpush1.bf16.msra.mxu1 %v11788_v58  ;;  %v905_v58 = vld [vmem:[%s14272_s30 + $0x590] sm:$0xff] }
 0x1c7   : > { %7034 = vmatprep.subr.bf16.mxu1 %v11821_v62  ;;  %v1417_v62 = vld [vmem:[%s14272_s30 + $0x1590] sm:$0xff]  ;;  %v11055_v1 = vcombine.high %v889_v57, %v905_v58  ;;  %v11054_v7 = vcombine.low %v889_v57, %v905_v58 }
 0x1c8   : > { %6994 = vmatpush1.bf16.msra.mxu0 %v11308_v3  ;;  %v11567_v2 = vcombine.high %v1401_v61, %v1417_v62  ;;  %v921_v3 = vld [vmem:[%s14272_s30 + $0x610] sm:$0xff]  ;;  %v11566_v8 = vcombine.low %v1401_v61, %v1417_v62 }
 0x1c9   : > { %6995 = vmatprep.subr.bf16.mxu0 %v11341_v5  ;;  %v1433_v5 = vld [vmem:[%s14272_s30 + $0x1610] sm:$0xff] }
 0x1ca   : > { %7035 = vmatpush1.bf16.msra.mxu1 %v11820_v4  ;;  %v937_v4 = vld [vmem:[%s14272_s30 + $0x690] sm:$0xff] }
 0x1cb   : > { %7036 = vmatprep.subr.bf16.mxu1 %v11853_v6  ;;  %v1449_v6 = vld [vmem:[%s14272_s30 + $0x1690] sm:$0xff]  ;;  %v11087_v9 = vcombine.high %v921_v3, %v937_v4  ;;  %v11086_v15 = vcombine.low %v921_v3, %v937_v4 }
 0x1cc   : > { %6996 = vmatpush1.bf16.msra.mxu0 %v11340_v11  ;;  %v11599_v10 = vcombine.high %v1433_v5, %v1449_v6  ;;  %v953_v11 = vld [vmem:[%s14272_s30 + $0x710] sm:$0xff]  ;;  %v11598_v16 = vcombine.low %v1433_v5, %v1449_v6 }
 0x1cd   : > { %6997 = vmatprep.subr.bf16.mxu0 %v11373_v13  ;;  %v1465_v13 = vld [vmem:[%s14272_s30 + $0x1710] sm:$0xff] }
 0x1ce   : > { %7037 = vmatpush1.bf16.msra.mxu1 %v11852_v12  ;;  %v969_v12 = vld [vmem:[%s14272_s30 + $0x790] sm:$0xff] }
 0x1cf   : > { %7038 = vmatprep.subr.bf16.mxu1 %v11885_v14  ;;  %v1481_v14 = vld [vmem:[%s14272_s30 + $0x1790] sm:$0xff]  ;;  %v11119_v18 = vcombine.high %v953_v11, %v969_v12  ;;  %v11118_v25 = vcombine.low %v953_v11, %v969_v12 }
 0x1d0   : > { %6998 = vmatpush1.bf16.msra.mxu0 %v11372_v21  ;;  %v11631_v19 = vcombine.high %v1465_v13, %v1481_v14  ;;  %v985_v21 = vld [vmem:[%s14272_s30 + $0x810] sm:$0xff]  ;;  %v11630_v54 = vcombine.low %v1465_v13, %v1481_v14 }
 0x1d1   : > { %7049 = vmatprep.subr.bf16.mxu0 %v10895_v23  ;;  %v1497_v23 = vld [vmem:[%s14272_s30 + $0x1810] sm:$0xff] }
 0x1d2   : > { %7039 = vmatpush1.bf16.msra.mxu1 %v11884_v22  ;;  %v1001_v22 = vld [vmem:[%s14272_s30 + $0x890] sm:$0xff] }
 0x1d3   : > { %7090 = vmatprep.subr.bf16.mxu1 %v11407_v24  ;;  %7000 = vmatmul.mubr.bf16.vlgmr.msra.gmra.mrb[4].mxu0 %v14394_v17  ;;  %v1513_v24 = vld [vmem:[%s14272_s30 + $0x1890] sm:$0xff]  ;;  %v11151_v26 = vcombine.high %v985_v21, %v1001_v22  ;;  %v11150_v31 = vcombine.low %v985_v21, %v1001_v22 }
 0x1d4   : > { %7050 = vmatpush1.bf16.msra.mxu0 %v10894_v55  ;;  %7081 = vmatprep.mubr.bf16.mxu0 %v14344_v59  ;;  %v11663_v27 = vcombine.high %v1497_v23, %v1513_v24  ;;  %v1017_v55 = vld [vmem:[%s14272_s30 + $0x910] sm:$0xff]  ;;  %v11662_v32 = vcombine.low %v1497_v23, %v1513_v24 }
 0x1d5   : > { %7041 = vmatmul.mubr.bf16.vlgmr.msra.gmra.mrb[4].mxu1 %v14400_v20  ;;  %7051 = vmatprep.subr.bf16.mxu0 %v10927_v29  ;;  %v1529_v29 = vld [vmem:[%s14272_s30 + $0x1910] sm:$0xff] }
 0x1d6   : > { %7091 = vmatpush1.bf16.msra.mxu1 %v11406_v28  ;;  %7122 = vmatprep.mubr.bf16.mxu1 %v14348_v60  ;;  %v1033_v28 = vld [vmem:[%s14272_s30 + $0x990] sm:$0xff] }
 0x1d7   : > { %7092 = vmatprep.subr.bf16.mxu1 %v11439_v30  ;;  %v1545_v30 = vld [vmem:[%s14272_s30 + $0x1990] sm:$0xff]  ;;  %v11183_v33 = vcombine.high %v1017_v55, %v1033_v28  ;;  %v11182_v39 = vcombine.low %v1017_v55, %v1033_v28 }
 0x1d8   : > { %7052 = vmatpush1.bf16.msra.mxu0 %v10926_v35  ;;  %v11695_v34 = vcombine.high %v1529_v29, %v1545_v30  ;;  %v1049_v35 = vld [vmem:[%s14272_s30 + $0xa10] sm:$0xff]  ;;  %v11694_v40 = vcombine.low %v1529_v29, %v1545_v30 }
 0x1d9   : > { %7053 = vmatprep.subr.bf16.mxu0 %v10959_v37  ;;  %v1561_v37 = vld [vmem:[%s14272_s30 + $0x1a10] sm:$0xff] }
 0x1da   : > { %7093 = vmatpush1.bf16.msra.mxu1 %v11438_v36  ;;  %v1065_v36 = vld [vmem:[%s14272_s30 + $0xa90] sm:$0xff] }
 0x1db   : > { %7094 = vmatprep.subr.bf16.mxu1 %v11471_v38  ;;  %v1577_v38 = vld [vmem:[%s14272_s30 + $0x1a90] sm:$0xff]  ;;  %v11215_v41 = vcombine.high %v1049_v35, %v1065_v36  ;;  %v11214_v47 = vcombine.low %v1049_v35, %v1065_v36 }
 0x1dc   : > { %7054 = vmatpush1.bf16.msra.mxu0 %v10958_v43  ;;  %v11727_v42 = vcombine.high %v1561_v37, %v1577_v38  ;;  %v1081_v43 = vld [vmem:[%s14272_s30 + $0xb10] sm:$0xff]  ;;  %v11726_v48 = vcombine.low %v1561_v37, %v1577_v38 }
 0x1dd   : > { %7055 = vmatprep.subr.bf16.mxu0 %v10991_v45  ;;  %v1593_v45 = vld [vmem:[%s14272_s30 + $0x1b10] sm:$0xff] }
 0x1de   : > { %7095 = vmatpush1.bf16.msra.mxu1 %v11470_v44  ;;  %v1097_v44 = vld [vmem:[%s14272_s30 + $0xb90] sm:$0xff] }
 0x1df   : > { %7096 = vmatprep.subr.bf16.mxu1 %v11503_v46  ;;  %v1609_v46 = vld [vmem:[%s14272_s30 + $0x1b90] sm:$0xff]  ;;  %v11247_v49 = vcombine.high %v1081_v43, %v1097_v44  ;;  %v11246_v57 = vcombine.low %v1081_v43, %v1097_v44 }
 0x1e0   : > { %7056 = vmatpush1.bf16.msra.mxu0 %v10990_v51  ;;  %v11759_v50 = vcombine.high %v1593_v45, %v1609_v46  ;;  %v1113_v51 = vld [vmem:[%s14272_s30 + $0xc10] sm:$0xff]  ;;  %v11758_v58 = vcombine.low %v1593_v45, %v1609_v46 }
 0x1e1   : > { %7057 = vmatprep.subr.bf16.mxu0 %v11023_v53  ;;  %v1625_v53 = vld [vmem:[%s14272_s30 + $0x1c10] sm:$0xff] }
 0x1e2   : > { %7097 = vmatpush1.bf16.msra.mxu1 %v11502_v52  ;;  %v1129_v52 = vld [vmem:[%s14272_s30 + $0xc90] sm:$0xff] }
 0x1e3   : > { %7098 = vmatprep.subr.bf16.mxu1 %v11535_v56  ;;  %v1641_v56 = vld [vmem:[%s14272_s30 + $0x1c90] sm:$0xff]  ;;  %v11279_v61 = vcombine.high %v1113_v51, %v1129_v52  ;;  %v11278_v3 = vcombine.low %v1113_v51, %v1129_v52 }
 0x1e4   : > { %7058 = vmatpush1.bf16.msra.mxu0 %v11022_v63  ;;  %v11791_v62 = vcombine.high %v1625_v53, %v1641_v56  ;;  %v1145_v63 = vld [vmem:[%s14272_s30 + $0xd10] sm:$0xff]  ;;  %v11790_v4 = vcombine.low %v1625_v53, %v1641_v56 }
 0x1e5   : > { %7059 = vmatprep.subr.bf16.mxu0 %v11055_v1  ;;  %v1657_v1 = vld [vmem:[%s14272_s30 + $0x1d10] sm:$0xff] }
 0x1e6   : > { %7099 = vmatpush1.bf16.msra.mxu1 %v11534_v0  ;;  %v1161_v0 = vld [vmem:[%s14272_s30 + $0xd90] sm:$0xff] }
 0x1e7   : > { %7100 = vmatprep.subr.bf16.mxu1 %v11567_v2  ;;  %v1673_v2 = vld [vmem:[%s14272_s30 + $0x1d90] sm:$0xff]  ;;  %v11311_v5 = vcombine.high %v1145_v63, %v1161_v0  ;;  %v11310_v11 = vcombine.low %v1145_v63, %v1161_v0 }
 0x1e8   : > { %7060 = vmatpush1.bf16.msra.mxu0 %v11054_v7  ;;  %v11823_v6 = vcombine.high %v1657_v1, %v1673_v2  ;;  %v1177_v7 = vld [vmem:[%s14272_s30 + $0xe10] sm:$0xff]  ;;  %v11822_v12 = vcombine.low %v1657_v1, %v1673_v2 }
 0x1e9   : > { %7061 = vmatprep.subr.bf16.mxu0 %v11087_v9  ;;  %v1689_v9 = vld [vmem:[%s14272_s30 + $0x1e10] sm:$0xff] }
 0x1ea   : > { %7101 = vmatpush1.bf16.msra.mxu1 %v11566_v8  ;;  %v1193_v8 = vld [vmem:[%s14272_s30 + $0xe90] sm:$0xff] }
 0x1eb   : > { %7102 = vmatprep.subr.bf16.mxu1 %v11599_v10  ;;  %v1705_v10 = vld [vmem:[%s14272_s30 + $0x1e90] sm:$0xff]  ;;  %v11343_v13 = vcombine.high %v1177_v7, %v1193_v8  ;;  %v11342_v21 = vcombine.low %v1177_v7, %v1193_v8 }
 0x1ec   : > { %7062 = vmatpush1.bf16.msra.mxu0 %v11086_v15  ;;  %v11855_v14 = vcombine.high %v1689_v9, %v1705_v10  ;;  %v1209_v15 = vld [vmem:[%s14272_s30 + $0xf10] sm:$0xff]  ;;  %v11854_v22 = vcombine.low %v1689_v9, %v1705_v10 }
 0x1ed   : > { %7063 = vmatprep.subr.bf16.mxu0 %v11119_v18  ;;  %v1721_v18 = vld [vmem:[%s14272_s30 + $0x1f10] sm:$0xff] }
 0x1ee   : > { %7103 = vmatpush1.bf16.msra.mxu1 %v11598_v16  ;;  %v1225_v16 = vld [vmem:[%s14272_s30 + $0xf90] sm:$0xff] }
 0x1ef   : > { %7104 = vmatprep.subr.bf16.mxu1 %v11631_v19  ;;  %v1737_v19 = vld [vmem:[%s14272_s30 + $0x1f90] sm:$0xff]  ;;  %v11375_v23 = vcombine.high %v1209_v15, %v1225_v16  ;;  %v11374_v55 = vcombine.low %v1209_v15, %v1225_v16 }
 0x1f0   : > { %7064 = vmatpush1.bf16.msra.mxu0 %v11118_v25  ;;  %v11887_v24 = vcombine.high %v1721_v18, %v1737_v19  ;;  %v730_v25 = vld [vmem:[%s14272_s30 + $0x18] sm:$0xff]  ;;  %v11886_v28 = vcombine.low %v1721_v18, %v1737_v19 }
 0x1f1   : > { %7065 = vmatprep.subr.bf16.mxu0 %v11151_v26  ;;  %v1242_v26 = vld [vmem:[%s14272_s30 + $0x1018] sm:$0xff] }
 0x1f2   : > { %7105 = vmatpush1.bf16.msra.mxu1 %v11630_v54  ;;  %v746_v54 = vld [vmem:[%s14272_s30 + $0x98] sm:$0xff] }
 0x1f3   : > { %7106 = vmatprep.subr.bf16.mxu1 %v11663_v27  ;;  %v1258_v27 = vld [vmem:[%s14272_s30 + $0x1098] sm:$0xff]  ;;  %v10897_v29 = vcombine.high %v730_v25, %v746_v54  ;;  %v10896_v35 = vcombine.low %v730_v25, %v746_v54 }
 0x1f4   : > { %7066 = vmatpush1.bf16.msra.mxu0 %v11150_v31  ;;  %v11409_v30 = vcombine.high %v1242_v26, %v1258_v27  ;;  %v762_v31 = vld [vmem:[%s14272_s30 + $0x118] sm:$0xff]  ;;  %v11408_v36 = vcombine.low %v1242_v26, %v1258_v27 }
 0x1f5   : > { %7067 = vmatprep.subr.bf16.mxu0 %v11183_v33  ;;  %v1274_v33 = vld [vmem:[%s14272_s30 + $0x1118] sm:$0xff] }
 0x1f6   : > { %7107 = vmatpush1.bf16.msra.mxu1 %v11662_v32  ;;  %v778_v32 = vld [vmem:[%s14272_s30 + $0x198] sm:$0xff] }
 0x1f7   : > { %7108 = vmatprep.subr.bf16.mxu1 %v11695_v34  ;;  %v1290_v34 = vld [vmem:[%s14272_s30 + $0x1198] sm:$0xff]  ;;  %v10929_v37 = vcombine.high %v762_v31, %v778_v32  ;;  %v10928_v43 = vcombine.low %v762_v31, %v778_v32 }
 0x1f8   : > { %7068 = vmatpush1.bf16.msra.mxu0 %v11182_v39  ;;  %v11441_v38 = vcombine.high %v1274_v33, %v1290_v34  ;;  %v794_v39 = vld [vmem:[%s14272_s30 + $0x218] sm:$0xff]  ;;  %v11440_v44 = vcombine.low %v1274_v33, %v1290_v34 }
 0x1f9   : > { %7069 = vmatprep.subr.bf16.mxu0 %v11215_v41  ;;  %v1306_v41 = vld [vmem:[%s14272_s30 + $0x1218] sm:$0xff] }
 0x1fa   : > { %7109 = vmatpush1.bf16.msra.mxu1 %v11694_v40  ;;  %v810_v40 = vld [vmem:[%s14272_s30 + $0x298] sm:$0xff] }
 0x1fb   : > { %7110 = vmatprep.subr.bf16.mxu1 %v11727_v42  ;;  %v1322_v42 = vld [vmem:[%s14272_s30 + $0x1298] sm:$0xff]  ;;  %v10961_v45 = vcombine.high %v794_v39, %v810_v40  ;;  %v10960_v51 = vcombine.low %v794_v39, %v810_v40 }
 0x1fc   : > { %7070 = vmatpush1.bf16.msra.mxu0 %v11214_v47  ;;  %v11473_v46 = vcombine.high %v1306_v41, %v1322_v42  ;;  %v826_v47 = vld [vmem:[%s14272_s30 + $0x318] sm:$0xff]  ;;  %v11472_v52 = vcombine.low %v1306_v41, %v1322_v42 }
 0x1fd   : > { %7071 = vmatprep.subr.bf16.mxu0 %v11247_v49  ;;  %v1338_v49 = vld [vmem:[%s14272_s30 + $0x1318] sm:$0xff] }
 0x1fe   : > { %7111 = vmatpush1.bf16.msra.mxu1 %v11726_v48  ;;  %v842_v48 = vld [vmem:[%s14272_s30 + $0x398] sm:$0xff] }
 0x1ff   : > { %7112 = vmatprep.subr.bf16.mxu1 %v11759_v50  ;;  %v1354_v50 = vld [vmem:[%s14272_s30 + $0x1398] sm:$0xff]  ;;  %v10993_v53 = vcombine.high %v826_v47, %v842_v48  ;;  %v10992_v63 = vcombine.low %v826_v47, %v842_v48 }
 0x200   : > { %7072 = vmatpush1.bf16.msra.mxu0 %v11246_v57  ;;  %v11505_v56 = vcombine.high %v1338_v49, %v1354_v50  ;;  %v858_v57 = vld [vmem:[%s14272_s30 + $0x418] sm:$0xff]  ;;  %v11504_v0 = vcombine.low %v1338_v49, %v1354_v50 }
 0x201   : > { %7073 = vmatprep.subr.bf16.mxu0 %v11279_v61  ;;  %v1370_v61 = vld [vmem:[%s14272_s30 + $0x1418] sm:$0xff] }
 0x202   : > { %7113 = vmatpush1.bf16.msra.mxu1 %v11758_v58  ;;  %v874_v58 = vld [vmem:[%s14272_s30 + $0x498] sm:$0xff] }
 0x203   : > { %7114 = vmatprep.subr.bf16.mxu1 %v11791_v62  ;;  %v1386_v62 = vld [vmem:[%s14272_s30 + $0x1498] sm:$0xff]  ;;  %v11025_v1 = vcombine.high %v858_v57, %v874_v58  ;;  %v11024_v7 = vcombine.low %v858_v57, %v874_v58 }
 0x204   : > { %7074 = vmatpush1.bf16.msra.mxu0 %v11278_v3  ;;  %v11537_v2 = vcombine.high %v1370_v61, %v1386_v62  ;;  %v890_v3 = vld [vmem:[%s14272_s30 + $0x518] sm:$0xff]  ;;  %v11536_v8 = vcombine.low %v1370_v61, %v1386_v62 }
 0x205   : > { %7075 = vmatprep.subr.bf16.mxu0 %v11311_v5  ;;  %v1402_v5 = vld [vmem:[%s14272_s30 + $0x1518] sm:$0xff] }
 0x206   : > { %7115 = vmatpush1.bf16.msra.mxu1 %v11790_v4  ;;  %v906_v4 = vld [vmem:[%s14272_s30 + $0x598] sm:$0xff] }
 0x207   : > { %7116 = vmatprep.subr.bf16.mxu1 %v11823_v6  ;;  %v1418_v6 = vld [vmem:[%s14272_s30 + $0x1598] sm:$0xff]  ;;  %v11057_v9 = vcombine.high %v890_v3, %v906_v4  ;;  %v11056_v15 = vcombine.low %v890_v3, %v906_v4 }
 0x208   : > { %7076 = vmatpush1.bf16.msra.mxu0 %v11310_v11  ;;  %v11569_v10 = vcombine.high %v1402_v5, %v1418_v6  ;;  %v922_v11 = vld [vmem:[%s14272_s30 + $0x618] sm:$0xff]  ;;  %v11568_v16 = vcombine.low %v1402_v5, %v1418_v6 }
 0x209   : > { %7077 = vmatprep.subr.bf16.mxu0 %v11343_v13  ;;  %v1434_v13 = vld [vmem:[%s14272_s30 + $0x1618] sm:$0xff] }
 0x20a   : > { %7117 = vmatpush1.bf16.msra.mxu1 %v11822_v12  ;;  %v938_v12 = vld [vmem:[%s14272_s30 + $0x698] sm:$0xff] }
 0x20b   : > { %7118 = vmatprep.subr.bf16.mxu1 %v11855_v14  ;;  %v1450_v14 = vld [vmem:[%s14272_s30 + $0x1698] sm:$0xff]  ;;  %v11089_v18 = vcombine.high %v922_v11, %v938_v12  ;;  %v11088_v25 = vcombine.low %v922_v11, %v938_v12 }
 0x20c   : > { %7078 = vmatpush1.bf16.msra.mxu0 %v11342_v21  ;;  %v11601_v19 = vcombine.high %v1434_v13, %v1450_v14  ;;  %v954_v21 = vld [vmem:[%s14272_s30 + $0x718] sm:$0xff]  ;;  %v11600_v54 = vcombine.low %v1434_v13, %v1450_v14 }
 0x20d   : > { %7079 = vmatprep.subr.bf16.mxu0 %v11375_v23  ;;  %v1466_v23 = vld [vmem:[%s14272_s30 + $0x1718] sm:$0xff] }
 0x20e   : > { %7119 = vmatpush1.bf16.msra.mxu1 %v11854_v22  ;;  %v970_v22 = vld [vmem:[%s14272_s30 + $0x798] sm:$0xff] }
 0x20f   : > { %7120 = vmatprep.subr.bf16.mxu1 %v11887_v24  ;;  %v1482_v24 = vld [vmem:[%s14272_s30 + $0x1798] sm:$0xff]  ;;  %v11121_v26 = vcombine.high %v954_v21, %v970_v22  ;;  %v11120_v31 = vcombine.low %v954_v21, %v970_v22 }
 0x210   : > { %7080 = vmatpush1.bf16.msra.mxu0 %v11374_v55  ;;  %v11633_v27 = vcombine.high %v1466_v23, %v1482_v24  ;;  %v986_v55 = vld [vmem:[%s14272_s30 + $0x818] sm:$0xff]  ;;  %v11632_v32 = vcombine.low %v1466_v23, %v1482_v24 }
 0x211   : > { %7131 = vmatprep.subr.bf16.mxu0 %v10897_v29  ;;  %v1498_v29 = vld [vmem:[%s14272_s30 + $0x1818] sm:$0xff] }
 0x212   : > { %7121 = vmatpush1.bf16.msra.mxu1 %v11886_v28  ;;  %v1002_v28 = vld [vmem:[%s14272_s30 + $0x898] sm:$0xff] }
 0x213   : > { %7172 = vmatprep.subr.bf16.mxu1 %v11409_v30  ;;  %7082 = vmatmul.mubr.bf16.vlgmr.msra.gmra.mrb[8].mxu0 %v14394_v17  ;;  %v1514_v30 = vld [vmem:[%s14272_s30 + $0x1898] sm:$0xff]  ;;  %v11153_v33 = vcombine.high %v986_v55, %v1002_v28  ;;  %v11152_v39 = vcombine.low %v986_v55, %v1002_v28 }
 0x214   : > { %7132 = vmatpush1.bf16.msra.mxu0 %v10896_v35  ;;  %7163 = vmatprep.mubr.bf16.mxu0 %v14344_v59  ;;  %v11665_v34 = vcombine.high %v1498_v29, %v1514_v30  ;;  %v1018_v35 = vld [vmem:[%s14272_s30 + $0x918] sm:$0xff]  ;;  %v11664_v40 = vcombine.low %v1498_v29, %v1514_v30 }
 0x215   : > { %7123 = vmatmul.mubr.bf16.vlgmr.msra.gmra.mrb[8].mxu1 %v14400_v20  ;;  %7133 = vmatprep.subr.bf16.mxu0 %v10929_v37  ;;  %v1530_v37 = vld [vmem:[%s14272_s30 + $0x1918] sm:$0xff] }
 0x216   : > { %7173 = vmatpush1.bf16.msra.mxu1 %v11408_v36  ;;  %7204 = vmatprep.mubr.bf16.mxu1 %v14348_v60  ;;  %v1034_v36 = vld [vmem:[%s14272_s30 + $0x998] sm:$0xff] }
 0x217   : > { %7174 = vmatprep.subr.bf16.mxu1 %v11441_v38  ;;  %v1546_v38 = vld [vmem:[%s14272_s30 + $0x1998] sm:$0xff]  ;;  %v11185_v41 = vcombine.high %v1018_v35, %v1034_v36  ;;  %v11184_v47 = vcombine.low %v1018_v35, %v1034_v36 }
 0x218   : > { %7134 = vmatpush1.bf16.msra.mxu0 %v10928_v43  ;;  %v11697_v42 = vcombine.high %v1530_v37, %v1546_v38  ;;  %v1050_v43 = vld [vmem:[%s14272_s30 + $0xa18] sm:$0xff]  ;;  %v11696_v48 = vcombine.low %v1530_v37, %v1546_v38 }
 0x219   : > { %7135 = vmatprep.subr.bf16.mxu0 %v10961_v45  ;;  %v1562_v45 = vld [vmem:[%s14272_s30 + $0x1a18] sm:$0xff] }
 0x21a   : > { %7175 = vmatpush1.bf16.msra.mxu1 %v11440_v44  ;;  %v1066_v44 = vld [vmem:[%s14272_s30 + $0xa98] sm:$0xff] }
 0x21b   : > { %7176 = vmatprep.subr.bf16.mxu1 %v11473_v46  ;;  %v1578_v46 = vld [vmem:[%s14272_s30 + $0x1a98] sm:$0xff]  ;;  %v11217_v49 = vcombine.high %v1050_v43, %v1066_v44  ;;  %v11216_v57 = vcombine.low %v1050_v43, %v1066_v44 }
 0x21c   : > { %7136 = vmatpush1.bf16.msra.mxu0 %v10960_v51  ;;  %v11729_v50 = vcombine.high %v1562_v45, %v1578_v46  ;;  %v1082_v51 = vld [vmem:[%s14272_s30 + $0xb18] sm:$0xff]  ;;  %v11728_v58 = vcombine.low %v1562_v45, %v1578_v46 }
 0x21d   : > { %7137 = vmatprep.subr.bf16.mxu0 %v10993_v53  ;;  %v1594_v53 = vld [vmem:[%s14272_s30 + $0x1b18] sm:$0xff] }
 0x21e   : > { %7177 = vmatpush1.bf16.msra.mxu1 %v11472_v52  ;;  %v1098_v52 = vld [vmem:[%s14272_s30 + $0xb98] sm:$0xff] }
 0x21f   : > { %7178 = vmatprep.subr.bf16.mxu1 %v11505_v56  ;;  %v1610_v56 = vld [vmem:[%s14272_s30 + $0x1b98] sm:$0xff]  ;;  %v11249_v61 = vcombine.high %v1082_v51, %v1098_v52  ;;  %v11248_v3 = vcombine.low %v1082_v51, %v1098_v52 }
 0x220   : > { %7138 = vmatpush1.bf16.msra.mxu0 %v10992_v63  ;;  %v11761_v62 = vcombine.high %v1594_v53, %v1610_v56  ;;  %v1114_v63 = vld [vmem:[%s14272_s30 + $0xc18] sm:$0xff]  ;;  %v11760_v4 = vcombine.low %v1594_v53, %v1610_v56 }
 0x221   : > { %7139 = vmatprep.subr.bf16.mxu0 %v11025_v1  ;;  %v1626_v1 = vld [vmem:[%s14272_s30 + $0x1c18] sm:$0xff] }
 0x222   : > { %7179 = vmatpush1.bf16.msra.mxu1 %v11504_v0  ;;  %v1130_v0 = vld [vmem:[%s14272_s30 + $0xc98] sm:$0xff] }
 0x223   : > { %7180 = vmatprep.subr.bf16.mxu1 %v11537_v2  ;;  %v1642_v2 = vld [vmem:[%s14272_s30 + $0x1c98] sm:$0xff]  ;;  %v11281_v5 = vcombine.high %v1114_v63, %v1130_v0  ;;  %v11280_v11 = vcombine.low %v1114_v63, %v1130_v0 }
 0x224   : > { %7140 = vmatpush1.bf16.msra.mxu0 %v11024_v7  ;;  %v11793_v6 = vcombine.high %v1626_v1, %v1642_v2  ;;  %v1146_v7 = vld [vmem:[%s14272_s30 + $0xd18] sm:$0xff]  ;;  %v11792_v12 = vcombine.low %v1626_v1, %v1642_v2 }
 0x225   : > { %7141 = vmatprep.subr.bf16.mxu0 %v11057_v9  ;;  %v1658_v9 = vld [vmem:[%s14272_s30 + $0x1d18] sm:$0xff] }
 0x226   : > { %7181 = vmatpush1.bf16.msra.mxu1 %v11536_v8  ;;  %v1162_v8 = vld [vmem:[%s14272_s30 + $0xd98] sm:$0xff] }
 0x227   : > { %7182 = vmatprep.subr.bf16.mxu1 %v11569_v10  ;;  %v1674_v10 = vld [vmem:[%s14272_s30 + $0x1d98] sm:$0xff]  ;;  %v11313_v13 = vcombine.high %v1146_v7, %v1162_v8  ;;  %v11312_v21 = vcombine.low %v1146_v7, %v1162_v8 }
 0x228   : > { %7142 = vmatpush1.bf16.msra.mxu0 %v11056_v15  ;;  %v11825_v14 = vcombine.high %v1658_v9, %v1674_v10  ;;  %v1178_v15 = vld [vmem:[%s14272_s30 + $0xe18] sm:$0xff]  ;;  %v11824_v22 = vcombine.low %v1658_v9, %v1674_v10 }
 0x229   : > { %7143 = vmatprep.subr.bf16.mxu0 %v11089_v18  ;;  %v1690_v18 = vld [vmem:[%s14272_s30 + $0x1e18] sm:$0xff] }
 0x22a   : > { %7183 = vmatpush1.bf16.msra.mxu1 %v11568_v16  ;;  %v1194_v16 = vld [vmem:[%s14272_s30 + $0xe98] sm:$0xff] }
 0x22b   : > { %7184 = vmatprep.subr.bf16.mxu1 %v11601_v19  ;;  %v1706_v19 = vld [vmem:[%s14272_s30 + $0x1e98] sm:$0xff]  ;;  %v11345_v23 = vcombine.high %v1178_v15, %v1194_v16  ;;  %v11344_v55 = vcombine.low %v1178_v15, %v1194_v16 }
 0x22c   : > { %7144 = vmatpush1.bf16.msra.mxu0 %v11088_v25  ;;  %v11857_v24 = vcombine.high %v1690_v18, %v1706_v19  ;;  %v1210_v25 = vld [vmem:[%s14272_s30 + $0xf18] sm:$0xff]  ;;  %v11856_v28 = vcombine.low %v1690_v18, %v1706_v19 }
 0x22d   : > { %7145 = vmatprep.subr.bf16.mxu0 %v11121_v26  ;;  %v1722_v26 = vld [vmem:[%s14272_s30 + $0x1f18] sm:$0xff] }
 0x22e   : > { %7185 = vmatpush1.bf16.msra.mxu1 %v11600_v54  ;;  %v1226_v54 = vld [vmem:[%s14272_s30 + $0xf98] sm:$0xff] }
 0x22f   : > { %7186 = vmatprep.subr.bf16.mxu1 %v11633_v27  ;;  %v1738_v27 = vld [vmem:[%s14272_s30 + $0x1f98] sm:$0xff]  ;;  %v11377_v29 = vcombine.high %v1210_v25, %v1226_v54  ;;  %v11376_v35 = vcombine.low %v1210_v25, %v1226_v54 }
 0x230   : > { %7146 = vmatpush1.bf16.msra.mxu0 %v11120_v31  ;;  %v11889_v30 = vcombine.high %v1722_v26, %v1738_v27  ;;  %v731_v31 = vld [vmem:[%s14272_s30 + $0x20] sm:$0xff]  ;;  %v11888_v36 = vcombine.low %v1722_v26, %v1738_v27 }
 0x231   : > { %7147 = vmatprep.subr.bf16.mxu0 %v11153_v33  ;;  %v1243_v33 = vld [vmem:[%s14272_s30 + $0x1020] sm:$0xff] }
 0x232   : > { %7187 = vmatpush1.bf16.msra.mxu1 %v11632_v32  ;;  %v747_v32 = vld [vmem:[%s14272_s30 + $0xa0] sm:$0xff] }
 0x233   : > { %7188 = vmatprep.subr.bf16.mxu1 %v11665_v34  ;;  %v1259_v34 = vld [vmem:[%s14272_s30 + $0x10a0] sm:$0xff]  ;;  %v10899_v37 = vcombine.high %v731_v31, %v747_v32  ;;  %v10898_v43 = vcombine.low %v731_v31, %v747_v32 }
 0x234   : > { %7148 = vmatpush1.bf16.msra.mxu0 %v11152_v39  ;;  %v11411_v38 = vcombine.high %v1243_v33, %v1259_v34  ;;  %v763_v39 = vld [vmem:[%s14272_s30 + $0x120] sm:$0xff]  ;;  %v11410_v44 = vcombine.low %v1243_v33, %v1259_v34 }
 0x235   : > { %7149 = vmatprep.subr.bf16.mxu0 %v11185_v41  ;;  %v1275_v41 = vld [vmem:[%s14272_s30 + $0x1120] sm:$0xff] }
 0x236   : > { %7189 = vmatpush1.bf16.msra.mxu1 %v11664_v40  ;;  %v779_v40 = vld [vmem:[%s14272_s30 + $0x1a0] sm:$0xff] }
 0x237   : > { %7190 = vmatprep.subr.bf16.mxu1 %v11697_v42  ;;  %v1291_v42 = vld [vmem:[%s14272_s30 + $0x11a0] sm:$0xff]  ;;  %v10931_v45 = vcombine.high %v763_v39, %v779_v40  ;;  %v10930_v51 = vcombine.low %v763_v39, %v779_v40 }
 0x238   : > { %7150 = vmatpush1.bf16.msra.mxu0 %v11184_v47  ;;  %v11443_v46 = vcombine.high %v1275_v41, %v1291_v42  ;;  %v795_v47 = vld [vmem:[%s14272_s30 + $0x220] sm:$0xff]  ;;  %v11442_v52 = vcombine.low %v1275_v41, %v1291_v42 }
 0x239   : > { %7151 = vmatprep.subr.bf16.mxu0 %v11217_v49  ;;  %v1307_v49 = vld [vmem:[%s14272_s30 + $0x1220] sm:$0xff] }
 0x23a   : > { %7191 = vmatpush1.bf16.msra.mxu1 %v11696_v48  ;;  %v811_v48 = vld [vmem:[%s14272_s30 + $0x2a0] sm:$0xff] }
 0x23b   : > { %7192 = vmatprep.subr.bf16.mxu1 %v11729_v50  ;;  %v1323_v50 = vld [vmem:[%s14272_s30 + $0x12a0] sm:$0xff]  ;;  %v10963_v53 = vcombine.high %v795_v47, %v811_v48  ;;  %v10962_v63 = vcombine.low %v795_v47, %v811_v48 }
 0x23c   : > { %7152 = vmatpush1.bf16.msra.mxu0 %v11216_v57  ;;  %v11475_v56 = vcombine.high %v1307_v49, %v1323_v50  ;;  %v827_v57 = vld [vmem:[%s14272_s30 + $0x320] sm:$0xff]  ;;  %v11474_v0 = vcombine.low %v1307_v49, %v1323_v50 }
 0x23d   : > { %7153 = vmatprep.subr.bf16.mxu0 %v11249_v61  ;;  %v1339_v61 = vld [vmem:[%s14272_s30 + $0x1320] sm:$0xff] }
 0x23e   : > { %7193 = vmatpush1.bf16.msra.mxu1 %v11728_v58  ;;  %v843_v58 = vld [vmem:[%s14272_s30 + $0x3a0] sm:$0xff] }
 0x23f   : > { %7194 = vmatprep.subr.bf16.mxu1 %v11761_v62  ;;  %v1355_v62 = vld [vmem:[%s14272_s30 + $0x13a0] sm:$0xff]  ;;  %v10995_v1 = vcombine.high %v827_v57, %v843_v58  ;;  %v10994_v7 = vcombine.low %v827_v57, %v843_v58 }
 0x240   : > { %7154 = vmatpush1.bf16.msra.mxu0 %v11248_v3  ;;  %v11507_v2 = vcombine.high %v1339_v61, %v1355_v62  ;;  %v859_v3 = vld [vmem:[%s14272_s30 + $0x420] sm:$0xff]  ;;  %v11506_v8 = vcombine.low %v1339_v61, %v1355_v62 }
 0x241   : > { %7155 = vmatprep.subr.bf16.mxu0 %v11281_v5  ;;  %v1371_v5 = vld [vmem:[%s14272_s30 + $0x1420] sm:$0xff] }
 0x242   : > { %7195 = vmatpush1.bf16.msra.mxu1 %v11760_v4  ;;  %v875_v4 = vld [vmem:[%s14272_s30 + $0x4a0] sm:$0xff] }
 0x243   : > { %7196 = vmatprep.subr.bf16.mxu1 %v11793_v6  ;;  %v1387_v6 = vld [vmem:[%s14272_s30 + $0x14a0] sm:$0xff]  ;;  %v11027_v9 = vcombine.high %v859_v3, %v875_v4  ;;  %v11026_v15 = vcombine.low %v859_v3, %v875_v4 }
 0x244   : > { %7156 = vmatpush1.bf16.msra.mxu0 %v11280_v11  ;;  %v11539_v10 = vcombine.high %v1371_v5, %v1387_v6  ;;  %v891_v11 = vld [vmem:[%s14272_s30 + $0x520] sm:$0xff]  ;;  %v11538_v16 = vcombine.low %v1371_v5, %v1387_v6 }
 0x245   : > { %7157 = vmatprep.subr.bf16.mxu0 %v11313_v13  ;;  %v1403_v13 = vld [vmem:[%s14272_s30 + $0x1520] sm:$0xff] }
 0x246   : > { %7197 = vmatpush1.bf16.msra.mxu1 %v11792_v12  ;;  %v907_v12 = vld [vmem:[%s14272_s30 + $0x5a0] sm:$0xff] }
 0x247   : > { %7198 = vmatprep.subr.bf16.mxu1 %v11825_v14  ;;  %v1419_v14 = vld [vmem:[%s14272_s30 + $0x15a0] sm:$0xff]  ;;  %v11059_v18 = vcombine.high %v891_v11, %v907_v12  ;;  %v11058_v25 = vcombine.low %v891_v11, %v907_v12 }
 0x248   : > { %7158 = vmatpush1.bf16.msra.mxu0 %v11312_v21  ;;  %v11571_v19 = vcombine.high %v1403_v13, %v1419_v14  ;;  %v923_v21 = vld [vmem:[%s14272_s30 + $0x620] sm:$0xff]  ;;  %v11570_v54 = vcombine.low %v1403_v13, %v1419_v14 }
 0x249   : > { %7159 = vmatprep.subr.bf16.mxu0 %v11345_v23  ;;  %v1435_v23 = vld [vmem:[%s14272_s30 + $0x1620] sm:$0xff] }
 0x24a   : > { %7199 = vmatpush1.bf16.msra.mxu1 %v11824_v22  ;;  %v939_v22 = vld [vmem:[%s14272_s30 + $0x6a0] sm:$0xff] }
 0x24b   : > { %7200 = vmatprep.subr.bf16.mxu1 %v11857_v24  ;;  %v1451_v24 = vld [vmem:[%s14272_s30 + $0x16a0] sm:$0xff]  ;;  %v11091_v26 = vcombine.high %v923_v21, %v939_v22  ;;  %v11090_v39 = vcombine.low %v923_v21, %v939_v22 }
 0x24c   : > { %7160 = vmatpush1.bf16.msra.mxu0 %v11344_v55  ;;  %v11603_v55 = vcombine.high %v1435_v23, %v1451_v24  ;;  %v1467_v33 = vld [vmem:[%s14272_s30 + $0x1720] sm:$0xff] }
 0x24d   : > { %7161 = vmatprep.subr.bf16.mxu0 %v11377_v29  ;;  %v971_v29 = vld [vmem:[%s14272_s30 + $0x7a0] sm:$0xff] }
 0x24e   : > { %7201 = vmatpush1.bf16.msra.mxu1 %v11856_v28  ;;  %v955_v28 = vld [vmem:[%s14272_s30 + $0x720] sm:$0xff] }
 0x24f   : > { %7202 = vmatprep.subr.bf16.mxu1 %v11889_v30  ;;  %v693_v30 = vld [vmem:[#allocation2] sm:$0xff] }
 0x250   : > { %7162 = vmatpush1.bf16.msra.mxu0 %v11376_v35  ;;  %v1483_v34 = vld [vmem:[%s14272_s30 + $0x17a0] sm:$0xff] }
 0x251   : > { %7213 = vmatprep.subr.bf16.mxu0 %v10899_v37  ;;  %v11635_v47 = vcombine.high %v1467_v33, %v1483_v34  ;;  %v987_v48 = vld [vmem:[%s14272_s30 + $0x820] sm:$0xff] }
 0x252   : > { %7203 = vmatpush1.bf16.msra.mxu1 %v11888_v36  ;;  %v694_v36 = vld [vmem:[#allocation2 + $0x8] sm:$0xff]  ;;  %v1003_v49 = vld [vmem:[%s14272_s30 + $0x8a0] sm:$0xff] }
 0x253   : > { %7254 = vmatprep.subr.bf16.mxu1 %v11411_v38  ;;  %7164 = vmatmul.mubr.bf16.vlgmr.msra.gmra.mrb[12].mxu0 %v14394_v17  ;;  %v11155_v57 = vcombine.high %v987_v48, %v1003_v49  ;;  %v1019_v61 = vld [vmem:[%s14272_s30 + $0x920] sm:$0xff] }
 0x254   : > { %7214 = vmatpush1.bf16.msra.mxu0 %v10898_v43  ;;  %7245 = vmatprep.mubr.bf16.mxu0 %v14344_v59  ;;  %v11602_v43 = vcombine.low %v1435_v23, %v1451_v24  ;;  %v1035_v62 = vld [vmem:[%s14272_s30 + $0x9a0] sm:$0xff] }
 0x255   : > { %7205 = vmatmul.mubr.bf16.vlgmr.msra.gmra.mrb[12].mxu1 %v14400_v20  ;;  %7215 = vmatprep.subr.bf16.mxu0 %v10931_v45  ;;  %v11187_v3 = vcombine.high %v1019_v61, %v1035_v62  ;;  %v1051_v5 = vld [vmem:[%s14272_s30 + $0xa20] sm:$0xff] }
 0x256   : > { %7255 = vmatpush1.bf16.msra.mxu1 %v11410_v44  ;;  %7286 = vmatprep.mubr.bf16.mxu1 %v14348_v60  ;;  %v11123_v44 = vcombine.high %v955_v28, %v971_v29  ;;  %v1067_v6 = vld [vmem:[%s14272_s30 + $0xaa0] sm:$0xff] }
 0x257   : > { %7256 = vmatprep.subr.bf16.mxu1 %v11443_v46  ;;  %v11219_v11 = vcombine.high %v1051_v5, %v1067_v6  ;;  %v1083_v13 = vld [vmem:[%s14272_s30 + $0xb20] sm:$0xff] }
 0x258   : > { %7216 = vmatpush1.bf16.msra.mxu0 %v10930_v51  ;;  %v1499_v51 = vld [vmem:[%s14272_s30 + $0x1820] sm:$0xff] }
 0x259   : > { %7217 = vmatprep.subr.bf16.mxu0 %v10963_v53  ;;  %v11122_v53 = vcombine.low %v955_v28, %v971_v29  ;;  %v1099_v14 = vld [vmem:[%s14272_s30 + $0xba0] sm:$0xff] }
 0x25a   : > { %7257 = vmatpush1.bf16.msra.mxu1 %v11442_v52  ;;  %v1515_v52 = vld [vmem:[%s14272_s30 + $0x18a0] sm:$0xff]  ;;  %v11251_v21 = vcombine.high %v1083_v13, %v1099_v14 }
 0x25b   : > { %7258 = vmatprep.subr.bf16.mxu1 %v11475_v56  ;;  %v11634_v56 = vcombine.low %v1467_v33, %v1483_v34  ;;  %v11667_v58 = vcombine.high %v1499_v51, %v1515_v52  ;;  %v1115_v23 = vld [vmem:[%s14272_s30 + $0xc20] sm:$0xff] }
 0x25c   : > { %7218 = vmatpush1.bf16.msra.mxu0 %v10962_v63  ;;  %v1531_v63 = vld [vmem:[%s14272_s30 + $0x1920] sm:$0xff] }
 0x25d   : > { %7219 = vmatprep.subr.bf16.mxu0 %v10995_v1  ;;  %v11154_v1 = vcombine.low %v987_v48, %v1003_v49  ;;  %v1131_v24 = vld [vmem:[%s14272_s30 + $0xca0] sm:$0xff] }
 0x25e   : > { %7259 = vmatpush1.bf16.msra.mxu1 %v11474_v0  ;;  %v1547_v0 = vld [vmem:[%s14272_s30 + $0x19a0] sm:$0xff]  ;;  %v11282_v33 = vcombine.low %v1115_v23, %v1131_v24 }
 0x25f   : > { %7260 = vmatprep.subr.bf16.mxu1 %v11507_v2  ;;  %v11666_v2 = vcombine.low %v1499_v51, %v1515_v52  ;;  %v11699_v4 = vcombine.high %v1531_v63, %v1547_v0  ;;  %v1147_v29 = vld [vmem:[%s14272_s30 + $0xd20] sm:$0xff] }
 0x260   : > { %7220 = vmatpush1.bf16.msra.mxu0 %v10994_v7  ;;  %v1563_v7 = vld [vmem:[%s14272_s30 + $0x1a20] sm:$0xff] }
 0x261   : > { %7221 = vmatprep.subr.bf16.mxu0 %v11027_v9  ;;  %v11186_v9 = vcombine.low %v1019_v61, %v1035_v62  ;;  %v1739_v48 = vld [vmem:[%s14272_s30 + $0x1fa0] sm:$0xff] }
 0x262   : > { %7261 = vmatpush1.bf16.msra.mxu1 %v11506_v8  ;;  %v1579_v8 = vld [vmem:[%s14272_s30 + $0x1aa0] sm:$0xff] }
 0x263   : > { %7262 = vmatprep.subr.bf16.mxu1 %v11539_v10  ;;  %v11698_v10 = vcombine.low %v1531_v63, %v1547_v0  ;;  %v11731_v12 = vcombine.high %v1563_v7, %v1579_v8 }
 0x264   : > { %7222 = vmatpush1.bf16.msra.mxu0 %v11026_v15  ;;  %v1595_v15 = vld [vmem:[%s14272_s30 + $0x1b20] sm:$0xff] }
 0x265   : > { %7223 = vmatprep.subr.bf16.mxu0 %v11059_v18  ;;  %v11218_v18 = vcombine.low %v1051_v5, %v1067_v6 }
 0x266   : > { %7263 = vmatpush1.bf16.msra.mxu1 %v11538_v16  ;;  %v6919_v27 = vpop.f32.mrb[0].mxu0  ;;  %v1611_v16 = vld [vmem:[%s14272_s30 + $0x1ba0] sm:$0xff] }
 0x267   : > { %7264 = vmatprep.subr.bf16.mxu1 %v11571_v19  ;;  %v6921_v32 = vpop.f32.mrb[1].mxu0  ;;  %v11730_v19 = vcombine.low %v1563_v7, %v1579_v8  ;;  %v11763_v22 = vcombine.high %v1595_v15, %v1611_v16 }
 0x268   : > { %v6960_v31 = vpop.f32.mrb[0].mxu1  ;;  %v6923_v38 = vpop.f32.mrb[2].mxu0  ;;  %7224 = vmatpush1.bf16.msra.mxu0 %v11058_v25  ;;  %v1627_v25 = vld [vmem:[%s14272_s30 + $0x1c20] sm:$0xff] }
 0x269   : > { %v6961_v35 = vadd.f32 %v6960_v31, %v6919_v27  ;;  %v6962_v37 = vpop.f32.mrb[1].mxu1  ;;  %v6924_v42 = vpop.f32.mrb[3].mxu0  ;;  %7225 = vmatprep.subr.bf16.mxu0 %v11091_v26  ;;  %v11250_v26 = vcombine.low %v1083_v13, %v1099_v14  ;;  %v11762_v27 = vcombine.low %v1595_v15, %v1611_v16  ;;  %v1659_v31 = vld [vmem:[%s14272_s30 + $0x1d20] sm:$0xff] }
 0x26a   : > { %v6963_v40 = vadd.f32 %v6962_v37, %v6921_v32  ;;  %v6964_v41 = vpop.f32.mrb[2].mxu1  ;;  %7265 = vmatpush1.bf16.msra.mxu1 %v11570_v54  ;;  %v1643_v54 = vld [vmem:[%s14272_s30 + $0x1ca0] sm:$0xff] }
 0x26b   : > { %v8197_v45 = vadd.f32 %v6961_v35, %v693_v30  ;;  %v6965_v46 = vpop.f32.mrb[3].mxu1  ;;  %7266 = vmatprep.subr.bf16.mxu1 %v11603_v55  ;;  %v11283_v55 = vcombine.high %v1115_v23, %v1131_v24  ;;  %v11795_v28 = vcombine.high %v1627_v25, %v1643_v54  ;;  %v1163_v30 = vld [vmem:[%s14272_s30 + $0xda0] sm:$0xff]  ;;  %v11794_v34 = vcombine.low %v1627_v25, %v1643_v54 }
 0x26c   : > { %v8198_v50 = vadd.f32 %v6963_v40, %v694_v36  ;;  %7226 = vmatpush1.bf16.msra.mxu0 %v11090_v39  ;;  %v1675_v32 = vld [vmem:[%s14272_s30 + $0x1da0] sm:$0xff]  ;;  %v11315_v35 = vcombine.high %v1147_v29, %v1163_v30  ;;  %v11314_v41 = vcombine.low %v1147_v29, %v1163_v30 }
 0x26d   : > { %8229 = vst [vmem:[#allocation2] sm:$0xff] %v8197_v45  ;;  %7227 = vmatprep.subr.bf16.mxu0 %v11123_v44  ;;  %v11827_v36 = vcombine.high %v1659_v31, %v1675_v32  ;;  %v1179_v37 = vld [vmem:[%s14272_s30 + $0xe20] sm:$0xff]  ;;  %v11826_v42 = vcombine.low %v1659_v31, %v1675_v32 }
 0x26e   : > { %8230 = vst [vmem:[#allocation2 + $0x8] sm:$0xff] %v8198_v50  ;;  %7267 = vmatpush1.bf16.msra.mxu1 %v11602_v43  ;;  %v1195_v38 = vld [vmem:[%s14272_s30 + $0xea0] sm:$0xff] }
 0x26f   : > { %7268 = vmatprep.subr.bf16.mxu1 %v11635_v47  ;;  %v1691_v39 = vld [vmem:[%s14272_s30 + $0x1e20] sm:$0xff]  ;;  %v11347_v43 = vcombine.high %v1179_v37, %v1195_v38  ;;  %v11346_v49 = vcombine.low %v1179_v37, %v1195_v38 }
 0x270   : > { %7228 = vmatpush1.bf16.msra.mxu0 %v11122_v53  ;;  %v1707_v40 = vld [vmem:[%s14272_s30 + $0x1ea0] sm:$0xff]  ;;  %v732_v53 = vld [vmem:[%s14272_s30 + $0x28] sm:$0xff] }
 0x271   : > { %7229 = vmatprep.subr.bf16.mxu0 %v11155_v57  ;;  %v11859_v44 = vcombine.high %v1691_v39, %v1707_v40  ;;  %v1211_v45 = vld [vmem:[%s14272_s30 + $0xf20] sm:$0xff]  ;;  %v11858_v50 = vcombine.low %v1691_v39, %v1707_v40  ;;  %v1244_v57 = vld [vmem:[%s14272_s30 + $0x1028] sm:$0xff] }
 0x272   : > { %7269 = vmatpush1.bf16.msra.mxu1 %v11634_v56  ;;  %v1227_v46 = vld [vmem:[%s14272_s30 + $0xfa0] sm:$0xff]  ;;  %v748_v56 = vld [vmem:[%s14272_s30 + $0xa8] sm:$0xff] }
 0x273   : > { %7270 = vmatprep.subr.bf16.mxu1 %v11667_v58  ;;  %v1723_v47 = vld [vmem:[%s14272_s30 + $0x1f20] sm:$0xff]  ;;  %v11379_v51 = vcombine.high %v1211_v45, %v1227_v46  ;;  %v1260_v58 = vld [vmem:[%s14272_s30 + $0x10a8] sm:$0xff]  ;;  %v11378_v61 = vcombine.low %v1211_v45, %v1227_v46  ;;  %v10901_v63 = vcombine.high %v732_v53, %v748_v56  ;;  %v10900_v5 = vcombine.low %v732_v53, %v748_v56 }
 0x274   : > { %7230 = vmatpush1.bf16.msra.mxu0 %v11154_v1  ;;  %v11891_v52 = vcombine.high %v1723_v47, %v1739_v48  ;;  %v11890_v62 = vcombine.low %v1723_v47, %v1739_v48  ;;  %v11413_v0 = vcombine.high %v1244_v57, %v1260_v58  ;;  %v764_v1 = vld [vmem:[%s14272_s30 + $0x128] sm:$0xff]  ;;  %v11412_v6 = vcombine.low %v1244_v57, %v1260_v58 }
 0x275   : > { %7231 = vmatprep.subr.bf16.mxu0 %v11187_v3  ;;  %v1276_v3 = vld [vmem:[%s14272_s30 + $0x1128] sm:$0xff] }
 0x276   : > { %7271 = vmatpush1.bf16.msra.mxu1 %v11666_v2  ;;  %v780_v2 = vld [vmem:[%s14272_s30 + $0x1a8] sm:$0xff] }
 0x277   : > { %7272 = vmatprep.subr.bf16.mxu1 %v11699_v4  ;;  %v1292_v4 = vld [vmem:[%s14272_s30 + $0x11a8] sm:$0xff]  ;;  %v10933_v7 = vcombine.high %v764_v1, %v780_v2  ;;  %v10932_v13 = vcombine.low %v764_v1, %v780_v2 }
 0x278   : > { %7232 = vmatpush1.bf16.msra.mxu0 %v11186_v9  ;;  %v11445_v8 = vcombine.high %v1276_v3, %v1292_v4  ;;  %v796_v9 = vld [vmem:[%s14272_s30 + $0x228] sm:$0xff]  ;;  %v11444_v14 = vcombine.low %v1276_v3, %v1292_v4 }
 0x279   : > { %7233 = vmatprep.subr.bf16.mxu0 %v11219_v11  ;;  %v1308_v11 = vld [vmem:[%s14272_s30 + $0x1228] sm:$0xff] }
 0x27a   : > { %7273 = vmatpush1.bf16.msra.mxu1 %v11698_v10  ;;  %v812_v10 = vld [vmem:[%s14272_s30 + $0x2a8] sm:$0xff] }
 0x27b   : > { %7274 = vmatprep.subr.bf16.mxu1 %v11731_v12  ;;  %v1324_v12 = vld [vmem:[%s14272_s30 + $0x12a8] sm:$0xff]  ;;  %v10965_v15 = vcombine.high %v796_v9, %v812_v10  ;;  %v10964_v23 = vcombine.low %v796_v9, %v812_v10 }
 0x27c   : > { %7234 = vmatpush1.bf16.msra.mxu0 %v11218_v18  ;;  %v11477_v16 = vcombine.high %v1308_v11, %v1324_v12  ;;  %v828_v18 = vld [vmem:[%s14272_s30 + $0x328] sm:$0xff]  ;;  %v11476_v24 = vcombine.low %v1308_v11, %v1324_v12 }
 0x27d   : > { %7235 = vmatprep.subr.bf16.mxu0 %v11251_v21  ;;  %v1340_v21 = vld [vmem:[%s14272_s30 + $0x1328] sm:$0xff] }
 0x27e   : > { %7275 = vmatpush1.bf16.msra.mxu1 %v11730_v19  ;;  %v844_v19 = vld [vmem:[%s14272_s30 + $0x3a8] sm:$0xff] }
 0x27f   : > { %7276 = vmatprep.subr.bf16.mxu1 %v11763_v22  ;;  %v1356_v22 = vld [vmem:[%s14272_s30 + $0x13a8] sm:$0xff]  ;;  %v10997_v25 = vcombine.high %v828_v18, %v844_v19  ;;  %v10996_v29 = vcombine.low %v828_v18, %v844_v19 }
 0x280   : > { %7236 = vmatpush1.bf16.msra.mxu0 %v11250_v26  ;;  %v11509_v54 = vcombine.high %v1340_v21, %v1356_v22  ;;  %v860_v26 = vld [vmem:[%s14272_s30 + $0x428] sm:$0xff]  ;;  %v11508_v30 = vcombine.low %v1340_v21, %v1356_v22 }
 0x281   : > { %7237 = vmatprep.subr.bf16.mxu0 %v11283_v55  ;;  %v1372_v55 = vld [vmem:[%s14272_s30 + $0x1428] sm:$0xff] }
 0x282   : > { %7277 = vmatpush1.bf16.msra.mxu1 %v11762_v27  ;;  %v876_v27 = vld [vmem:[%s14272_s30 + $0x4a8] sm:$0xff] }
 0x283   : > { %7278 = vmatprep.subr.bf16.mxu1 %v11795_v28  ;;  %v1388_v28 = vld [vmem:[%s14272_s30 + $0x14a8] sm:$0xff]  ;;  %v11029_v31 = vcombine.high %v860_v26, %v876_v27  ;;  %v11028_v37 = vcombine.low %v860_v26, %v876_v27 }
 0x284   : > { %7238 = vmatpush1.bf16.msra.mxu0 %v11282_v33  ;;  %v11541_v32 = vcombine.high %v1372_v55, %v1388_v28  ;;  %v892_v33 = vld [vmem:[%s14272_s30 + $0x528] sm:$0xff]  ;;  %v11540_v38 = vcombine.low %v1372_v55, %v1388_v28 }
 0x285   : > { %7239 = vmatprep.subr.bf16.mxu0 %v11315_v35  ;;  %v1404_v35 = vld [vmem:[%s14272_s30 + $0x1528] sm:$0xff] }
 0x286   : > { %7279 = vmatpush1.bf16.msra.mxu1 %v11794_v34  ;;  %v908_v34 = vld [vmem:[%s14272_s30 + $0x5a8] sm:$0xff] }
 0x287   : > { %7280 = vmatprep.subr.bf16.mxu1 %v11827_v36  ;;  %v1420_v36 = vld [vmem:[%s14272_s30 + $0x15a8] sm:$0xff]  ;;  %v11061_v39 = vcombine.high %v892_v33, %v908_v34  ;;  %v11060_v45 = vcombine.low %v892_v33, %v908_v34 }
 0x288   : > { %7240 = vmatpush1.bf16.msra.mxu0 %v11314_v41  ;;  %v11573_v40 = vcombine.high %v1404_v35, %v1420_v36  ;;  %v924_v41 = vld [vmem:[%s14272_s30 + $0x628] sm:$0xff]  ;;  %v11572_v46 = vcombine.low %v1404_v35, %v1420_v36 }
 0x289   : > { %7241 = vmatprep.subr.bf16.mxu0 %v11347_v43  ;;  %v1436_v43 = vld [vmem:[%s14272_s30 + $0x1628] sm:$0xff] }
 0x28a   : > { %7281 = vmatpush1.bf16.msra.mxu1 %v11826_v42  ;;  %v940_v42 = vld [vmem:[%s14272_s30 + $0x6a8] sm:$0xff] }
 0x28b   : > { %7282 = vmatprep.subr.bf16.mxu1 %v11859_v44  ;;  %v1452_v44 = vld [vmem:[%s14272_s30 + $0x16a8] sm:$0xff]  ;;  %v11093_v47 = vcombine.high %v924_v41, %v940_v42  ;;  %v11092_v1 = vcombine.low %v924_v41, %v940_v42 }
 0x28c   : > { %7242 = vmatpush1.bf16.msra.mxu0 %v11346_v49  ;;  %v11605_v49 = vcombine.high %v1436_v43, %v1452_v44  ;;  %v1468_v57 = vld [vmem:[%s14272_s30 + $0x1728] sm:$0xff] }
 0x28d   : > { %7243 = vmatprep.subr.bf16.mxu0 %v11379_v51  ;;  %v972_v51 = vld [vmem:[%s14272_s30 + $0x7a8] sm:$0xff] }
 0x28e   : > { %7283 = vmatpush1.bf16.msra.mxu1 %v11858_v50  ;;  %v956_v50 = vld [vmem:[%s14272_s30 + $0x728] sm:$0xff] }
 0x28f   : > { %7284 = vmatprep.subr.bf16.mxu1 %v11891_v52  ;;  %v695_v52 = vld [vmem:[#allocation2 + $0x10] sm:$0xff]  ;;  %v1484_v58 = vld [vmem:[%s14272_s30 + $0x17a8] sm:$0xff] }
 0x290   : > { %7244 = vmatpush1.bf16.msra.mxu0 %v11378_v61  ;;  %v11637_v9 = vcombine.high %v1468_v57, %v1484_v58  ;;  %v988_v10 = vld [vmem:[%s14272_s30 + $0x828] sm:$0xff] }
 0x291   : > { %7295 = vmatprep.subr.bf16.mxu0 %v10901_v63  ;;  %v1004_v11 = vld [vmem:[%s14272_s30 + $0x8a8] sm:$0xff] }
 0x292   : > { %7285 = vmatpush1.bf16.msra.mxu1 %v11890_v62  ;;  %v696_v62 = vld [vmem:[#allocation2 + $0x18] sm:$0xff]  ;;  %v11157_v18 = vcombine.high %v988_v10, %v1004_v11  ;;  %v1020_v21 = vld [vmem:[%s14272_s30 + $0x928] sm:$0xff] }
 0x293   : > { %7336 = vmatprep.subr.bf16.mxu1 %v11413_v0  ;;  %7246 = vmatmul.mubr.bf16.vlgmr.msra.gmra.mrb[16].mxu0 %v14394_v17  ;;  %v1036_v22 = vld [vmem:[%s14272_s30 + $0x9a8] sm:$0xff] }
 0x294   : > { %7296 = vmatpush1.bf16.msra.mxu0 %v10900_v5  ;;  %7327 = vmatprep.mubr.bf16.mxu0 %v14344_v59  ;;  %v11604_v5 = vcombine.low %v1436_v43, %v1452_v44  ;;  %v11189_v26 = vcombine.high %v1020_v21, %v1036_v22  ;;  %v1052_v55 = vld [vmem:[%s14272_s30 + $0xa28] sm:$0xff] }
 0x295   : > { %7287 = vmatmul.mubr.bf16.vlgmr.msra.gmra.mrb[16].mxu1 %v14400_v20  ;;  %7297 = vmatprep.subr.bf16.mxu0 %v10933_v7  ;;  %v1068_v28 = vld [vmem:[%s14272_s30 + $0xaa8] sm:$0xff] }
 0x296   : > { %7337 = vmatpush1.bf16.msra.mxu1 %v11412_v6  ;;  %7368 = vmatprep.mubr.bf16.mxu1 %v14348_v60  ;;  %v11125_v6 = vcombine.high %v956_v50, %v972_v51  ;;  %v11221_v33 = vcombine.high %v1052_v55, %v1068_v28  ;;  %v1084_v35 = vld [vmem:[%s14272_s30 + $0xb28] sm:$0xff] }
 0x297   : > { %7338 = vmatprep.subr.bf16.mxu1 %v11445_v8  ;;  %v1100_v36 = vld [vmem:[%s14272_s30 + $0xba8] sm:$0xff] }
 0x298   : > { %7298 = vmatpush1.bf16.msra.mxu0 %v10932_v13  ;;  %v1500_v13 = vld [vmem:[%s14272_s30 + $0x1828] sm:$0xff]  ;;  %v11253_v41 = vcombine.high %v1084_v35, %v1100_v36 }
 0x299   : > { %7299 = vmatprep.subr.bf16.mxu0 %v10965_v15  ;;  %v11124_v15 = vcombine.low %v956_v50, %v972_v51  ;;  %v1116_v43 = vld [vmem:[%s14272_s30 + $0xc28] sm:$0xff] }
 0x29a   : > { %7339 = vmatpush1.bf16.msra.mxu1 %v11444_v14  ;;  %v1516_v14 = vld [vmem:[%s14272_s30 + $0x18a8] sm:$0xff] }
 0x29b   : > { %7340 = vmatprep.subr.bf16.mxu1 %v11477_v16  ;;  %v11636_v16 = vcombine.low %v1468_v57, %v1484_v58  ;;  %v11669_v19 = vcombine.high %v1500_v13, %v1516_v14  ;;  %v1132_v44 = vld [vmem:[%s14272_s30 + $0xca8] sm:$0xff] }
 0x29c   : > { %7300 = vmatpush1.bf16.msra.mxu0 %v10964_v23  ;;  %v1532_v23 = vld [vmem:[%s14272_s30 + $0x1928] sm:$0xff]  ;;  %v11284_v57 = vcombine.low %v1116_v43, %v1132_v44 }
 0x29d   : > { %7301 = vmatprep.subr.bf16.mxu0 %v10997_v25  ;;  %v11156_v25 = vcombine.low %v988_v10, %v1004_v11  ;;  %v1148_v51 = vld [vmem:[%s14272_s30 + $0xd28] sm:$0xff] }
 0x29e   : > { %7341 = vmatpush1.bf16.msra.mxu1 %v11476_v24  ;;  %v1548_v24 = vld [vmem:[%s14272_s30 + $0x19a8] sm:$0xff] }
 0x29f   : > { %7342 = vmatprep.subr.bf16.mxu1 %v11509_v54  ;;  %v11668_v54 = vcombine.low %v1500_v13, %v1516_v14  ;;  %v11701_v27 = vcombine.high %v1532_v23, %v1548_v24  ;;  %v1740_v10 = vld [vmem:[%s14272_s30 + $0x1fa8] sm:$0xff] }
 0x2a0   : > { %7302 = vmatpush1.bf16.msra.mxu0 %v10996_v29  ;;  %v1564_v29 = vld [vmem:[%s14272_s30 + $0x1a28] sm:$0xff] }
 0x2a1   : > { %7303 = vmatprep.subr.bf16.mxu0 %v11029_v31  ;;  %v11188_v31 = vcombine.low %v1020_v21, %v1036_v22 }
 0x2a2   : > { %7343 = vmatpush1.bf16.msra.mxu1 %v11508_v30  ;;  %v1580_v30 = vld [vmem:[%s14272_s30 + $0x1aa8] sm:$0xff] }
 0x2a3   : > { %7344 = vmatprep.subr.bf16.mxu1 %v11541_v32  ;;  %v11700_v32 = vcombine.low %v1532_v23, %v1548_v24  ;;  %v11733_v34 = vcombine.high %v1564_v29, %v1580_v30 }
 0x2a4   : > { %7304 = vmatpush1.bf16.msra.mxu0 %v11028_v37  ;;  %v1596_v37 = vld [vmem:[%s14272_s30 + $0x1b28] sm:$0xff] }
 0x2a5   : > { %7305 = vmatprep.subr.bf16.mxu0 %v11061_v39  ;;  %v11220_v39 = vcombine.low %v1052_v55, %v1068_v28 }
 0x2a6   : > { %7345 = vmatpush1.bf16.msra.mxu1 %v11540_v38  ;;  %v7001_v48 = vpop.f32.mrb[4].mxu0  ;;  %v1612_v38 = vld [vmem:[%s14272_s30 + $0x1ba8] sm:$0xff] }
 0x2a7   : > { %7346 = vmatprep.subr.bf16.mxu1 %v11573_v40  ;;  %v7003_v56 = vpop.f32.mrb[5].mxu0  ;;  %v11732_v40 = vcombine.low %v1564_v29, %v1580_v30  ;;  %v11765_v42 = vcombine.high %v1596_v37, %v1612_v38 }
 0x2a8   : > { %v7042_v53 = vpop.f32.mrb[4].mxu1  ;;  %v7005_v0 = vpop.f32.mrb[6].mxu0  ;;  %7306 = vmatpush1.bf16.msra.mxu0 %v11060_v45  ;;  %v1628_v45 = vld [vmem:[%s14272_s30 + $0x1c28] sm:$0xff] }
 0x2a9   : > { %v7043_v61 = vadd.f32 %v7042_v53, %v7001_v48  ;;  %v7044_v63 = vpop.f32.mrb[5].mxu1  ;;  %v7006_v4 = vpop.f32.mrb[7].mxu0  ;;  %7307 = vmatprep.subr.bf16.mxu0 %v11093_v47  ;;  %v11252_v47 = vcombine.low %v1084_v35, %v1100_v36  ;;  %v11764_v48 = vcombine.low %v1596_v37, %v1612_v38  ;;  %v1660_v53 = vld [vmem:[%s14272_s30 + $0x1d28] sm:$0xff] }
 0x2aa   : > { %v7045_v2 = vadd.f32 %v7044_v63, %v7003_v56  ;;  %v7046_v3 = vpop.f32.mrb[6].mxu1  ;;  %7347 = vmatpush1.bf16.msra.mxu1 %v11572_v46  ;;  %v1644_v46 = vld [vmem:[%s14272_s30 + $0x1ca8] sm:$0xff] }
 0x2ab   : > { %v8199_v7 = vadd.f32 %v7043_v61, %v695_v52  ;;  %v7047_v8 = vpop.f32.mrb[7].mxu1  ;;  %7348 = vmatprep.subr.bf16.mxu1 %v11605_v49  ;;  %v11285_v49 = vcombine.high %v1116_v43, %v1132_v44  ;;  %v11797_v50 = vcombine.high %v1628_v45, %v1644_v46  ;;  %v1164_v52 = vld [vmem:[%s14272_s30 + $0xda8] sm:$0xff]  ;;  %v11796_v58 = vcombine.low %v1628_v45, %v1644_v46 }
 0x2ac   : > { %v8200_v12 = vadd.f32 %v7045_v2, %v696_v62  ;;  %7308 = vmatpush1.bf16.msra.mxu0 %v11092_v1  ;;  %v1676_v56 = vld [vmem:[%s14272_s30 + $0x1da8] sm:$0xff]  ;;  %v11317_v61 = vcombine.high %v1148_v51, %v1164_v52  ;;  %v11316_v3 = vcombine.low %v1148_v51, %v1164_v52 }
 0x2ad   : > { %8231 = vst [vmem:[#allocation2 + $0x10] sm:$0xff] %v8199_v7  ;;  %7309 = vmatprep.subr.bf16.mxu0 %v11125_v6  ;;  %v11829_v62 = vcombine.high %v1660_v53, %v1676_v56  ;;  %v1180_v63 = vld [vmem:[%s14272_s30 + $0xe28] sm:$0xff]  ;;  %v11828_v4 = vcombine.low %v1660_v53, %v1676_v56 }
 0x2ae   : > { %8232 = vst [vmem:[#allocation2 + $0x18] sm:$0xff] %v8200_v12  ;;  %7349 = vmatpush1.bf16.msra.mxu1 %v11604_v5  ;;  %v1196_v0 = vld [vmem:[%s14272_s30 + $0xea8] sm:$0xff] }
 0x2af   : > { %7350 = vmatprep.subr.bf16.mxu1 %v11637_v9  ;;  %v1692_v1 = vld [vmem:[%s14272_s30 + $0x1e28] sm:$0xff]  ;;  %v11349_v5 = vcombine.high %v1180_v63, %v1196_v0  ;;  %v11348_v11 = vcombine.low %v1180_v63, %v1196_v0 }
 0x2b0   : > { %7310 = vmatpush1.bf16.msra.mxu0 %v11124_v15  ;;  %v1708_v2 = vld [vmem:[%s14272_s30 + $0x1ea8] sm:$0xff]  ;;  %v733_v15 = vld [vmem:[%s14272_s30 + $0x30] sm:$0xff] }
 0x2b1   : > { %7311 = vmatprep.subr.bf16.mxu0 %v11157_v18  ;;  %v11861_v6 = vcombine.high %v1692_v1, %v1708_v2  ;;  %v1212_v7 = vld [vmem:[%s14272_s30 + $0xf28] sm:$0xff]  ;;  %v11860_v12 = vcombine.low %v1692_v1, %v1708_v2  ;;  %v1245_v18 = vld [vmem:[%s14272_s30 + $0x1030] sm:$0xff] }
 0x2b2   : > { %7351 = vmatpush1.bf16.msra.mxu1 %v11636_v16  ;;  %v1228_v8 = vld [vmem:[%s14272_s30 + $0xfa8] sm:$0xff]  ;;  %v749_v16 = vld [vmem:[%s14272_s30 + $0xb0] sm:$0xff] }
 0x2b3   : > { %7352 = vmatprep.subr.bf16.mxu1 %v11669_v19  ;;  %v1724_v9 = vld [vmem:[%s14272_s30 + $0x1f28] sm:$0xff]  ;;  %v11381_v13 = vcombine.high %v1212_v7, %v1228_v8  ;;  %v1261_v19 = vld [vmem:[%s14272_s30 + $0x10b0] sm:$0xff]  ;;  %v11380_v21 = vcombine.low %v1212_v7, %v1228_v8  ;;  %v10903_v23 = vcombine.high %v733_v15, %v749_v16  ;;  %v10902_v55 = vcombine.low %v733_v15, %v749_v16 }
 0x2b4   : > { %7312 = vmatpush1.bf16.msra.mxu0 %v11156_v25  ;;  %v11893_v14 = vcombine.high %v1724_v9, %v1740_v10  ;;  %v11892_v22 = vcombine.low %v1724_v9, %v1740_v10  ;;  %v11415_v24 = vcombine.high %v1245_v18, %v1261_v19  ;;  %v765_v25 = vld [vmem:[%s14272_s30 + $0x130] sm:$0xff]  ;;  %v11414_v28 = vcombine.low %v1245_v18, %v1261_v19 }
 0x2b5   : > { %7313 = vmatprep.subr.bf16.mxu0 %v11189_v26  ;;  %v1277_v26 = vld [vmem:[%s14272_s30 + $0x1130] sm:$0xff] }
 0x2b6   : > { %7353 = vmatpush1.bf16.msra.mxu1 %v11668_v54  ;;  %v781_v54 = vld [vmem:[%s14272_s30 + $0x1b0] sm:$0xff] }
 0x2b7   : > { %7354 = vmatprep.subr.bf16.mxu1 %v11701_v27  ;;  %v1293_v27 = vld [vmem:[%s14272_s30 + $0x11b0] sm:$0xff]  ;;  %v10935_v29 = vcombine.high %v765_v25, %v781_v54  ;;  %v10934_v35 = vcombine.low %v765_v25, %v781_v54 }
 0x2b8   : > { %7314 = vmatpush1.bf16.msra.mxu0 %v11188_v31  ;;  %v11447_v30 = vcombine.high %v1277_v26, %v1293_v27  ;;  %v797_v31 = vld [vmem:[%s14272_s30 + $0x230] sm:$0xff]  ;;  %v11446_v36 = vcombine.low %v1277_v26, %v1293_v27 }
 0x2b9   : > { %7315 = vmatprep.subr.bf16.mxu0 %v11221_v33  ;;  %v1309_v33 = vld [vmem:[%s14272_s30 + $0x1230] sm:$0xff] }
 0x2ba   : > { %7355 = vmatpush1.bf16.msra.mxu1 %v11700_v32  ;;  %v813_v32 = vld [vmem:[%s14272_s30 + $0x2b0] sm:$0xff] }
 0x2bb   : > { %7356 = vmatprep.subr.bf16.mxu1 %v11733_v34  ;;  %v1325_v34 = vld [vmem:[%s14272_s30 + $0x12b0] sm:$0xff]  ;;  %v10967_v37 = vcombine.high %v797_v31, %v813_v32  ;;  %v10966_v43 = vcombine.low %v797_v31, %v813_v32 }
 0x2bc   : > { %7316 = vmatpush1.bf16.msra.mxu0 %v11220_v39  ;;  %v11479_v38 = vcombine.high %v1309_v33, %v1325_v34  ;;  %v829_v39 = vld [vmem:[%s14272_s30 + $0x330] sm:$0xff]  ;;  %v11478_v44 = vcombine.low %v1309_v33, %v1325_v34 }
 0x2bd   : > { %7317 = vmatprep.subr.bf16.mxu0 %v11253_v41  ;;  %v1341_v41 = vld [vmem:[%s14272_s30 + $0x1330] sm:$0xff] }
 0x2be   : > { %7357 = vmatpush1.bf16.msra.mxu1 %v11732_v40  ;;  %v845_v40 = vld [vmem:[%s14272_s30 + $0x3b0] sm:$0xff] }
 0x2bf   : > { %7358 = vmatprep.subr.bf16.mxu1 %v11765_v42  ;;  %v1357_v42 = vld [vmem:[%s14272_s30 + $0x13b0] sm:$0xff]  ;;  %v10999_v45 = vcombine.high %v829_v39, %v845_v40  ;;  %v10998_v51 = vcombine.low %v829_v39, %v845_v40 }
 0x2c0   : > { %7318 = vmatpush1.bf16.msra.mxu0 %v11252_v47  ;;  %v11511_v46 = vcombine.high %v1341_v41, %v1357_v42  ;;  %v861_v47 = vld [vmem:[%s14272_s30 + $0x430] sm:$0xff]  ;;  %v11510_v52 = vcombine.low %v1341_v41, %v1357_v42 }
 0x2c1   : > { %7319 = vmatprep.subr.bf16.mxu0 %v11285_v49  ;;  %v1373_v49 = vld [vmem:[%s14272_s30 + $0x1430] sm:$0xff] }
 0x2c2   : > { %7359 = vmatpush1.bf16.msra.mxu1 %v11764_v48  ;;  %v877_v48 = vld [vmem:[%s14272_s30 + $0x4b0] sm:$0xff] }
 0x2c3   : > { %7360 = vmatprep.subr.bf16.mxu1 %v11797_v50  ;;  %v1389_v50 = vld [vmem:[%s14272_s30 + $0x14b0] sm:$0xff]  ;;  %v11031_v53 = vcombine.high %v861_v47, %v877_v48  ;;  %v11030_v63 = vcombine.low %v861_v47, %v877_v48 }
 0x2c4   : > { %7320 = vmatpush1.bf16.msra.mxu0 %v11284_v57  ;;  %v11543_v56 = vcombine.high %v1373_v49, %v1389_v50  ;;  %v893_v57 = vld [vmem:[%s14272_s30 + $0x530] sm:$0xff]  ;;  %v11542_v0 = vcombine.low %v1373_v49, %v1389_v50 }
 0x2c5   : > { %7321 = vmatprep.subr.bf16.mxu0 %v11317_v61  ;;  %v1405_v61 = vld [vmem:[%s14272_s30 + $0x1530] sm:$0xff] }
 0x2c6   : > { %7361 = vmatpush1.bf16.msra.mxu1 %v11796_v58  ;;  %v909_v58 = vld [vmem:[%s14272_s30 + $0x5b0] sm:$0xff] }
 0x2c7   : > { %7362 = vmatprep.subr.bf16.mxu1 %v11829_v62  ;;  %v1421_v62 = vld [vmem:[%s14272_s30 + $0x15b0] sm:$0xff]  ;;  %v11063_v1 = vcombine.high %v893_v57, %v909_v58  ;;  %v11062_v7 = vcombine.low %v893_v57, %v909_v58 }
 0x2c8   : > { %7322 = vmatpush1.bf16.msra.mxu0 %v11316_v3  ;;  %v11575_v2 = vcombine.high %v1405_v61, %v1421_v62  ;;  %v925_v3 = vld [vmem:[%s14272_s30 + $0x630] sm:$0xff]  ;;  %v11574_v8 = vcombine.low %v1405_v61, %v1421_v62 }
 0x2c9   : > { %7323 = vmatprep.subr.bf16.mxu0 %v11349_v5  ;;  %v1437_v5 = vld [vmem:[%s14272_s30 + $0x1630] sm:$0xff] }
 0x2ca   : > { %7363 = vmatpush1.bf16.msra.mxu1 %v11828_v4  ;;  %v941_v4 = vld [vmem:[%s14272_s30 + $0x6b0] sm:$0xff] }
 0x2cb   : > { %7364 = vmatprep.subr.bf16.mxu1 %v11861_v6  ;;  %v1453_v6 = vld [vmem:[%s14272_s30 + $0x16b0] sm:$0xff]  ;;  %v11095_v9 = vcombine.high %v925_v3, %v941_v4  ;;  %v11094_v25 = vcombine.low %v925_v3, %v941_v4 }
 0x2cc   : > { %7324 = vmatpush1.bf16.msra.mxu0 %v11348_v11  ;;  %v11607_v11 = vcombine.high %v1437_v5, %v1453_v6  ;;  %v1469_v18 = vld [vmem:[%s14272_s30 + $0x1730] sm:$0xff] }
 0x2cd   : > { %7325 = vmatprep.subr.bf16.mxu0 %v11381_v13  ;;  %v973_v13 = vld [vmem:[%s14272_s30 + $0x7b0] sm:$0xff] }
 0x2ce   : > { %7365 = vmatpush1.bf16.msra.mxu1 %v11860_v12  ;;  %v957_v12 = vld [vmem:[%s14272_s30 + $0x730] sm:$0xff] }
 0x2cf   : > { %7366 = vmatprep.subr.bf16.mxu1 %v11893_v14  ;;  %v697_v14 = vld [vmem:[#allocation2 + $0x20] sm:$0xff]  ;;  %v1485_v19 = vld [vmem:[%s14272_s30 + $0x17b0] sm:$0xff] }
 0x2d0   : > { %7326 = vmatpush1.bf16.msra.mxu0 %v11380_v21  ;;  %v11639_v31 = vcombine.high %v1469_v18, %v1485_v19  ;;  %v989_v32 = vld [vmem:[%s14272_s30 + $0x830] sm:$0xff] }
 0x2d1   : > { %7377 = vmatprep.subr.bf16.mxu0 %v10903_v23  ;;  %v1005_v33 = vld [vmem:[%s14272_s30 + $0x8b0] sm:$0xff] }
 0x2d2   : > { %7367 = vmatpush1.bf16.msra.mxu1 %v11892_v22  ;;  %v698_v22 = vld [vmem:[#allocation2 + $0x28] sm:$0xff]  ;;  %v11159_v39 = vcombine.high %v989_v32, %v1005_v33  ;;  %v1021_v41 = vld [vmem:[%s14272_s30 + $0x930] sm:$0xff] }
 0x2d3   : > { %7418 = vmatprep.subr.bf16.mxu1 %v11415_v24  ;;  %7328 = vmatmul.mubr.bf16.vlgmr.msra.gmra.mrb[20].mxu0 %v14394_v17  ;;  %v1037_v42 = vld [vmem:[%s14272_s30 + $0x9b0] sm:$0xff] }
 0x2d4   : > { %7378 = vmatpush1.bf16.msra.mxu0 %v10902_v55  ;;  %7409 = vmatprep.mubr.bf16.mxu0 %v14344_v59  ;;  %v11606_v55 = vcombine.low %v1437_v5, %v1453_v6  ;;  %v11191_v47 = vcombine.high %v1021_v41, %v1037_v42  ;;  %v1053_v49 = vld [vmem:[%s14272_s30 + $0xa30] sm:$0xff] }
 0x2d5   : > { %7369 = vmatmul.mubr.bf16.vlgmr.msra.gmra.mrb[20].mxu1 %v14400_v20  ;;  %7379 = vmatprep.subr.bf16.mxu0 %v10935_v29  ;;  %v1069_v50 = vld [vmem:[%s14272_s30 + $0xab0] sm:$0xff] }
 0x2d6   : > { %7419 = vmatpush1.bf16.msra.mxu1 %v11414_v28  ;;  %7450 = vmatprep.mubr.bf16.mxu1 %v14348_v60  ;;  %v11127_v28 = vcombine.high %v957_v12, %v973_v13  ;;  %v11223_v57 = vcombine.high %v1053_v49, %v1069_v50  ;;  %v1085_v61 = vld [vmem:[%s14272_s30 + $0xb30] sm:$0xff] }
 0x2d7   : > { %7420 = vmatprep.subr.bf16.mxu1 %v11447_v30  ;;  %v1101_v62 = vld [vmem:[%s14272_s30 + $0xbb0] sm:$0xff] }
 0x2d8   : > { %7380 = vmatpush1.bf16.msra.mxu0 %v10934_v35  ;;  %v1501_v35 = vld [vmem:[%s14272_s30 + $0x1830] sm:$0xff]  ;;  %v11255_v3 = vcombine.high %v1085_v61, %v1101_v62 }
 0x2d9   : > { %7381 = vmatprep.subr.bf16.mxu0 %v10967_v37  ;;  %v11126_v37 = vcombine.low %v957_v12, %v973_v13  ;;  %v1117_v5 = vld [vmem:[%s14272_s30 + $0xc30] sm:$0xff] }
 0x2da   : > { %7421 = vmatpush1.bf16.msra.mxu1 %v11446_v36  ;;  %v1517_v36 = vld [vmem:[%s14272_s30 + $0x18b0] sm:$0xff] }
 0x2db   : > { %7422 = vmatprep.subr.bf16.mxu1 %v11479_v38  ;;  %v11638_v38 = vcombine.low %v1469_v18, %v1485_v19  ;;  %v11671_v40 = vcombine.high %v1501_v35, %v1517_v36  ;;  %v1133_v6 = vld [vmem:[%s14272_s30 + $0xcb0] sm:$0xff] }
 0x2dc   : > { %7382 = vmatpush1.bf16.msra.mxu0 %v10966_v43  ;;  %v1533_v43 = vld [vmem:[%s14272_s30 + $0x1930] sm:$0xff]  ;;  %v11286_v18 = vcombine.low %v1117_v5, %v1133_v6 }
 0x2dd   : > { %7383 = vmatprep.subr.bf16.mxu0 %v10999_v45  ;;  %v11158_v45 = vcombine.low %v989_v32, %v1005_v33  ;;  %v1149_v13 = vld [vmem:[%s14272_s30 + $0xd30] sm:$0xff] }
 0x2de   : > { %7423 = vmatpush1.bf16.msra.mxu1 %v11478_v44  ;;  %v1549_v44 = vld [vmem:[%s14272_s30 + $0x19b0] sm:$0xff] }
 0x2df   : > { %7424 = vmatprep.subr.bf16.mxu1 %v11511_v46  ;;  %v11670_v46 = vcombine.low %v1501_v35, %v1517_v36  ;;  %v11703_v48 = vcombine.high %v1533_v43, %v1549_v44  ;;  %v1741_v32 = vld [vmem:[%s14272_s30 + $0x1fb0] sm:$0xff] }
 0x2e0   : > { %7384 = vmatpush1.bf16.msra.mxu0 %v10998_v51  ;;  %v1565_v51 = vld [vmem:[%s14272_s30 + $0x1a30] sm:$0xff] }
 0x2e1   : > { %7385 = vmatprep.subr.bf16.mxu0 %v11031_v53  ;;  %v11190_v53 = vcombine.low %v1021_v41, %v1037_v42 }
 0x2e2   : > { %7425 = vmatpush1.bf16.msra.mxu1 %v11510_v52  ;;  %v1581_v52 = vld [vmem:[%s14272_s30 + $0x1ab0] sm:$0xff] }
 0x2e3   : > { %7426 = vmatprep.subr.bf16.mxu1 %v11543_v56  ;;  %v11702_v56 = vcombine.low %v1533_v43, %v1549_v44  ;;  %v11735_v58 = vcombine.high %v1565_v51, %v1581_v52 }
 0x2e4   : > { %7386 = vmatpush1.bf16.msra.mxu0 %v11030_v63  ;;  %v1597_v63 = vld [vmem:[%s14272_s30 + $0x1b30] sm:$0xff] }
 0x2e5   : > { %7387 = vmatprep.subr.bf16.mxu0 %v11063_v1  ;;  %v11222_v1 = vcombine.low %v1053_v49, %v1069_v50 }
 0x2e6   : > { %7427 = vmatpush1.bf16.msra.mxu1 %v11542_v0  ;;  %v7083_v10 = vpop.f32.mrb[8].mxu0  ;;  %v1613_v0 = vld [vmem:[%s14272_s30 + $0x1bb0] sm:$0xff] }
 0x2e7   : > { %7428 = vmatprep.subr.bf16.mxu1 %v11575_v2  ;;  %v7085_v16 = vpop.f32.mrb[9].mxu0  ;;  %v11734_v2 = vcombine.low %v1565_v51, %v1581_v52  ;;  %v11767_v4 = vcombine.high %v1597_v63, %v1613_v0 }
 0x2e8   : > { %v7124_v15 = vpop.f32.mrb[8].mxu1  ;;  %v7087_v24 = vpop.f32.mrb[10].mxu0  ;;  %7388 = vmatpush1.bf16.msra.mxu0 %v11062_v7  ;;  %v1629_v7 = vld [vmem:[%s14272_s30 + $0x1c30] sm:$0xff] }
 0x2e9   : > { %v7125_v21 = vadd.f32 %v7124_v15, %v7083_v10  ;;  %v7126_v23 = vpop.f32.mrb[9].mxu1  ;;  %v7088_v27 = vpop.f32.mrb[11].mxu0  ;;  %7389 = vmatprep.subr.bf16.mxu0 %v11095_v9  ;;  %v11254_v9 = vcombine.low %v1085_v61, %v1101_v62  ;;  %v11766_v10 = vcombine.low %v1597_v63, %v1613_v0  ;;  %v1661_v15 = vld [vmem:[%s14272_s30 + $0x1d30] sm:$0xff] }
 0x2ea   : > { %v7127_v54 = vadd.f32 %v7126_v23, %v7085_v16  ;;  %v7128_v26 = vpop.f32.mrb[10].mxu1  ;;  %7429 = vmatpush1.bf16.msra.mxu1 %v11574_v8  ;;  %v1645_v8 = vld [vmem:[%s14272_s30 + $0x1cb0] sm:$0xff] }
 0x2eb   : > { %v8201_v29 = vadd.f32 %v7125_v21, %v697_v14  ;;  %v7129_v30 = vpop.f32.mrb[11].mxu1  ;;  %7430 = vmatprep.subr.bf16.mxu1 %v11607_v11  ;;  %v11287_v11 = vcombine.high %v1117_v5, %v1133_v6  ;;  %v11799_v12 = vcombine.high %v1629_v7, %v1645_v8  ;;  %v1165_v14 = vld [vmem:[%s14272_s30 + $0xdb0] sm:$0xff]  ;;  %v11798_v19 = vcombine.low %v1629_v7, %v1645_v8 }
 0x2ec   : > { %v8202_v34 = vadd.f32 %v7127_v54, %v698_v22  ;;  %7390 = vmatpush1.bf16.msra.mxu0 %v11094_v25  ;;  %v1677_v16 = vld [vmem:[%s14272_s30 + $0x1db0] sm:$0xff]  ;;  %v11319_v21 = vcombine.high %v1149_v13, %v1165_v14  ;;  %v11318_v26 = vcombine.low %v1149_v13, %v1165_v14 }
 0x2ed   : > { %8233 = vst [vmem:[#allocation2 + $0x20] sm:$0xff] %v8201_v29  ;;  %7391 = vmatprep.subr.bf16.mxu0 %v11127_v28  ;;  %v11831_v22 = vcombine.high %v1661_v15, %v1677_v16  ;;  %v1181_v23 = vld [vmem:[%s14272_s30 + $0xe30] sm:$0xff]  ;;  %v11830_v27 = vcombine.low %v1661_v15, %v1677_v16 }
 0x2ee   : > { %8234 = vst [vmem:[#allocation2 + $0x28] sm:$0xff] %v8202_v34  ;;  %7431 = vmatpush1.bf16.msra.mxu1 %v11606_v55  ;;  %v1197_v24 = vld [vmem:[%s14272_s30 + $0xeb0] sm:$0xff] }
 0x2ef   : > { %7432 = vmatprep.subr.bf16.mxu1 %v11639_v31  ;;  %v1693_v25 = vld [vmem:[%s14272_s30 + $0x1e30] sm:$0xff]  ;;  %v11351_v55 = vcombine.high %v1181_v23, %v1197_v24  ;;  %v11350_v33 = vcombine.low %v1181_v23, %v1197_v24 }
 0x2f0   : > { %7392 = vmatpush1.bf16.msra.mxu0 %v11126_v37  ;;  %v1709_v54 = vld [vmem:[%s14272_s30 + $0x1eb0] sm:$0xff]  ;;  %v734_v37 = vld [vmem:[%s14272_s30 + $0x38] sm:$0xff] }
 0x2f1   : > { %7393 = vmatprep.subr.bf16.mxu0 %v11159_v39  ;;  %v11863_v28 = vcombine.high %v1693_v25, %v1709_v54  ;;  %v1213_v29 = vld [vmem:[%s14272_s30 + $0xf30] sm:$0xff]  ;;  %v11862_v34 = vcombine.low %v1693_v25, %v1709_v54  ;;  %v1246_v39 = vld [vmem:[%s14272_s30 + $0x1038] sm:$0xff] }
 0x2f2   : > { %7433 = vmatpush1.bf16.msra.mxu1 %v11638_v38  ;;  %v1229_v30 = vld [vmem:[%s14272_s30 + $0xfb0] sm:$0xff]  ;;  %v750_v38 = vld [vmem:[%s14272_s30 + $0xb8] sm:$0xff] }
 0x2f3   : > { %7434 = vmatprep.subr.bf16.mxu1 %v11671_v40  ;;  %v1725_v31 = vld [vmem:[%s14272_s30 + $0x1f30] sm:$0xff]  ;;  %v11383_v35 = vcombine.high %v1213_v29, %v1229_v30  ;;  %v1262_v40 = vld [vmem:[%s14272_s30 + $0x10b8] sm:$0xff]  ;;  %v11382_v41 = vcombine.low %v1213_v29, %v1229_v30  ;;  %v10905_v43 = vcombine.high %v734_v37, %v750_v38  ;;  %v10904_v49 = vcombine.low %v734_v37, %v750_v38 }
 0x2f4   : > { %7394 = vmatpush1.bf16.msra.mxu0 %v11158_v45  ;;  %v11895_v36 = vcombine.high %v1725_v31, %v1741_v32  ;;  %v11894_v42 = vcombine.low %v1725_v31, %v1741_v32  ;;  %v11417_v44 = vcombine.high %v1246_v39, %v1262_v40  ;;  %v766_v45 = vld [vmem:[%s14272_s30 + $0x138] sm:$0xff]  ;;  %v11416_v50 = vcombine.low %v1246_v39, %v1262_v40 }
 0x2f5   : > { %7395 = vmatprep.subr.bf16.mxu0 %v11191_v47  ;;  %v1278_v47 = vld [vmem:[%s14272_s30 + $0x1138] sm:$0xff] }
 0x2f6   : > { %7435 = vmatpush1.bf16.msra.mxu1 %v11670_v46  ;;  %v782_v46 = vld [vmem:[%s14272_s30 + $0x1b8] sm:$0xff] }
 0x2f7   : > { %7436 = vmatprep.subr.bf16.mxu1 %v11703_v48  ;;  %v1294_v48 = vld [vmem:[%s14272_s30 + $0x11b8] sm:$0xff]  ;;  %v10937_v51 = vcombine.high %v766_v45, %v782_v46  ;;  %v10936_v61 = vcombine.low %v766_v45, %v782_v46 }
 0x2f8   : > { %7396 = vmatpush1.bf16.msra.mxu0 %v11190_v53  ;;  %v11449_v52 = vcombine.high %v1278_v47, %v1294_v48  ;;  %v798_v53 = vld [vmem:[%s14272_s30 + $0x238] sm:$0xff]  ;;  %v11448_v62 = vcombine.low %v1278_v47, %v1294_v48 }
 0x2f9   : > { %7397 = vmatprep.subr.bf16.mxu0 %v11223_v57  ;;  %v1310_v57 = vld [vmem:[%s14272_s30 + $0x1238] sm:$0xff] }
 0x2fa   : > { %7437 = vmatpush1.bf16.msra.mxu1 %v11702_v56  ;;  %v814_v56 = vld [vmem:[%s14272_s30 + $0x2b8] sm:$0xff] }
 0x2fb   : > { %7438 = vmatprep.subr.bf16.mxu1 %v11735_v58  ;;  %v1326_v58 = vld [vmem:[%s14272_s30 + $0x12b8] sm:$0xff]  ;;  %v10969_v63 = vcombine.high %v798_v53, %v814_v56  ;;  %v10968_v5 = vcombine.low %v798_v53, %v814_v56 }
 0x2fc   : > { %7398 = vmatpush1.bf16.msra.mxu0 %v11222_v1  ;;  %v11481_v0 = vcombine.high %v1310_v57, %v1326_v58  ;;  %v830_v1 = vld [vmem:[%s14272_s30 + $0x338] sm:$0xff]  ;;  %v11480_v6 = vcombine.low %v1310_v57, %v1326_v58 }
 0x2fd   : > { %7399 = vmatprep.subr.bf16.mxu0 %v11255_v3  ;;  %v1342_v3 = vld [vmem:[%s14272_s30 + $0x1338] sm:$0xff] }
 0x2fe   : > { %7439 = vmatpush1.bf16.msra.mxu1 %v11734_v2  ;;  %v846_v2 = vld [vmem:[%s14272_s30 + $0x3b8] sm:$0xff] }
 0x2ff   : > { %7440 = vmatprep.subr.bf16.mxu1 %v11767_v4  ;;  %v1358_v4 = vld [vmem:[%s14272_s30 + $0x13b8] sm:$0xff]  ;;  %v11001_v7 = vcombine.high %v830_v1, %v846_v2  ;;  %v11000_v13 = vcombine.low %v830_v1, %v846_v2 }
 0x300   : > { %7400 = vmatpush1.bf16.msra.mxu0 %v11254_v9  ;;  %v11513_v8 = vcombine.high %v1342_v3, %v1358_v4  ;;  %v862_v9 = vld [vmem:[%s14272_s30 + $0x438] sm:$0xff]  ;;  %v11512_v14 = vcombine.low %v1342_v3, %v1358_v4 }
 0x301   : > { %7401 = vmatprep.subr.bf16.mxu0 %v11287_v11  ;;  %v1374_v11 = vld [vmem:[%s14272_s30 + $0x1438] sm:$0xff] }
 0x302   : > { %7441 = vmatpush1.bf16.msra.mxu1 %v11766_v10  ;;  %v878_v10 = vld [vmem:[%s14272_s30 + $0x4b8] sm:$0xff] }
 0x303   : > { %7442 = vmatprep.subr.bf16.mxu1 %v11799_v12  ;;  %v1390_v12 = vld [vmem:[%s14272_s30 + $0x14b8] sm:$0xff]  ;;  %v11033_v15 = vcombine.high %v862_v9, %v878_v10  ;;  %v11032_v23 = vcombine.low %v862_v9, %v878_v10 }
 0x304   : > { %7402 = vmatpush1.bf16.msra.mxu0 %v11286_v18  ;;  %v11545_v16 = vcombine.high %v1374_v11, %v1390_v12  ;;  %v894_v18 = vld [vmem:[%s14272_s30 + $0x538] sm:$0xff]  ;;  %v11544_v24 = vcombine.low %v1374_v11, %v1390_v12 }
 0x305   : > { %7403 = vmatprep.subr.bf16.mxu0 %v11319_v21  ;;  %v1406_v21 = vld [vmem:[%s14272_s30 + $0x1538] sm:$0xff] }
 0x306   : > { %7443 = vmatpush1.bf16.msra.mxu1 %v11798_v19  ;;  %v910_v19 = vld [vmem:[%s14272_s30 + $0x5b8] sm:$0xff] }
 0x307   : > { %7444 = vmatprep.subr.bf16.mxu1 %v11831_v22  ;;  %v1422_v22 = vld [vmem:[%s14272_s30 + $0x15b8] sm:$0xff]  ;;  %v11065_v25 = vcombine.high %v894_v18, %v910_v19  ;;  %v11064_v29 = vcombine.low %v894_v18, %v910_v19 }
 0x308   : > { %7404 = vmatpush1.bf16.msra.mxu0 %v11318_v26  ;;  %v11577_v54 = vcombine.high %v1406_v21, %v1422_v22  ;;  %v926_v26 = vld [vmem:[%s14272_s30 + $0x638] sm:$0xff]  ;;  %v11576_v30 = vcombine.low %v1406_v21, %v1422_v22 }
 0x309   : > { %7405 = vmatprep.subr.bf16.mxu0 %v11351_v55  ;;  %v1438_v55 = vld [vmem:[%s14272_s30 + $0x1638] sm:$0xff] }
 0x30a   : > { %7445 = vmatpush1.bf16.msra.mxu1 %v11830_v27  ;;  %v942_v27 = vld [vmem:[%s14272_s30 + $0x6b8] sm:$0xff] }
 0x30b   : > { %7446 = vmatprep.subr.bf16.mxu1 %v11863_v28  ;;  %v1454_v28 = vld [vmem:[%s14272_s30 + $0x16b8] sm:$0xff]  ;;  %v11097_v31 = vcombine.high %v926_v26, %v942_v27  ;;  %v11096_v45 = vcombine.low %v926_v26, %v942_v27 }
 0x30c   : > { %7406 = vmatpush1.bf16.msra.mxu0 %v11350_v33  ;;  %v11609_v33 = vcombine.high %v1438_v55, %v1454_v28  ;;  %v1470_v39 = vld [vmem:[%s14272_s30 + $0x1738] sm:$0xff] }
 0x30d   : > { %7407 = vmatprep.subr.bf16.mxu0 %v11383_v35  ;;  %v974_v35 = vld [vmem:[%s14272_s30 + $0x7b8] sm:$0xff] }
 0x30e   : > { %7447 = vmatpush1.bf16.msra.mxu1 %v11862_v34  ;;  %v958_v34 = vld [vmem:[%s14272_s30 + $0x738] sm:$0xff] }
 0x30f   : > { %7448 = vmatprep.subr.bf16.mxu1 %v11895_v36  ;;  %v699_v36 = vld [vmem:[#allocation2 + $0x30] sm:$0xff]  ;;  %v1486_v40 = vld [vmem:[%s14272_s30 + $0x17b8] sm:$0xff] }
 0x310   : > { %7408 = vmatpush1.bf16.msra.mxu0 %v11382_v41  ;;  %v11641_v53 = vcombine.high %v1470_v39, %v1486_v40  ;;  %v990_v56 = vld [vmem:[%s14272_s30 + $0x838] sm:$0xff] }
 0x311   : > { %7459 = vmatprep.subr.bf16.mxu0 %v10905_v43  ;;  %v1006_v57 = vld [vmem:[%s14272_s30 + $0x8b8] sm:$0xff] }
 0x312   : > { %7449 = vmatpush1.bf16.msra.mxu1 %v11894_v42  ;;  %v700_v42 = vld [vmem:[#allocation2 + $0x38] sm:$0xff]  ;;  %v11161_v1 = vcombine.high %v990_v56, %v1006_v57 }
 0x313   : > { %7500 = vmatprep.subr.bf16.mxu1 %v11417_v44  ;;  %7410 = vmatmul.mubr.bf16.vlgmr.msra.gmra.mrb[24].mxu0 %v14394_v17  ;;  %v1022_v3 = vld [vmem:[%s14272_s30 + $0x938] sm:$0xff] }
 0x314   : > { %7460 = vmatpush1.bf16.msra.mxu0 %v10904_v49  ;;  %7491 = vmatprep.mubr.bf16.mxu0 %v14344_v59  ;;  %v11608_v49 = vcombine.low %v1438_v55, %v1454_v28  ;;  %v1038_v4 = vld [vmem:[%s14272_s30 + $0x9b8] sm:$0xff] }
 0x315   : > { %7451 = vmatmul.mubr.bf16.vlgmr.msra.gmra.mrb[24].mxu1 %v14400_v20  ;;  %7461 = vmatprep.subr.bf16.mxu0 %v10937_v51  ;;  %v11193_v9 = vcombine.high %v1022_v3, %v1038_v4  ;;  %v1054_v11 = vld [vmem:[%s14272_s30 + $0xa38] sm:$0xff] }
 0x316   : > { %7501 = vmatpush1.bf16.msra.mxu1 %v11416_v50  ;;  %7532 = vmatprep.mubr.bf16.mxu1 %v14348_v60  ;;  %v11129_v50 = vcombine.high %v958_v34, %v974_v35  ;;  %v1070_v12 = vld [vmem:[%s14272_s30 + $0xab8] sm:$0xff] }
 0x317   : > { %7502 = vmatprep.subr.bf16.mxu1 %v11449_v52  ;;  %v11225_v18 = vcombine.high %v1054_v11, %v1070_v12  ;;  %v1086_v21 = vld [vmem:[%s14272_s30 + $0xb38] sm:$0xff] }
 0x318   : > { %7462 = vmatpush1.bf16.msra.mxu0 %v10936_v61  ;;  %v1502_v61 = vld [vmem:[%s14272_s30 + $0x1838] sm:$0xff] }
 0x319   : > { %7463 = vmatprep.subr.bf16.mxu0 %v10969_v63  ;;  %v11128_v63 = vcombine.low %v958_v34, %v974_v35  ;;  %v1102_v22 = vld [vmem:[%s14272_s30 + $0xbb8] sm:$0xff] }
 0x31a   : > { %7503 = vmatpush1.bf16.msra.mxu1 %v11448_v62  ;;  %v1518_v62 = vld [vmem:[%s14272_s30 + $0x18b8] sm:$0xff]  ;;  %v11257_v26 = vcombine.high %v1086_v21, %v1102_v22 }
 0x31b   : > { %7504 = vmatprep.subr.bf16.mxu1 %v11481_v0  ;;  %v11640_v0 = vcombine.low %v1470_v39, %v1486_v40  ;;  %v11673_v2 = vcombine.high %v1502_v61, %v1518_v62  ;;  %v1118_v55 = vld [vmem:[%s14272_s30 + $0xc38] sm:$0xff] }
 0x31c   : > { %7464 = vmatpush1.bf16.msra.mxu0 %v10968_v5  ;;  %v1534_v5 = vld [vmem:[%s14272_s30 + $0x1938] sm:$0xff] }
 0x31d   : > { %7465 = vmatprep.subr.bf16.mxu0 %v11001_v7  ;;  %v11160_v7 = vcombine.low %v990_v56, %v1006_v57  ;;  %v1134_v28 = vld [vmem:[%s14272_s30 + $0xcb8] sm:$0xff] }
 0x31e   : > { %7505 = vmatpush1.bf16.msra.mxu1 %v11480_v6  ;;  %v1550_v6 = vld [vmem:[%s14272_s30 + $0x19b8] sm:$0xff]  ;;  %v11288_v39 = vcombine.low %v1118_v55, %v1134_v28 }
 0x31f   : > { %7506 = vmatprep.subr.bf16.mxu1 %v11513_v8  ;;  %v11672_v8 = vcombine.low %v1502_v61, %v1518_v62  ;;  %v11705_v10 = vcombine.high %v1534_v5, %v1550_v6  ;;  %v1150_v35 = vld [vmem:[%s14272_s30 + $0xd38] sm:$0xff] }
 0x320   : > { %7466 = vmatpush1.bf16.msra.mxu0 %v11000_v13  ;;  %v1566_v13 = vld [vmem:[%s14272_s30 + $0x1a38] sm:$0xff] }
 0x321   : > { %7467 = vmatprep.subr.bf16.mxu0 %v11033_v15  ;;  %v11192_v15 = vcombine.low %v1022_v3, %v1038_v4  ;;  %v1742_v56 = vld [vmem:[%s14272_s30 + $0x1fb8] sm:$0xff] }
 0x322   : > { %7507 = vmatpush1.bf16.msra.mxu1 %v11512_v14  ;;  %v1582_v14 = vld [vmem:[%s14272_s30 + $0x1ab8] sm:$0xff] }
 0x323   : > { %7508 = vmatprep.subr.bf16.mxu1 %v11545_v16  ;;  %v11704_v16 = vcombine.low %v1534_v5, %v1550_v6  ;;  %v11737_v19 = vcombine.high %v1566_v13, %v1582_v14 }
 0x324   : > { %7468 = vmatpush1.bf16.msra.mxu0 %v11032_v23  ;;  %v1598_v23 = vld [vmem:[%s14272_s30 + $0x1b38] sm:$0xff] }
 0x325   : > { %7469 = vmatprep.subr.bf16.mxu0 %v11065_v25  ;;  %v11224_v25 = vcombine.low %v1054_v11, %v1070_v12 }
 0x326   : > { %7509 = vmatpush1.bf16.msra.mxu1 %v11544_v24  ;;  %v7165_v32 = vpop.f32.mrb[12].mxu0  ;;  %v1614_v24 = vld [vmem:[%s14272_s30 + $0x1bb8] sm:$0xff] }
 0x327   : > { %7510 = vmatprep.subr.bf16.mxu1 %v11577_v54  ;;  %v7167_v38 = vpop.f32.mrb[13].mxu0  ;;  %v11736_v54 = vcombine.low %v1566_v13, %v1582_v14  ;;  %v11769_v27 = vcombine.high %v1598_v23, %v1614_v24 }
 0x328   : > { %v7206_v37 = vpop.f32.mrb[12].mxu1  ;;  %v7169_v44 = vpop.f32.mrb[14].mxu0  ;;  %7470 = vmatpush1.bf16.msra.mxu0 %v11064_v29  ;;  %v1630_v29 = vld [vmem:[%s14272_s30 + $0x1c38] sm:$0xff] }
 0x329   : > { %v7207_v41 = vadd.f32 %v7206_v37, %v7165_v32  ;;  %v7208_v43 = vpop.f32.mrb[13].mxu1  ;;  %v7170_v48 = vpop.f32.mrb[15].mxu0  ;;  %7471 = vmatprep.subr.bf16.mxu0 %v11097_v31  ;;  %v11256_v31 = vcombine.low %v1086_v21, %v1102_v22  ;;  %v11768_v32 = vcombine.low %v1598_v23, %v1614_v24  ;;  %v1662_v37 = vld [vmem:[%s14272_s30 + $0x1d38] sm:$0xff] }
 0x32a   : > { %v7209_v46 = vadd.f32 %v7208_v43, %v7167_v38  ;;  %v7210_v47 = vpop.f32.mrb[14].mxu1  ;;  %7511 = vmatpush1.bf16.msra.mxu1 %v11576_v30  ;;  %v1646_v30 = vld [vmem:[%s14272_s30 + $0x1cb8] sm:$0xff] }
 0x32b   : > { %v8203_v51 = vadd.f32 %v7207_v41, %v699_v36  ;;  %v7211_v52 = vpop.f32.mrb[15].mxu1  ;;  %7512 = vmatprep.subr.bf16.mxu1 %v11609_v33  ;;  %v11289_v33 = vcombine.high %v1118_v55, %v1134_v28  ;;  %v11801_v34 = vcombine.high %v1630_v29, %v1646_v30  ;;  %v1166_v36 = vld [vmem:[%s14272_s30 + $0xdb8] sm:$0xff]  ;;  %v11800_v40 = vcombine.low %v1630_v29, %v1646_v30 }
 0x32c   : > { %v8204_v58 = vadd.f32 %v7209_v46, %v700_v42  ;;  %7472 = vmatpush1.bf16.msra.mxu0 %v11096_v45  ;;  %v1678_v38 = vld [vmem:[%s14272_s30 + $0x1db8] sm:$0xff]  ;;  %v11321_v41 = vcombine.high %v1150_v35, %v1166_v36  ;;  %v11320_v47 = vcombine.low %v1150_v35, %v1166_v36 }
 0x32d   : > { %8235 = vst [vmem:[#allocation2 + $0x30] sm:$0xff] %v8203_v51  ;;  %7473 = vmatprep.subr.bf16.mxu0 %v11129_v50  ;;  %v11833_v42 = vcombine.high %v1662_v37, %v1678_v38  ;;  %v1182_v43 = vld [vmem:[%s14272_s30 + $0xe38] sm:$0xff]  ;;  %v11832_v48 = vcombine.low %v1662_v37, %v1678_v38 }
 0x32e   : > { %8236 = vst [vmem:[#allocation2 + $0x38] sm:$0xff] %v8204_v58  ;;  %7513 = vmatpush1.bf16.msra.mxu1 %v11608_v49  ;;  %v1198_v44 = vld [vmem:[%s14272_s30 + $0xeb8] sm:$0xff] }
 0x32f   : > { %7514 = vmatprep.subr.bf16.mxu1 %v11641_v53  ;;  %v1694_v45 = vld [vmem:[%s14272_s30 + $0x1e38] sm:$0xff]  ;;  %v11353_v49 = vcombine.high %v1182_v43, %v1198_v44  ;;  %v11352_v57 = vcombine.low %v1182_v43, %v1198_v44 }
 0x330   : > { %7474 = vmatpush1.bf16.msra.mxu0 %v11128_v63  ;;  %v1710_v46 = vld [vmem:[%s14272_s30 + $0x1eb8] sm:$0xff]  ;;  %v735_v63 = vld [vmem:[%s14272_s30 + $0x40] sm:$0xff] }
 0x331   : > { %7475 = vmatprep.subr.bf16.mxu0 %v11161_v1  ;;  %v11865_v50 = vcombine.high %v1694_v45, %v1710_v46  ;;  %v1214_v51 = vld [vmem:[%s14272_s30 + $0xf38] sm:$0xff]  ;;  %v11864_v58 = vcombine.low %v1694_v45, %v1710_v46  ;;  %v1247_v1 = vld [vmem:[%s14272_s30 + $0x1040] sm:$0xff] }
 0x332   : > { %7515 = vmatpush1.bf16.msra.mxu1 %v11640_v0  ;;  %v1230_v52 = vld [vmem:[%s14272_s30 + $0xfb8] sm:$0xff]  ;;  %v751_v0 = vld [vmem:[%s14272_s30 + $0xc0] sm:$0xff] }
 0x333   : > { %7516 = vmatprep.subr.bf16.mxu1 %v11673_v2  ;;  %v1726_v53 = vld [vmem:[%s14272_s30 + $0x1f38] sm:$0xff]  ;;  %v11385_v61 = vcombine.high %v1214_v51, %v1230_v52  ;;  %v1263_v2 = vld [vmem:[%s14272_s30 + $0x10c0] sm:$0xff]  ;;  %v11384_v3 = vcombine.low %v1214_v51, %v1230_v52  ;;  %v10907_v5 = vcombine.high %v735_v63, %v751_v0  ;;  %v10906_v11 = vcombine.low %v735_v63, %v751_v0 }
 0x334   : > { %7476 = vmatpush1.bf16.msra.mxu0 %v11160_v7  ;;  %v11897_v62 = vcombine.high %v1726_v53, %v1742_v56  ;;  %v11896_v4 = vcombine.low %v1726_v53, %v1742_v56  ;;  %v11419_v6 = vcombine.high %v1247_v1, %v1263_v2  ;;  %v767_v7 = vld [vmem:[%s14272_s30 + $0x140] sm:$0xff]  ;;  %v11418_v12 = vcombine.low %v1247_v1, %v1263_v2 }
 0x335   : > { %7477 = vmatprep.subr.bf16.mxu0 %v11193_v9  ;;  %v1279_v9 = vld [vmem:[%s14272_s30 + $0x1140] sm:$0xff] }
 0x336   : > { %7517 = vmatpush1.bf16.msra.mxu1 %v11672_v8  ;;  %v783_v8 = vld [vmem:[%s14272_s30 + $0x1c0] sm:$0xff] }
 0x337   : > { %7518 = vmatprep.subr.bf16.mxu1 %v11705_v10  ;;  %v1295_v10 = vld [vmem:[%s14272_s30 + $0x11c0] sm:$0xff]  ;;  %v10939_v13 = vcombine.high %v767_v7, %v783_v8  ;;  %v10938_v21 = vcombine.low %v767_v7, %v783_v8 }
 0x338   : > { %7478 = vmatpush1.bf16.msra.mxu0 %v11192_v15  ;;  %v11451_v14 = vcombine.high %v1279_v9, %v1295_v10  ;;  %v799_v15 = vld [vmem:[%s14272_s30 + $0x240] sm:$0xff]  ;;  %v11450_v22 = vcombine.low %v1279_v9, %v1295_v10 }
 0x339   : > { %7479 = vmatprep.subr.bf16.mxu0 %v11225_v18  ;;  %v1311_v18 = vld [vmem:[%s14272_s30 + $0x1240] sm:$0xff] }
 0x33a   : > { %7519 = vmatpush1.bf16.msra.mxu1 %v11704_v16  ;;  %v815_v16 = vld [vmem:[%s14272_s30 + $0x2c0] sm:$0xff] }
 0x33b   : > { %7520 = vmatprep.subr.bf16.mxu1 %v11737_v19  ;;  %v1327_v19 = vld [vmem:[%s14272_s30 + $0x12c0] sm:$0xff]  ;;  %v10971_v23 = vcombine.high %v799_v15, %v815_v16  ;;  %v10970_v55 = vcombine.low %v799_v15, %v815_v16 }
 0x33c   : > { %7480 = vmatpush1.bf16.msra.mxu0 %v11224_v25  ;;  %v11483_v24 = vcombine.high %v1311_v18, %v1327_v19  ;;  %v831_v25 = vld [vmem:[%s14272_s30 + $0x340] sm:$0xff]  ;;  %v11482_v28 = vcombine.low %v1311_v18, %v1327_v19 }
 0x33d   : > { %7481 = vmatprep.subr.bf16.mxu0 %v11257_v26  ;;  %v1343_v26 = vld [vmem:[%s14272_s30 + $0x1340] sm:$0xff] }
 0x33e   : > { %7521 = vmatpush1.bf16.msra.mxu1 %v11736_v54  ;;  %v847_v54 = vld [vmem:[%s14272_s30 + $0x3c0] sm:$0xff] }
 0x33f   : > { %7522 = vmatprep.subr.bf16.mxu1 %v11769_v27  ;;  %v1359_v27 = vld [vmem:[%s14272_s30 + $0x13c0] sm:$0xff]  ;;  %v11003_v29 = vcombine.high %v831_v25, %v847_v54  ;;  %v11002_v35 = vcombine.low %v831_v25, %v847_v54 }
 0x340   : > { %7482 = vmatpush1.bf16.msra.mxu0 %v11256_v31  ;;  %v11515_v30 = vcombine.high %v1343_v26, %v1359_v27  ;;  %v863_v31 = vld [vmem:[%s14272_s30 + $0x440] sm:$0xff]  ;;  %v11514_v36 = vcombine.low %v1343_v26, %v1359_v27 }
 0x341   : > { %7483 = vmatprep.subr.bf16.mxu0 %v11289_v33  ;;  %v1375_v33 = vld [vmem:[%s14272_s30 + $0x1440] sm:$0xff] }
 0x342   : > { %7523 = vmatpush1.bf16.msra.mxu1 %v11768_v32  ;;  %v879_v32 = vld [vmem:[%s14272_s30 + $0x4c0] sm:$0xff] }
 0x343   : > { %7524 = vmatprep.subr.bf16.mxu1 %v11801_v34  ;;  %v1391_v34 = vld [vmem:[%s14272_s30 + $0x14c0] sm:$0xff]  ;;  %v11035_v37 = vcombine.high %v863_v31, %v879_v32  ;;  %v11034_v43 = vcombine.low %v863_v31, %v879_v32 }
 0x344   : > { %7484 = vmatpush1.bf16.msra.mxu0 %v11288_v39  ;;  %v11547_v38 = vcombine.high %v1375_v33, %v1391_v34  ;;  %v895_v39 = vld [vmem:[%s14272_s30 + $0x540] sm:$0xff]  ;;  %v11546_v44 = vcombine.low %v1375_v33, %v1391_v34 }
 0x345   : > { %7485 = vmatprep.subr.bf16.mxu0 %v11321_v41  ;;  %v1407_v41 = vld [vmem:[%s14272_s30 + $0x1540] sm:$0xff] }
 0x346   : > { %7525 = vmatpush1.bf16.msra.mxu1 %v11800_v40  ;;  %v911_v40 = vld [vmem:[%s14272_s30 + $0x5c0] sm:$0xff] }
 0x347   : > { %7526 = vmatprep.subr.bf16.mxu1 %v11833_v42  ;;  %v1423_v42 = vld [vmem:[%s14272_s30 + $0x15c0] sm:$0xff]  ;;  %v11067_v45 = vcombine.high %v895_v39, %v911_v40  ;;  %v11066_v51 = vcombine.low %v895_v39, %v911_v40 }
 0x348   : > { %7486 = vmatpush1.bf16.msra.mxu0 %v11320_v47  ;;  %v11579_v46 = vcombine.high %v1407_v41, %v1423_v42  ;;  %v927_v47 = vld [vmem:[%s14272_s30 + $0x640] sm:$0xff]  ;;  %v11578_v52 = vcombine.low %v1407_v41, %v1423_v42 }
 0x349   : > { %7487 = vmatprep.subr.bf16.mxu0 %v11353_v49  ;;  %v1439_v49 = vld [vmem:[%s14272_s30 + $0x1640] sm:$0xff] }
 0x34a   : > { %7527 = vmatpush1.bf16.msra.mxu1 %v11832_v48  ;;  %v943_v48 = vld [vmem:[%s14272_s30 + $0x6c0] sm:$0xff] }
 0x34b   : > { %7528 = vmatprep.subr.bf16.mxu1 %v11865_v50  ;;  %v1455_v50 = vld [vmem:[%s14272_s30 + $0x16c0] sm:$0xff]  ;;  %v11099_v53 = vcombine.high %v927_v47, %v943_v48  ;;  %v11098_v7 = vcombine.low %v927_v47, %v943_v48 }
 0x34c   : > { %7488 = vmatpush1.bf16.msra.mxu0 %v11352_v57  ;;  %v11611_v57 = vcombine.high %v1439_v49, %v1455_v50  ;;  %v1471_v1 = vld [vmem:[%s14272_s30 + $0x1740] sm:$0xff] }
 0x34d   : > { %7489 = vmatprep.subr.bf16.mxu0 %v11385_v61  ;;  %v975_v61 = vld [vmem:[%s14272_s30 + $0x7c0] sm:$0xff] }
 0x34e   : > { %7529 = vmatpush1.bf16.msra.mxu1 %v11864_v58  ;;  %v959_v58 = vld [vmem:[%s14272_s30 + $0x740] sm:$0xff] }
 0x34f   : > { %7530 = vmatprep.subr.bf16.mxu1 %v11897_v62  ;;  %v701_v62 = vld [vmem:[#allocation2 + $0x40] sm:$0xff] }
 0x350   : > { %7490 = vmatpush1.bf16.msra.mxu0 %v11384_v3  ;;  %v1487_v2 = vld [vmem:[%s14272_s30 + $0x17c0] sm:$0xff] }
 0x351   : > { %7541 = vmatprep.subr.bf16.mxu0 %v10907_v5  ;;  %v11643_v15 = vcombine.high %v1471_v1, %v1487_v2  ;;  %v991_v16 = vld [vmem:[%s14272_s30 + $0x840] sm:$0xff] }
 0x352   : > { %7531 = vmatpush1.bf16.msra.mxu1 %v11896_v4  ;;  %v702_v4 = vld [vmem:[#allocation2 + $0x48] sm:$0xff]  ;;  %v1007_v18 = vld [vmem:[%s14272_s30 + $0x8c0] sm:$0xff] }
 0x353   : > { %7582 = vmatprep.subr.bf16.mxu1 %v11419_v6  ;;  %7492 = vmatmul.mubr.bf16.vlgmr.msra.gmra.mrb[28].mxu0 %v14394_v17  ;;  %v11163_v25 = vcombine.high %v991_v16, %v1007_v18  ;;  %v1023_v26 = vld [vmem:[%s14272_s30 + $0x940] sm:$0xff] }
 0x354   : > { %7542 = vmatpush1.bf16.msra.mxu0 %v10906_v11  ;;  %7573 = vmatprep.mubr.bf16.mxu0 %v14344_v59  ;;  %v11610_v11 = vcombine.low %v1439_v49, %v1455_v50  ;;  %v1039_v27 = vld [vmem:[%s14272_s30 + $0x9c0] sm:$0xff] }
 0x355   : > { %7533 = vmatmul.mubr.bf16.vlgmr.msra.gmra.mrb[28].mxu1 %v14400_v20  ;;  %7543 = vmatprep.subr.bf16.mxu0 %v10939_v13  ;;  %v11195_v31 = vcombine.high %v1023_v26, %v1039_v27  ;;  %v1055_v33 = vld [vmem:[%s14272_s30 + $0xa40] sm:$0xff] }
 0x356   : > { %7583 = vmatpush1.bf16.msra.mxu1 %v11418_v12  ;;  %7614 = vmatprep.mubr.bf16.mxu1 %v14348_v60  ;;  %v11131_v12 = vcombine.high %v959_v58, %v975_v61  ;;  %v1071_v34 = vld [vmem:[%s14272_s30 + $0xac0] sm:$0xff] }
 0x357   : > { %7584 = vmatprep.subr.bf16.mxu1 %v11451_v14  ;;  %v11227_v39 = vcombine.high %v1055_v33, %v1071_v34  ;;  %v1087_v41 = vld [vmem:[%s14272_s30 + $0xb40] sm:$0xff] }
 0x358   : > { %7544 = vmatpush1.bf16.msra.mxu0 %v10938_v21  ;;  %v1503_v21 = vld [vmem:[%s14272_s30 + $0x1840] sm:$0xff] }
 0x359   : > { %7545 = vmatprep.subr.bf16.mxu0 %v10971_v23  ;;  %v11130_v23 = vcombine.low %v959_v58, %v975_v61  ;;  %v1103_v42 = vld [vmem:[%s14272_s30 + $0xbc0] sm:$0xff] }
 0x35a   : > { %7585 = vmatpush1.bf16.msra.mxu1 %v11450_v22  ;;  %v1519_v22 = vld [vmem:[%s14272_s30 + $0x18c0] sm:$0xff]  ;;  %v11259_v47 = vcombine.high %v1087_v41, %v1103_v42 }
 0x35b   : > { %7586 = vmatprep.subr.bf16.mxu1 %v11483_v24  ;;  %v11642_v24 = vcombine.low %v1471_v1, %v1487_v2  ;;  %v11675_v54 = vcombine.high %v1503_v21, %v1519_v22  ;;  %v1119_v49 = vld [vmem:[%s14272_s30 + $0xc40] sm:$0xff] }
 0x35c   : > { %7546 = vmatpush1.bf16.msra.mxu0 %v10970_v55  ;;  %v1535_v55 = vld [vmem:[%s14272_s30 + $0x1940] sm:$0xff] }
 0x35d   : > { %7547 = vmatprep.subr.bf16.mxu0 %v11003_v29  ;;  %v11162_v29 = vcombine.low %v991_v16, %v1007_v18  ;;  %v1135_v50 = vld [vmem:[%s14272_s30 + $0xcc0] sm:$0xff] }
 0x35e   : > { %7587 = vmatpush1.bf16.msra.mxu1 %v11482_v28  ;;  %v1551_v28 = vld [vmem:[%s14272_s30 + $0x19c0] sm:$0xff]  ;;  %v11290_v1 = vcombine.low %v1119_v49, %v1135_v50 }
 0x35f   : > { %7588 = vmatprep.subr.bf16.mxu1 %v11515_v30  ;;  %v11674_v30 = vcombine.low %v1503_v21, %v1519_v22  ;;  %v11707_v32 = vcombine.high %v1535_v55, %v1551_v28  ;;  %v1151_v61 = vld [vmem:[%s14272_s30 + $0xd40] sm:$0xff] }
 0x360   : > { %7548 = vmatpush1.bf16.msra.mxu0 %v11002_v35  ;;  %v1567_v35 = vld [vmem:[%s14272_s30 + $0x1a40] sm:$0xff] }
 0x361   : > { %7549 = vmatprep.subr.bf16.mxu0 %v11035_v37  ;;  %v11194_v37 = vcombine.low %v1023_v26, %v1039_v27  ;;  %v1743_v16 = vld [vmem:[%s14272_s30 + $0x1fc0] sm:$0xff] }
 0x362   : > { %7589 = vmatpush1.bf16.msra.mxu1 %v11514_v36  ;;  %v1583_v36 = vld [vmem:[%s14272_s30 + $0x1ac0] sm:$0xff] }
 0x363   : > { %7590 = vmatprep.subr.bf16.mxu1 %v11547_v38  ;;  %v11706_v38 = vcombine.low %v1535_v55, %v1551_v28  ;;  %v11739_v40 = vcombine.high %v1567_v35, %v1583_v36 }
 0x364   : > { %7550 = vmatpush1.bf16.msra.mxu0 %v11034_v43  ;;  %v1599_v43 = vld [vmem:[%s14272_s30 + $0x1b40] sm:$0xff] }
 0x365   : > { %7551 = vmatprep.subr.bf16.mxu0 %v11067_v45  ;;  %v11226_v45 = vcombine.low %v1055_v33, %v1071_v34 }
 0x366   : > { %7591 = vmatpush1.bf16.msra.mxu1 %v11546_v44  ;;  %v7247_v56 = vpop.f32.mrb[16].mxu0  ;;  %v1615_v44 = vld [vmem:[%s14272_s30 + $0x1bc0] sm:$0xff] }
 0x367   : > { %7592 = vmatprep.subr.bf16.mxu1 %v11579_v46  ;;  %v7249_v0 = vpop.f32.mrb[17].mxu0  ;;  %v11738_v46 = vcombine.low %v1567_v35, %v1583_v36  ;;  %v11771_v48 = vcombine.high %v1599_v43, %v1615_v44 }
 0x368   : > { %v7288_v63 = vpop.f32.mrb[16].mxu1  ;;  %v7251_v6 = vpop.f32.mrb[18].mxu0  ;;  %7552 = vmatpush1.bf16.msra.mxu0 %v11066_v51  ;;  %v1631_v51 = vld [vmem:[%s14272_s30 + $0x1c40] sm:$0xff] }
 0x369   : > { %v7289_v3 = vadd.f32 %v7288_v63, %v7247_v56  ;;  %v7290_v5 = vpop.f32.mrb[17].mxu1  ;;  %v7252_v10 = vpop.f32.mrb[19].mxu0  ;;  %7553 = vmatprep.subr.bf16.mxu0 %v11099_v53  ;;  %v11258_v53 = vcombine.low %v1087_v41, %v1103_v42  ;;  %v11770_v56 = vcombine.low %v1599_v43, %v1615_v44  ;;  %v1663_v63 = vld [vmem:[%s14272_s30 + $0x1d40] sm:$0xff] }
 0x36a   : > { %v7291_v8 = vadd.f32 %v7290_v5, %v7249_v0  ;;  %v7292_v9 = vpop.f32.mrb[18].mxu1  ;;  %7593 = vmatpush1.bf16.msra.mxu1 %v11578_v52  ;;  %v1647_v52 = vld [vmem:[%s14272_s30 + $0x1cc0] sm:$0xff] }
 0x36b   : > { %v8205_v13 = vadd.f32 %v7289_v3, %v701_v62  ;;  %v7293_v14 = vpop.f32.mrb[19].mxu1  ;;  %7594 = vmatprep.subr.bf16.mxu1 %v11611_v57  ;;  %v11291_v57 = vcombine.high %v1119_v49, %v1135_v50  ;;  %v11803_v58 = vcombine.high %v1631_v51, %v1647_v52  ;;  %v1167_v62 = vld [vmem:[%s14272_s30 + $0xdc0] sm:$0xff]  ;;  %v11802_v2 = vcombine.low %v1631_v51, %v1647_v52 }
 0x36c   : > { %v8206_v19 = vadd.f32 %v7291_v8, %v702_v4  ;;  %7554 = vmatpush1.bf16.msra.mxu0 %v11098_v7  ;;  %v1679_v0 = vld [vmem:[%s14272_s30 + $0x1dc0] sm:$0xff]  ;;  %v11323_v3 = vcombine.high %v1151_v61, %v1167_v62  ;;  %v11322_v9 = vcombine.low %v1151_v61, %v1167_v62 }
 0x36d   : > { %8237 = vst [vmem:[#allocation2 + $0x40] sm:$0xff] %v8205_v13  ;;  %7555 = vmatprep.subr.bf16.mxu0 %v11131_v12  ;;  %v11835_v4 = vcombine.high %v1663_v63, %v1679_v0  ;;  %v1183_v5 = vld [vmem:[%s14272_s30 + $0xe40] sm:$0xff]  ;;  %v11834_v10 = vcombine.low %v1663_v63, %v1679_v0 }
 0x36e   : > { %8238 = vst [vmem:[#allocation2 + $0x48] sm:$0xff] %v8206_v19  ;;  %7595 = vmatpush1.bf16.msra.mxu1 %v11610_v11  ;;  %v1199_v6 = vld [vmem:[%s14272_s30 + $0xec0] sm:$0xff] }
 0x36f   : > { %7596 = vmatprep.subr.bf16.mxu1 %v11643_v15  ;;  %v1695_v7 = vld [vmem:[%s14272_s30 + $0x1e40] sm:$0xff]  ;;  %v11355_v11 = vcombine.high %v1183_v5, %v1199_v6  ;;  %v11354_v18 = vcombine.low %v1183_v5, %v1199_v6 }
 0x370   : > { %7556 = vmatpush1.bf16.msra.mxu0 %v11130_v23  ;;  %v1711_v8 = vld [vmem:[%s14272_s30 + $0x1ec0] sm:$0xff]  ;;  %v736_v23 = vld [vmem:[%s14272_s30 + $0x48] sm:$0xff] }
 0x371   : > { %7557 = vmatprep.subr.bf16.mxu0 %v11163_v25  ;;  %v11867_v12 = vcombine.high %v1695_v7, %v1711_v8  ;;  %v1215_v13 = vld [vmem:[%s14272_s30 + $0xf40] sm:$0xff]  ;;  %v11866_v19 = vcombine.low %v1695_v7, %v1711_v8  ;;  %v1248_v25 = vld [vmem:[%s14272_s30 + $0x1048] sm:$0xff] }
 0x372   : > { %7597 = vmatpush1.bf16.msra.mxu1 %v11642_v24  ;;  %v1231_v14 = vld [vmem:[%s14272_s30 + $0xfc0] sm:$0xff]  ;;  %v752_v24 = vld [vmem:[%s14272_s30 + $0xc8] sm:$0xff] }
 0x373   : > { %7598 = vmatprep.subr.bf16.mxu1 %v11675_v54  ;;  %v1727_v15 = vld [vmem:[%s14272_s30 + $0x1f40] sm:$0xff]  ;;  %v11387_v21 = vcombine.high %v1215_v13, %v1231_v14  ;;  %v1264_v54 = vld [vmem:[%s14272_s30 + $0x10c8] sm:$0xff]  ;;  %v11386_v26 = vcombine.low %v1215_v13, %v1231_v14  ;;  %v10909_v55 = vcombine.high %v736_v23, %v752_v24  ;;  %v10908_v33 = vcombine.low %v736_v23, %v752_v24 }
 0x374   : > { %7558 = vmatpush1.bf16.msra.mxu0 %v11162_v29  ;;  %v11899_v22 = vcombine.high %v1727_v15, %v1743_v16  ;;  %v11898_v27 = vcombine.low %v1727_v15, %v1743_v16  ;;  %v11421_v28 = vcombine.high %v1248_v25, %v1264_v54  ;;  %v768_v29 = vld [vmem:[%s14272_s30 + $0x148] sm:$0xff]  ;;  %v11420_v34 = vcombine.low %v1248_v25, %v1264_v54 }
 0x375   : > { %7559 = vmatprep.subr.bf16.mxu0 %v11195_v31  ;;  %v1280_v31 = vld [vmem:[%s14272_s30 + $0x1148] sm:$0xff] }
 0x376   : > { %7599 = vmatpush1.bf16.msra.mxu1 %v11674_v30  ;;  %v784_v30 = vld [vmem:[%s14272_s30 + $0x1c8] sm:$0xff] }
 0x377   : > { %7600 = vmatprep.subr.bf16.mxu1 %v11707_v32  ;;  %v1296_v32 = vld [vmem:[%s14272_s30 + $0x11c8] sm:$0xff]  ;;  %v10941_v35 = vcombine.high %v768_v29, %v784_v30  ;;  %v10940_v41 = vcombine.low %v768_v29, %v784_v30 }
 0x378   : > { %7560 = vmatpush1.bf16.msra.mxu0 %v11194_v37  ;;  %v11453_v36 = vcombine.high %v1280_v31, %v1296_v32  ;;  %v800_v37 = vld [vmem:[%s14272_s30 + $0x248] sm:$0xff]  ;;  %v11452_v42 = vcombine.low %v1280_v31, %v1296_v32 }
 0x379   : > { %7561 = vmatprep.subr.bf16.mxu0 %v11227_v39  ;;  %v1312_v39 = vld [vmem:[%s14272_s30 + $0x1248] sm:$0xff] }
 0x37a   : > { %7601 = vmatpush1.bf16.msra.mxu1 %v11706_v38  ;;  %v816_v38 = vld [vmem:[%s14272_s30 + $0x2c8] sm:$0xff] }
 0x37b   : > { %7602 = vmatprep.subr.bf16.mxu1 %v11739_v40  ;;  %v1328_v40 = vld [vmem:[%s14272_s30 + $0x12c8] sm:$0xff]  ;;  %v10973_v43 = vcombine.high %v800_v37, %v816_v38  ;;  %v10972_v49 = vcombine.low %v800_v37, %v816_v38 }
 0x37c   : > { %7562 = vmatpush1.bf16.msra.mxu0 %v11226_v45  ;;  %v11485_v44 = vcombine.high %v1312_v39, %v1328_v40  ;;  %v832_v45 = vld [vmem:[%s14272_s30 + $0x348] sm:$0xff]  ;;  %v11484_v50 = vcombine.low %v1312_v39, %v1328_v40 }
 0x37d   : > { %7563 = vmatprep.subr.bf16.mxu0 %v11259_v47  ;;  %v1344_v47 = vld [vmem:[%s14272_s30 + $0x1348] sm:$0xff] }
 0x37e   : > { %7603 = vmatpush1.bf16.msra.mxu1 %v11738_v46  ;;  %v848_v46 = vld [vmem:[%s14272_s30 + $0x3c8] sm:$0xff] }
 0x37f   : > { %7604 = vmatprep.subr.bf16.mxu1 %v11771_v48  ;;  %v1360_v48 = vld [vmem:[%s14272_s30 + $0x13c8] sm:$0xff]  ;;  %v11005_v51 = vcombine.high %v832_v45, %v848_v46  ;;  %v11004_v61 = vcombine.low %v832_v45, %v848_v46 }
 0x380   : > { %7564 = vmatpush1.bf16.msra.mxu0 %v11258_v53  ;;  %v11517_v52 = vcombine.high %v1344_v47, %v1360_v48  ;;  %v864_v53 = vld [vmem:[%s14272_s30 + $0x448] sm:$0xff]  ;;  %v11516_v62 = vcombine.low %v1344_v47, %v1360_v48 }
 0x381   : > { %7565 = vmatprep.subr.bf16.mxu0 %v11291_v57  ;;  %v1376_v57 = vld [vmem:[%s14272_s30 + $0x1448] sm:$0xff] }
 0x382   : > { %7605 = vmatpush1.bf16.msra.mxu1 %v11770_v56  ;;  %v880_v56 = vld [vmem:[%s14272_s30 + $0x4c8] sm:$0xff] }
 0x383   : > { %7606 = vmatprep.subr.bf16.mxu1 %v11803_v58  ;;  %v1392_v58 = vld [vmem:[%s14272_s30 + $0x14c8] sm:$0xff]  ;;  %v11037_v63 = vcombine.high %v864_v53, %v880_v56  ;;  %v11036_v5 = vcombine.low %v864_v53, %v880_v56 }
 0x384   : > { %7566 = vmatpush1.bf16.msra.mxu0 %v11290_v1  ;;  %v11549_v0 = vcombine.high %v1376_v57, %v1392_v58  ;;  %v896_v1 = vld [vmem:[%s14272_s30 + $0x548] sm:$0xff]  ;;  %v11548_v6 = vcombine.low %v1376_v57, %v1392_v58 }
 0x385   : > { %7567 = vmatprep.subr.bf16.mxu0 %v11323_v3  ;;  %v1408_v3 = vld [vmem:[%s14272_s30 + $0x1548] sm:$0xff] }
 0x386   : > { %7607 = vmatpush1.bf16.msra.mxu1 %v11802_v2  ;;  %v912_v2 = vld [vmem:[%s14272_s30 + $0x5c8] sm:$0xff] }
 0x387   : > { %7608 = vmatprep.subr.bf16.mxu1 %v11835_v4  ;;  %v1424_v4 = vld [vmem:[%s14272_s30 + $0x15c8] sm:$0xff]  ;;  %v11069_v7 = vcombine.high %v896_v1, %v912_v2  ;;  %v11068_v13 = vcombine.low %v896_v1, %v912_v2 }
 0x388   : > { %7568 = vmatpush1.bf16.msra.mxu0 %v11322_v9  ;;  %v11581_v8 = vcombine.high %v1408_v3, %v1424_v4  ;;  %v928_v9 = vld [vmem:[%s14272_s30 + $0x648] sm:$0xff]  ;;  %v11580_v14 = vcombine.low %v1408_v3, %v1424_v4 }
 0x389   : > { %7569 = vmatprep.subr.bf16.mxu0 %v11355_v11  ;;  %v1440_v11 = vld [vmem:[%s14272_s30 + $0x1648] sm:$0xff] }
 0x38a   : > { %7609 = vmatpush1.bf16.msra.mxu1 %v11834_v10  ;;  %v944_v10 = vld [vmem:[%s14272_s30 + $0x6c8] sm:$0xff] }
 0x38b   : > { %7610 = vmatprep.subr.bf16.mxu1 %v11867_v12  ;;  %v1456_v12 = vld [vmem:[%s14272_s30 + $0x16c8] sm:$0xff]  ;;  %v11101_v15 = vcombine.high %v928_v9, %v944_v10  ;;  %v11100_v29 = vcombine.low %v928_v9, %v944_v10 }
 0x38c   : > { %7570 = vmatpush1.bf16.msra.mxu0 %v11354_v18  ;;  %v11613_v18 = vcombine.high %v1440_v11, %v1456_v12  ;;  %v1472_v25 = vld [vmem:[%s14272_s30 + $0x1748] sm:$0xff] }
 0x38d   : > { %7571 = vmatprep.subr.bf16.mxu0 %v11387_v21  ;;  %v976_v21 = vld [vmem:[%s14272_s30 + $0x7c8] sm:$0xff] }
 0x38e   : > { %7611 = vmatpush1.bf16.msra.mxu1 %v11866_v19  ;;  %v960_v19 = vld [vmem:[%s14272_s30 + $0x748] sm:$0xff] }
 0x38f   : > { %7612 = vmatprep.subr.bf16.mxu1 %v11899_v22  ;;  %v703_v22 = vld [vmem:[#allocation2 + $0x50] sm:$0xff]  ;;  %v1488_v54 = vld [vmem:[%s14272_s30 + $0x17c8] sm:$0xff] }
 0x390   : > { %7572 = vmatpush1.bf16.msra.mxu0 %v11386_v26  ;;  %v11645_v37 = vcombine.high %v1472_v25, %v1488_v54  ;;  %v992_v38 = vld [vmem:[%s14272_s30 + $0x848] sm:$0xff] }
 0x391   : > { %7623 = vmatprep.subr.bf16.mxu0 %v10909_v55  ;;  %v1008_v39 = vld [vmem:[%s14272_s30 + $0x8c8] sm:$0xff] }
 0x392   : > { %7613 = vmatpush1.bf16.msra.mxu1 %v11898_v27  ;;  %v704_v27 = vld [vmem:[#allocation2 + $0x58] sm:$0xff]  ;;  %v11165_v45 = vcombine.high %v992_v38, %v1008_v39  ;;  %v1024_v47 = vld [vmem:[%s14272_s30 + $0x948] sm:$0xff] }
 0x393   : > { %7664 = vmatprep.subr.bf16.mxu1 %v11421_v28  ;;  %7574 = vmatmul.mubr.bf16.vlgmr.msra.gmra.mrb[32].mxu0 %v14394_v17  ;;  %v1040_v48 = vld [vmem:[%s14272_s30 + $0x9c8] sm:$0xff] }
 0x394   : > { %7624 = vmatpush1.bf16.msra.mxu0 %v10908_v33  ;;  %7655 = vmatprep.mubr.bf16.mxu0 %v14344_v59  ;;  %v11612_v33 = vcombine.low %v1440_v11, %v1456_v12  ;;  %v11197_v53 = vcombine.high %v1024_v47, %v1040_v48  ;;  %v1056_v57 = vld [vmem:[%s14272_s30 + $0xa48] sm:$0xff] }
 0x395   : > { %7615 = vmatmul.mubr.bf16.vlgmr.msra.gmra.mrb[32].mxu1 %v14400_v20  ;;  %7625 = vmatprep.subr.bf16.mxu0 %v10941_v35  ;;  %v1072_v58 = vld [vmem:[%s14272_s30 + $0xac8] sm:$0xff] }
 0x396   : > { %7665 = vmatpush1.bf16.msra.mxu1 %v11420_v34  ;;  %7696 = vmatprep.mubr.bf16.mxu1 %v14348_v60  ;;  %v11133_v34 = vcombine.high %v960_v19, %v976_v21  ;;  %v11229_v1 = vcombine.high %v1056_v57, %v1072_v58  ;;  %v1088_v3 = vld [vmem:[%s14272_s30 + $0xb48] sm:$0xff] }
 0x397   : > { %7666 = vmatprep.subr.bf16.mxu1 %v11453_v36  ;;  %v1104_v4 = vld [vmem:[%s14272_s30 + $0xbc8] sm:$0xff] }
 0x398   : > { %7626 = vmatpush1.bf16.msra.mxu0 %v10940_v41  ;;  %v1504_v41 = vld [vmem:[%s14272_s30 + $0x1848] sm:$0xff]  ;;  %v11261_v9 = vcombine.high %v1088_v3, %v1104_v4 }
 0x399   : > { %7627 = vmatprep.subr.bf16.mxu0 %v10973_v43  ;;  %v11132_v43 = vcombine.low %v960_v19, %v976_v21  ;;  %v1120_v11 = vld [vmem:[%s14272_s30 + $0xc48] sm:$0xff] }
 0x39a   : > { %7667 = vmatpush1.bf16.msra.mxu1 %v11452_v42  ;;  %v1520_v42 = vld [vmem:[%s14272_s30 + $0x18c8] sm:$0xff] }
 0x39b   : > { %7668 = vmatprep.subr.bf16.mxu1 %v11485_v44  ;;  %v11644_v44 = vcombine.low %v1472_v25, %v1488_v54  ;;  %v11677_v46 = vcombine.high %v1504_v41, %v1520_v42  ;;  %v1136_v12 = vld [vmem:[%s14272_s30 + $0xcc8] sm:$0xff] }
 0x39c   : > { %7628 = vmatpush1.bf16.msra.mxu0 %v10972_v49  ;;  %v1536_v49 = vld [vmem:[%s14272_s30 + $0x1948] sm:$0xff]  ;;  %v11292_v25 = vcombine.low %v1120_v11, %v1136_v12 }
 0x39d   : > { %7629 = vmatprep.subr.bf16.mxu0 %v11005_v51  ;;  %v11164_v51 = vcombine.low %v992_v38, %v1008_v39  ;;  %v1152_v21 = vld [vmem:[%s14272_s30 + $0xd48] sm:$0xff] }
 0x39e   : > { %7669 = vmatpush1.bf16.msra.mxu1 %v11484_v50  ;;  %v1552_v50 = vld [vmem:[%s14272_s30 + $0x19c8] sm:$0xff] }
 0x39f   : > { %7670 = vmatprep.subr.bf16.mxu1 %v11517_v52  ;;  %v11676_v52 = vcombine.low %v1504_v41, %v1520_v42  ;;  %v11709_v56 = vcombine.high %v1536_v49, %v1552_v50  ;;  %v1744_v38 = vld [vmem:[%s14272_s30 + $0x1fc8] sm:$0xff] }
 0x3a0   : > { %7630 = vmatpush1.bf16.msra.mxu0 %v11004_v61  ;;  %v1568_v61 = vld [vmem:[%s14272_s30 + $0x1a48] sm:$0xff] }
 0x3a1   : > { %7631 = vmatprep.subr.bf16.mxu0 %v11037_v63  ;;  %v11196_v63 = vcombine.low %v1024_v47, %v1040_v48 }
 0x3a2   : > { %7671 = vmatpush1.bf16.msra.mxu1 %v11516_v62  ;;  %v1584_v62 = vld [vmem:[%s14272_s30 + $0x1ac8] sm:$0xff] }
 0x3a3   : > { %7672 = vmatprep.subr.bf16.mxu1 %v11549_v0  ;;  %v11708_v0 = vcombine.low %v1536_v49, %v1552_v50  ;;  %v11741_v2 = vcombine.high %v1568_v61, %v1584_v62 }
 0x3a4   : > { %7632 = vmatpush1.bf16.msra.mxu0 %v11036_v5  ;;  %v1600_v5 = vld [vmem:[%s14272_s30 + $0x1b48] sm:$0xff] }
 0x3a5   : > { %7633 = vmatprep.subr.bf16.mxu0 %v11069_v7  ;;  %v11228_v7 = vcombine.low %v1056_v57, %v1072_v58 }
 0x3a6   : > { %7673 = vmatpush1.bf16.msra.mxu1 %v11548_v6  ;;  %v7329_v16 = vpop.f32.mrb[20].mxu0  ;;  %v1616_v6 = vld [vmem:[%s14272_s30 + $0x1bc8] sm:$0xff] }
 0x3a7   : > { %7674 = vmatprep.subr.bf16.mxu1 %v11581_v8  ;;  %v7331_v24 = vpop.f32.mrb[21].mxu0  ;;  %v11740_v8 = vcombine.low %v1568_v61, %v1584_v62  ;;  %v11773_v10 = vcombine.high %v1600_v5, %v1616_v6 }
 0x3a8   : > { %v7370_v23 = vpop.f32.mrb[20].mxu1  ;;  %v7333_v28 = vpop.f32.mrb[22].mxu0  ;;  %7634 = vmatpush1.bf16.msra.mxu0 %v11068_v13  ;;  %v1632_v13 = vld [vmem:[%s14272_s30 + $0x1c48] sm:$0xff] }
 0x3a9   : > { %v7371_v26 = vadd.f32 %v7370_v23, %v7329_v16  ;;  %v7372_v55 = vpop.f32.mrb[21].mxu1  ;;  %v7334_v32 = vpop.f32.mrb[23].mxu0  ;;  %7635 = vmatprep.subr.bf16.mxu0 %v11101_v15  ;;  %v11260_v15 = vcombine.low %v1088_v3, %v1104_v4  ;;  %v11772_v16 = vcombine.low %v1600_v5, %v1616_v6  ;;  %v1664_v23 = vld [vmem:[%s14272_s30 + $0x1d48] sm:$0xff] }
 0x3aa   : > { %v7373_v30 = vadd.f32 %v7372_v55, %v7331_v24  ;;  %v7374_v31 = vpop.f32.mrb[22].mxu1  ;;  %7675 = vmatpush1.bf16.msra.mxu1 %v11580_v14  ;;  %v1648_v14 = vld [vmem:[%s14272_s30 + $0x1cc8] sm:$0xff] }
 0x3ab   : > { %v8207_v35 = vadd.f32 %v7371_v26, %v703_v22  ;;  %v7375_v36 = vpop.f32.mrb[23].mxu1  ;;  %7676 = vmatprep.subr.bf16.mxu1 %v11613_v18  ;;  %v11293_v18 = vcombine.high %v1120_v11, %v1136_v12  ;;  %v11805_v19 = vcombine.high %v1632_v13, %v1648_v14  ;;  %v1168_v22 = vld [vmem:[%s14272_s30 + $0xdc8] sm:$0xff]  ;;  %v11804_v54 = vcombine.low %v1632_v13, %v1648_v14 }
 0x3ac   : > { %v8208_v40 = vadd.f32 %v7373_v30, %v704_v27  ;;  %7636 = vmatpush1.bf16.msra.mxu0 %v11100_v29  ;;  %v1680_v24 = vld [vmem:[%s14272_s30 + $0x1dc8] sm:$0xff]  ;;  %v11325_v26 = vcombine.high %v1152_v21, %v1168_v22  ;;  %v11324_v31 = vcombine.low %v1152_v21, %v1168_v22 }
 0x3ad   : > { %8239 = vst [vmem:[#allocation2 + $0x50] sm:$0xff] %v8207_v35  ;;  %7637 = vmatprep.subr.bf16.mxu0 %v11133_v34  ;;  %v11837_v27 = vcombine.high %v1664_v23, %v1680_v24  ;;  %v1184_v55 = vld [vmem:[%s14272_s30 + $0xe48] sm:$0xff]  ;;  %v11836_v32 = vcombine.low %v1664_v23, %v1680_v24 }
 0x3ae   : > { %8240 = vst [vmem:[#allocation2 + $0x58] sm:$0xff] %v8208_v40  ;;  %7677 = vmatpush1.bf16.msra.mxu1 %v11612_v33  ;;  %v1200_v28 = vld [vmem:[%s14272_s30 + $0xec8] sm:$0xff] }
 0x3af   : > { %7678 = vmatprep.subr.bf16.mxu1 %v11645_v37  ;;  %v1696_v29 = vld [vmem:[%s14272_s30 + $0x1e48] sm:$0xff]  ;;  %v11357_v33 = vcombine.high %v1184_v55, %v1200_v28  ;;  %v11356_v39 = vcombine.low %v1184_v55, %v1200_v28 }
 0x3b0   : > { %7638 = vmatpush1.bf16.msra.mxu0 %v11132_v43  ;;  %v1712_v30 = vld [vmem:[%s14272_s30 + $0x1ec8] sm:$0xff]  ;;  %v737_v43 = vld [vmem:[%s14272_s30 + $0x50] sm:$0xff] }
 0x3b1   : > { %7639 = vmatprep.subr.bf16.mxu0 %v11165_v45  ;;  %v11869_v34 = vcombine.high %v1696_v29, %v1712_v30  ;;  %v1216_v35 = vld [vmem:[%s14272_s30 + $0xf48] sm:$0xff]  ;;  %v11868_v40 = vcombine.low %v1696_v29, %v1712_v30  ;;  %v1249_v45 = vld [vmem:[%s14272_s30 + $0x1050] sm:$0xff] }
 0x3b2   : > { %7679 = vmatpush1.bf16.msra.mxu1 %v11644_v44  ;;  %v1232_v36 = vld [vmem:[%s14272_s30 + $0xfc8] sm:$0xff]  ;;  %v753_v44 = vld [vmem:[%s14272_s30 + $0xd0] sm:$0xff] }
 0x3b3   : > { %7680 = vmatprep.subr.bf16.mxu1 %v11677_v46  ;;  %v1728_v37 = vld [vmem:[%s14272_s30 + $0x1f48] sm:$0xff]  ;;  %v11389_v41 = vcombine.high %v1216_v35, %v1232_v36  ;;  %v1265_v46 = vld [vmem:[%s14272_s30 + $0x10d0] sm:$0xff]  ;;  %v11388_v47 = vcombine.low %v1216_v35, %v1232_v36  ;;  %v10911_v49 = vcombine.high %v737_v43, %v753_v44  ;;  %v10910_v57 = vcombine.low %v737_v43, %v753_v44 }
 0x3b4   : > { %7640 = vmatpush1.bf16.msra.mxu0 %v11164_v51  ;;  %v11901_v42 = vcombine.high %v1728_v37, %v1744_v38  ;;  %v11900_v48 = vcombine.low %v1728_v37, %v1744_v38  ;;  %v11423_v50 = vcombine.high %v1249_v45, %v1265_v46  ;;  %v769_v51 = vld [vmem:[%s14272_s30 + $0x150] sm:$0xff]  ;;  %v11422_v58 = vcombine.low %v1249_v45, %v1265_v46 }
 0x3b5   : > { %7641 = vmatprep.subr.bf16.mxu0 %v11197_v53  ;;  %v1281_v53 = vld [vmem:[%s14272_s30 + $0x1150] sm:$0xff] }
 0x3b6   : > { %7681 = vmatpush1.bf16.msra.mxu1 %v11676_v52  ;;  %v785_v52 = vld [vmem:[%s14272_s30 + $0x1d0] sm:$0xff] }
 0x3b7   : > { %7682 = vmatprep.subr.bf16.mxu1 %v11709_v56  ;;  %v1297_v56 = vld [vmem:[%s14272_s30 + $0x11d0] sm:$0xff]  ;;  %v10943_v61 = vcombine.high %v769_v51, %v785_v52  ;;  %v10942_v3 = vcombine.low %v769_v51, %v785_v52 }
 0x3b8   : > { %7642 = vmatpush1.bf16.msra.mxu0 %v11196_v63  ;;  %v11455_v62 = vcombine.high %v1281_v53, %v1297_v56  ;;  %v801_v63 = vld [vmem:[%s14272_s30 + $0x250] sm:$0xff]  ;;  %v11454_v4 = vcombine.low %v1281_v53, %v1297_v56 }
 0x3b9   : > { %7643 = vmatprep.subr.bf16.mxu0 %v11229_v1  ;;  %v1313_v1 = vld [vmem:[%s14272_s30 + $0x1250] sm:$0xff] }
 0x3ba   : > { %7683 = vmatpush1.bf16.msra.mxu1 %v11708_v0  ;;  %v817_v0 = vld [vmem:[%s14272_s30 + $0x2d0] sm:$0xff] }
 0x3bb   : > { %7684 = vmatprep.subr.bf16.mxu1 %v11741_v2  ;;  %v1329_v2 = vld [vmem:[%s14272_s30 + $0x12d0] sm:$0xff]  ;;  %v10975_v5 = vcombine.high %v801_v63, %v817_v0  ;;  %v10974_v11 = vcombine.low %v801_v63, %v817_v0 }
 0x3bc   : > { %7644 = vmatpush1.bf16.msra.mxu0 %v11228_v7  ;;  %v11487_v6 = vcombine.high %v1313_v1, %v1329_v2  ;;  %v833_v7 = vld [vmem:[%s14272_s30 + $0x350] sm:$0xff]  ;;  %v11486_v12 = vcombine.low %v1313_v1, %v1329_v2 }
 0x3bd   : > { %7645 = vmatprep.subr.bf16.mxu0 %v11261_v9  ;;  %v1345_v9 = vld [vmem:[%s14272_s30 + $0x1350] sm:$0xff] }
 0x3be   : > { %7685 = vmatpush1.bf16.msra.mxu1 %v11740_v8  ;;  %v849_v8 = vld [vmem:[%s14272_s30 + $0x3d0] sm:$0xff] }
 0x3bf   : > { %7686 = vmatprep.subr.bf16.mxu1 %v11773_v10  ;;  %v1361_v10 = vld [vmem:[%s14272_s30 + $0x13d0] sm:$0xff]  ;;  %v11007_v13 = vcombine.high %v833_v7, %v849_v8  ;;  %v11006_v21 = vcombine.low %v833_v7, %v849_v8 }
 0x3c0   : > { %7646 = vmatpush1.bf16.msra.mxu0 %v11260_v15  ;;  %v11519_v14 = vcombine.high %v1345_v9, %v1361_v10  ;;  %v865_v15 = vld [vmem:[%s14272_s30 + $0x450] sm:$0xff]  ;;  %v11518_v22 = vcombine.low %v1345_v9, %v1361_v10 }
 0x3c1   : > { %7647 = vmatprep.subr.bf16.mxu0 %v11293_v18  ;;  %v1377_v18 = vld [vmem:[%s14272_s30 + $0x1450] sm:$0xff] }
 0x3c2   : > { %7687 = vmatpush1.bf16.msra.mxu1 %v11772_v16  ;;  %v881_v16 = vld [vmem:[%s14272_s30 + $0x4d0] sm:$0xff] }
 0x3c3   : > { %7688 = vmatprep.subr.bf16.mxu1 %v11805_v19  ;;  %v1393_v19 = vld [vmem:[%s14272_s30 + $0x14d0] sm:$0xff]  ;;  %v11039_v23 = vcombine.high %v865_v15, %v881_v16  ;;  %v11038_v55 = vcombine.low %v865_v15, %v881_v16 }
 0x3c4   : > { %7648 = vmatpush1.bf16.msra.mxu0 %v11292_v25  ;;  %v11551_v24 = vcombine.high %v1377_v18, %v1393_v19  ;;  %v897_v25 = vld [vmem:[%s14272_s30 + $0x550] sm:$0xff]  ;;  %v11550_v28 = vcombine.low %v1377_v18, %v1393_v19 }
 0x3c5   : > { %7649 = vmatprep.subr.bf16.mxu0 %v11325_v26  ;;  %v1409_v26 = vld [vmem:[%s14272_s30 + $0x1550] sm:$0xff] }
 0x3c6   : > { %7689 = vmatpush1.bf16.msra.mxu1 %v11804_v54  ;;  %v913_v54 = vld [vmem:[%s14272_s30 + $0x5d0] sm:$0xff] }
 0x3c7   : > { %7690 = vmatprep.subr.bf16.mxu1 %v11837_v27  ;;  %v1425_v27 = vld [vmem:[%s14272_s30 + $0x15d0] sm:$0xff]  ;;  %v11071_v29 = vcombine.high %v897_v25, %v913_v54  ;;  %v11070_v35 = vcombine.low %v897_v25, %v913_v54 }
 0x3c8   : > { %7650 = vmatpush1.bf16.msra.mxu0 %v11324_v31  ;;  %v11583_v30 = vcombine.high %v1409_v26, %v1425_v27  ;;  %v929_v31 = vld [vmem:[%s14272_s30 + $0x650] sm:$0xff]  ;;  %v11582_v36 = vcombine.low %v1409_v26, %v1425_v27 }
 0x3c9   : > { %7651 = vmatprep.subr.bf16.mxu0 %v11357_v33  ;;  %v1441_v33 = vld [vmem:[%s14272_s30 + $0x1650] sm:$0xff] }
 0x3ca   : > { %7691 = vmatpush1.bf16.msra.mxu1 %v11836_v32  ;;  %v945_v32 = vld [vmem:[%s14272_s30 + $0x6d0] sm:$0xff] }
 0x3cb   : > { %7692 = vmatprep.subr.bf16.mxu1 %v11869_v34  ;;  %v1457_v34 = vld [vmem:[%s14272_s30 + $0x16d0] sm:$0xff]  ;;  %v11103_v37 = vcombine.high %v929_v31, %v945_v32  ;;  %v11102_v51 = vcombine.low %v929_v31, %v945_v32 }
 0x3cc   : > { %7652 = vmatpush1.bf16.msra.mxu0 %v11356_v39  ;;  %v11615_v39 = vcombine.high %v1441_v33, %v1457_v34  ;;  %v1473_v45 = vld [vmem:[%s14272_s30 + $0x1750] sm:$0xff] }
 0x3cd   : > { %7653 = vmatprep.subr.bf16.mxu0 %v11389_v41  ;;  %v977_v41 = vld [vmem:[%s14272_s30 + $0x7d0] sm:$0xff] }
 0x3ce   : > { %7693 = vmatpush1.bf16.msra.mxu1 %v11868_v40  ;;  %v961_v40 = vld [vmem:[%s14272_s30 + $0x750] sm:$0xff] }
 0x3cf   : > { %7694 = vmatprep.subr.bf16.mxu1 %v11901_v42  ;;  %v705_v42 = vld [vmem:[#allocation2 + $0x60] sm:$0xff]  ;;  %v1489_v46 = vld [vmem:[%s14272_s30 + $0x17d0] sm:$0xff] }
 0x3d0   : > { %7654 = vmatpush1.bf16.msra.mxu0 %v11388_v47  ;;  %v11647_v63 = vcombine.high %v1473_v45, %v1489_v46  ;;  %v993_v0 = vld [vmem:[%s14272_s30 + $0x850] sm:$0xff] }
 0x3d1   : > { %7705 = vmatprep.subr.bf16.mxu0 %v10911_v49  ;;  %v1009_v1 = vld [vmem:[%s14272_s30 + $0x8d0] sm:$0xff] }
 0x3d2   : > { %7695 = vmatpush1.bf16.msra.mxu1 %v11900_v48  ;;  %v706_v48 = vld [vmem:[#allocation2 + $0x68] sm:$0xff]  ;;  %v11167_v7 = vcombine.high %v993_v0, %v1009_v1  ;;  %v1025_v9 = vld [vmem:[%s14272_s30 + $0x950] sm:$0xff] }
 0x3d3   : > { %7746 = vmatprep.subr.bf16.mxu1 %v11423_v50  ;;  %7656 = vmatmul.mubr.bf16.vlgmr.msra.gmra.mrb[36].mxu0 %v14394_v17  ;;  %v1041_v10 = vld [vmem:[%s14272_s30 + $0x9d0] sm:$0xff] }
 0x3d4   : > { %7706 = vmatpush1.bf16.msra.mxu0 %v10910_v57  ;;  %7737 = vmatprep.mubr.bf16.mxu0 %v14344_v59  ;;  %v11614_v57 = vcombine.low %v1441_v33, %v1457_v34  ;;  %v11199_v15 = vcombine.high %v1025_v9, %v1041_v10  ;;  %v1057_v18 = vld [vmem:[%s14272_s30 + $0xa50] sm:$0xff] }
 0x3d5   : > { %7697 = vmatmul.mubr.bf16.vlgmr.msra.gmra.mrb[36].mxu1 %v14400_v20  ;;  %7707 = vmatprep.subr.bf16.mxu0 %v10943_v61  ;;  %v1073_v19 = vld [vmem:[%s14272_s30 + $0xad0] sm:$0xff] }
 0x3d6   : > { %7747 = vmatpush1.bf16.msra.mxu1 %v11422_v58  ;;  %7778 = vmatprep.mubr.bf16.mxu1 %v14348_v60  ;;  %v11135_v58 = vcombine.high %v961_v40, %v977_v41  ;;  %v11231_v25 = vcombine.high %v1057_v18, %v1073_v19  ;;  %v1089_v26 = vld [vmem:[%s14272_s30 + $0xb50] sm:$0xff] }
 0x3d7   : > { %7748 = vmatprep.subr.bf16.mxu1 %v11455_v62  ;;  %v1105_v27 = vld [vmem:[%s14272_s30 + $0xbd0] sm:$0xff] }
 0x3d8   : > { %7708 = vmatpush1.bf16.msra.mxu0 %v10942_v3  ;;  %v1505_v3 = vld [vmem:[%s14272_s30 + $0x1850] sm:$0xff]  ;;  %v11263_v31 = vcombine.high %v1089_v26, %v1105_v27 }
 0x3d9   : > { %7709 = vmatprep.subr.bf16.mxu0 %v10975_v5  ;;  %v11134_v5 = vcombine.low %v961_v40, %v977_v41  ;;  %v1121_v33 = vld [vmem:[%s14272_s30 + $0xc50] sm:$0xff] }
 0x3da   : > { %7749 = vmatpush1.bf16.msra.mxu1 %v11454_v4  ;;  %v1521_v4 = vld [vmem:[%s14272_s30 + $0x18d0] sm:$0xff] }
 0x3db   : > { %7750 = vmatprep.subr.bf16.mxu1 %v11487_v6  ;;  %v11646_v6 = vcombine.low %v1473_v45, %v1489_v46  ;;  %v11679_v8 = vcombine.high %v1505_v3, %v1521_v4  ;;  %v1137_v34 = vld [vmem:[%s14272_s30 + $0xcd0] sm:$0xff] }
 0x3dc   : > { %7710 = vmatpush1.bf16.msra.mxu0 %v10974_v11  ;;  %v1537_v11 = vld [vmem:[%s14272_s30 + $0x1950] sm:$0xff]  ;;  %v11294_v45 = vcombine.low %v1121_v33, %v1137_v34 }
 0x3dd   : > { %7711 = vmatprep.subr.bf16.mxu0 %v11007_v13  ;;  %v11166_v13 = vcombine.low %v993_v0, %v1009_v1  ;;  %v1153_v41 = vld [vmem:[%s14272_s30 + $0xd50] sm:$0xff] }
 0x3de   : > { %7751 = vmatpush1.bf16.msra.mxu1 %v11486_v12  ;;  %v1553_v12 = vld [vmem:[%s14272_s30 + $0x19d0] sm:$0xff] }
 0x3df   : > { %7752 = vmatprep.subr.bf16.mxu1 %v11519_v14  ;;  %v11678_v14 = vcombine.low %v1505_v3, %v1521_v4  ;;  %v11711_v16 = vcombine.high %v1537_v11, %v1553_v12  ;;  %v1745_v0 = vld [vmem:[%s14272_s30 + $0x1fd0] sm:$0xff] }
 0x3e0   : > { %7712 = vmatpush1.bf16.msra.mxu0 %v11006_v21  ;;  %v1569_v21 = vld [vmem:[%s14272_s30 + $0x1a50] sm:$0xff] }
 0x3e1   : > { %7713 = vmatprep.subr.bf16.mxu0 %v11039_v23  ;;  %v11198_v23 = vcombine.low %v1025_v9, %v1041_v10 }
 0x3e2   : > { %7753 = vmatpush1.bf16.msra.mxu1 %v11518_v22  ;;  %v1585_v22 = vld [vmem:[%s14272_s30 + $0x1ad0] sm:$0xff] }
 0x3e3   : > { %7754 = vmatprep.subr.bf16.mxu1 %v11551_v24  ;;  %v11710_v24 = vcombine.low %v1537_v11, %v1553_v12  ;;  %v11743_v54 = vcombine.high %v1569_v21, %v1585_v22 }
 0x3e4   : > { %7714 = vmatpush1.bf16.msra.mxu0 %v11038_v55  ;;  %v1601_v55 = vld [vmem:[%s14272_s30 + $0x1b50] sm:$0xff] }
 0x3e5   : > { %7715 = vmatprep.subr.bf16.mxu0 %v11071_v29  ;;  %v11230_v29 = vcombine.low %v1057_v18, %v1073_v19 }
 0x3e6   : > { %7755 = vmatpush1.bf16.msra.mxu1 %v11550_v28  ;;  %v7411_v38 = vpop.f32.mrb[24].mxu0  ;;  %v1617_v28 = vld [vmem:[%s14272_s30 + $0x1bd0] sm:$0xff] }
 0x3e7   : > { %7756 = vmatprep.subr.bf16.mxu1 %v11583_v30  ;;  %v7413_v44 = vpop.f32.mrb[25].mxu0  ;;  %v11742_v30 = vcombine.low %v1569_v21, %v1585_v22  ;;  %v11775_v32 = vcombine.high %v1601_v55, %v1617_v28 }
 0x3e8   : > { %v7452_v43 = vpop.f32.mrb[24].mxu1  ;;  %v7415_v50 = vpop.f32.mrb[26].mxu0  ;;  %7716 = vmatpush1.bf16.msra.mxu0 %v11070_v35  ;;  %v1633_v35 = vld [vmem:[%s14272_s30 + $0x1c50] sm:$0xff] }
 0x3e9   : > { %v7453_v47 = vadd.f32 %v7452_v43, %v7411_v38  ;;  %v7454_v49 = vpop.f32.mrb[25].mxu1  ;;  %v7416_v56 = vpop.f32.mrb[27].mxu0  ;;  %7717 = vmatprep.subr.bf16.mxu0 %v11103_v37  ;;  %v11262_v37 = vcombine.low %v1089_v26, %v1105_v27  ;;  %v11774_v38 = vcombine.low %v1601_v55, %v1617_v28  ;;  %v1665_v43 = vld [vmem:[%s14272_s30 + $0x1d50] sm:$0xff] }
 0x3ea   : > { %v7455_v52 = vadd.f32 %v7454_v49, %v7413_v44  ;;  %v7456_v53 = vpop.f32.mrb[26].mxu1  ;;  %7757 = vmatpush1.bf16.msra.mxu1 %v11582_v36  ;;  %v1649_v36 = vld [vmem:[%s14272_s30 + $0x1cd0] sm:$0xff] }
 0x3eb   : > { %v8209_v61 = vadd.f32 %v7453_v47, %v705_v42  ;;  %v7457_v62 = vpop.f32.mrb[27].mxu1  ;;  %7758 = vmatprep.subr.bf16.mxu1 %v11615_v39  ;;  %v11295_v39 = vcombine.high %v1121_v33, %v1137_v34  ;;  %v11807_v40 = vcombine.high %v1633_v35, %v1649_v36  ;;  %v1169_v42 = vld [vmem:[%s14272_s30 + $0xdd0] sm:$0xff]  ;;  %v11806_v46 = vcombine.low %v1633_v35, %v1649_v36 }
 0x3ec   : > { %v8210_v2 = vadd.f32 %v7455_v52, %v706_v48  ;;  %7718 = vmatpush1.bf16.msra.mxu0 %v11102_v51  ;;  %v1681_v44 = vld [vmem:[%s14272_s30 + $0x1dd0] sm:$0xff]  ;;  %v11327_v47 = vcombine.high %v1153_v41, %v1169_v42  ;;  %v11326_v53 = vcombine.low %v1153_v41, %v1169_v42 }
 0x3ed   : > { %8241 = vst [vmem:[#allocation2 + $0x60] sm:$0xff] %v8209_v61  ;;  %7719 = vmatprep.subr.bf16.mxu0 %v11135_v58  ;;  %v11839_v48 = vcombine.high %v1665_v43, %v1681_v44  ;;  %v1185_v49 = vld [vmem:[%s14272_s30 + $0xe50] sm:$0xff]  ;;  %v11838_v56 = vcombine.low %v1665_v43, %v1681_v44 }
 0x3ee   : > { %8242 = vst [vmem:[#allocation2 + $0x68] sm:$0xff] %v8210_v2  ;;  %7759 = vmatpush1.bf16.msra.mxu1 %v11614_v57  ;;  %v1201_v50 = vld [vmem:[%s14272_s30 + $0xed0] sm:$0xff] }
 0x3ef   : > { %7760 = vmatprep.subr.bf16.mxu1 %v11647_v63  ;;  %v1697_v51 = vld [vmem:[%s14272_s30 + $0x1e50] sm:$0xff]  ;;  %v11359_v57 = vcombine.high %v1185_v49, %v1201_v50  ;;  %v11358_v1 = vcombine.low %v1185_v49, %v1201_v50 }
 0x3f0   : > { %7720 = vmatpush1.bf16.msra.mxu0 %v11134_v5  ;;  %v1713_v52 = vld [vmem:[%s14272_s30 + $0x1ed0] sm:$0xff]  ;;  %v738_v5 = vld [vmem:[%s14272_s30 + $0x58] sm:$0xff] }
 0x3f1   : > { %7721 = vmatprep.subr.bf16.mxu0 %v11167_v7  ;;  %v11871_v58 = vcombine.high %v1697_v51, %v1713_v52  ;;  %v1217_v61 = vld [vmem:[%s14272_s30 + $0xf50] sm:$0xff]  ;;  %v11870_v2 = vcombine.low %v1697_v51, %v1713_v52  ;;  %v1250_v7 = vld [vmem:[%s14272_s30 + $0x1058] sm:$0xff] }
 0x3f2   : > { %7761 = vmatpush1.bf16.msra.mxu1 %v11646_v6  ;;  %v1233_v62 = vld [vmem:[%s14272_s30 + $0xfd0] sm:$0xff]  ;;  %v754_v6 = vld [vmem:[%s14272_s30 + $0xd8] sm:$0xff] }
 0x3f3   : > { %7762 = vmatprep.subr.bf16.mxu1 %v11679_v8  ;;  %v1729_v63 = vld [vmem:[%s14272_s30 + $0x1f50] sm:$0xff]  ;;  %v11391_v3 = vcombine.high %v1217_v61, %v1233_v62  ;;  %v1266_v8 = vld [vmem:[%s14272_s30 + $0x10d8] sm:$0xff]  ;;  %v11390_v9 = vcombine.low %v1217_v61, %v1233_v62  ;;  %v10913_v11 = vcombine.high %v738_v5, %v754_v6  ;;  %v10912_v18 = vcombine.low %v738_v5, %v754_v6 }
 0x3f4   : > { %7722 = vmatpush1.bf16.msra.mxu0 %v11166_v13  ;;  %v11903_v4 = vcombine.high %v1729_v63, %v1745_v0  ;;  %v11902_v10 = vcombine.low %v1729_v63, %v1745_v0  ;;  %v11425_v12 = vcombine.high %v1250_v7, %v1266_v8  ;;  %v770_v13 = vld [vmem:[%s14272_s30 + $0x158] sm:$0xff]  ;;  %v11424_v19 = vcombine.low %v1250_v7, %v1266_v8 }
 0x3f5   : > { %7723 = vmatprep.subr.bf16.mxu0 %v11199_v15  ;;  %v1282_v15 = vld [vmem:[%s14272_s30 + $0x1158] sm:$0xff] }
 0x3f6   : > { %7763 = vmatpush1.bf16.msra.mxu1 %v11678_v14  ;;  %v786_v14 = vld [vmem:[%s14272_s30 + $0x1d8] sm:$0xff] }
 0x3f7   : > { %7764 = vmatprep.subr.bf16.mxu1 %v11711_v16  ;;  %v1298_v16 = vld [vmem:[%s14272_s30 + $0x11d8] sm:$0xff]  ;;  %v10945_v21 = vcombine.high %v770_v13, %v786_v14  ;;  %v10944_v26 = vcombine.low %v770_v13, %v786_v14 }
 0x3f8   : > { %7724 = vmatpush1.bf16.msra.mxu0 %v11198_v23  ;;  %v11457_v22 = vcombine.high %v1282_v15, %v1298_v16  ;;  %v802_v23 = vld [vmem:[%s14272_s30 + $0x258] sm:$0xff]  ;;  %v11456_v27 = vcombine.low %v1282_v15, %v1298_v16 }
 0x3f9   : > { %7725 = vmatprep.subr.bf16.mxu0 %v11231_v25  ;;  %v1314_v25 = vld [vmem:[%s14272_s30 + $0x1258] sm:$0xff] }
 0x3fa   : > { %7765 = vmatpush1.bf16.msra.mxu1 %v11710_v24  ;;  %v818_v24 = vld [vmem:[%s14272_s30 + $0x2d8] sm:$0xff] }
 0x3fb   : > { %7766 = vmatprep.subr.bf16.mxu1 %v11743_v54  ;;  %v1330_v54 = vld [vmem:[%s14272_s30 + $0x12d8] sm:$0xff]  ;;  %v10977_v55 = vcombine.high %v802_v23, %v818_v24  ;;  %v10976_v33 = vcombine.low %v802_v23, %v818_v24 }
 0x3fc   : > { %7726 = vmatpush1.bf16.msra.mxu0 %v11230_v29  ;;  %v11489_v28 = vcombine.high %v1314_v25, %v1330_v54  ;;  %v834_v29 = vld [vmem:[%s14272_s30 + $0x358] sm:$0xff]  ;;  %v11488_v34 = vcombine.low %v1314_v25, %v1330_v54 }
 0x3fd   : > { %7727 = vmatprep.subr.bf16.mxu0 %v11263_v31  ;;  %v1346_v31 = vld [vmem:[%s14272_s30 + $0x1358] sm:$0xff] }
 0x3fe   : > { %7767 = vmatpush1.bf16.msra.mxu1 %v11742_v30  ;;  %v850_v30 = vld [vmem:[%s14272_s30 + $0x3d8] sm:$0xff] }
 0x3ff   : > { %7768 = vmatprep.subr.bf16.mxu1 %v11775_v32  ;;  %v1362_v32 = vld [vmem:[%s14272_s30 + $0x13d8] sm:$0xff]  ;;  %v11009_v35 = vcombine.high %v834_v29, %v850_v30  ;;  %v11008_v41 = vcombine.low %v834_v29, %v850_v30 }
 0x400   : > { %7728 = vmatpush1.bf16.msra.mxu0 %v11262_v37  ;;  %v11521_v36 = vcombine.high %v1346_v31, %v1362_v32  ;;  %v866_v37 = vld [vmem:[%s14272_s30 + $0x458] sm:$0xff]  ;;  %v11520_v42 = vcombine.low %v1346_v31, %v1362_v32 }
 0x401   : > { %7729 = vmatprep.subr.bf16.mxu0 %v11295_v39  ;;  %v1378_v39 = vld [vmem:[%s14272_s30 + $0x1458] sm:$0xff] }
 0x402   : > { %7769 = vmatpush1.bf16.msra.mxu1 %v11774_v38  ;;  %v882_v38 = vld [vmem:[%s14272_s30 + $0x4d8] sm:$0xff] }
 0x403   : > { %7770 = vmatprep.subr.bf16.mxu1 %v11807_v40  ;;  %v1394_v40 = vld [vmem:[%s14272_s30 + $0x14d8] sm:$0xff]  ;;  %v11041_v43 = vcombine.high %v866_v37, %v882_v38  ;;  %v11040_v49 = vcombine.low %v866_v37, %v882_v38 }
 0x404   : > { %7730 = vmatpush1.bf16.msra.mxu0 %v11294_v45  ;;  %v11553_v44 = vcombine.high %v1378_v39, %v1394_v40  ;;  %v898_v45 = vld [vmem:[%s14272_s30 + $0x558] sm:$0xff]  ;;  %v11552_v50 = vcombine.low %v1378_v39, %v1394_v40 }
 0x405   : > { %7731 = vmatprep.subr.bf16.mxu0 %v11327_v47  ;;  %v1410_v47 = vld [vmem:[%s14272_s30 + $0x1558] sm:$0xff] }
 0x406   : > { %7771 = vmatpush1.bf16.msra.mxu1 %v11806_v46  ;;  %v914_v46 = vld [vmem:[%s14272_s30 + $0x5d8] sm:$0xff] }
 0x407   : > { %7772 = vmatprep.subr.bf16.mxu1 %v11839_v48  ;;  %v1426_v48 = vld [vmem:[%s14272_s30 + $0x15d8] sm:$0xff]  ;;  %v11073_v51 = vcombine.high %v898_v45, %v914_v46  ;;  %v11072_v61 = vcombine.low %v898_v45, %v914_v46 }
 0x408   : > { %7732 = vmatpush1.bf16.msra.mxu0 %v11326_v53  ;;  %v11585_v52 = vcombine.high %v1410_v47, %v1426_v48  ;;  %v930_v53 = vld [vmem:[%s14272_s30 + $0x658] sm:$0xff]  ;;  %v11584_v62 = vcombine.low %v1410_v47, %v1426_v48 }
 0x409   : > { %7733 = vmatprep.subr.bf16.mxu0 %v11359_v57  ;;  %v1442_v57 = vld [vmem:[%s14272_s30 + $0x1658] sm:$0xff] }
 0x40a   : > { %7773 = vmatpush1.bf16.msra.mxu1 %v11838_v56  ;;  %v946_v56 = vld [vmem:[%s14272_s30 + $0x6d8] sm:$0xff] }
 0x40b   : > { %7774 = vmatprep.subr.bf16.mxu1 %v11871_v58  ;;  %v1458_v58 = vld [vmem:[%s14272_s30 + $0x16d8] sm:$0xff]  ;;  %v11105_v63 = vcombine.high %v930_v53, %v946_v56  ;;  %v11104_v13 = vcombine.low %v930_v53, %v946_v56 }
 0x40c   : > { %7734 = vmatpush1.bf16.msra.mxu0 %v11358_v1  ;;  %v11617_v1 = vcombine.high %v1442_v57, %v1458_v58  ;;  %v1474_v7 = vld [vmem:[%s14272_s30 + $0x1758] sm:$0xff] }
 0x40d   : > { %7735 = vmatprep.subr.bf16.mxu0 %v11391_v3  ;;  %v978_v3 = vld [vmem:[%s14272_s30 + $0x7d8] sm:$0xff] }
 0x40e   : > { %7775 = vmatpush1.bf16.msra.mxu1 %v11870_v2  ;;  %v962_v2 = vld [vmem:[%s14272_s30 + $0x758] sm:$0xff] }
 0x40f   : > { %7776 = vmatprep.subr.bf16.mxu1 %v11903_v4  ;;  %v707_v4 = vld [vmem:[#allocation2 + $0x70] sm:$0xff]  ;;  %v1490_v8 = vld [vmem:[%s14272_s30 + $0x17d8] sm:$0xff] }
 0x410   : > { %7736 = vmatpush1.bf16.msra.mxu0 %v11390_v9  ;;  %v11649_v23 = vcombine.high %v1474_v7, %v1490_v8  ;;  %v994_v24 = vld [vmem:[%s14272_s30 + $0x858] sm:$0xff] }
 0x411   : > { %7787 = vmatprep.subr.bf16.mxu0 %v10913_v11  ;;  %v1010_v25 = vld [vmem:[%s14272_s30 + $0x8d8] sm:$0xff] }
 0x412   : > { %7777 = vmatpush1.bf16.msra.mxu1 %v11902_v10  ;;  %v708_v10 = vld [vmem:[#allocation2 + $0x78] sm:$0xff]  ;;  %v11169_v29 = vcombine.high %v994_v24, %v1010_v25 }
 0x413   : > { %7828 = vmatprep.subr.bf16.mxu1 %v11425_v12  ;;  %7738 = vmatmul.mubr.bf16.vlgmr.msra.gmra.mrb[40].mxu0 %v14394_v17  ;;  %v1026_v31 = vld [vmem:[%s14272_s30 + $0x958] sm:$0xff] }
 0x414   : > { %7788 = vmatpush1.bf16.msra.mxu0 %v10912_v18  ;;  %7819 = vmatprep.mubr.bf16.mxu0 %v14344_v59  ;;  %v11616_v18 = vcombine.low %v1442_v57, %v1458_v58  ;;  %v1042_v32 = vld [vmem:[%s14272_s30 + $0x9d8] sm:$0xff] }
 0x415   : > { %7779 = vmatmul.mubr.bf16.vlgmr.msra.gmra.mrb[40].mxu1 %v14400_v20  ;;  %7789 = vmatprep.subr.bf16.mxu0 %v10945_v21  ;;  %v11201_v37 = vcombine.high %v1026_v31, %v1042_v32  ;;  %v1058_v39 = vld [vmem:[%s14272_s30 + $0xa58] sm:$0xff] }
 0x416   : > { %7829 = vmatpush1.bf16.msra.mxu1 %v11424_v19  ;;  %7860 = vmatprep.mubr.bf16.mxu1 %v14348_v60  ;;  %v11137_v19 = vcombine.high %v962_v2, %v978_v3  ;;  %v1074_v40 = vld [vmem:[%s14272_s30 + $0xad8] sm:$0xff] }
 0x417   : > { %7830 = vmatprep.subr.bf16.mxu1 %v11457_v22  ;;  %v11233_v45 = vcombine.high %v1058_v39, %v1074_v40  ;;  %v1090_v47 = vld [vmem:[%s14272_s30 + $0xb58] sm:$0xff] }
 0x418   : > { %7790 = vmatpush1.bf16.msra.mxu0 %v10944_v26  ;;  %v1506_v26 = vld [vmem:[%s14272_s30 + $0x1858] sm:$0xff] }
 0x419   : > { %7791 = vmatprep.subr.bf16.mxu0 %v10977_v55  ;;  %v11136_v55 = vcombine.low %v962_v2, %v978_v3  ;;  %v1106_v48 = vld [vmem:[%s14272_s30 + $0xbd8] sm:$0xff] }
 0x41a   : > { %7831 = vmatpush1.bf16.msra.mxu1 %v11456_v27  ;;  %v1522_v27 = vld [vmem:[%s14272_s30 + $0x18d8] sm:$0xff]  ;;  %v11265_v53 = vcombine.high %v1090_v47, %v1106_v48 }
 0x41b   : > { %7832 = vmatprep.subr.bf16.mxu1 %v11489_v28  ;;  %v11648_v28 = vcombine.low %v1474_v7, %v1490_v8  ;;  %v11681_v30 = vcombine.high %v1506_v26, %v1522_v27  ;;  %v1122_v57 = vld [vmem:[%s14272_s30 + $0xc58] sm:$0xff] }
 0x41c   : > { %7792 = vmatpush1.bf16.msra.mxu0 %v10976_v33  ;;  %v1538_v33 = vld [vmem:[%s14272_s30 + $0x1958] sm:$0xff] }
 0x41d   : > { %7793 = vmatprep.subr.bf16.mxu0 %v11009_v35  ;;  %v11168_v35 = vcombine.low %v994_v24, %v1010_v25  ;;  %v1138_v58 = vld [vmem:[%s14272_s30 + $0xcd8] sm:$0xff] }
 0x41e   : > { %7833 = vmatpush1.bf16.msra.mxu1 %v11488_v34  ;;  %v1554_v34 = vld [vmem:[%s14272_s30 + $0x19d8] sm:$0xff]  ;;  %v11296_v7 = vcombine.low %v1122_v57, %v1138_v58 }
 0x41f   : > { %7834 = vmatprep.subr.bf16.mxu1 %v11521_v36  ;;  %v11680_v36 = vcombine.low %v1506_v26, %v1522_v27  ;;  %v11713_v38 = vcombine.high %v1538_v33, %v1554_v34  ;;  %v1154_v3 = vld [vmem:[%s14272_s30 + $0xd58] sm:$0xff] }
 0x420   : > { %7794 = vmatpush1.bf16.msra.mxu0 %v11008_v41  ;;  %v1570_v41 = vld [vmem:[%s14272_s30 + $0x1a58] sm:$0xff] }
 0x421   : > { %7795 = vmatprep.subr.bf16.mxu0 %v11041_v43  ;;  %v11200_v43 = vcombine.low %v1026_v31, %v1042_v32  ;;  %v1746_v24 = vld [vmem:[%s14272_s30 + $0x1fd8] sm:$0xff] }
 0x422   : > { %7835 = vmatpush1.bf16.msra.mxu1 %v11520_v42  ;;  %v1586_v42 = vld [vmem:[%s14272_s30 + $0x1ad8] sm:$0xff] }
 0x423   : > { %7836 = vmatprep.subr.bf16.mxu1 %v11553_v44  ;;  %v11712_v44 = vcombine.low %v1538_v33, %v1554_v34  ;;  %v11745_v46 = vcombine.high %v1570_v41, %v1586_v42 }
 0x424   : > { %7796 = vmatpush1.bf16.msra.mxu0 %v11040_v49  ;;  %v1602_v49 = vld [vmem:[%s14272_s30 + $0x1b58] sm:$0xff] }
 0x425   : > { %7797 = vmatprep.subr.bf16.mxu0 %v11073_v51  ;;  %v11232_v51 = vcombine.low %v1058_v39, %v1074_v40 }
 0x426   : > { %7837 = vmatpush1.bf16.msra.mxu1 %v11552_v50  ;;  %v7493_v0 = vpop.f32.mrb[28].mxu0  ;;  %v1618_v50 = vld [vmem:[%s14272_s30 + $0x1bd8] sm:$0xff] }
 0x427   : > { %7838 = vmatprep.subr.bf16.mxu1 %v11585_v52  ;;  %v7495_v6 = vpop.f32.mrb[29].mxu0  ;;  %v11744_v52 = vcombine.low %v1570_v41, %v1586_v42  ;;  %v11777_v56 = vcombine.high %v1602_v49, %v1618_v50 }
 0x428   : > { %v7534_v5 = vpop.f32.mrb[28].mxu1  ;;  %v7497_v12 = vpop.f32.mrb[30].mxu0  ;;  %7798 = vmatpush1.bf16.msra.mxu0 %v11072_v61  ;;  %v1634_v61 = vld [vmem:[%s14272_s30 + $0x1c58] sm:$0xff] }
 0x429   : > { %v7535_v9 = vadd.f32 %v7534_v5, %v7493_v0  ;;  %v7536_v11 = vpop.f32.mrb[29].mxu1  ;;  %v7498_v16 = vpop.f32.mrb[31].mxu0  ;;  %7799 = vmatprep.subr.bf16.mxu0 %v11105_v63  ;;  %v11264_v63 = vcombine.low %v1090_v47, %v1106_v48  ;;  %v11776_v0 = vcombine.low %v1602_v49, %v1618_v50  ;;  %v1666_v5 = vld [vmem:[%s14272_s30 + $0x1d58] sm:$0xff] }
 0x42a   : > { %v7537_v14 = vadd.f32 %v7536_v11, %v7495_v6  ;;  %v7538_v15 = vpop.f32.mrb[30].mxu1  ;;  %7839 = vmatpush1.bf16.msra.mxu1 %v11584_v62  ;;  %v1650_v62 = vld [vmem:[%s14272_s30 + $0x1cd8] sm:$0xff] }
 0x42b   : > { %v8211_v21 = vadd.f32 %v7535_v9, %v707_v4  ;;  %v7539_v22 = vpop.f32.mrb[31].mxu1  ;;  %7840 = vmatprep.subr.bf16.mxu1 %v11617_v1  ;;  %v11297_v1 = vcombine.high %v1122_v57, %v1138_v58  ;;  %v11809_v2 = vcombine.high %v1634_v61, %v1650_v62  ;;  %v1170_v4 = vld [vmem:[%s14272_s30 + $0xdd8] sm:$0xff]  ;;  %v11808_v8 = vcombine.low %v1634_v61, %v1650_v62 }
 0x42c   : > { %v8212_v54 = vadd.f32 %v7537_v14, %v708_v10  ;;  %7800 = vmatpush1.bf16.msra.mxu0 %v11104_v13  ;;  %v1682_v6 = vld [vmem:[%s14272_s30 + $0x1dd8] sm:$0xff]  ;;  %v11329_v9 = vcombine.high %v1154_v3, %v1170_v4  ;;  %v11328_v15 = vcombine.low %v1154_v3, %v1170_v4 }
 0x42d   : > { %8243 = vst [vmem:[#allocation2 + $0x70] sm:$0xff] %v8211_v21  ;;  %7801 = vmatprep.subr.bf16.mxu0 %v11137_v19  ;;  %v11841_v10 = vcombine.high %v1666_v5, %v1682_v6  ;;  %v1186_v11 = vld [vmem:[%s14272_s30 + $0xe58] sm:$0xff]  ;;  %v11840_v16 = vcombine.low %v1666_v5, %v1682_v6 }
 0x42e   : > { %8244 = vst [vmem:[#allocation2 + $0x78] sm:$0xff] %v8212_v54  ;;  %7841 = vmatpush1.bf16.msra.mxu1 %v11616_v18  ;;  %v1202_v12 = vld [vmem:[%s14272_s30 + $0xed8] sm:$0xff] }
 0x42f   : > { %7842 = vmatprep.subr.bf16.mxu1 %v11649_v23  ;;  %v1698_v13 = vld [vmem:[%s14272_s30 + $0x1e58] sm:$0xff]  ;;  %v11361_v18 = vcombine.high %v1186_v11, %v1202_v12  ;;  %v11360_v25 = vcombine.low %v1186_v11, %v1202_v12 }
 0x430   : > { %7802 = vmatpush1.bf16.msra.mxu0 %v11136_v55  ;;  %v1714_v14 = vld [vmem:[%s14272_s30 + $0x1ed8] sm:$0xff]  ;;  %v739_v55 = vld [vmem:[%s14272_s30 + $0x60] sm:$0xff] }
 0x431   : > { %7803 = vmatprep.subr.bf16.mxu0 %v11169_v29  ;;  %v11873_v19 = vcombine.high %v1698_v13, %v1714_v14  ;;  %v1218_v21 = vld [vmem:[%s14272_s30 + $0xf58] sm:$0xff]  ;;  %v11872_v54 = vcombine.low %v1698_v13, %v1714_v14  ;;  %v1251_v29 = vld [vmem:[%s14272_s30 + $0x1060] sm:$0xff] }
 0x432   : > { %7843 = vmatpush1.bf16.msra.mxu1 %v11648_v28  ;;  %v1234_v22 = vld [vmem:[%s14272_s30 + $0xfd8] sm:$0xff]  ;;  %v755_v28 = vld [vmem:[%s14272_s30 + $0xe0] sm:$0xff] }
 0x433   : > { %7844 = vmatprep.subr.bf16.mxu1 %v11681_v30  ;;  %v1730_v23 = vld [vmem:[%s14272_s30 + $0x1f58] sm:$0xff]  ;;  %v11393_v26 = vcombine.high %v1218_v21, %v1234_v22  ;;  %v1267_v30 = vld [vmem:[%s14272_s30 + $0x10e0] sm:$0xff]  ;;  %v11392_v31 = vcombine.low %v1218_v21, %v1234_v22  ;;  %v10915_v33 = vcombine.high %v739_v55, %v755_v28  ;;  %v10914_v39 = vcombine.low %v739_v55, %v755_v28 }
 0x434   : > { %7804 = vmatpush1.bf16.msra.mxu0 %v11168_v35  ;;  %v11905_v27 = vcombine.high %v1730_v23, %v1746_v24  ;;  %v11904_v32 = vcombine.low %v1730_v23, %v1746_v24  ;;  %v11427_v34 = vcombine.high %v1251_v29, %v1267_v30  ;;  %v771_v35 = vld [vmem:[%s14272_s30 + $0x160] sm:$0xff]  ;;  %v11426_v40 = vcombine.low %v1251_v29, %v1267_v30 }
 0x435   : > { %7805 = vmatprep.subr.bf16.mxu0 %v11201_v37  ;;  %v1283_v37 = vld [vmem:[%s14272_s30 + $0x1160] sm:$0xff] }
 0x436   : > { %7845 = vmatpush1.bf16.msra.mxu1 %v11680_v36  ;;  %v787_v36 = vld [vmem:[%s14272_s30 + $0x1e0] sm:$0xff] }
 0x437   : > { %7846 = vmatprep.subr.bf16.mxu1 %v11713_v38  ;;  %v1299_v38 = vld [vmem:[%s14272_s30 + $0x11e0] sm:$0xff]  ;;  %v10947_v41 = vcombine.high %v771_v35, %v787_v36  ;;  %v10946_v47 = vcombine.low %v771_v35, %v787_v36 }
 0x438   : > { %7806 = vmatpush1.bf16.msra.mxu0 %v11200_v43  ;;  %v11459_v42 = vcombine.high %v1283_v37, %v1299_v38  ;;  %v803_v43 = vld [vmem:[%s14272_s30 + $0x260] sm:$0xff]  ;;  %v11458_v48 = vcombine.low %v1283_v37, %v1299_v38 }
 0x439   : > { %7807 = vmatprep.subr.bf16.mxu0 %v11233_v45  ;;  %v1315_v45 = vld [vmem:[%s14272_s30 + $0x1260] sm:$0xff] }
 0x43a   : > { %7847 = vmatpush1.bf16.msra.mxu1 %v11712_v44  ;;  %v819_v44 = vld [vmem:[%s14272_s30 + $0x2e0] sm:$0xff] }
 0x43b   : > { %7848 = vmatprep.subr.bf16.mxu1 %v11745_v46  ;;  %v1331_v46 = vld [vmem:[%s14272_s30 + $0x12e0] sm:$0xff]  ;;  %v10979_v49 = vcombine.high %v803_v43, %v819_v44  ;;  %v10978_v57 = vcombine.low %v803_v43, %v819_v44 }
 0x43c   : > { %7808 = vmatpush1.bf16.msra.mxu0 %v11232_v51  ;;  %v11491_v50 = vcombine.high %v1315_v45, %v1331_v46  ;;  %v835_v51 = vld [vmem:[%s14272_s30 + $0x360] sm:$0xff]  ;;  %v11490_v58 = vcombine.low %v1315_v45, %v1331_v46 }
 0x43d   : > { %7809 = vmatprep.subr.bf16.mxu0 %v11265_v53  ;;  %v1347_v53 = vld [vmem:[%s14272_s30 + $0x1360] sm:$0xff] }
 0x43e   : > { %7849 = vmatpush1.bf16.msra.mxu1 %v11744_v52  ;;  %v851_v52 = vld [vmem:[%s14272_s30 + $0x3e0] sm:$0xff] }
 0x43f   : > { %7850 = vmatprep.subr.bf16.mxu1 %v11777_v56  ;;  %v1363_v56 = vld [vmem:[%s14272_s30 + $0x13e0] sm:$0xff]  ;;  %v11011_v61 = vcombine.high %v835_v51, %v851_v52  ;;  %v11010_v3 = vcombine.low %v835_v51, %v851_v52 }
 0x440   : > { %7810 = vmatpush1.bf16.msra.mxu0 %v11264_v63  ;;  %v11523_v62 = vcombine.high %v1347_v53, %v1363_v56  ;;  %v867_v63 = vld [vmem:[%s14272_s30 + $0x460] sm:$0xff]  ;;  %v11522_v4 = vcombine.low %v1347_v53, %v1363_v56 }
 0x441   : > { %7811 = vmatprep.subr.bf16.mxu0 %v11297_v1  ;;  %v1379_v1 = vld [vmem:[%s14272_s30 + $0x1460] sm:$0xff] }
 0x442   : > { %7851 = vmatpush1.bf16.msra.mxu1 %v11776_v0  ;;  %v883_v0 = vld [vmem:[%s14272_s30 + $0x4e0] sm:$0xff] }
 0x443   : > { %7852 = vmatprep.subr.bf16.mxu1 %v11809_v2  ;;  %v1395_v2 = vld [vmem:[%s14272_s30 + $0x14e0] sm:$0xff]  ;;  %v11043_v5 = vcombine.high %v867_v63, %v883_v0  ;;  %v11042_v11 = vcombine.low %v867_v63, %v883_v0 }
 0x444   : > { %7812 = vmatpush1.bf16.msra.mxu0 %v11296_v7  ;;  %v11555_v6 = vcombine.high %v1379_v1, %v1395_v2  ;;  %v899_v7 = vld [vmem:[%s14272_s30 + $0x560] sm:$0xff]  ;;  %v11554_v12 = vcombine.low %v1379_v1, %v1395_v2 }
 0x445   : > { %7813 = vmatprep.subr.bf16.mxu0 %v11329_v9  ;;  %v1411_v9 = vld [vmem:[%s14272_s30 + $0x1560] sm:$0xff] }
 0x446   : > { %7853 = vmatpush1.bf16.msra.mxu1 %v11808_v8  ;;  %v915_v8 = vld [vmem:[%s14272_s30 + $0x5e0] sm:$0xff] }
 0x447   : > { %7854 = vmatprep.subr.bf16.mxu1 %v11841_v10  ;;  %v1427_v10 = vld [vmem:[%s14272_s30 + $0x15e0] sm:$0xff]  ;;  %v11075_v13 = vcombine.high %v899_v7, %v915_v8  ;;  %v11074_v21 = vcombine.low %v899_v7, %v915_v8 }
 0x448   : > { %7814 = vmatpush1.bf16.msra.mxu0 %v11328_v15  ;;  %v11587_v14 = vcombine.high %v1411_v9, %v1427_v10  ;;  %v931_v15 = vld [vmem:[%s14272_s30 + $0x660] sm:$0xff]  ;;  %v11586_v22 = vcombine.low %v1411_v9, %v1427_v10 }
 0x449   : > { %7815 = vmatprep.subr.bf16.mxu0 %v11361_v18  ;;  %v1443_v18 = vld [vmem:[%s14272_s30 + $0x1660] sm:$0xff] }
 0x44a   : > { %7855 = vmatpush1.bf16.msra.mxu1 %v11840_v16  ;;  %v947_v16 = vld [vmem:[%s14272_s30 + $0x6e0] sm:$0xff] }
 0x44b   : > { %7856 = vmatprep.subr.bf16.mxu1 %v11873_v19  ;;  %v1459_v19 = vld [vmem:[%s14272_s30 + $0x16e0] sm:$0xff]  ;;  %v11107_v23 = vcombine.high %v931_v15, %v947_v16  ;;  %v11106_v35 = vcombine.low %v931_v15, %v947_v16 }
 0x44c   : > { %7816 = vmatpush1.bf16.msra.mxu0 %v11360_v25  ;;  %v11619_v25 = vcombine.high %v1443_v18, %v1459_v19  ;;  %v1475_v29 = vld [vmem:[%s14272_s30 + $0x1760] sm:$0xff] }
 0x44d   : > { %7817 = vmatprep.subr.bf16.mxu0 %v11393_v26  ;;  %v979_v26 = vld [vmem:[%s14272_s30 + $0x7e0] sm:$0xff] }
 0x44e   : > { %7857 = vmatpush1.bf16.msra.mxu1 %v11872_v54  ;;  %v963_v54 = vld [vmem:[%s14272_s30 + $0x760] sm:$0xff] }
 0x44f   : > { %7858 = vmatprep.subr.bf16.mxu1 %v11905_v27  ;;  %v709_v27 = vld [vmem:[#allocation2 + $0x80] sm:$0xff] }
 0x450   : > { %7818 = vmatpush1.bf16.msra.mxu0 %v11392_v31  ;;  %v1491_v30 = vld [vmem:[%s14272_s30 + $0x17e0] sm:$0xff] }
 0x451   : > { %7869 = vmatprep.subr.bf16.mxu0 %v10915_v33  ;;  %v11651_v43 = vcombine.high %v1475_v29, %v1491_v30  ;;  %v995_v44 = vld [vmem:[%s14272_s30 + $0x860] sm:$0xff] }
 0x452   : > { %7859 = vmatpush1.bf16.msra.mxu1 %v11904_v32  ;;  %v710_v32 = vld [vmem:[#allocation2 + $0x88] sm:$0xff]  ;;  %v1011_v45 = vld [vmem:[%s14272_s30 + $0x8e0] sm:$0xff] }
 0x453   : > { %7910 = vmatprep.subr.bf16.mxu1 %v11427_v34  ;;  %7820 = vmatmul.mubr.bf16.vlgmr.msra.gmra.mrb[44].mxu0 %v14394_v17  ;;  %v11171_v51 = vcombine.high %v995_v44, %v1011_v45  ;;  %v1027_v53 = vld [vmem:[%s14272_s30 + $0x960] sm:$0xff] }
 0x454   : > { %7870 = vmatpush1.bf16.msra.mxu0 %v10914_v39  ;;  %7901 = vmatprep.mubr.bf16.mxu0 %v14344_v59  ;;  %v11618_v39 = vcombine.low %v1443_v18, %v1459_v19  ;;  %v1043_v56 = vld [vmem:[%s14272_s30 + $0x9e0] sm:$0xff] }
 0x455   : > { %7861 = vmatmul.mubr.bf16.vlgmr.msra.gmra.mrb[44].mxu1 %v14400_v20  ;;  %7871 = vmatprep.subr.bf16.mxu0 %v10947_v41  ;;  %v11203_v63 = vcombine.high %v1027_v53, %v1043_v56  ;;  %v1059_v1 = vld [vmem:[%s14272_s30 + $0xa60] sm:$0xff] }
 0x456   : > { %7911 = vmatpush1.bf16.msra.mxu1 %v11426_v40  ;;  %7942 = vmatprep.mubr.bf16.mxu1 %v14348_v60  ;;  %v11139_v40 = vcombine.high %v963_v54, %v979_v26  ;;  %v1075_v2 = vld [vmem:[%s14272_s30 + $0xae0] sm:$0xff] }
 0x457   : > { %7912 = vmatprep.subr.bf16.mxu1 %v11459_v42  ;;  %v11235_v7 = vcombine.high %v1059_v1, %v1075_v2  ;;  %v1091_v9 = vld [vmem:[%s14272_s30 + $0xb60] sm:$0xff] }
 0x458   : > { %7872 = vmatpush1.bf16.msra.mxu0 %v10946_v47  ;;  %v1507_v47 = vld [vmem:[%s14272_s30 + $0x1860] sm:$0xff] }
 0x459   : > { %7873 = vmatprep.subr.bf16.mxu0 %v10979_v49  ;;  %v11138_v49 = vcombine.low %v963_v54, %v979_v26  ;;  %v1107_v10 = vld [vmem:[%s14272_s30 + $0xbe0] sm:$0xff] }
 0x45a   : > { %7913 = vmatpush1.bf16.msra.mxu1 %v11458_v48  ;;  %v1523_v48 = vld [vmem:[%s14272_s30 + $0x18e0] sm:$0xff]  ;;  %v11267_v15 = vcombine.high %v1091_v9, %v1107_v10 }
 0x45b   : > { %7914 = vmatprep.subr.bf16.mxu1 %v11491_v50  ;;  %v11650_v50 = vcombine.low %v1475_v29, %v1491_v30  ;;  %v11683_v52 = vcombine.high %v1507_v47, %v1523_v48  ;;  %v1123_v18 = vld [vmem:[%s14272_s30 + $0xc60] sm:$0xff] }
 0x45c   : > { %7874 = vmatpush1.bf16.msra.mxu0 %v10978_v57  ;;  %v1539_v57 = vld [vmem:[%s14272_s30 + $0x1960] sm:$0xff] }
 0x45d   : > { %7875 = vmatprep.subr.bf16.mxu0 %v11011_v61  ;;  %v11170_v61 = vcombine.low %v995_v44, %v1011_v45  ;;  %v1139_v19 = vld [vmem:[%s14272_s30 + $0xce0] sm:$0xff] }
 0x45e   : > { %7915 = vmatpush1.bf16.msra.mxu1 %v11490_v58  ;;  %v1555_v58 = vld [vmem:[%s14272_s30 + $0x19e0] sm:$0xff]  ;;  %v11298_v29 = vcombine.low %v1123_v18, %v1139_v19 }
 0x45f   : > { %7916 = vmatprep.subr.bf16.mxu1 %v11523_v62  ;;  %v11682_v62 = vcombine.low %v1507_v47, %v1523_v48  ;;  %v11715_v0 = vcombine.high %v1539_v57, %v1555_v58  ;;  %v1155_v26 = vld [vmem:[%s14272_s30 + $0xd60] sm:$0xff] }
 0x460   : > { %7876 = vmatpush1.bf16.msra.mxu0 %v11010_v3  ;;  %v1571_v3 = vld [vmem:[%s14272_s30 + $0x1a60] sm:$0xff] }
 0x461   : > { %7877 = vmatprep.subr.bf16.mxu0 %v11043_v5  ;;  %v11202_v5 = vcombine.low %v1027_v53, %v1043_v56  ;;  %v1747_v44 = vld [vmem:[%s14272_s30 + $0x1fe0] sm:$0xff] }
 0x462   : > { %7917 = vmatpush1.bf16.msra.mxu1 %v11522_v4  ;;  %v1587_v4 = vld [vmem:[%s14272_s30 + $0x1ae0] sm:$0xff] }
 0x463   : > { %7918 = vmatprep.subr.bf16.mxu1 %v11555_v6  ;;  %v11714_v6 = vcombine.low %v1539_v57, %v1555_v58  ;;  %v11747_v8 = vcombine.high %v1571_v3, %v1587_v4 }
 0x464   : > { %7878 = vmatpush1.bf16.msra.mxu0 %v11042_v11  ;;  %v1603_v11 = vld [vmem:[%s14272_s30 + $0x1b60] sm:$0xff] }
 0x465   : > { %7879 = vmatprep.subr.bf16.mxu0 %v11075_v13  ;;  %v11234_v13 = vcombine.low %v1059_v1, %v1075_v2 }
 0x466   : > { %7919 = vmatpush1.bf16.msra.mxu1 %v11554_v12  ;;  %v7575_v24 = vpop.f32.mrb[32].mxu0  ;;  %v1619_v12 = vld [vmem:[%s14272_s30 + $0x1be0] sm:$0xff] }
 0x467   : > { %7920 = vmatprep.subr.bf16.mxu1 %v11587_v14  ;;  %v7577_v28 = vpop.f32.mrb[33].mxu0  ;;  %v11746_v14 = vcombine.low %v1571_v3, %v1587_v4  ;;  %v11779_v16 = vcombine.high %v1603_v11, %v1619_v12 }
 0x468   : > { %v7616_v55 = vpop.f32.mrb[32].mxu1  ;;  %v7579_v34 = vpop.f32.mrb[34].mxu0  ;;  %7880 = vmatpush1.bf16.msra.mxu0 %v11074_v21  ;;  %v1635_v21 = vld [vmem:[%s14272_s30 + $0x1c60] sm:$0xff] }
 0x469   : > { %v7617_v31 = vadd.f32 %v7616_v55, %v7575_v24  ;;  %v7618_v33 = vpop.f32.mrb[33].mxu1  ;;  %v7580_v38 = vpop.f32.mrb[35].mxu0  ;;  %7881 = vmatprep.subr.bf16.mxu0 %v11107_v23  ;;  %v11266_v23 = vcombine.low %v1091_v9, %v1107_v10  ;;  %v11778_v24 = vcombine.low %v1603_v11, %v1619_v12  ;;  %v1667_v55 = vld [vmem:[%s14272_s30 + $0x1d60] sm:$0xff] }
 0x46a   : > { %v7619_v36 = vadd.f32 %v7618_v33, %v7577_v28  ;;  %v7620_v37 = vpop.f32.mrb[34].mxu1  ;;  %7921 = vmatpush1.bf16.msra.mxu1 %v11586_v22  ;;  %v1651_v22 = vld [vmem:[%s14272_s30 + $0x1ce0] sm:$0xff] }
 0x46b   : > { %v8213_v41 = vadd.f32 %v7617_v31, %v709_v27  ;;  %v7621_v42 = vpop.f32.mrb[35].mxu1  ;;  %7922 = vmatprep.subr.bf16.mxu1 %v11619_v25  ;;  %v11299_v25 = vcombine.high %v1123_v18, %v1139_v19  ;;  %v11811_v54 = vcombine.high %v1635_v21, %v1651_v22  ;;  %v1171_v27 = vld [vmem:[%s14272_s30 + $0xde0] sm:$0xff]  ;;  %v11810_v30 = vcombine.low %v1635_v21, %v1651_v22 }
 0x46c   : > { %v8214_v46 = vadd.f32 %v7619_v36, %v710_v32  ;;  %7882 = vmatpush1.bf16.msra.mxu0 %v11106_v35  ;;  %v1683_v28 = vld [vmem:[%s14272_s30 + $0x1de0] sm:$0xff]  ;;  %v11331_v31 = vcombine.high %v1155_v26, %v1171_v27  ;;  %v11330_v37 = vcombine.low %v1155_v26, %v1171_v27 }
 0x46d   : > { %8245 = vst [vmem:[#allocation2 + $0x80] sm:$0xff] %v8213_v41  ;;  %7883 = vmatprep.subr.bf16.mxu0 %v11139_v40  ;;  %v11843_v32 = vcombine.high %v1667_v55, %v1683_v28  ;;  %v1187_v33 = vld [vmem:[%s14272_s30 + $0xe60] sm:$0xff]  ;;  %v11842_v38 = vcombine.low %v1667_v55, %v1683_v28 }
 0x46e   : > { %8246 = vst [vmem:[#allocation2 + $0x88] sm:$0xff] %v8214_v46  ;;  %7923 = vmatpush1.bf16.msra.mxu1 %v11618_v39  ;;  %v1203_v34 = vld [vmem:[%s14272_s30 + $0xee0] sm:$0xff] }
 0x46f   : > { %7924 = vmatprep.subr.bf16.mxu1 %v11651_v43  ;;  %v1699_v35 = vld [vmem:[%s14272_s30 + $0x1e60] sm:$0xff]  ;;  %v11363_v39 = vcombine.high %v1187_v33, %v1203_v34  ;;  %v11362_v45 = vcombine.low %v1187_v33, %v1203_v34 }
 0x470   : > { %7884 = vmatpush1.bf16.msra.mxu0 %v11138_v49  ;;  %v1715_v36 = vld [vmem:[%s14272_s30 + $0x1ee0] sm:$0xff]  ;;  %v740_v49 = vld [vmem:[%s14272_s30 + $0x68] sm:$0xff] }
 0x471   : > { %7885 = vmatprep.subr.bf16.mxu0 %v11171_v51  ;;  %v11875_v40 = vcombine.high %v1699_v35, %v1715_v36  ;;  %v1219_v41 = vld [vmem:[%s14272_s30 + $0xf60] sm:$0xff]  ;;  %v11874_v46 = vcombine.low %v1699_v35, %v1715_v36  ;;  %v1252_v51 = vld [vmem:[%s14272_s30 + $0x1068] sm:$0xff] }
 0x472   : > { %7925 = vmatpush1.bf16.msra.mxu1 %v11650_v50  ;;  %v1235_v42 = vld [vmem:[%s14272_s30 + $0xfe0] sm:$0xff]  ;;  %v756_v50 = vld [vmem:[%s14272_s30 + $0xe8] sm:$0xff] }
 0x473   : > { %7926 = vmatprep.subr.bf16.mxu1 %v11683_v52  ;;  %v1731_v43 = vld [vmem:[%s14272_s30 + $0x1f60] sm:$0xff]  ;;  %v11395_v47 = vcombine.high %v1219_v41, %v1235_v42  ;;  %v1268_v52 = vld [vmem:[%s14272_s30 + $0x10e8] sm:$0xff]  ;;  %v11394_v53 = vcombine.low %v1219_v41, %v1235_v42  ;;  %v10917_v57 = vcombine.high %v740_v49, %v756_v50  ;;  %v10916_v1 = vcombine.low %v740_v49, %v756_v50 }
 0x474   : > { %7886 = vmatpush1.bf16.msra.mxu0 %v11170_v61  ;;  %v11907_v48 = vcombine.high %v1731_v43, %v1747_v44  ;;  %v11906_v56 = vcombine.low %v1731_v43, %v1747_v44  ;;  %v11429_v58 = vcombine.high %v1252_v51, %v1268_v52  ;;  %v772_v61 = vld [vmem:[%s14272_s30 + $0x168] sm:$0xff]  ;;  %v11428_v2 = vcombine.low %v1252_v51, %v1268_v52 }
 0x475   : > { %7887 = vmatprep.subr.bf16.mxu0 %v11203_v63  ;;  %v1284_v63 = vld [vmem:[%s14272_s30 + $0x1168] sm:$0xff] }
 0x476   : > { %7927 = vmatpush1.bf16.msra.mxu1 %v11682_v62  ;;  %v788_v62 = vld [vmem:[%s14272_s30 + $0x1e8] sm:$0xff] }
 0x477   : > { %7928 = vmatprep.subr.bf16.mxu1 %v11715_v0  ;;  %v1300_v0 = vld [vmem:[%s14272_s30 + $0x11e8] sm:$0xff]  ;;  %v10949_v3 = vcombine.high %v772_v61, %v788_v62  ;;  %v10948_v9 = vcombine.low %v772_v61, %v788_v62 }
 0x478   : > { %7888 = vmatpush1.bf16.msra.mxu0 %v11202_v5  ;;  %v11461_v4 = vcombine.high %v1284_v63, %v1300_v0  ;;  %v804_v5 = vld [vmem:[%s14272_s30 + $0x268] sm:$0xff]  ;;  %v11460_v10 = vcombine.low %v1284_v63, %v1300_v0 }
 0x479   : > { %7889 = vmatprep.subr.bf16.mxu0 %v11235_v7  ;;  %v1316_v7 = vld [vmem:[%s14272_s30 + $0x1268] sm:$0xff] }
 0x47a   : > { %7929 = vmatpush1.bf16.msra.mxu1 %v11714_v6  ;;  %v820_v6 = vld [vmem:[%s14272_s30 + $0x2e8] sm:$0xff] }
 0x47b   : > { %7930 = vmatprep.subr.bf16.mxu1 %v11747_v8  ;;  %v1332_v8 = vld [vmem:[%s14272_s30 + $0x12e8] sm:$0xff]  ;;  %v10981_v11 = vcombine.high %v804_v5, %v820_v6  ;;  %v10980_v18 = vcombine.low %v804_v5, %v820_v6 }
 0x47c   : > { %7890 = vmatpush1.bf16.msra.mxu0 %v11234_v13  ;;  %v11493_v12 = vcombine.high %v1316_v7, %v1332_v8  ;;  %v836_v13 = vld [vmem:[%s14272_s30 + $0x368] sm:$0xff]  ;;  %v11492_v19 = vcombine.low %v1316_v7, %v1332_v8 }
 0x47d   : > { %7891 = vmatprep.subr.bf16.mxu0 %v11267_v15  ;;  %v1348_v15 = vld [vmem:[%s14272_s30 + $0x1368] sm:$0xff] }
 0x47e   : > { %7931 = vmatpush1.bf16.msra.mxu1 %v11746_v14  ;;  %v852_v14 = vld [vmem:[%s14272_s30 + $0x3e8] sm:$0xff] }
 0x47f   : > { %7932 = vmatprep.subr.bf16.mxu1 %v11779_v16  ;;  %v1364_v16 = vld [vmem:[%s14272_s30 + $0x13e8] sm:$0xff]  ;;  %v11013_v21 = vcombine.high %v836_v13, %v852_v14  ;;  %v11012_v26 = vcombine.low %v836_v13, %v852_v14 }
 0x480   : > { %7892 = vmatpush1.bf16.msra.mxu0 %v11266_v23  ;;  %v11525_v22 = vcombine.high %v1348_v15, %v1364_v16  ;;  %v868_v23 = vld [vmem:[%s14272_s30 + $0x468] sm:$0xff]  ;;  %v11524_v27 = vcombine.low %v1348_v15, %v1364_v16 }
 0x481   : > { %7893 = vmatprep.subr.bf16.mxu0 %v11299_v25  ;;  %v1380_v25 = vld [vmem:[%s14272_s30 + $0x1468] sm:$0xff] }
 0x482   : > { %7933 = vmatpush1.bf16.msra.mxu1 %v11778_v24  ;;  %v884_v24 = vld [vmem:[%s14272_s30 + $0x4e8] sm:$0xff] }
 0x483   : > { %7934 = vmatprep.subr.bf16.mxu1 %v11811_v54  ;;  %v1396_v54 = vld [vmem:[%s14272_s30 + $0x14e8] sm:$0xff]  ;;  %v11045_v55 = vcombine.high %v868_v23, %v884_v24  ;;  %v11044_v33 = vcombine.low %v868_v23, %v884_v24 }
 0x484   : > { %7894 = vmatpush1.bf16.msra.mxu0 %v11298_v29  ;;  %v11557_v28 = vcombine.high %v1380_v25, %v1396_v54  ;;  %v900_v29 = vld [vmem:[%s14272_s30 + $0x568] sm:$0xff]  ;;  %v11556_v34 = vcombine.low %v1380_v25, %v1396_v54 }
 0x485   : > { %7895 = vmatprep.subr.bf16.mxu0 %v11331_v31  ;;  %v1412_v31 = vld [vmem:[%s14272_s30 + $0x1568] sm:$0xff] }
 0x486   : > { %7935 = vmatpush1.bf16.msra.mxu1 %v11810_v30  ;;  %v916_v30 = vld [vmem:[%s14272_s30 + $0x5e8] sm:$0xff] }
 0x487   : > { %7936 = vmatprep.subr.bf16.mxu1 %v11843_v32  ;;  %v1428_v32 = vld [vmem:[%s14272_s30 + $0x15e8] sm:$0xff]  ;;  %v11077_v35 = vcombine.high %v900_v29, %v916_v30  ;;  %v11076_v41 = vcombine.low %v900_v29, %v916_v30 }
 0x488   : > { %7896 = vmatpush1.bf16.msra.mxu0 %v11330_v37  ;;  %v11589_v36 = vcombine.high %v1412_v31, %v1428_v32  ;;  %v932_v37 = vld [vmem:[%s14272_s30 + $0x668] sm:$0xff]  ;;  %v11588_v42 = vcombine.low %v1412_v31, %v1428_v32 }
 0x489   : > { %7897 = vmatprep.subr.bf16.mxu0 %v11363_v39  ;;  %v1444_v39 = vld [vmem:[%s14272_s30 + $0x1668] sm:$0xff] }
 0x48a   : > { %7937 = vmatpush1.bf16.msra.mxu1 %v11842_v38  ;;  %v948_v38 = vld [vmem:[%s14272_s30 + $0x6e8] sm:$0xff] }
 0x48b   : > { %7938 = vmatprep.subr.bf16.mxu1 %v11875_v40  ;;  %v1460_v40 = vld [vmem:[%s14272_s30 + $0x16e8] sm:$0xff]  ;;  %v11109_v43 = vcombine.high %v932_v37, %v948_v38  ;;  %v11108_v61 = vcombine.low %v932_v37, %v948_v38 }
 0x48c   : > { %7898 = vmatpush1.bf16.msra.mxu0 %v11362_v45  ;;  %v11621_v45 = vcombine.high %v1444_v39, %v1460_v40  ;;  %v1476_v51 = vld [vmem:[%s14272_s30 + $0x1768] sm:$0xff] }
 0x48d   : > { %7899 = vmatprep.subr.bf16.mxu0 %v11395_v47  ;;  %v980_v47 = vld [vmem:[%s14272_s30 + $0x7e8] sm:$0xff] }
 0x48e   : > { %7939 = vmatpush1.bf16.msra.mxu1 %v11874_v46  ;;  %v964_v46 = vld [vmem:[%s14272_s30 + $0x768] sm:$0xff] }
 0x48f   : > { %7940 = vmatprep.subr.bf16.mxu1 %v11907_v48  ;;  %v711_v48 = vld [vmem:[#allocation2 + $0x90] sm:$0xff]  ;;  %v1492_v52 = vld [vmem:[%s14272_s30 + $0x17e8] sm:$0xff] }
 0x490   : > { %7900 = vmatpush1.bf16.msra.mxu0 %v11394_v53  ;;  %v11653_v5 = vcombine.high %v1476_v51, %v1492_v52  ;;  %v996_v6 = vld [vmem:[%s14272_s30 + $0x868] sm:$0xff] }
 0x491   : > { %7951 = vmatprep.subr.bf16.mxu0 %v10917_v57  ;;  %v1012_v7 = vld [vmem:[%s14272_s30 + $0x8e8] sm:$0xff] }
 0x492   : > { %7941 = vmatpush1.bf16.msra.mxu1 %v11906_v56  ;;  %v712_v56 = vld [vmem:[#allocation2 + $0x98] sm:$0xff]  ;;  %v11173_v13 = vcombine.high %v996_v6, %v1012_v7  ;;  %v1028_v15 = vld [vmem:[%s14272_s30 + $0x968] sm:$0xff] }
 0x493   : > { %7992 = vmatprep.subr.bf16.mxu1 %v11429_v58  ;;  %7902 = vmatmul.mubr.bf16.vlgmr.msra.gmra.mrb[48].mxu0 %v14394_v17  ;;  %v1044_v16 = vld [vmem:[%s14272_s30 + $0x9e8] sm:$0xff] }
 0x494   : > { %7952 = vmatpush1.bf16.msra.mxu0 %v10916_v1  ;;  %7983 = vmatprep.mubr.bf16.mxu0 %v14344_v59  ;;  %v11620_v1 = vcombine.low %v1444_v39, %v1460_v40  ;;  %v11205_v23 = vcombine.high %v1028_v15, %v1044_v16  ;;  %v1060_v25 = vld [vmem:[%s14272_s30 + $0xa68] sm:$0xff] }
 0x495   : > { %7943 = vmatmul.mubr.bf16.vlgmr.msra.gmra.mrb[48].mxu1 %v14400_v20  ;;  %7953 = vmatprep.subr.bf16.mxu0 %v10949_v3  ;;  %v1076_v54 = vld [vmem:[%s14272_s30 + $0xae8] sm:$0xff] }
 0x496   : > { %7993 = vmatpush1.bf16.msra.mxu1 %v11428_v2  ;;  %8024 = vmatprep.mubr.bf16.mxu1 %v14348_v60  ;;  %v11141_v2 = vcombine.high %v964_v46, %v980_v47  ;;  %v11237_v29 = vcombine.high %v1060_v25, %v1076_v54  ;;  %v1092_v31 = vld [vmem:[%s14272_s30 + $0xb68] sm:$0xff] }
 0x497   : > { %7994 = vmatprep.subr.bf16.mxu1 %v11461_v4  ;;  %v1108_v32 = vld [vmem:[%s14272_s30 + $0xbe8] sm:$0xff] }
 0x498   : > { %7954 = vmatpush1.bf16.msra.mxu0 %v10948_v9  ;;  %v1508_v9 = vld [vmem:[%s14272_s30 + $0x1868] sm:$0xff]  ;;  %v11269_v37 = vcombine.high %v1092_v31, %v1108_v32 }
 0x499   : > { %7955 = vmatprep.subr.bf16.mxu0 %v10981_v11  ;;  %v11140_v11 = vcombine.low %v964_v46, %v980_v47  ;;  %v1124_v39 = vld [vmem:[%s14272_s30 + $0xc68] sm:$0xff] }
 0x49a   : > { %7995 = vmatpush1.bf16.msra.mxu1 %v11460_v10  ;;  %v1524_v10 = vld [vmem:[%s14272_s30 + $0x18e8] sm:$0xff] }
 0x49b   : > { %7996 = vmatprep.subr.bf16.mxu1 %v11493_v12  ;;  %v11652_v12 = vcombine.low %v1476_v51, %v1492_v52  ;;  %v11685_v14 = vcombine.high %v1508_v9, %v1524_v10  ;;  %v1140_v40 = vld [vmem:[%s14272_s30 + $0xce8] sm:$0xff] }
 0x49c   : > { %7956 = vmatpush1.bf16.msra.mxu0 %v10980_v18  ;;  %v1540_v18 = vld [vmem:[%s14272_s30 + $0x1968] sm:$0xff]  ;;  %v11300_v51 = vcombine.low %v1124_v39, %v1140_v40 }
 0x49d   : > { %7957 = vmatprep.subr.bf16.mxu0 %v11013_v21  ;;  %v11172_v21 = vcombine.low %v996_v6, %v1012_v7  ;;  %v1156_v47 = vld [vmem:[%s14272_s30 + $0xd68] sm:$0xff] }
 0x49e   : > { %7997 = vmatpush1.bf16.msra.mxu1 %v11492_v19  ;;  %v1556_v19 = vld [vmem:[%s14272_s30 + $0x19e8] sm:$0xff] }
 0x49f   : > { %7998 = vmatprep.subr.bf16.mxu1 %v11525_v22  ;;  %v11684_v22 = vcombine.low %v1508_v9, %v1524_v10  ;;  %v11717_v24 = vcombine.high %v1540_v18, %v1556_v19  ;;  %v1748_v6 = vld [vmem:[%s14272_s30 + $0x1fe8] sm:$0xff] }
 0x4a0   : > { %7958 = vmatpush1.bf16.msra.mxu0 %v11012_v26  ;;  %v1572_v26 = vld [vmem:[%s14272_s30 + $0x1a68] sm:$0xff] }
 0x4a1   : > { %7959 = vmatprep.subr.bf16.mxu0 %v11045_v55  ;;  %v11204_v55 = vcombine.low %v1028_v15, %v1044_v16 }
 0x4a2   : > { %7999 = vmatpush1.bf16.msra.mxu1 %v11524_v27  ;;  %v1588_v27 = vld [vmem:[%s14272_s30 + $0x1ae8] sm:$0xff] }
 0x4a3   : > { %8000 = vmatprep.subr.bf16.mxu1 %v11557_v28  ;;  %v11716_v28 = vcombine.low %v1540_v18, %v1556_v19  ;;  %v11749_v30 = vcombine.high %v1572_v26, %v1588_v27 }
 0x4a4   : > { %7960 = vmatpush1.bf16.msra.mxu0 %v11044_v33  ;;  %v1604_v33 = vld [vmem:[%s14272_s30 + $0x1b68] sm:$0xff] }
 0x4a5   : > { %7961 = vmatprep.subr.bf16.mxu0 %v11077_v35  ;;  %v11236_v35 = vcombine.low %v1060_v25, %v1076_v54 }
 0x4a6   : > { %8001 = vmatpush1.bf16.msra.mxu1 %v11556_v34  ;;  %v7657_v44 = vpop.f32.mrb[36].mxu0  ;;  %v1620_v34 = vld [vmem:[%s14272_s30 + $0x1be8] sm:$0xff] }
 0x4a7   : > { %8002 = vmatprep.subr.bf16.mxu1 %v11589_v36  ;;  %v7659_v50 = vpop.f32.mrb[37].mxu0  ;;  %v11748_v36 = vcombine.low %v1572_v26, %v1588_v27  ;;  %v11781_v38 = vcombine.high %v1604_v33, %v1620_v34 }
 0x4a8   : > { %v7698_v49 = vpop.f32.mrb[36].mxu1  ;;  %v7661_v58 = vpop.f32.mrb[38].mxu0  ;;  %7962 = vmatpush1.bf16.msra.mxu0 %v11076_v41  ;;  %v1636_v41 = vld [vmem:[%s14272_s30 + $0x1c68] sm:$0xff] }
 0x4a9   : > { %v7699_v53 = vadd.f32 %v7698_v49, %v7657_v44  ;;  %v7700_v57 = vpop.f32.mrb[37].mxu1  ;;  %v7662_v0 = vpop.f32.mrb[39].mxu0  ;;  %7963 = vmatprep.subr.bf16.mxu0 %v11109_v43  ;;  %v11268_v43 = vcombine.low %v1092_v31, %v1108_v32  ;;  %v11780_v44 = vcombine.low %v1604_v33, %v1620_v34  ;;  %v1668_v49 = vld [vmem:[%s14272_s30 + $0x1d68] sm:$0xff] }
 0x4aa   : > { %v7701_v62 = vadd.f32 %v7700_v57, %v7659_v50  ;;  %v7702_v63 = vpop.f32.mrb[38].mxu1  ;;  %8003 = vmatpush1.bf16.msra.mxu1 %v11588_v42  ;;  %v1652_v42 = vld [vmem:[%s14272_s30 + $0x1ce8] sm:$0xff] }
 0x4ab   : > { %v8215_v3 = vadd.f32 %v7699_v53, %v711_v48  ;;  %v7703_v4 = vpop.f32.mrb[39].mxu1  ;;  %8004 = vmatprep.subr.bf16.mxu1 %v11621_v45  ;;  %v11301_v45 = vcombine.high %v1124_v39, %v1140_v40  ;;  %v11813_v46 = vcombine.high %v1636_v41, %v1652_v42  ;;  %v1172_v48 = vld [vmem:[%s14272_s30 + $0xde8] sm:$0xff]  ;;  %v11812_v52 = vcombine.low %v1636_v41, %v1652_v42 }
 0x4ac   : > { %v8216_v8 = vadd.f32 %v7701_v62, %v712_v56  ;;  %7964 = vmatpush1.bf16.msra.mxu0 %v11108_v61  ;;  %v1684_v50 = vld [vmem:[%s14272_s30 + $0x1de8] sm:$0xff]  ;;  %v11333_v53 = vcombine.high %v1156_v47, %v1172_v48  ;;  %v11332_v63 = vcombine.low %v1156_v47, %v1172_v48 }
 0x4ad   : > { %8247 = vst [vmem:[#allocation2 + $0x90] sm:$0xff] %v8215_v3  ;;  %7965 = vmatprep.subr.bf16.mxu0 %v11141_v2  ;;  %v11845_v56 = vcombine.high %v1668_v49, %v1684_v50  ;;  %v1188_v57 = vld [vmem:[%s14272_s30 + $0xe68] sm:$0xff]  ;;  %v11844_v0 = vcombine.low %v1668_v49, %v1684_v50 }
 0x4ae   : > { %8248 = vst [vmem:[#allocation2 + $0x98] sm:$0xff] %v8216_v8  ;;  %8005 = vmatpush1.bf16.msra.mxu1 %v11620_v1  ;;  %v1204_v58 = vld [vmem:[%s14272_s30 + $0xee8] sm:$0xff] }
 0x4af   : > { %8006 = vmatprep.subr.bf16.mxu1 %v11653_v5  ;;  %v1700_v61 = vld [vmem:[%s14272_s30 + $0x1e68] sm:$0xff]  ;;  %v11365_v1 = vcombine.high %v1188_v57, %v1204_v58  ;;  %v11364_v7 = vcombine.low %v1188_v57, %v1204_v58 }
 0x4b0   : > { %7966 = vmatpush1.bf16.msra.mxu0 %v11140_v11  ;;  %v1716_v62 = vld [vmem:[%s14272_s30 + $0x1ee8] sm:$0xff]  ;;  %v741_v11 = vld [vmem:[%s14272_s30 + $0x70] sm:$0xff] }
 0x4b1   : > { %7967 = vmatprep.subr.bf16.mxu0 %v11173_v13  ;;  %v11877_v2 = vcombine.high %v1700_v61, %v1716_v62  ;;  %v1220_v3 = vld [vmem:[%s14272_s30 + $0xf68] sm:$0xff]  ;;  %v11876_v8 = vcombine.low %v1700_v61, %v1716_v62  ;;  %v1253_v13 = vld [vmem:[%s14272_s30 + $0x1070] sm:$0xff] }
 0x4b2   : > { %8007 = vmatpush1.bf16.msra.mxu1 %v11652_v12  ;;  %v1236_v4 = vld [vmem:[%s14272_s30 + $0xfe8] sm:$0xff]  ;;  %v757_v12 = vld [vmem:[%s14272_s30 + $0xf0] sm:$0xff] }
 0x4b3   : > { %8008 = vmatprep.subr.bf16.mxu1 %v11685_v14  ;;  %v1732_v5 = vld [vmem:[%s14272_s30 + $0x1f68] sm:$0xff]  ;;  %v11397_v9 = vcombine.high %v1220_v3, %v1236_v4  ;;  %v1269_v14 = vld [vmem:[%s14272_s30 + $0x10f0] sm:$0xff]  ;;  %v11396_v15 = vcombine.low %v1220_v3, %v1236_v4  ;;  %v10919_v18 = vcombine.high %v741_v11, %v757_v12  ;;  %v10918_v25 = vcombine.low %v741_v11, %v757_v12 }
 0x4b4   : > { %7968 = vmatpush1.bf16.msra.mxu0 %v11172_v21  ;;  %v11909_v10 = vcombine.high %v1732_v5, %v1748_v6  ;;  %v11908_v16 = vcombine.low %v1732_v5, %v1748_v6  ;;  %v11431_v19 = vcombine.high %v1253_v13, %v1269_v14  ;;  %v773_v21 = vld [vmem:[%s14272_s30 + $0x170] sm:$0xff]  ;;  %v11430_v54 = vcombine.low %v1253_v13, %v1269_v14 }
 0x4b5   : > { %7969 = vmatprep.subr.bf16.mxu0 %v11205_v23  ;;  %v1285_v23 = vld [vmem:[%s14272_s30 + $0x1170] sm:$0xff] }
 0x4b6   : > { %8009 = vmatpush1.bf16.msra.mxu1 %v11684_v22  ;;  %v789_v22 = vld [vmem:[%s14272_s30 + $0x1f0] sm:$0xff] }
 0x4b7   : > { %8010 = vmatprep.subr.bf16.mxu1 %v11717_v24  ;;  %v1301_v24 = vld [vmem:[%s14272_s30 + $0x11f0] sm:$0xff]  ;;  %v10951_v26 = vcombine.high %v773_v21, %v789_v22  ;;  %v10950_v31 = vcombine.low %v773_v21, %v789_v22 }
 0x4b8   : > { %7970 = vmatpush1.bf16.msra.mxu0 %v11204_v55  ;;  %v11463_v27 = vcombine.high %v1285_v23, %v1301_v24  ;;  %v805_v55 = vld [vmem:[%s14272_s30 + $0x270] sm:$0xff]  ;;  %v11462_v32 = vcombine.low %v1285_v23, %v1301_v24 }
 0x4b9   : > { %7971 = vmatprep.subr.bf16.mxu0 %v11237_v29  ;;  %v1317_v29 = vld [vmem:[%s14272_s30 + $0x1270] sm:$0xff] }
 0x4ba   : > { %8011 = vmatpush1.bf16.msra.mxu1 %v11716_v28  ;;  %v821_v28 = vld [vmem:[%s14272_s30 + $0x2f0] sm:$0xff] }
 0x4bb   : > { %8012 = vmatprep.subr.bf16.mxu1 %v11749_v30  ;;  %v1333_v30 = vld [vmem:[%s14272_s30 + $0x12f0] sm:$0xff]  ;;  %v10983_v33 = vcombine.high %v805_v55, %v821_v28  ;;  %v10982_v39 = vcombine.low %v805_v55, %v821_v28 }
 0x4bc   : > { %7972 = vmatpush1.bf16.msra.mxu0 %v11236_v35  ;;  %v11495_v34 = vcombine.high %v1317_v29, %v1333_v30  ;;  %v837_v35 = vld [vmem:[%s14272_s30 + $0x370] sm:$0xff]  ;;  %v11494_v40 = vcombine.low %v1317_v29, %v1333_v30 }
 0x4bd   : > { %7973 = vmatprep.subr.bf16.mxu0 %v11269_v37  ;;  %v1349_v37 = vld [vmem:[%s14272_s30 + $0x1370] sm:$0xff] }
 0x4be   : > { %8013 = vmatpush1.bf16.msra.mxu1 %v11748_v36  ;;  %v853_v36 = vld [vmem:[%s14272_s30 + $0x3f0] sm:$0xff] }
 0x4bf   : > { %8014 = vmatprep.subr.bf16.mxu1 %v11781_v38  ;;  %v1365_v38 = vld [vmem:[%s14272_s30 + $0x13f0] sm:$0xff]  ;;  %v11015_v41 = vcombine.high %v837_v35, %v853_v36  ;;  %v11014_v47 = vcombine.low %v837_v35, %v853_v36 }
 0x4c0   : > { %7974 = vmatpush1.bf16.msra.mxu0 %v11268_v43  ;;  %v11527_v42 = vcombine.high %v1349_v37, %v1365_v38  ;;  %v869_v43 = vld [vmem:[%s14272_s30 + $0x470] sm:$0xff]  ;;  %v11526_v48 = vcombine.low %v1349_v37, %v1365_v38 }
 0x4c1   : > { %7975 = vmatprep.subr.bf16.mxu0 %v11301_v45  ;;  %v1381_v45 = vld [vmem:[%s14272_s30 + $0x1470] sm:$0xff] }
 0x4c2   : > { %8015 = vmatpush1.bf16.msra.mxu1 %v11780_v44  ;;  %v885_v44 = vld [vmem:[%s14272_s30 + $0x4f0] sm:$0xff] }
 0x4c3   : > { %8016 = vmatprep.subr.bf16.mxu1 %v11813_v46  ;;  %v1397_v46 = vld [vmem:[%s14272_s30 + $0x14f0] sm:$0xff]  ;;  %v11047_v49 = vcombine.high %v869_v43, %v885_v44  ;;  %v11046_v57 = vcombine.low %v869_v43, %v885_v44 }
 0x4c4   : > { %7976 = vmatpush1.bf16.msra.mxu0 %v11300_v51  ;;  %v11559_v50 = vcombine.high %v1381_v45, %v1397_v46  ;;  %v901_v51 = vld [vmem:[%s14272_s30 + $0x570] sm:$0xff]  ;;  %v11558_v58 = vcombine.low %v1381_v45, %v1397_v46 }
 0x4c5   : > { %7977 = vmatprep.subr.bf16.mxu0 %v11333_v53  ;;  %v1413_v53 = vld [vmem:[%s14272_s30 + $0x1570] sm:$0xff] }
 0x4c6   : > { %8017 = vmatpush1.bf16.msra.mxu1 %v11812_v52  ;;  %v917_v52 = vld [vmem:[%s14272_s30 + $0x5f0] sm:$0xff] }
 0x4c7   : > { %8018 = vmatprep.subr.bf16.mxu1 %v11845_v56  ;;  %v1429_v56 = vld [vmem:[%s14272_s30 + $0x15f0] sm:$0xff]  ;;  %v11079_v61 = vcombine.high %v901_v51, %v917_v52  ;;  %v11078_v3 = vcombine.low %v901_v51, %v917_v52 }
 0x4c8   : > { %7978 = vmatpush1.bf16.msra.mxu0 %v11332_v63  ;;  %v11591_v62 = vcombine.high %v1413_v53, %v1429_v56  ;;  %v933_v63 = vld [vmem:[%s14272_s30 + $0x670] sm:$0xff]  ;;  %v11590_v4 = vcombine.low %v1413_v53, %v1429_v56 }
 0x4c9   : > { %7979 = vmatprep.subr.bf16.mxu0 %v11365_v1  ;;  %v1445_v1 = vld [vmem:[%s14272_s30 + $0x1670] sm:$0xff] }
 0x4ca   : > { %8019 = vmatpush1.bf16.msra.mxu1 %v11844_v0  ;;  %v949_v0 = vld [vmem:[%s14272_s30 + $0x6f0] sm:$0xff] }
 0x4cb   : > { %8020 = vmatprep.subr.bf16.mxu1 %v11877_v2  ;;  %v1461_v2 = vld [vmem:[%s14272_s30 + $0x16f0] sm:$0xff]  ;;  %v11111_v5 = vcombine.high %v933_v63, %v949_v0  ;;  %v11110_v21 = vcombine.low %v933_v63, %v949_v0 }
 0x4cc   : > { %7980 = vmatpush1.bf16.msra.mxu0 %v11364_v7  ;;  %v11623_v7 = vcombine.high %v1445_v1, %v1461_v2  ;;  %v1477_v13 = vld [vmem:[%s14272_s30 + $0x1770] sm:$0xff] }
 0x4cd   : > { %7981 = vmatprep.subr.bf16.mxu0 %v11397_v9  ;;  %v981_v9 = vld [vmem:[%s14272_s30 + $0x7f0] sm:$0xff] }
 0x4ce   : > { %8021 = vmatpush1.bf16.msra.mxu1 %v11876_v8  ;;  %v965_v8 = vld [vmem:[%s14272_s30 + $0x770] sm:$0xff] }
 0x4cf   : > { %8022 = vmatprep.subr.bf16.mxu1 %v11909_v10  ;;  %v713_v10 = vld [vmem:[#allocation2 + $0xa0] sm:$0xff]  ;;  %v1493_v14 = vld [vmem:[%s14272_s30 + $0x17f0] sm:$0xff] }
 0x4d0   : > { %7982 = vmatpush1.bf16.msra.mxu0 %v11396_v15  ;;  %v11655_v55 = vcombine.high %v1477_v13, %v1493_v14  ;;  %v997_v28 = vld [vmem:[%s14272_s30 + $0x870] sm:$0xff] }
 0x4d1   : > { %8033 = vmatprep.subr.bf16.mxu0 %v10919_v18  ;;  %v1013_v29 = vld [vmem:[%s14272_s30 + $0x8f0] sm:$0xff] }
 0x4d2   : > { %8023 = vmatpush1.bf16.msra.mxu1 %v11908_v16  ;;  %v714_v16 = vld [vmem:[#allocation2 + $0xa8] sm:$0xff]  ;;  %v11175_v35 = vcombine.high %v997_v28, %v1013_v29  ;;  %v1029_v37 = vld [vmem:[%s14272_s30 + $0x970] sm:$0xff] }
 0x4d3   : > { %8074 = vmatprep.subr.bf16.mxu1 %v11431_v19  ;;  %7984 = vmatmul.mubr.bf16.vlgmr.msra.gmra.mrb[52].mxu0 %v14394_v17  ;;  %v1045_v38 = vld [vmem:[%s14272_s30 + $0x9f0] sm:$0xff] }
 0x4d4   : > { %8034 = vmatpush1.bf16.msra.mxu0 %v10918_v25  ;;  %8065 = vmatprep.mubr.bf16.mxu0 %v14344_v59  ;;  %v11622_v25 = vcombine.low %v1445_v1, %v1461_v2  ;;  %v11207_v43 = vcombine.high %v1029_v37, %v1045_v38  ;;  %v1061_v45 = vld [vmem:[%s14272_s30 + $0xa70] sm:$0xff] }
 0x4d5   : > { %8025 = vmatmul.mubr.bf16.vlgmr.msra.gmra.mrb[52].mxu1 %v14400_v20  ;;  %8035 = vmatprep.subr.bf16.mxu0 %v10951_v26  ;;  %v1077_v46 = vld [vmem:[%s14272_s30 + $0xaf0] sm:$0xff] }
 0x4d6   : > { %8075 = vmatpush1.bf16.msra.mxu1 %v11430_v54  ;;  %8106 = vmatprep.mubr.bf16.mxu1 %v14348_v60  ;;  %v11143_v54 = vcombine.high %v965_v8, %v981_v9  ;;  %v11239_v51 = vcombine.high %v1061_v45, %v1077_v46  ;;  %v1093_v53 = vld [vmem:[%s14272_s30 + $0xb70] sm:$0xff] }
 0x4d7   : > { %8076 = vmatprep.subr.bf16.mxu1 %v11463_v27  ;;  %v1109_v56 = vld [vmem:[%s14272_s30 + $0xbf0] sm:$0xff] }
 0x4d8   : > { %8036 = vmatpush1.bf16.msra.mxu0 %v10950_v31  ;;  %v1509_v31 = vld [vmem:[%s14272_s30 + $0x1870] sm:$0xff]  ;;  %v11271_v63 = vcombine.high %v1093_v53, %v1109_v56 }
 0x4d9   : > { %8037 = vmatprep.subr.bf16.mxu0 %v10983_v33  ;;  %v11142_v33 = vcombine.low %v965_v8, %v981_v9  ;;  %v1125_v1 = vld [vmem:[%s14272_s30 + $0xc70] sm:$0xff] }
 0x4da   : > { %8077 = vmatpush1.bf16.msra.mxu1 %v11462_v32  ;;  %v1525_v32 = vld [vmem:[%s14272_s30 + $0x18f0] sm:$0xff] }
 0x4db   : > { %8078 = vmatprep.subr.bf16.mxu1 %v11495_v34  ;;  %v11654_v34 = vcombine.low %v1477_v13, %v1493_v14  ;;  %v11687_v36 = vcombine.high %v1509_v31, %v1525_v32  ;;  %v1141_v2 = vld [vmem:[%s14272_s30 + $0xcf0] sm:$0xff] }
 0x4dc   : > { %8038 = vmatpush1.bf16.msra.mxu0 %v10982_v39  ;;  %v1541_v39 = vld [vmem:[%s14272_s30 + $0x1970] sm:$0xff]  ;;  %v11302_v13 = vcombine.low %v1125_v1, %v1141_v2 }
 0x4dd   : > { %8039 = vmatprep.subr.bf16.mxu0 %v11015_v41  ;;  %v11174_v41 = vcombine.low %v997_v28, %v1013_v29  ;;  %v1157_v9 = vld [vmem:[%s14272_s30 + $0xd70] sm:$0xff] }
 0x4de   : > { %8079 = vmatpush1.bf16.msra.mxu1 %v11494_v40  ;;  %v1557_v40 = vld [vmem:[%s14272_s30 + $0x19f0] sm:$0xff] }
 0x4df   : > { %8080 = vmatprep.subr.bf16.mxu1 %v11527_v42  ;;  %v11686_v42 = vcombine.low %v1509_v31, %v1525_v32  ;;  %v11719_v44 = vcombine.high %v1541_v39, %v1557_v40  ;;  %v1749_v28 = vld [vmem:[%s14272_s30 + $0x1ff0] sm:$0xff] }
 0x4e0   : > { %8040 = vmatpush1.bf16.msra.mxu0 %v11014_v47  ;;  %v1573_v47 = vld [vmem:[%s14272_s30 + $0x1a70] sm:$0xff] }
 0x4e1   : > { %8041 = vmatprep.subr.bf16.mxu0 %v11047_v49  ;;  %v11206_v49 = vcombine.low %v1029_v37, %v1045_v38 }
 0x4e2   : > { %8081 = vmatpush1.bf16.msra.mxu1 %v11526_v48  ;;  %v1589_v48 = vld [vmem:[%s14272_s30 + $0x1af0] sm:$0xff] }
 0x4e3   : > { %8082 = vmatprep.subr.bf16.mxu1 %v11559_v50  ;;  %v11718_v50 = vcombine.low %v1541_v39, %v1557_v40  ;;  %v11751_v52 = vcombine.high %v1573_v47, %v1589_v48 }
 0x4e4   : > { %8042 = vmatpush1.bf16.msra.mxu0 %v11046_v57  ;;  %v1605_v57 = vld [vmem:[%s14272_s30 + $0x1b70] sm:$0xff] }
 0x4e5   : > { %8043 = vmatprep.subr.bf16.mxu0 %v11079_v61  ;;  %v11238_v61 = vcombine.low %v1061_v45, %v1077_v46 }
 0x4e6   : > { %8083 = vmatpush1.bf16.msra.mxu1 %v11558_v58  ;;  %v7739_v6 = vpop.f32.mrb[40].mxu0  ;;  %v1621_v58 = vld [vmem:[%s14272_s30 + $0x1bf0] sm:$0xff] }
 0x4e7   : > { %8084 = vmatprep.subr.bf16.mxu1 %v11591_v62  ;;  %v7741_v12 = vpop.f32.mrb[41].mxu0  ;;  %v11750_v62 = vcombine.low %v1573_v47, %v1589_v48  ;;  %v11783_v0 = vcombine.high %v1605_v57, %v1621_v58 }
 0x4e8   : > { %v7780_v11 = vpop.f32.mrb[40].mxu1  ;;  %v7743_v19 = vpop.f32.mrb[42].mxu0  ;;  %8044 = vmatpush1.bf16.msra.mxu0 %v11078_v3  ;;  %v1637_v3 = vld [vmem:[%s14272_s30 + $0x1c70] sm:$0xff] }
 0x4e9   : > { %v7781_v15 = vadd.f32 %v7780_v11, %v7739_v6  ;;  %v7782_v18 = vpop.f32.mrb[41].mxu1  ;;  %v7744_v24 = vpop.f32.mrb[43].mxu0  ;;  %8045 = vmatprep.subr.bf16.mxu0 %v11111_v5  ;;  %v11270_v5 = vcombine.low %v1093_v53, %v1109_v56  ;;  %v11782_v6 = vcombine.low %v1605_v57, %v1621_v58  ;;  %v1669_v11 = vld [vmem:[%s14272_s30 + $0x1d70] sm:$0xff] }
 0x4ea   : > { %v7783_v22 = vadd.f32 %v7782_v18, %v7741_v12  ;;  %v7784_v23 = vpop.f32.mrb[42].mxu1  ;;  %8085 = vmatpush1.bf16.msra.mxu1 %v11590_v4  ;;  %v1653_v4 = vld [vmem:[%s14272_s30 + $0x1cf0] sm:$0xff] }
 0x4eb   : > { %v8217_v26 = vadd.f32 %v7781_v15, %v713_v10  ;;  %v7785_v27 = vpop.f32.mrb[43].mxu1  ;;  %8086 = vmatprep.subr.bf16.mxu1 %v11623_v7  ;;  %v11303_v7 = vcombine.high %v1125_v1, %v1141_v2  ;;  %v11815_v8 = vcombine.high %v1637_v3, %v1653_v4  ;;  %v1173_v10 = vld [vmem:[%s14272_s30 + $0xdf0] sm:$0xff]  ;;  %v11814_v14 = vcombine.low %v1637_v3, %v1653_v4 }
 0x4ec   : > { %v8218_v30 = vadd.f32 %v7783_v22, %v714_v16  ;;  %8046 = vmatpush1.bf16.msra.mxu0 %v11110_v21  ;;  %v1685_v12 = vld [vmem:[%s14272_s30 + $0x1df0] sm:$0xff]  ;;  %v11335_v15 = vcombine.high %v1157_v9, %v1173_v10  ;;  %v11334_v23 = vcombine.low %v1157_v9, %v1173_v10 }
 0x4ed   : > { %8249 = vst [vmem:[#allocation2 + $0xa0] sm:$0xff] %v8217_v26  ;;  %8047 = vmatprep.subr.bf16.mxu0 %v11143_v54  ;;  %v11847_v16 = vcombine.high %v1669_v11, %v1685_v12  ;;  %v1189_v18 = vld [vmem:[%s14272_s30 + $0xe70] sm:$0xff]  ;;  %v11846_v24 = vcombine.low %v1669_v11, %v1685_v12  ;;  %v902_v11 = vld [vmem:[%s14272_s30 + $0x578] sm:$0xff] }
 0x4ee   : > { %8250 = vst [vmem:[#allocation2 + $0xa8] sm:$0xff] %v8218_v30  ;;  %8087 = vmatpush1.bf16.msra.mxu1 %v11622_v25  ;;  %v1205_v19 = vld [vmem:[%s14272_s30 + $0xef0] sm:$0xff]  ;;  %v918_v12 = vld [vmem:[%s14272_s30 + $0x5f8] sm:$0xff] }
 0x4ef   : > { %8088 = vmatprep.subr.bf16.mxu1 %v11655_v55  ;;  %v1701_v21 = vld [vmem:[%s14272_s30 + $0x1e70] sm:$0xff]  ;;  %v11367_v25 = vcombine.high %v1189_v18, %v1205_v19  ;;  %v11366_v29 = vcombine.low %v1189_v18, %v1205_v19  ;;  %v11081_v18 = vcombine.high %v902_v11, %v918_v12 }
 0x4f0   : > { %8048 = vmatpush1.bf16.msra.mxu0 %v11142_v33  ;;  %v1717_v22 = vld [vmem:[%s14272_s30 + $0x1ef0] sm:$0xff]  ;;  %v742_v33 = vld [vmem:[%s14272_s30 + $0x78] sm:$0xff] }
 0x4f1   : > { %8049 = vmatprep.subr.bf16.mxu0 %v11175_v35  ;;  %v11879_v54 = vcombine.high %v1701_v21, %v1717_v22  ;;  %v1221_v26 = vld [vmem:[%s14272_s30 + $0xf70] sm:$0xff]  ;;  %v11878_v30 = vcombine.low %v1701_v21, %v1717_v22  ;;  %v1254_v35 = vld [vmem:[%s14272_s30 + $0x1078] sm:$0xff] }
 0x4f2   : > { %8089 = vmatpush1.bf16.msra.mxu1 %v11654_v34  ;;  %v1237_v27 = vld [vmem:[%s14272_s30 + $0xff0] sm:$0xff]  ;;  %v758_v34 = vld [vmem:[%s14272_s30 + $0xf8] sm:$0xff] }
 0x4f3   : > { %8090 = vmatprep.subr.bf16.mxu1 %v11687_v36  ;;  %v1733_v55 = vld [vmem:[%s14272_s30 + $0x1f70] sm:$0xff]  ;;  %v11399_v31 = vcombine.high %v1221_v26, %v1237_v27  ;;  %v1270_v36 = vld [vmem:[%s14272_s30 + $0x10f8] sm:$0xff]  ;;  %v11398_v37 = vcombine.low %v1221_v26, %v1237_v27  ;;  %v10921_v39 = vcombine.high %v742_v33, %v758_v34  ;;  %v10920_v45 = vcombine.low %v742_v33, %v758_v34 }
 0x4f4   : > { %8050 = vmatpush1.bf16.msra.mxu0 %v11174_v41  ;;  %v11911_v32 = vcombine.high %v1733_v55, %v1749_v28  ;;  %v11910_v38 = vcombine.low %v1733_v55, %v1749_v28  ;;  %v11433_v40 = vcombine.high %v1254_v35, %v1270_v36  ;;  %v774_v41 = vld [vmem:[%s14272_s30 + $0x178] sm:$0xff]  ;;  %v11432_v46 = vcombine.low %v1254_v35, %v1270_v36 }
 0x4f5   : > { %8051 = vmatprep.subr.bf16.mxu0 %v11207_v43  ;;  %v1286_v43 = vld [vmem:[%s14272_s30 + $0x1178] sm:$0xff] }
 0x4f6   : > { %8091 = vmatpush1.bf16.msra.mxu1 %v11686_v42  ;;  %v790_v42 = vld [vmem:[%s14272_s30 + $0x1f8] sm:$0xff] }
 0x4f7   : > { %8092 = vmatprep.subr.bf16.mxu1 %v11719_v44  ;;  %v1302_v44 = vld [vmem:[%s14272_s30 + $0x11f8] sm:$0xff]  ;;  %v10953_v47 = vcombine.high %v774_v41, %v790_v42  ;;  %v10952_v53 = vcombine.low %v774_v41, %v790_v42 }
 0x4f8   : > { %8052 = vmatpush1.bf16.msra.mxu0 %v11206_v49  ;;  %v11465_v48 = vcombine.high %v1286_v43, %v1302_v44  ;;  %v806_v49 = vld [vmem:[%s14272_s30 + $0x278] sm:$0xff]  ;;  %v11464_v56 = vcombine.low %v1286_v43, %v1302_v44 }
 0x4f9   : > { %8053 = vmatprep.subr.bf16.mxu0 %v11239_v51  ;;  %v1318_v51 = vld [vmem:[%s14272_s30 + $0x1278] sm:$0xff] }
 0x4fa   : > { %8093 = vmatpush1.bf16.msra.mxu1 %v11718_v50  ;;  %v822_v50 = vld [vmem:[%s14272_s30 + $0x2f8] sm:$0xff] }
 0x4fb   : > { %8094 = vmatprep.subr.bf16.mxu1 %v11751_v52  ;;  %v1334_v52 = vld [vmem:[%s14272_s30 + $0x12f8] sm:$0xff]  ;;  %v10985_v57 = vcombine.high %v806_v49, %v822_v50  ;;  %v10984_v1 = vcombine.low %v806_v49, %v822_v50 }
 0x4fc   : > { %8054 = vmatpush1.bf16.msra.mxu0 %v11238_v61  ;;  %v11497_v58 = vcombine.high %v1318_v51, %v1334_v52  ;;  %v838_v61 = vld [vmem:[%s14272_s30 + $0x378] sm:$0xff]  ;;  %v11496_v2 = vcombine.low %v1318_v51, %v1334_v52 }
 0x4fd   : > { %8055 = vmatprep.subr.bf16.mxu0 %v11271_v63  ;;  %v1350_v63 = vld [vmem:[%s14272_s30 + $0x1378] sm:$0xff] }
 0x4fe   : > { %8095 = vmatpush1.bf16.msra.mxu1 %v11750_v62  ;;  %v854_v62 = vld [vmem:[%s14272_s30 + $0x3f8] sm:$0xff] }
 0x4ff   : > { %8096 = vmatprep.subr.bf16.mxu1 %v11783_v0  ;;  %v1366_v0 = vld [vmem:[%s14272_s30 + $0x13f8] sm:$0xff]  ;;  %v11017_v3 = vcombine.high %v838_v61, %v854_v62 }
 0x500   : > { %8056 = vmatpush1.bf16.msra.mxu0 %v11270_v5  ;;  %v11529_v4 = vcombine.high %v1350_v63, %v1366_v0  ;;  %v870_v5 = vld [vmem:[%s14272_s30 + $0x478] sm:$0xff] }
 0x501   : > { %8057 = vmatprep.subr.bf16.mxu0 %v11303_v7  ;;  %v1382_v7 = vld [vmem:[%s14272_s30 + $0x1478] sm:$0xff] }
 0x502   : > { %8097 = vmatpush1.bf16.msra.mxu1 %v11782_v6  ;;  %v886_v6 = vld [vmem:[%s14272_s30 + $0x4f8] sm:$0xff] }
 0x503   : > { %8098 = vmatprep.subr.bf16.mxu1 %v11815_v8  ;;  %v11016_v8 = vcombine.low %v838_v61, %v854_v62  ;;  %v11049_v9 = vcombine.high %v870_v5, %v886_v6  ;;  %v934_v21 = vld [vmem:[%s14272_s30 + $0x678] sm:$0xff] }
 0x504   : > { %8058 = vmatpush1.bf16.msra.mxu0 %v11302_v13  ;;  %v1414_v13 = vld [vmem:[%s14272_s30 + $0x1578] sm:$0xff] }
 0x505   : > { %8059 = vmatprep.subr.bf16.mxu0 %v11335_v15  ;;  %v11048_v15 = vcombine.low %v870_v5, %v886_v6  ;;  %v950_v22 = vld [vmem:[%s14272_s30 + $0x6f8] sm:$0xff] }
 0x506   : > { %8099 = vmatpush1.bf16.msra.mxu1 %v11814_v14  ;;  %v1430_v14 = vld [vmem:[%s14272_s30 + $0x15f8] sm:$0xff]  ;;  %v11113_v26 = vcombine.high %v934_v21, %v950_v22 }
 0x507   : > { %8100 = vmatprep.subr.bf16.mxu1 %v11847_v16  ;;  %v11593_v19 = vcombine.high %v1414_v13, %v1430_v14  ;;  %v966_v28 = vld [vmem:[%s14272_s30 + $0x778] sm:$0xff] }
 0x508   : > { %8060 = vmatpush1.bf16.msra.mxu0 %v11334_v23  ;;  %v1446_v23 = vld [vmem:[%s14272_s30 + $0x1678] sm:$0xff] }
 0x509   : > { %8061 = vmatprep.subr.bf16.mxu0 %v11367_v25  ;;  %v11080_v25 = vcombine.low %v902_v11, %v918_v12  ;;  %v1478_v33 = vld [vmem:[%s14272_s30 + $0x1778] sm:$0xff] }
 0x50a   : > { %8101 = vmatpush1.bf16.msra.mxu1 %v11846_v24  ;;  %v1462_v24 = vld [vmem:[%s14272_s30 + $0x16f8] sm:$0xff] }
 0x50b   : > { %8102 = vmatprep.subr.bf16.mxu1 %v11879_v54  ;;  %v11592_v54 = vcombine.low %v1414_v13, %v1430_v14  ;;  %v11625_v55 = vcombine.high %v1446_v23, %v1462_v24  ;;  %v1494_v34 = vld [vmem:[%s14272_s30 + $0x17f8] sm:$0xff]  ;;  %v11624_v43 = vcombine.low %v1446_v23, %v1462_v24 }
 0x50c   : > { %8062 = vmatpush1.bf16.msra.mxu0 %v11366_v29  ;;  %v982_v29 = vld [vmem:[%s14272_s30 + $0x7f8] sm:$0xff] }
 0x50d   : > { %8063 = vmatprep.subr.bf16.mxu0 %v11399_v31  ;;  %v716_v36 = vld [vmem:[#allocation2 + $0xb8] sm:$0xff]  ;;  %v11145_v44 = vcombine.high %v966_v28, %v982_v29 }
 0x50e   : > { %8103 = vmatpush1.bf16.msra.mxu1 %v11878_v30  ;;  %v715_v30 = vld [vmem:[#allocation2 + $0xb0] sm:$0xff]  ;;  %v1014_v49 = vld [vmem:[%s14272_s30 + $0x8f8] sm:$0xff] }
 0x50f   : > { %8104 = vmatprep.subr.bf16.mxu1 %v11911_v32  ;;  %v1510_v51 = vld [vmem:[%s14272_s30 + $0x1878] sm:$0xff] }
 0x510   : > { %8064 = vmatpush1.bf16.msra.mxu0 %v11398_v37  ;;  %v1526_v52 = vld [vmem:[%s14272_s30 + $0x18f8] sm:$0xff] }
 0x511   : > { %8115 = vmatprep.subr.bf16.mxu0 %v10921_v39  ;;  %v11112_v39 = vcombine.low %v934_v21, %v950_v22  ;;  %v1030_v61 = vld [vmem:[%s14272_s30 + $0x978] sm:$0xff] }
 0x512   : > { %8105 = vmatpush1.bf16.msra.mxu1 %v11910_v38  ;;  %v1046_v62 = vld [vmem:[%s14272_s30 + $0x9f8] sm:$0xff] }
 0x513   : > { %8156 = vmatprep.subr.bf16.mxu1 %v11433_v40  ;;  %8066 = vmatmul.mubr.bf16.vlgmr.msra.gmra.mrb[56].mxu0 %v14394_v17  ;;  %v1062_v5 = vld [vmem:[%s14272_s30 + $0xa78] sm:$0xff] }
 0x514   : > { %8116 = vmatpush1.bf16.msra.mxu0 %v10920_v45  ;;  %8147 = vmatprep.mubr.bf16.mxu0 %v14344_v59  ;;  %v1398_v59 = vld [vmem:[%s14272_s30 + $0x14f8] sm:$0xff] }
 0x515   : > { %8107 = vmatmul.mubr.bf16.vlgmr.msra.gmra.mrb[56].mxu1 %v14400_v20  ;;  %8117 = vmatprep.subr.bf16.mxu0 %v10953_v47  ;;  %v11561_v10 = vcombine.high %v1382_v7, %v1398_v59  ;;  %v11560_v16 = vcombine.low %v1382_v7, %v1398_v59  ;;  %v11657_v47 = vcombine.high %v1478_v33, %v1494_v34  ;;  %v1078_v6 = vld [vmem:[%s14272_s30 + $0xaf8] sm:$0xff] }
 0x516   : > { %8157 = vmatpush1.bf16.msra.mxu1 %v11432_v46  ;;  %8188 = vmatprep.mubr.bf16.mxu1 %v14348_v60  ;;  %v11528_v60 = vcombine.low %v1350_v63, %v1366_v0  ;;  %v1542_v63 = vld [vmem:[%s14272_s30 + $0x1978] sm:$0xff] }
 0x517   : > { %8158 = vmatprep.subr.bf16.mxu1 %v11465_v48  ;;  %v998_v48 = vld [vmem:[%s14272_s30 + $0x878] sm:$0xff] }
 0x518   : > { %8118 = vmatpush1.bf16.msra.mxu0 %v10952_v53  ;;  %v11144_v53 = vcombine.low %v966_v28, %v982_v29  ;;  %v1558_v0 = vld [vmem:[%s14272_s30 + $0x19f8] sm:$0xff] }
 0x519   : > { %8119 = vmatprep.subr.bf16.mxu0 %v10985_v57  ;;  %v11177_v57 = vcombine.high %v998_v48, %v1014_v49  ;;  %v1574_v7 = vld [vmem:[%s14272_s30 + $0x1a78] sm:$0xff] }
 0x51a   : > { %8159 = vmatpush1.bf16.msra.mxu1 %v11464_v56  ;;  %v11656_v56 = vcombine.low %v1478_v33, %v1494_v34  ;;  %v1590_v59 = vld [vmem:[%s14272_s30 + $0x1af8] sm:$0xff] }
 0x51b   : > { %8160 = vmatprep.subr.bf16.mxu1 %v11497_v58  ;;  %v11689_v58 = vcombine.high %v1510_v51, %v1526_v52  ;;  %v1094_v11 = vld [vmem:[%s14272_s30 + $0xb78] sm:$0xff] }
 0x51c   : > { %8120 = vmatpush1.bf16.msra.mxu0 %v10984_v1  ;;  %v11176_v1 = vcombine.low %v998_v48, %v1014_v49  ;;  %v1110_v12 = vld [vmem:[%s14272_s30 + $0xbf8] sm:$0xff] }
 0x51d   : > { %8121 = vmatprep.subr.bf16.mxu0 %v11017_v3  ;;  %v11209_v3 = vcombine.high %v1030_v61, %v1046_v62  ;;  %v1606_v13 = vld [vmem:[%s14272_s30 + $0x1b78] sm:$0xff] }
 0x51e   : > { %8161 = vmatpush1.bf16.msra.mxu1 %v11496_v2  ;;  %v11688_v2 = vcombine.low %v1510_v51, %v1526_v52  ;;  %v1622_v14 = vld [vmem:[%s14272_s30 + $0x1bf8] sm:$0xff] }
 0x51f   : > { %8162 = vmatprep.subr.bf16.mxu1 %v11529_v4  ;;  %v11721_v4 = vcombine.high %v1542_v63, %v1558_v0  ;;  %v1126_v21 = vld [vmem:[%s14272_s30 + $0xc78] sm:$0xff] }
 0x520   : > { %8122 = vmatpush1.bf16.msra.mxu0 %v11016_v8  ;;  %v11208_v8 = vcombine.low %v1030_v61, %v1046_v62  ;;  %v1142_v22 = vld [vmem:[%s14272_s30 + $0xcf8] sm:$0xff]  ;;  %v718_v62 = vld [vmem:[#allocation2 + $0xc8] sm:$0xff] }
 0x521   : > { %8123 = vmatprep.subr.bf16.mxu0 %v11049_v9  ;;  %v11241_v9 = vcombine.high %v1062_v5, %v1078_v6  ;;  %v1638_v23 = vld [vmem:[%s14272_s30 + $0x1c78] sm:$0xff] }
 0x522   : > { %8163 = vmatpush1.bf16.msra.mxu1 %v11528_v60  ;;  %v11720_v60 = vcombine.low %v1542_v63, %v1558_v0  ;;  %v1654_v24 = vld [vmem:[%s14272_s30 + $0x1cf8] sm:$0xff] }
 0x523   : > { %8164 = vmatprep.subr.bf16.mxu1 %v11561_v10  ;;  %v11753_v10 = vcombine.high %v1574_v7, %v1590_v59  ;;  %v1174_v28 = vld [vmem:[%s14272_s30 + $0xdf8] sm:$0xff] }
 0x524   : > { %8124 = vmatpush1.bf16.msra.mxu0 %v11048_v15  ;;  %v11240_v15 = vcombine.low %v1062_v5, %v1078_v6  ;;  %v1670_v29 = vld [vmem:[%s14272_s30 + $0x1d78] sm:$0xff] }
 0x525   : > { %8125 = vmatprep.subr.bf16.mxu0 %v11081_v18  ;;  %v11273_v18 = vcombine.high %v1094_v11, %v1110_v12 }
 0x526   : > { %8165 = vmatpush1.bf16.msra.mxu1 %v11560_v16  ;;  %v7821_v27 = vpop.f32.mrb[44].mxu0  ;;  %v11752_v16 = vcombine.low %v1574_v7, %v1590_v59 }
 0x527   : > { %8166 = vmatprep.subr.bf16.mxu1 %v11593_v19  ;;  %v7823_v32 = vpop.f32.mrb[45].mxu0  ;;  %v11785_v19 = vcombine.high %v1606_v13, %v1622_v14 }
 0x528   : > { %v7862_v31 = vpop.f32.mrb[44].mxu1  ;;  %v7825_v38 = vpop.f32.mrb[46].mxu0  ;;  %8126 = vmatpush1.bf16.msra.mxu0 %v11080_v25  ;;  %v11272_v25 = vcombine.low %v1094_v11, %v1110_v12 }
 0x529   : > { %v7863_v35 = vadd.f32 %v7862_v31, %v7821_v27  ;;  %v7864_v37 = vpop.f32.mrb[45].mxu1  ;;  %v7826_v42 = vpop.f32.mrb[47].mxu0  ;;  %8127 = vmatprep.subr.bf16.mxu0 %v11113_v26  ;;  %v11305_v26 = vcombine.high %v1126_v21, %v1142_v22  ;;  %v11817_v27 = vcombine.high %v1638_v23, %v1654_v24  ;;  %v11304_v31 = vcombine.low %v1126_v21, %v1142_v22  ;;  %v1718_v38 = vld [vmem:[%s14272_s30 + $0x1ef8] sm:$0xff] }
 0x52a   : > { %v7865_v40 = vadd.f32 %v7864_v37, %v7823_v32  ;;  %v7866_v41 = vpop.f32.mrb[46].mxu1  ;;  %8167 = vmatpush1.bf16.msra.mxu1 %v11592_v54  ;;  %v11784_v54 = vcombine.low %v1606_v13, %v1622_v14  ;;  %v11816_v32 = vcombine.low %v1638_v23, %v1654_v24  ;;  %v1702_v37 = vld [vmem:[%s14272_s30 + $0x1e78] sm:$0xff]  ;;  %v722_v24 = vld [vmem:[#allocation2 + $0xe8] sm:$0xff] }
 0x52b   : > { %v8219_v45 = vadd.f32 %v7863_v35, %v715_v30  ;;  %v7867_v46 = vpop.f32.mrb[47].mxu1  ;;  %8168 = vmatprep.subr.bf16.mxu1 %v11625_v55  ;;  %v1158_v55 = vld [vmem:[%s14272_s30 + $0xd78] sm:$0xff]  ;;  %v11881_v42 = vcombine.high %v1702_v37, %v1718_v38  ;;  %v11880_v48 = vcombine.low %v1702_v37, %v1718_v38 }
 0x52c   : > { %v8220_v50 = vadd.f32 %v7865_v40, %v716_v36  ;;  %8128 = vmatpush1.bf16.msra.mxu0 %v11112_v39  ;;  %v1686_v30 = vld [vmem:[%s14272_s30 + $0x1df8] sm:$0xff]  ;;  %v11337_v33 = vcombine.high %v1158_v55, %v1174_v28  ;;  %v11336_v39 = vcombine.low %v1158_v55, %v1174_v28 }
 0x52d   : > { %8251 = vst [vmem:[#allocation2 + $0xb0] sm:$0xff] %v8219_v45  ;;  %8129 = vmatprep.subr.bf16.mxu0 %v11145_v44  ;;  %v11849_v34 = vcombine.high %v1670_v29, %v1686_v30  ;;  %v1190_v35 = vld [vmem:[%s14272_s30 + $0xe78] sm:$0xff]  ;;  %v11848_v40 = vcombine.low %v1670_v29, %v1686_v30 }
 0x52e   : > { %8252 = vst [vmem:[#allocation2 + $0xb8] sm:$0xff] %v8220_v50  ;;  %8169 = vmatpush1.bf16.msra.mxu1 %v11624_v43  ;;  %v1206_v36 = vld [vmem:[%s14272_s30 + $0xef8] sm:$0xff] }
 0x52f   : > { %8170 = vmatprep.subr.bf16.mxu1 %v11657_v47  ;;  %v11369_v41 = vcombine.high %v1190_v35, %v1206_v36  ;;  %v1222_v43 = vld [vmem:[%s14272_s30 + $0xf78] sm:$0xff]  ;;  %v11368_v47 = vcombine.low %v1190_v35, %v1206_v36 }
 0x530   : > { %8130 = vmatpush1.bf16.msra.mxu0 %v11144_v53  ;;  %v1238_v44 = vld [vmem:[%s14272_s30 + $0xff8] sm:$0xff] }
 0x531   : > { %8131 = vmatprep.subr.bf16.mxu0 %v11177_v57  ;;  %v1734_v45 = vld [vmem:[%s14272_s30 + $0x1f78] sm:$0xff]  ;;  %v11401_v49 = vcombine.high %v1222_v43, %v1238_v44  ;;  %v11400_v51 = vcombine.low %v1222_v43, %v1238_v44 }
 0x532   : > { %8171 = vmatpush1.bf16.msra.mxu1 %v11656_v56  ;;  %v1750_v46 = vld [vmem:[%s14272_s30 + $0x1ff8] sm:$0xff]  ;;  %v717_v56 = vld [vmem:[#allocation2 + $0xc0] sm:$0xff] }
 0x533   : > { %8172 = vmatprep.subr.bf16.mxu1 %v11689_v58  ;;  %v11913_v50 = vcombine.high %v1734_v45, %v1750_v46  ;;  %v11912_v52 = vcombine.low %v1734_v45, %v1750_v46  ;;  %v724_v36 = vld [vmem:[#allocation2 + $0xf8] sm:$0xff]  ;;  %v8545_v45 = vld [vmem:[#allocation7 + $0x80] sm:$0xff] (!%p11914_p7)  ;;  %v8546_v46 = vld [vmem:[#allocation7 + $0x88] sm:$0xff] (!%p11914_p7) }
 0x534   : > { %8132 = vmatpush1.bf16.msra.mxu0 %v11176_v1 }
 0x535   : > { %8133 = vmatprep.subr.bf16.mxu0 %v11209_v3 }
 0x536   : > { %8173 = vmatpush1.bf16.msra.mxu1 %v11688_v2 }
 0x537   : > { %8174 = vmatprep.subr.bf16.mxu1 %v11721_v4 }
 0x538   : > { %8134 = vmatpush1.bf16.msra.mxu0 %v11208_v8 }
 0x539   : > { %8135 = vmatprep.subr.bf16.mxu0 %v11241_v9 }
 0x53a   : > { %8175 = vmatpush1.bf16.msra.mxu1 %v11720_v60  ;;  %v720_v60 = vld [vmem:[#allocation2 + $0xd8] sm:$0xff] }
 0x53b   : > { %8176 = vmatprep.subr.bf16.mxu1 %v11753_v10 }
 0x53c   : > { %8136 = vmatpush1.bf16.msra.mxu0 %v11240_v15 }
 0x53d   : > { %8137 = vmatprep.subr.bf16.mxu0 %v11273_v18 }
 0x53e   : > { %8177 = vmatpush1.bf16.msra.mxu1 %v11752_v16 }
 0x53f   : > { %8178 = vmatprep.subr.bf16.mxu1 %v11785_v19  ;;  %v721_v19 = vld [vmem:[#allocation2 + $0xe0] sm:$0xff] }
 0x540   : > { %8138 = vmatpush1.bf16.msra.mxu0 %v11272_v25 }
 0x541   : > { %8139 = vmatprep.subr.bf16.mxu0 %v11305_v26 }
 0x542   : > { %8179 = vmatpush1.bf16.msra.mxu1 %v11784_v54 }
 0x543   : > { %8180 = vmatprep.subr.bf16.mxu1 %v11817_v27 }
 0x544   : > { %8140 = vmatpush1.bf16.msra.mxu0 %v11304_v31 }
 0x545   : > { %8141 = vmatprep.subr.bf16.mxu0 %v11337_v33 }
 0x546   : > { %8181 = vmatpush1.bf16.msra.mxu1 %v11816_v32  ;;  %v723_v32 = vld [vmem:[#allocation2 + $0xf0] sm:$0xff] }
 0x547   : > { %8182 = vmatprep.subr.bf16.mxu1 %v11849_v34 }
 0x548   : > { %8142 = vmatpush1.bf16.msra.mxu0 %v11336_v39 }
 0x549   : > { %8143 = vmatprep.subr.bf16.mxu0 %v11369_v41 }
 0x54a   : > { %8183 = vmatpush1.bf16.msra.mxu1 %v11848_v40 }
 0x54b   : > { %8184 = vmatprep.subr.bf16.mxu1 %v11881_v42 }
 0x54c   : > { %8144 = vmatpush1.bf16.msra.mxu0 %v11368_v47  ;;  %v8529_v47 = vld [vmem:[#allocation7] sm:$0xff] (!%p11914_p7) }
 0x54d   : > { %8145 = vmatprep.subr.bf16.mxu0 %v11401_v49  ;;  %v8530_v49 = vld [vmem:[#allocation7 + $0x8] sm:$0xff] (!%p11914_p7) }
 0x54e   : > { %8185 = vmatpush1.bf16.msra.mxu1 %v11880_v48  ;;  %v12719_v48 = vpack.c.bf16 (!%p11914_p7), %v8546_v46, %v8545_v45 }
 0x54f   : > { %8186 = vmatprep.subr.bf16.mxu1 %v11913_v50  ;;  %v8577_v50 = vld [vmem:[#allocation7 + $0x180] sm:$0xff] (!%p11914_p7) }
 0x550   : > { %8146 = vmatpush1.bf16.msra.mxu0 %v11400_v51  ;;  %v8578_v51 = vld [vmem:[#allocation7 + $0x188] sm:$0xff] (!%p11914_p7) }
 0x551   : > { %12720 = vmatprep.subr.bf16.mxu0 (!%p11914_p7), %v12719_v48  ;;  %v8539_v48 = vld [vmem:[#allocation7 + $0x50] sm:$0xff] (!%p11914_p7) }
 0x552   : > { %8187 = vmatpush1.bf16.msra.mxu1 %v11912_v52  ;;  %v12721_v52 = vpack.c.bf16 (!%p11914_p7), %v8530_v49, %v8529_v47  ;;  %v8540_v49 = vld [vmem:[#allocation7 + $0x58] sm:$0xff] (!%p11914_p7) }
 0x553   : > { %8148 = vmatmul.mubr.bf16.vlgmr.msra.gmra.mrb[60].mxu0 %v14394_v17  ;;  %v719_v17 = vld [vmem:[#allocation2 + $0xd0] sm:$0xff] }
 0x554   : > { %12722 = vmatpush3.bf16.msra.mxu0 (!%p11914_p7), %v12721_v52  ;;  %v8572_v52 = vld [vmem:[#allocation7 + $0x158] sm:$0xff] (!%p11914_p7) }
 0x555   : > { %8189 = vmatmul.mubr.bf16.vlgmr.msra.gmra.mrb[60].mxu1 %v14400_v20 }
 0x566   : > { %v7903_v53 = vpop.f32.mrb[48].mxu0 }
 0x567   : > { %v7905_v58 = vpop.f32.mrb[49].mxu0 }
 0x568   : > { %v7944_v57 = vpop.f32.mrb[48].mxu1  ;;  %v7907_v0 = vpop.f32.mrb[50].mxu0 }
 0x569   : > { %v7945_v61 = vadd.f32 %v7944_v57, %v7903_v53  ;;  %v7946_v63 = vpop.f32.mrb[49].mxu1  ;;  %v7908_v3 = vpop.f32.mrb[51].mxu0  ;;  %v12751_v53 = vpack.c.bf16 (!%p11914_p7), %v8578_v51, %v8577_v50  ;;  %v8562_v57 = vld [vmem:[#allocation7 + $0x108] sm:$0xff] (!%p11914_p7)  ;;  %v8532_v0 = vld [vmem:[#allocation7 + $0x18] sm:$0xff] (!%p11914_p7)  ;;  %v8571_v50 = vld [vmem:[#allocation7 + $0x150] sm:$0xff] (!%p11914_p7) }
 0x56a   : > { %v7947_v1 = vadd.f32 %v7946_v63, %v7905_v58  ;;  %v7948_v2 = vpop.f32.mrb[50].mxu1  ;;  %v8547_v58 = vld [vmem:[#allocation7 + $0x90] sm:$0xff] (!%p11914_p7) }
 0x56b   : > { %v8221_v4 = vadd.f32 %v7945_v61, %v717_v56  ;;  %v7949_v5 = vpop.f32.mrb[51].mxu1  ;;  %v8561_v56 = vld [vmem:[#allocation7 + $0x100] sm:$0xff] (!%p11914_p7)  ;;  %v8531_v63 = vld [vmem:[#allocation7 + $0x10] sm:$0xff] (!%p11914_p7)  ;;  %12752 = vmatprep.subr.bf16.mxu1 (!%p11914_p7), %v12751_v53 }
 0x56c   : > { %v8222_v6 = vadd.f32 %v7947_v1, %v718_v62  ;;  %v12753_v61 = vpack.c.bf16 (!%p11914_p7), %v8562_v57, %v8561_v56  ;;  %v8548_v62 = vld [vmem:[#allocation7 + $0x98] sm:$0xff] (!%p11914_p7)  ;;  %v12725_v2 = vpack.c.bf16 (!%p11914_p7), %v8532_v0, %v8531_v63  ;;  %v8579_v3 = vld [vmem:[#allocation7 + $0x190] sm:$0xff] (!%p11914_p7)  ;;  %v8557_v53 = vld [vmem:[#allocation7 + $0xe0] sm:$0xff] (!%p11914_p7)  ;;  %v12741_v0 = vpack.c.bf16 (!%p11914_p7), %v8540_v49, %v8539_v48 }
 0x56d   : > { %8253 = vst [vmem:[#allocation2 + $0xc0] sm:$0xff] %v8221_v4  ;;  %v12723_v1 = vpack.c.bf16 (!%p11914_p7), %v8548_v62, %v8547_v58  ;;  %v8580_v4 = vld [vmem:[#allocation7 + $0x198] sm:$0xff] (!%p11914_p7)  ;;  %v8563_v5 = vld [vmem:[#allocation7 + $0x110] sm:$0xff] (!%p11914_p7)  ;;  %v8558_v56 = vld [vmem:[#allocation7 + $0xe8] sm:$0xff] (!%p11914_p7) }
 0x56e   : > { %8254 = vst [vmem:[#allocation2 + $0xc8] sm:$0xff] %v8222_v6  ;;  %12754 = vmatpush3.bf16.msra.mxu1 (!%p11914_p7), %v12753_v61  ;;  %v12755_v6 = vpack.c.bf16 (!%p11914_p7), %v8580_v4, %v8579_v3  ;;  %v8589_v61 = vld [vmem:[#allocation7 + $0x1e0] sm:$0xff] (!%p11914_p7)  ;;  %v8590_v62 = vld [vmem:[#allocation7 + $0x1e8] sm:$0xff] (!%p11914_p7)  ;;  %v12773_v4 = vpack.c.bf16 (!%p11914_p7), %v8572_v52, %v8571_v50  ;;  %v8643_v49 = vld [vmem:[#allocation7 + $0x390] sm:$0xff] (!%p11914_p7) }
 0x56f   : > { %12724 = vmatprep.subr.bf16.mxu0 (!%p11914_p7), %v12723_v1  ;;  %v8541_v1 = vld [vmem:[#allocation7 + $0x60] sm:$0xff] (!%p11914_p7)  ;;  %v8644_v50 = vld [vmem:[#allocation7 + $0x398] sm:$0xff] (!%p11914_p7) }
 0x570   : > { %12756 = vmatprep.subr.bf16.mxu1 (!%p11914_p7), %v12755_v6  ;;  %12726 = vmatpush3.bf16.msra.mxu0 (!%p11914_p7), %v12725_v2  ;;  %v8542_v2 = vld [vmem:[#allocation7 + $0x68] sm:$0xff] (!%p11914_p7)  ;;  %v8573_v6 = vld [vmem:[#allocation7 + $0x160] sm:$0xff] (!%p11914_p7) }
 0x5a6   : > { %v7985_v7 = vpop.f32.mrb[52].mxu0 }
 0x5a7   : > { %v7987_v20 = vpop.f32.mrb[53].mxu0 }
 0x5a8   : > { %v8026_v59 = vpop.f32.mrb[52].mxu1  ;;  %v7989_v10 = vpop.f32.mrb[54].mxu0 }
 0x5a9   : > { %v8027_v8 = vadd.f32 %v8026_v59, %v7985_v7  ;;  %v8028_v9 = vpop.f32.mrb[53].mxu1  ;;  %v7990_v13 = vpop.f32.mrb[55].mxu0  ;;  %v8564_v7 = vld [vmem:[#allocation7 + $0x118] sm:$0xff] (!%p11914_p7)  ;;  %v8550_v59 = vld [vmem:[#allocation7 + $0xa8] sm:$0xff] (!%p11914_p7)  ;;  %v8581_v10 = vld [vmem:[#allocation7 + $0x1a0] sm:$0xff] (!%p11914_p7) }
 0x5aa   : > { %v8029_v11 = vadd.f32 %v8028_v9, %v7987_v20  ;;  %v8030_v12 = vpop.f32.mrb[54].mxu1  ;;  %v12757_v20 = vpack.c.bf16 (!%p11914_p7), %v8564_v7, %v8563_v5  ;;  %v8534_v9 = vld [vmem:[#allocation7 + $0x28] sm:$0xff] (!%p11914_p7)  ;;  %v12743_v5 = vpack.c.bf16 (!%p11914_p7), %v8558_v56, %v8557_v53 }
 0x5ab   : > { %v8223_v14 = vadd.f32 %v8027_v8, %v719_v17  ;;  %v8031_v15 = vpop.f32.mrb[55].mxu1  ;;  %v8549_v17 = vld [vmem:[#allocation7 + $0xa0] sm:$0xff] (!%p11914_p7)  ;;  %v8566_v13 = vld [vmem:[#allocation7 + $0x128] sm:$0xff] (!%p11914_p7) }
 0x5ac   : > { %v8224_v16 = vadd.f32 %v8029_v11, %v720_v60  ;;  %v12727_v8 = vpack.c.bf16 (!%p11914_p7), %v8550_v59, %v8549_v17  ;;  %v8533_v60 = vld [vmem:[#allocation7 + $0x20] sm:$0xff] (!%p11914_p7)  ;;  %v8582_v11 = vld [vmem:[#allocation7 + $0x1a8] sm:$0xff] (!%p11914_p7)  ;;  %12758 = vmatpush3.bf16.msra.mxu1 (!%p11914_p7), %v12757_v20  ;;  %v12775_v59 = vpack.c.bf16 (!%p11914_p7), %v8590_v62, %v8589_v61  ;;  %v8595_v61 = vld [vmem:[#allocation7 + $0x210] sm:$0xff] (!%p11914_p7) }
 0x5ad   : > { %8255 = vst [vmem:[#allocation2 + $0xd0] sm:$0xff] %v8223_v14  ;;  %v8565_v12 = vld [vmem:[#allocation7 + $0x120] sm:$0xff] (!%p11914_p7)  ;;  %v12729_v14 = vpack.c.bf16 (!%p11914_p7), %v8534_v9, %v8533_v60  ;;  %v12759_v15 = vpack.c.bf16 (!%p11914_p7), %v8582_v11, %v8581_v10  ;;  %v8266_v7 = vld [vmem:[#allocation2 + $0x8] sm:$0xff] (!%p11914_p7)  ;;  %v8560_v60 = vld [vmem:[#allocation7 + $0xf8] sm:$0xff] (!%p11914_p7) }
 0x5ae   : > { %8256 = vst [vmem:[#allocation2 + $0xd8] sm:$0xff] %v8224_v16  ;;  %v8551_v16 = vld [vmem:[#allocation7 + $0xb0] sm:$0xff] (!%p11914_p7)  ;;  %12728 = vmatprep.subr.bf16.mxu0 (!%p11914_p7), %v12727_v8  ;;  %v15432_v17 = vld [vmem:[#allocation5] sm:$0xff] (!%p11914_p7)  ;;  %v8574_v20 = vld [vmem:[#allocation7 + $0x168] sm:$0xff] (!%p11914_p7) }
 0x5af   : > { %12760 = vmatprep.subr.bf16.mxu1 (!%p11914_p7), %v12759_v15  ;;  %12730 = vmatpush3.bf16.msra.mxu0 (!%p11914_p7), %v12729_v14  ;;  %v8559_v8 = vld [vmem:[#allocation7 + $0xf0] sm:$0xff] (!%p11914_p7)  ;;  %v8268_v14 = vld [vmem:[#allocation2 + $0x18] sm:$0xff] (!%p11914_p7)  ;;  %v12745_v15 = vpack.c.bf16 (!%p11914_p7), %v8542_v2, %v8541_v1  ;;  %v12819_v1 = vpack.c.bf16 (!%p11914_p7), %v8644_v50, %v8643_v49 }
 0x5b0   : > { %v8591_v11 = vld [vmem:[#allocation7 + $0x1f0] sm:$0xff] (!%p11914_p7)  ;;  %v8596_v62 = vld [vmem:[#allocation7 + $0x218] sm:$0xff] (!%p11914_p7) }
 0x5b1   : > { %v8628_v2 = vld [vmem:[#allocation7 + $0x318] sm:$0xff] (!%p11914_p7)  ;;  %v8651_v49 = vld [vmem:[#allocation7 + $0x3d0] sm:$0xff] (!%p11914_p7) }
 0x5b2   : > { %v8652_v50 = vld [vmem:[#allocation7 + $0x3d8] sm:$0xff] (!%p11914_p7) }
 0x5e6   : > { %v8067_v18 = vpop.f32.mrb[56].mxu0 }
 0x5e7   : > { %v8069_v22 = vpop.f32.mrb[57].mxu0 }
 0x5e8   : > { %v8108_v21 = vpop.f32.mrb[56].mxu1  ;;  %v8071_v54 = vpop.f32.mrb[58].mxu0 }
 0x5e9   : > { %v8109_v23 = vadd.f32 %v8108_v21, %v8067_v18  ;;  %v8110_v25 = vpop.f32.mrb[57].mxu1  ;;  %v8072_v55 = vpop.f32.mrb[59].mxu0  ;;  %v8552_v18 = vld [vmem:[#allocation7 + $0xb8] sm:$0xff] (!%p11914_p7)  ;;  %v12761_v21 = vpack.c.bf16 (!%p11914_p7), %v8566_v13, %v8565_v12 }
 0x5ea   : > { %v8111_v26 = vadd.f32 %v8110_v25, %v8069_v22  ;;  %v8112_v27 = vpop.f32.mrb[58].mxu1  ;;  %v12731_v22 = vpack.c.bf16 (!%p11914_p7), %v8552_v18, %v8551_v16  ;;  %v8584_v25 = vld [vmem:[#allocation7 + $0x1b8] sm:$0xff] (!%p11914_p7)  ;;  %v8553_v55 = vld [vmem:[#allocation7 + $0xc0] sm:$0xff] (!%p11914_p7)  ;;  %v8543_v16 = vld [vmem:[#allocation7 + $0x70] sm:$0xff] (!%p11914_p7) }
 0x5eb   : > { %v8225_v28 = vadd.f32 %v8109_v23, %v721_v19  ;;  %v8113_v29 = vpop.f32.mrb[59].mxu1  ;;  %v8535_v19 = vld [vmem:[#allocation7 + $0x30] sm:$0xff] (!%p11914_p7)  ;;  %v8536_v23 = vld [vmem:[#allocation7 + $0x38] sm:$0xff] (!%p11914_p7)  ;;  %12762 = vmatpush3.bf16.msra.mxu1 (!%p11914_p7), %v12761_v21 }
 0x5ec   : > { %v8226_v30 = vadd.f32 %v8111_v26, %v722_v24  ;;  %v8583_v24 = vld [vmem:[#allocation7 + $0x1b0] sm:$0xff] (!%p11914_p7)  ;;  %v8568_v27 = vld [vmem:[#allocation7 + $0x138] sm:$0xff] (!%p11914_p7)  ;;  %v8554_v29 = vld [vmem:[#allocation7 + $0xc8] sm:$0xff] (!%p11914_p7)  ;;  %12732 = vmatprep.subr.bf16.mxu0 (!%p11914_p7), %v12731_v22 }
 0x5ed   : > { %8257 = vst [vmem:[#allocation2 + $0xe0] sm:$0xff] %v8225_v28  ;;  %v12763_v54 = vpack.c.bf16 (!%p11914_p7), %v8584_v25, %v8583_v24  ;;  %v8567_v26 = vld [vmem:[#allocation7 + $0x130] sm:$0xff] (!%p11914_p7)  ;;  %v8305_v28 = vlaneseq (!%p11914_p7)  ;;  %v8592_v12 = vld [vmem:[#allocation7 + $0x1f8] sm:$0xff] (!%p11914_p7)  ;;  %v12747_v24 = vpack.c.bf16 (!%p11914_p7), %v8560_v60, %v8559_v8  ;;  %v8597_v60 = vld [vmem:[#allocation7 + $0x220] sm:$0xff] (!%p11914_p7) }
 0x5ee   : > { %8258 = vst [vmem:[#allocation2 + $0xe8] sm:$0xff] %v8226_v30  ;;  %v12733_v30 = vpack.c.bf16 (!%p11914_p7), %v8536_v23, %v8535_v19  ;;  %v8265_v19 = vld [vmem:[#allocation2] sm:$0xff] (!%p11914_p7)  ;;  %v12777_v23 = vpack.c.bf16 (!%p11914_p7), %v8574_v20, %v8573_v6  ;;  %v8544_v25 = vld [vmem:[#allocation7 + $0x78] sm:$0xff] (!%p11914_p7) }
 0x5ef   : > { %12764 = vmatprep.subr.bf16.mxu1 (!%p11914_p7), %v12763_v54  ;;  %v8575_v54 = vld [vmem:[#allocation7 + $0x170] sm:$0xff] (!%p11914_p7)  ;;  %v8645_v6 = vld [vmem:[#allocation7 + $0x3a0] sm:$0xff] (!%p11914_p7) }
 0x5f0   : > { %12734 = vmatpush3.bf16.msra.mxu0 (!%p11914_p7), %v12733_v30  ;;  %v8609_v30 = vld [vmem:[#allocation7 + $0x280] sm:$0xff] (!%p11914_p7) }
 0x626   : > { %v8149_v31 = vpop.f32.mrb[60].mxu0 }
 0x627   : > { %v8151_v34 = vpop.f32.mrb[61].mxu0 }
 0x628   : > { %v8190_v33 = vpop.f32.mrb[60].mxu1  ;;  %v8153_v38 = vpop.f32.mrb[62].mxu0  ;;  %8264 = sbr.rel (%p11914_p7) target bundleno = 2686 (0xa7e), region = 128 }
 0x629   : > { %v8191_v35 = vadd.f32 %v8190_v33, %v8149_v31  ;;  %v8192_v37 = vpop.f32.mrb[61].mxu1  ;;  %v8154_v41 = vpop.f32.mrb[63].mxu0  ;;  %v8585_v31 = vld [vmem:[#allocation7 + $0x1c0] sm:$0xff] (!%p11914_p7)  ;;  %v12765_v33 = vpack.c.bf16 (!%p11914_p7), %v8568_v27, %v8567_v26  ;;  %v8267_v26 = vld [vmem:[#allocation2 + $0x10] sm:$0xff] (!%p11914_p7)  ;;  %v12779_v27 = vpack.c.bf16 (!%p11914_p7), %v8592_v12, %v8591_v11 }
 0x62a   : > { %v8193_v39 = vadd.f32 %v8192_v37, %v8151_v34  ;;  %v8194_v40 = vpop.f32.mrb[62].mxu1  ;;  %v12735_v34 = vpack.c.bf16 (!%p11914_p7), %v8554_v29, %v8553_v55  ;;  %v8569_v37 = vld [vmem:[#allocation7 + $0x140] sm:$0xff] (!%p11914_p7)  ;;  %v8556_v41 = vld [vmem:[#allocation7 + $0xd8] sm:$0xff] (!%p11914_p7) }
 0x62b   : > { %v8227_v42 = vadd.f32 %v8191_v35, %v723_v32  ;;  %v8195_v43 = vpop.f32.mrb[63].mxu1  ;;  %v8586_v32 = vld [vmem:[#allocation7 + $0x1c8] sm:$0xff] (!%p11914_p7)  ;;  %v8537_v35 = vld [vmem:[#allocation7 + $0x40] sm:$0xff] (!%p11914_p7)  ;;  %v8555_v40 = vld [vmem:[#allocation7 + $0xd0] sm:$0xff] (!%p11914_p7)  ;;  %12766 = vmatpush3.bf16.msra.mxu1 (!%p11914_p7), %v12765_v33 }
 0x62c   : > { %v8228_v44 = vadd.f32 %v8193_v39, %v724_v36  ;;  %v8538_v36 = vld [vmem:[#allocation7 + $0x48] sm:$0xff] (!%p11914_p7)  ;;  %v12767_v38 = vpack.c.bf16 (!%p11914_p7), %v8586_v32, %v8585_v31  ;;  %v8587_v43 = vld [vmem:[#allocation7 + $0x1d0] sm:$0xff] (!%p11914_p7)  ;;  %12736 = vmatprep.subr.bf16.mxu0 (!%p11914_p7), %v12735_v34  ;;  %v12739_v47 = vpack.c.bf16 (!%p11914_p7), %v8556_v41, %v8555_v40  ;;  %v8576_v55 = vld [vmem:[#allocation7 + $0x178] sm:$0xff] (!%p11914_p7) }
 0x62d   : > { %8259 = vst [vmem:[#allocation2 + $0xf0] sm:$0xff] %v8227_v42  ;;  %v8570_v39 = vld [vmem:[#allocation7 + $0x148] sm:$0xff] (!%p11914_p7)  ;;  %v15418_v42 = vshrl.u32 (!%p11914_p7), %v8305_v28, 7  ;;  %v12737_v45 = vpack.c.bf16 (!%p11914_p7), %v8538_v36, %v8537_v35  ;;  %v8641_v34 = vld [vmem:[#allocation7 + $0x380] sm:$0xff] (!%p11914_p7)  ;;  %v12749_v36 = vpack.c.bf16 (!%p11914_p7), %v8544_v25, %v8543_v16  ;;  %v8600_v25 = vld [vmem:[#allocation7 + $0x238] sm:$0xff] (!%p11914_p7) }
 0x62e   : > { %8260 = vst [vmem:[#allocation2 + $0xf8] sm:$0xff] %v8228_v44  ;;  %v8588_v44 = vld [vmem:[#allocation7 + $0x1d8] sm:$0xff] (!%p11914_p7)  ;;  %v12769_v46 = vpack.c.bf16 (!%p11914_p7), %v8570_v39, %v8569_v37  ;;  %12768 = vmatprep.subr.bf16.mxu1 (!%p11914_p7), %v12767_v38  ;;  %v8610_v31 = vld [vmem:[#allocation7 + $0x288] sm:$0xff] (!%p11914_p7)  ;;  %v12781_v38 = vpack.c.bf16 (!%p11914_p7), %v8576_v55, %v8575_v54  ;;  %v8593_v40 = vld [vmem:[#allocation7 + $0x200] sm:$0xff] (!%p11914_p7) }
 0x62f   : > { %v12771_v51 = vpack.c.bf16 %v8588_v44, %v8587_v43  ;;  %v15421_v57 = vsub.s32 1, %v15418_v42  ;;  %v15424_v58 = vsub.s32 3, %v15418_v42  ;;  %v15427_v63 = vsub.s32 0, %v15418_v42  ;;  %12738 = vmatpush3.bf16.msra.mxu0 %v12737_v45  ;;  %v8642_v35 = vld [vmem:[#allocation7 + $0x388] sm:$0xff]  ;;  %v8625_v43 = vld [vmem:[#allocation7 + $0x300] sm:$0xff]  ;;  %v8631_v54 = vld [vmem:[#allocation7 + $0x330] sm:$0xff] }
 0x630   : > { %v15430_v3 = vsub.s32 2, %v15418_v42  ;;  %12770 = vmatpush3.bf16.msra.mxu1 %v12769_v46  ;;  %12740 = vmatprep.subr.bf16.mxu0 %v12739_v47  ;;  %v12783_v39 = vpack.c.bf16 %v8610_v31, %v8609_v30  ;;  %v8594_v41 = vld [vmem:[#allocation7 + $0x208] sm:$0xff]  ;;  %v12815_v44 = vpack.c.bf16 %v8642_v35, %v8641_v34  ;;  %v8611_v46 = vld [vmem:[#allocation7 + $0x290] sm:$0xff]  ;;  %v8612_v47 = vld [vmem:[#allocation7 + $0x298] sm:$0xff]  ;;  %v15443_v11 = vsub.s32 5, %v15418_v42 }
 0x631   : > { %12772 = vmatprep.subr.bf16.mxu1 %v12771_v51  ;;  %v8312_v9 = vrot.slane %v15432_v17, %v15421_v57  ;;  %v8320_v10 = vrot.slane %v15432_v17, %v15424_v58  ;;  %v8308_v13 = vrot.slane %v15432_v17, %v15427_v63  ;;  %v8626_v45 = vld [vmem:[#allocation7 + $0x308] sm:$0xff]  ;;  %v12785_v51 = vpack.c.bf16 %v8594_v41, %v8593_v40  ;;  %v8632_v55 = vld [vmem:[#allocation7 + $0x338] sm:$0xff]  ;;  %v8601_v35 = vld [vmem:[#allocation7 + $0x240] sm:$0xff] }
 0x632   : > { %v8316_v22 = vrot.slane %v15432_v17, %v15430_v3  ;;  %v12817_v53 = vpack.c.bf16 %v8626_v45, %v8625_v43  ;;  %v12787_v56 = vpack.c.bf16 %v8612_v47, %v8611_v46  ;;  %v15446_v16 = vsub.s32 7, %v15418_v42  ;;  %v8618_v30 = vld [vmem:[#allocation7 + $0x2c8] sm:$0xff]  ;;  %v8633_v40 = vld [vmem:[#allocation7 + $0x340] sm:$0xff]  ;;  %v8272_v43 = vld [vmem:[#allocation2 + $0x38] sm:$0xff] }
 0x633   : > { %12742 = vmatpush3.bf16.msra.mxu0 %v12741_v0  ;;  %v8466_v18 = vadd.f32 %v8312_v9, %v8266_v7  ;;  %v8468_v21 = vadd.f32 %v8320_v10, %v8268_v14  ;;  %v8465_v33 = vadd.f32 %v8308_v13, %v8265_v19  ;;  %v8627_v0 = vld [vmem:[#allocation7 + $0x310] sm:$0xff]  ;;  %v8646_v7 = vld [vmem:[#allocation7 + $0x3a8] sm:$0xff]  ;;  %v8629_v10 = vld [vmem:[#allocation7 + $0x320] sm:$0xff] }
 0x634   : > { %12774 = vmatpush3.bf16.msra.mxu1 %v12773_v4  ;;  %12744 = vmatprep.subr.bf16.mxu0 %v12743_v5  ;;  %v8467_v37 = vadd.f32 %v8316_v22, %v8267_v26  ;;  %v8613_v4 = vld [vmem:[#allocation7 + $0x2a0] sm:$0xff]  ;;  %v8614_v5 = vld [vmem:[#allocation7 + $0x2a8] sm:$0xff]  ;;  %v12821_v20 = vpack.c.bf16 %v8628_v2, %v8627_v0  ;;  %v12823_v12 = vpack.c.bf16 %v8646_v7, %v8645_v6  ;;  %v8615_v14 = vld [vmem:[#allocation7 + $0x2b0] sm:$0xff] }
 0x635   : > { %12776 = vmatprep.subr.bf16.mxu1 %v12775_v59  ;;  %v8498_v29 = vmax.f32 %v8466_v18, 0.0  ;;  %v8500_v32 = vmax.f32 %v8468_v21, 0.0  ;;  %v8497_v48 = vmax.f32 %v8465_v33, 0.0  ;;  %v12789_v59 = vpack.c.bf16 %v8596_v62, %v8595_v61  ;;  %v8598_v9 = vld [vmem:[#allocation7 + $0x228] sm:$0xff]  ;;  %v8647_v18 = vld [vmem:[#allocation7 + $0x3b0] sm:$0xff]  ;;  %v8648_v19 = vld [vmem:[#allocation7 + $0x3b8] sm:$0xff] }
 0x636   : > { %v8499_v52 = vmax.f32 %v8467_v37, 0.0  ;;  %v12791_v8 = vpack.c.bf16 %v8614_v5, %v8613_v4  ;;  %v8630_v13 = vld [vmem:[#allocation7 + $0x328] sm:$0xff]  ;;  %v12793_v21 = vpack.c.bf16 %v8598_v9, %v8597_v60  ;;  %v8328_v26 = vrot.slane %v15432_v17, %v15443_v11  ;;  %v8619_v46 = vld [vmem:[#allocation7 + $0x2d0] sm:$0xff]  ;;  %v8620_v47 = vld [vmem:[#allocation7 + $0x2d8] sm:$0xff] }
 0x637   : > { %12746 = vmatpush3.bf16.msra.mxu0 %v12745_v15  ;;  %9112 = vmatprep.mubr.f32.mxu0 %v8498_v29  ;;  %v8616_v15 = vld [vmem:[#allocation7 + $0x2b8] sm:$0xff]  ;;  %v12825_v22 = vpack.c.bf16 %v8630_v13, %v8629_v10  ;;  %v8617_v29 = vld [vmem:[#allocation7 + $0x2c0] sm:$0xff]  ;;  %v8336_v31 = vrot.slane %v15432_v17, %v15446_v16  ;;  %v8650_v33 = vld [vmem:[#allocation7 + $0x3c8] sm:$0xff]  ;;  %v12829_v37 = vpack.c.bf16 %v8632_v55, %v8631_v54  ;;  %v15456_v60 = vsub.s32 6, %v15418_v42 }
 0x638   : > { %12778 = vmatpush3.bf16.msra.mxu1 %v12777_v23  ;;  %12748 = vmatprep.subr.bf16.mxu0 %v12747_v24  ;;  %v12795_v23 = vpack.c.bf16 %v8616_v15, %v8615_v14  ;;  %v8599_v24 = vld [vmem:[#allocation7 + $0x230] sm:$0xff]  ;;  %v8634_v45 = vld [vmem:[#allocation7 + $0x348] sm:$0xff]  ;;  %v12803_v61 = vpack.c.bf16 %v8620_v47, %v8619_v46  ;;  %v8604_v0 = vld [vmem:[#allocation7 + $0x258] sm:$0xff]  ;;  %v12835_v2 = vpack.c.bf16 %v8652_v50, %v8651_v49 }
 0x639   : > { %12780 = vmatprep.subr.bf16.mxu1 %v12779_v27  ;;  %9182 = vmatprep.mubr.f32.mxu1 %v8500_v32  ;;  %v12827_v27 = vpack.c.bf16 %v8648_v19, %v8647_v18  ;;  %v8649_v32 = vld [vmem:[#allocation7 + $0x3c0] sm:$0xff]  ;;  %v12797_v34 = vpack.c.bf16 %v8600_v25, %v8599_v24  ;;  %v8603_v62 = vld [vmem:[#allocation7 + $0x250] sm:$0xff]  ;;  %v8636_v4 = vld [vmem:[#allocation7 + $0x358] sm:$0xff] }
 0x63a   : > { %v8621_v5 = vld [vmem:[#allocation7 + $0x2e0] sm:$0xff]  ;;  %v8622_v6 = vld [vmem:[#allocation7 + $0x2e8] sm:$0xff]  ;;  %v8623_v19 = vld [vmem:[#allocation7 + $0x2f0] sm:$0xff] }
 0x63b   : > { %12750 = vmatpush3.bf16.msra.mxu0 %v12749_v36  ;;  %v8270_v36 = vld [vmem:[#allocation2 + $0x28] sm:$0xff]  ;;  %v8653_v7 = vld [vmem:[#allocation7 + $0x3e0] sm:$0xff]  ;;  %v12807_v10 = vpack.c.bf16 %v8622_v6, %v8621_v5  ;;  %v8607_v54 = vld [vmem:[#allocation7 + $0x270] sm:$0xff] }
 0x63c   : > { %12782 = vmatpush3.bf16.msra.mxu1 %v12781_v38  ;;  %12784 = vmatprep.subr.bf16.mxu0 %v12783_v39  ;;  %v12799_v38 = vpack.c.bf16 %v8618_v30, %v8617_v29  ;;  %v8602_v39 = vld [vmem:[#allocation7 + $0x248] sm:$0xff]  ;;  %v8470_v41 = vadd.f32 %v8328_v26, %v8270_v36  ;;  %v8637_v14 = vld [vmem:[#allocation7 + $0x360] sm:$0xff]  ;;  %v8608_v30 = vld [vmem:[#allocation7 + $0x278] sm:$0xff] }
 0x63d   : > { %12816 = vmatprep.subr.bf16.mxu1 %v12815_v44  ;;  %v12831_v44 = vpack.c.bf16 %v8650_v33, %v8649_v32  ;;  %v8606_v13 = vld [vmem:[#allocation7 + $0x268] sm:$0xff]  ;;  %v8269_v26 = vld [vmem:[#allocation2 + $0x20] sm:$0xff]  ;;  %v8271_v32 = vld [vmem:[#allocation2 + $0x30] sm:$0xff] }
 0x63e   : > { %9113 = vmatmul.mubr.f32.vlgmr.msra.gmra.mrb[0].mxu0 %v8497_v48  ;;  %v8472_v48 = vadd.f32 %v8336_v31, %v8272_v43  ;;  %v8638_v18 = vld [vmem:[#allocation7 + $0x368] sm:$0xff]  ;;  %v8639_v31 = vld [vmem:[#allocation7 + $0x370] sm:$0xff]  ;;  %v8689_v46 = vld [vmem:[#allocation7 + $0x500] sm:$0xff] }
 0x63f   : > { %12786 = vmatpush3.bf16.msra.mxu0 %v12785_v51  ;;  %9183 = vmatmul.mubr.f32.vlgmr.msra.gmra.mrb[0].mxu1 %v8499_v52  ;;  %v8502_v51 = vmax.f32 %v8470_v41, 0.0  ;;  %v12801_v52 = vpack.c.bf16 %v8602_v39, %v8601_v35  ;;  %v12841_v55 = vpack.c.bf16 %v8638_v18, %v8637_v14  ;;  %v8673_v35 = vld [vmem:[#allocation7 + $0x480] sm:$0xff]  ;;  %v8674_v36 = vld [vmem:[#allocation7 + $0x488] sm:$0xff]  ;;  %v8675_v49 = vld [vmem:[#allocation7 + $0x490] sm:$0xff] }
 0x640   : > { %12818 = vmatpush3.bf16.msra.mxu1 %v12817_v53  ;;  %12788 = vmatprep.subr.bf16.mxu0 %v12787_v56  ;;  %v8504_v53 = vmax.f32 %v8472_v48, 0.0  ;;  %v12833_v56 = vpack.c.bf16 %v8634_v45, %v8633_v40  ;;  %v8706_v39 = vld [vmem:[#allocation7 + $0x588] sm:$0xff]  ;;  %v12813_v40 = vpack.c.bf16 %v8608_v30, %v8607_v54  ;;  %v12847_v43 = vpack.c.bf16 %v8674_v36, %v8673_v35  ;;  %v8676_v50 = vld [vmem:[#allocation7 + $0x498] sm:$0xff]  ;;  %v8711_v30 = vld [vmem:[#allocation7 + $0x5b0] sm:$0xff] }
 0x641   : > { %12820 = vmatprep.subr.bf16.mxu1 %v12819_v1  ;;  %v8635_v1 = vld [vmem:[#allocation7 + $0x350] sm:$0xff]  ;;  %9252 = vmatprep.mubr.f32.mxu0 %v8502_v51  ;;  %v8658_v45 = vld [vmem:[#allocation7 + $0x408] sm:$0xff]  ;;  %v8692_v5 = vld [vmem:[#allocation7 + $0x518] sm:$0xff] }
 0x642   : > { %9322 = vmatprep.mubr.f32.mxu1 %v8504_v53  ;;  %v12837_v9 = vpack.c.bf16 %v8636_v4, %v8635_v1  ;;  %v8690_v48 = vld [vmem:[#allocation7 + $0x508] sm:$0xff]  ;;  %v8708_v53 = vld [vmem:[#allocation7 + $0x598] sm:$0xff]  ;;  %v12851_v1 = vpack.c.bf16 %v8676_v50, %v8675_v49  ;;  %v8691_v4 = vld [vmem:[#allocation7 + $0x510] sm:$0xff] }
 0x643   : > { %12790 = vmatpush3.bf16.msra.mxu0 %v12789_v59  ;;  %v8654_v59 = vld [vmem:[#allocation7 + $0x3e8] sm:$0xff]  ;;  %v8665_v49 = vld [vmem:[#allocation7 + $0x440] sm:$0xff] }
 0x644   : > { %12822 = vmatpush3.bf16.msra.mxu1 %v12821_v20  ;;  %12792 = vmatprep.subr.bf16.mxu0 %v12791_v8  ;;  %v15453_v20 = vsub.s32 4, %v15418_v42  ;;  %v12805_v8 = vpack.c.bf16 %v8604_v0, %v8603_v62  ;;  %v12839_v15 = vpack.c.bf16 %v8654_v59, %v8653_v7  ;;  %v8659_v62 = vld [vmem:[#allocation7 + $0x410] sm:$0xff]  ;;  %v12881_v0 = vpack.c.bf16 %v8690_v48, %v8689_v46  ;;  %v8677_v7 = vld [vmem:[#allocation7 + $0x4a0] sm:$0xff]  ;;  %v8678_v59 = vld [vmem:[#allocation7 + $0x4a8] sm:$0xff] }
 0x645   : > { %12824 = vmatprep.subr.bf16.mxu1 %v12823_v12  ;;  %v8605_v12 = vld [vmem:[#allocation7 + $0x260] sm:$0xff]  ;;  %v8694_v54 = vld [vmem:[#allocation7 + $0x528] sm:$0xff] }
 0x646   : > { %v8324_v24 = vrot.slane %v15432_v17, %v15453_v20  ;;  %v12809_v25 = vpack.c.bf16 %v8606_v13, %v8605_v12  ;;  %v15462_v12 = vld [vmem:[#allocation5 + $0x8] sm:$0xff] }
 0x647   : > { %12794 = vmatpush3.bf16.msra.mxu0 %v12793_v21  ;;  %v8624_v21 = vld [vmem:[#allocation7 + $0x2f8] sm:$0xff]  ;;  %v8344_v14 = vrot.slane %v15462_v12, %v15421_v57  ;;  %v8352_v18 = vrot.slane %v15462_v12, %v15424_v58  ;;  %v8666_v50 = vld [vmem:[#allocation7 + $0x448] sm:$0xff] }
 0x648   : > { %12826 = vmatpush3.bf16.msra.mxu1 %v12825_v22  ;;  %12796 = vmatprep.subr.bf16.mxu0 %v12795_v23  ;;  %v8655_v22 = vld [vmem:[#allocation7 + $0x3f0] sm:$0xff]  ;;  %v8656_v23 = vld [vmem:[#allocation7 + $0x3f8] sm:$0xff]  ;;  %v12811_v29 = vpack.c.bf16 %v8624_v21, %v8623_v19  ;;  %v12885_v19 = vpack.c.bf16 %v8692_v5, %v8691_v4  ;;  %v12855_v21 = vpack.c.bf16 %v8678_v59, %v8677_v7 }
 0x649   : > { %12828 = vmatprep.subr.bf16.mxu1 %v12827_v27  ;;  %v8332_v27 = vrot.slane %v15432_v17, %v15456_v60  ;;  %v12843_v33 = vpack.c.bf16 %v8656_v23, %v8655_v22  ;;  %v8661_v22 = vld [vmem:[#allocation7 + $0x420] sm:$0xff]  ;;  %v8662_v23 = vld [vmem:[#allocation7 + $0x428] sm:$0xff]  ;;  %v8667_v5 = vld [vmem:[#allocation7 + $0x450] sm:$0xff] }
 0x64a   : > { %v8699_v7 = vld [vmem:[#allocation7 + $0x550] sm:$0xff] }
 0x64b   : > { %12798 = vmatpush3.bf16.msra.mxu0 %v12797_v34  ;;  %v8640_v34 = vld [vmem:[#allocation7 + $0x378] sm:$0xff]  ;;  %v8471_v41 = vadd.f32 %v8332_v27, %v8271_v32  ;;  %v12857_v32 = vpack.c.bf16 %v8662_v23, %v8661_v22  ;;  %v8670_v22 = vld [vmem:[#allocation7 + $0x468] sm:$0xff]  ;;  %v8701_v23 = vld [vmem:[#allocation7 + $0x560] sm:$0xff] }
 0x64c   : > { %12830 = vmatpush3.bf16.msra.mxu1 %v12829_v37  ;;  %12800 = vmatprep.subr.bf16.mxu0 %v12799_v38  ;;  %v8469_v37 = vadd.f32 %v8324_v24, %v8269_v26  ;;  %v8705_v38 = vld [vmem:[#allocation7 + $0x580] sm:$0xff]  ;;  %v12845_v17 = vpack.c.bf16 %v8640_v34, %v8639_v31  ;;  %v8679_v26 = vld [vmem:[#allocation7 + $0x4b0] sm:$0xff]  ;;  %v8680_v27 = vld [vmem:[#allocation7 + $0x4b8] sm:$0xff] }
 0x64d   : > { %12832 = vmatprep.subr.bf16.mxu1 %v12831_v44  ;;  %v8657_v44 = vld [vmem:[#allocation7 + $0x400] sm:$0xff]  ;;  %v12879_v47 = vpack.c.bf16 %v8706_v39, %v8705_v38  ;;  %v8712_v31 = vld [vmem:[#allocation7 + $0x5b8] sm:$0xff]  ;;  %v12859_v36 = vpack.c.bf16 %v8680_v27, %v8679_v26  ;;  %v8695_v39 = vld [vmem:[#allocation7 + $0x530] sm:$0xff] }
 0x64e   : > { %v8501_v51 = vmax.f32 %v8469_v37, 0.0  ;;  %v8693_v24 = vld [vmem:[#allocation7 + $0x520] sm:$0xff]  ;;  %v8663_v37 = vld [vmem:[#allocation7 + $0x430] sm:$0xff]  ;;  %v8664_v38 = vld [vmem:[#allocation7 + $0x438] sm:$0xff] }
 0x64f   : > { %12802 = vmatpush3.bf16.msra.mxu0 %v12801_v52  ;;  %v8707_v52 = vld [vmem:[#allocation7 + $0x590] sm:$0xff]  ;;  %v12889_v35 = vpack.c.bf16 %v8694_v54, %v8693_v24  ;;  %v12861_v46 = vpack.c.bf16 %v8664_v38, %v8663_v37  ;;  %v8688_v26 = vld [vmem:[#allocation7 + $0x4f8] sm:$0xff] }
 0x650   : > { %12834 = vmatpush3.bf16.msra.mxu1 %v12833_v56  ;;  %12804 = vmatprep.subr.bf16.mxu0 %v12803_v61  ;;  %v12849_v56 = vpack.c.bf16 %v8658_v45, %v8657_v44  ;;  %v8503_v61 = vmax.f32 %v8471_v41, 0.0  ;;  %v12883_v6 = vpack.c.bf16 %v8708_v53, %v8707_v52  ;;  %v8696_v41 = vld [vmem:[#allocation7 + $0x538] sm:$0xff]  ;;  %v8713_v44 = vld [vmem:[#allocation7 + $0x5c0] sm:$0xff]  ;;  %v8714_v45 = vld [vmem:[#allocation7 + $0x5c8] sm:$0xff] }
 0x651   : > { %12836 = vmatprep.subr.bf16.mxu1 %v12835_v2  ;;  %v8660_v2 = vld [vmem:[#allocation7 + $0x418] sm:$0xff]  ;;  %v12895_v52 = vpack.c.bf16 %v8714_v45, %v8713_v44  ;;  %v8698_v53 = vld [vmem:[#allocation7 + $0x548] sm:$0xff]  ;;  %v8687_v54 = vld [vmem:[#allocation7 + $0x4f0] sm:$0xff] }
 0x652   : > { %v12853_v13 = vpack.c.bf16 %v8660_v2, %v8659_v62  ;;  %v8715_v62 = vld [vmem:[#allocation7 + $0x5d0] sm:$0xff]  ;;  %v8769_v45 = vld [vmem:[#allocation7 + $0x780] sm:$0xff] }
 0x653   : > { %12806 = vmatpush3.bf16.msra.mxu0 %v12805_v8  ;;  %v8709_v8 = vld [vmem:[#allocation7 + $0x5a0] sm:$0xff]  ;;  %v8719_v27 = vld [vmem:[#allocation7 + $0x5f0] sm:$0xff] }
 0x654   : > { %12838 = vmatpush3.bf16.msra.mxu1 %v12837_v9  ;;  %12808 = vmatprep.subr.bf16.mxu0 %v12807_v10  ;;  %v8710_v9 = vld [vmem:[#allocation7 + $0x5a8] sm:$0xff]  ;;  %v8703_v37 = vld [vmem:[#allocation7 + $0x570] sm:$0xff] }
 0x655   : > { %12840 = vmatprep.subr.bf16.mxu1 %v12839_v15  ;;  %v8274_v10 = vld [vmem:[#allocation2 + $0x48] sm:$0xff]  ;;  %v8276_v15 = vld [vmem:[#allocation2 + $0x58] sm:$0xff]  ;;  %v8275_v38 = vld [vmem:[#allocation2 + $0x50] sm:$0xff] }
 0x657   : > { %12810 = vmatpush3.bf16.msra.mxu0 %v12809_v25  ;;  %v12887_v25 = vpack.c.bf16 %v8710_v9, %v8709_v8  ;;  %v8700_v8 = vld [vmem:[#allocation7 + $0x558] sm:$0xff]  ;;  %v8685_v9 = vld [vmem:[#allocation7 + $0x4e0] sm:$0xff] }
 0x658   : > { %12842 = vmatpush3.bf16.msra.mxu1 %v12841_v55  ;;  %12812 = vmatprep.subr.bf16.mxu0 %v12811_v29  ;;  %v8474_v55 = vadd.f32 %v8344_v14, %v8274_v10  ;;  %v8476_v29 = vadd.f32 %v8352_v18, %v8276_v15  ;;  %v8686_v10 = vld [vmem:[#allocation7 + $0x4e8] sm:$0xff]  ;;  %v12901_v18 = vpack.c.bf16 %v8700_v8, %v8699_v7  ;;  %v8771_v7 = vld [vmem:[#allocation7 + $0x790] sm:$0xff] }
 0x659   : > { %12844 = vmatprep.subr.bf16.mxu1 %v12843_v33  ;;  %v8718_v14 = vld [vmem:[#allocation7 + $0x5e8] sm:$0xff] }
 0x65a   : > { %v8506_v33 = vmax.f32 %v8474_v55, 0.0  ;;  %v8508_v34 = vmax.f32 %v8476_v29, 0.0  ;;  %v8720_v55 = vld [vmem:[#allocation7 + $0x5f8] sm:$0xff]  ;;  %v8340_v29 = vrot.slane %v15462_v12, %v15427_v63 }
 0x65b   : > { %12814 = vmatpush3.bf16.msra.mxu0 %v12813_v40  ;;  %v12891_v40 = vpack.c.bf16 %v8712_v31, %v8711_v30  ;;  %v8671_v31 = vld [vmem:[#allocation7 + $0x470] sm:$0xff] }
 0x65c   : > { %12846 = vmatpush3.bf16.msra.mxu1 %v12845_v17  ;;  %12848 = vmatprep.subr.bf16.mxu0 %v12847_v43  ;;  %v8681_v17 = vld [vmem:[#allocation7 + $0x4c0] sm:$0xff]  ;;  %v8682_v43 = vld [vmem:[#allocation7 + $0x4c8] sm:$0xff] }
 0x65d   : > { %12880 = vmatprep.subr.bf16.mxu1 %v12879_v47  ;;  %v12893_v47 = vpack.c.bf16 %v8696_v41, %v8695_v39  ;;  %v12863_v48 = vpack.c.bf16 %v8682_v43, %v8681_v17  ;;  %v12907_v39 = vpack.c.bf16 %v8720_v55, %v8719_v27  ;;  %v8737_v41 = vld [vmem:[#allocation7 + $0x680] sm:$0xff]  ;;  %v8738_v17 = vld [vmem:[#allocation7 + $0x688] sm:$0xff]  ;;  %v8360_v43 = vrot.slane %v15462_v12, %v15443_v11 }
 0x65e   : > { %9253 = vmatmul.mubr.f32.vlgmr.msra.gmra.mrb[2].mxu0 %v8501_v51  ;;  %v8697_v51 = vld [vmem:[#allocation7 + $0x540] sm:$0xff] }
 0x65f   : > { %12850 = vmatpush3.bf16.msra.mxu0 %v12849_v56  ;;  %9323 = vmatmul.mubr.f32.vlgmr.msra.gmra.mrb[2].mxu1 %v8503_v61  ;;  %v8683_v56 = vld [vmem:[#allocation7 + $0x4d0] sm:$0xff]  ;;  %v8684_v61 = vld [vmem:[#allocation7 + $0x4d8] sm:$0xff]  ;;  %v12897_v2 = vpack.c.bf16 %v8698_v53, %v8697_v51  ;;  %v12911_v53 = vpack.c.bf16 %v8738_v17, %v8737_v41 }
 0x660   : > { %12882 = vmatpush3.bf16.msra.mxu1 %v12881_v0  ;;  %12852 = vmatprep.subr.bf16.mxu0 %v12851_v1  ;;  %v8716_v0 = vld [vmem:[#allocation7 + $0x5d8] sm:$0xff]  ;;  %v12865_v1 = vpack.c.bf16 %v8666_v50, %v8665_v49  ;;  %v12867_v4 = vpack.c.bf16 %v8684_v61, %v8683_v56  ;;  %v8721_v56 = vld [vmem:[#allocation7 + $0x600] sm:$0xff]  ;;  %v8722_v61 = vld [vmem:[#allocation7 + $0x608] sm:$0xff] }
 0x661   : > { %12884 = vmatprep.subr.bf16.mxu1 %v12883_v6  ;;  %9392 = vmatprep.mubr.f32.mxu0 %v8506_v33  ;;  %v8668_v6 = vld [vmem:[#allocation7 + $0x458] sm:$0xff]  ;;  %v12899_v59 = vpack.c.bf16 %v8716_v0, %v8715_v62  ;;  %v8348_v33 = vrot.slane %v15462_v12, %v15430_v3  ;;  %v8753_v62 = vld [vmem:[#allocation7 + $0x700] sm:$0xff] }
 0x662   : > { %9462 = vmatprep.mubr.f32.mxu1 %v8508_v34  ;;  %v12869_v15 = vpack.c.bf16 %v8668_v6, %v8667_v5  ;;  %v8280_v51 = vld [vmem:[#allocation2 + $0x78] sm:$0xff] }
 0x663   : > { %12854 = vmatpush3.bf16.msra.mxu0 %v12853_v13  ;;  %v8717_v13 = vld [vmem:[#allocation7 + $0x5e0] sm:$0xff]  ;;  %v8475_v50 = vadd.f32 %v8348_v33, %v8275_v38  ;;  %v8775_v38 = vld [vmem:[#allocation7 + $0x7b0] sm:$0xff] }
 0x664   : > { %12886 = vmatpush3.bf16.msra.mxu1 %v12885_v19  ;;  %12856 = vmatprep.subr.bf16.mxu0 %v12855_v21  ;;  %v12871_v19 = vpack.c.bf16 %v8686_v10, %v8685_v9  ;;  %v8669_v21 = vld [vmem:[#allocation7 + $0x460] sm:$0xff]  ;;  %v12903_v24 = vpack.c.bf16 %v8718_v14, %v8717_v13  ;;  %v12913_v9 = vpack.c.bf16 %v8722_v61, %v8721_v56 }
 0x665   : > { %12888 = vmatprep.subr.bf16.mxu1 %v12887_v25  ;;  %v8702_v25 = vld [vmem:[#allocation7 + $0x568] sm:$0xff]  ;;  %v12873_v30 = vpack.c.bf16 %v8670_v22, %v8669_v21  ;;  %v8507_v10 = vmax.f32 %v8475_v50, 0.0  ;;  %v8756_v22 = vld [vmem:[#allocation7 + $0x718] sm:$0xff]  ;;  %v8757_v33 = vld [vmem:[#allocation7 + $0x720] sm:$0xff] }
 0x666   : > { %v12905_v34 = vpack.c.bf16 %v8702_v25, %v8701_v23  ;;  %v8741_v23 = vld [vmem:[#allocation7 + $0x6a0] sm:$0xff] }
 0x667   : > { %12858 = vmatpush3.bf16.msra.mxu0 %v12857_v32  ;;  %v8273_v32 = vld [vmem:[#allocation2 + $0x40] sm:$0xff] }
 0x668   : > { %12890 = vmatpush3.bf16.msra.mxu1 %v12889_v35  ;;  %12860 = vmatprep.subr.bf16.mxu0 %v12859_v36  ;;  %v12875_v35 = vpack.c.bf16 %v8688_v26, %v8687_v54  ;;  %v8672_v36 = vld [vmem:[#allocation7 + $0x478] sm:$0xff]  ;;  %v8473_v44 = vadd.f32 %v8340_v29, %v8273_v32  ;;  %v8773_v54 = vld [vmem:[#allocation7 + $0x7a0] sm:$0xff]  ;;  %v8774_v26 = vld [vmem:[#allocation7 + $0x7a8] sm:$0xff] }
 0x669   : > { %12892 = vmatprep.subr.bf16.mxu1 %v12891_v40  ;;  %v8704_v40 = vld [vmem:[#allocation7 + $0x578] sm:$0xff]  ;;  %v12877_v49 = vpack.c.bf16 %v8672_v36, %v8671_v31  ;;  %v8725_v31 = vld [vmem:[#allocation7 + $0x620] sm:$0xff]  ;;  %v8726_v32 = vld [vmem:[#allocation7 + $0x628] sm:$0xff] }
 0x66a   : > { %v8505_v6 = vmax.f32 %v8473_v44, 0.0  ;;  %v8743_v36 = vld [vmem:[#allocation7 + $0x6b0] sm:$0xff]  ;;  %v8728_v44 = vld [vmem:[#allocation7 + $0x638] sm:$0xff]  ;;  %v8777_v50 = vld [vmem:[#allocation7 + $0x7c0] sm:$0xff] }
 0x66b   : > { %12862 = vmatpush3.bf16.msra.mxu0 %v12861_v46  ;;  %v8770_v46 = vld [vmem:[#allocation7 + $0x788] sm:$0xff]  ;;  %v8729_v61 = vld [vmem:[#allocation7 + $0x640] sm:$0xff] }
 0x66c   : > { %12894 = vmatpush3.bf16.msra.mxu1 %v12893_v47  ;;  %12864 = vmatprep.subr.bf16.mxu0 %v12863_v48  ;;  %v8278_v47 = vld [vmem:[#allocation2 + $0x68] sm:$0xff]  ;;  %v8368_v48 = vrot.slane %v15462_v12, %v15446_v16  ;;  %v12943_v0 = vpack.c.bf16 %v8770_v46, %v8769_v45  ;;  %v8759_v45 = vld [vmem:[#allocation7 + $0x730] sm:$0xff] }
 0x66d   : > { %12896 = vmatprep.subr.bf16.mxu1 %v12895_v52  ;;  %v12909_v52 = vpack.c.bf16 %v8704_v40, %v8703_v37  ;;  %v8478_v5 = vadd.f32 %v8360_v43, %v8278_v47  ;;  %v8744_v37 = vld [vmem:[#allocation7 + $0x6b8] sm:$0xff]  ;;  %v12921_v40 = vpack.c.bf16 %v8726_v32, %v8725_v31  ;;  %v8727_v43 = vld [vmem:[#allocation7 + $0x630] sm:$0xff] }
 0x66e   : > { %v8480_v8 = vadd.f32 %v8368_v48, %v8280_v51  ;;  %v12923_v17 = vpack.c.bf16 %v8744_v37, %v8743_v36  ;;  %v8760_v47 = vld [vmem:[#allocation7 + $0x738] sm:$0xff]  ;;  %v8745_v48 = vld [vmem:[#allocation7 + $0x6c0] sm:$0xff]  ;;  %v8778_v51 = vld [vmem:[#allocation7 + $0x7c8] sm:$0xff] }
 0x66f   : > { %12866 = vmatpush3.bf16.msra.mxu0 %v12865_v1  ;;  %v8754_v1 = vld [vmem:[#allocation7 + $0x708] sm:$0xff]  ;;  %v8510_v25 = vmax.f32 %v8478_v5, 0.0  ;;  %v8748_v5 = vld [vmem:[#allocation7 + $0x6d8] sm:$0xff]  ;;  %v8751_v31 = vld [vmem:[#allocation7 + $0x6f0] sm:$0xff] }
 0x670   : > { %12898 = vmatpush3.bf16.msra.mxu1 %v12897_v2  ;;  %12868 = vmatprep.subr.bf16.mxu0 %v12867_v4  ;;  %v8739_v2 = vld [vmem:[#allocation7 + $0x690] sm:$0xff]  ;;  %v8740_v4 = vld [vmem:[#allocation7 + $0x698] sm:$0xff]  ;;  %v12945_v13 = vpack.c.bf16 %v8754_v1, %v8753_v62  ;;  %v8512_v27 = vmax.f32 %v8480_v8, 0.0  ;;  %v8730_v62 = vld [vmem:[#allocation7 + $0x648] sm:$0xff]  ;;  %v12959_v1 = vpack.c.bf16 %v8778_v51, %v8777_v50 }
 0x671   : > { %12900 = vmatprep.subr.bf16.mxu1 %v12899_v59  ;;  %v8772_v59 = vld [vmem:[#allocation7 + $0x798] sm:$0xff]  ;;  %v12915_v14 = vpack.c.bf16 %v8740_v4, %v8739_v2  ;;  %v8762_v2 = vld [vmem:[#allocation7 + $0x748] sm:$0xff]  ;;  %v8747_v4 = vld [vmem:[#allocation7 + $0x6d0] sm:$0xff] }
 0x672   : > { %v12947_v21 = vpack.c.bf16 %v8772_v59, %v8771_v7  ;;  %v8780_v7 = vld [vmem:[#allocation7 + $0x7d8] sm:$0xff]  ;;  %v12929_v59 = vpack.c.bf16 %v8730_v62, %v8729_v61  ;;  %v15478_v36 = vld [vmem:[#allocation5 + $0x10] sm:$0xff] }
 0x673   : > { %12870 = vmatpush3.bf16.msra.mxu0 %v12869_v15  ;;  %v8723_v15 = vld [vmem:[#allocation7 + $0x610] sm:$0xff]  ;;  %v8752_v32 = vld [vmem:[#allocation7 + $0x6f8] sm:$0xff]  ;;  %v8376_v50 = vrot.slane %v15478_v36, %v15421_v57 }
 0x674   : > { %12902 = vmatpush3.bf16.msra.mxu1 %v12901_v18  ;;  %12872 = vmatprep.subr.bf16.mxu0 %v12871_v19  ;;  %v8724_v18 = vld [vmem:[#allocation7 + $0x618] sm:$0xff]  ;;  %v8755_v19 = vld [vmem:[#allocation7 + $0x710] sm:$0xff] }
 0x675   : > { %12904 = vmatprep.subr.bf16.mxu1 %v12903_v24  ;;  %v8742_v24 = vld [vmem:[#allocation7 + $0x6a8] sm:$0xff]  ;;  %v12917_v55 = vpack.c.bf16 %v8724_v18, %v8723_v15  ;;  %v12949_v29 = vpack.c.bf16 %v8756_v22, %v8755_v19  ;;  %v8764_v18 = vld [vmem:[#allocation7 + $0x758] sm:$0xff]  ;;  %v8749_v19 = vld [vmem:[#allocation7 + $0x6e0] sm:$0xff] }
 0x676   : > { %v8781_v22 = vld [vmem:[#allocation7 + $0x7e0] sm:$0xff] }
 0x677   : > { %12874 = vmatpush3.bf16.msra.mxu0 %v12873_v30  ;;  %v12919_v30 = vpack.c.bf16 %v8742_v24, %v8741_v23  ;;  %v8782_v23 = vld [vmem:[#allocation7 + $0x7e8] sm:$0xff] }
 0x678   : > { %12906 = vmatpush3.bf16.msra.mxu1 %v12905_v34  ;;  %12876 = vmatprep.subr.bf16.mxu0 %v12875_v35  ;;  %v12951_v34 = vpack.c.bf16 %v8774_v26, %v8773_v54  ;;  %v8758_v35 = vld [vmem:[#allocation7 + $0x728] sm:$0xff]  ;;  %v8733_v26 = vld [vmem:[#allocation7 + $0x660] sm:$0xff] }
 0x679   : > { %12908 = vmatprep.subr.bf16.mxu1 %v12907_v39  ;;  %v8776_v39 = vld [vmem:[#allocation7 + $0x7b8] sm:$0xff]  ;;  %v12953_v41 = vpack.c.bf16 %v8758_v35, %v8757_v33  ;;  %v8783_v33 = vld [vmem:[#allocation7 + $0x7f0] sm:$0xff]  ;;  %v8356_v35 = vrot.slane %v15462_v12, %v15453_v20 }
 0x67a   : > { %v12955_v46 = vpack.c.bf16 %v8776_v39, %v8775_v38  ;;  %v8735_v38 = vld [vmem:[#allocation7 + $0x670] sm:$0xff]  ;;  %v8277_v39 = vld [vmem:[#allocation2 + $0x60] sm:$0xff] }
 0x67b   : > { %12878 = vmatpush3.bf16.msra.mxu0 %v12877_v49  ;;  %v8746_v49 = vld [vmem:[#allocation7 + $0x6c8] sm:$0xff]  ;;  %v8477_v51 = vadd.f32 %v8356_v35, %v8277_v39 }
 0x67c   : > { %12910 = vmatpush3.bf16.msra.mxu1 %v12909_v52  ;;  %12912 = vmatprep.subr.bf16.mxu0 %v12911_v53  ;;  %v12925_v52 = vpack.c.bf16 %v8728_v44, %v8727_v43  ;;  %v12957_v53 = vpack.c.bf16 %v8760_v47, %v8759_v45  ;;  %v12927_v56 = vpack.c.bf16 %v8746_v49, %v8745_v48  ;;  %v8736_v43 = vld [vmem:[#allocation7 + $0x678] sm:$0xff]  ;;  %v8767_v44 = vld [vmem:[#allocation7 + $0x770] sm:$0xff]  ;;  %v8801_v48 = vld [vmem:[#allocation7 + $0x880] sm:$0xff] }
 0x67d   : > { %12944 = vmatprep.subr.bf16.mxu1 %v12943_v0  ;;  %v8761_v0 = vld [vmem:[#allocation7 + $0x740] sm:$0xff]  ;;  %v8279_v45 = vld [vmem:[#allocation2 + $0x70] sm:$0xff]  ;;  %v8768_v47 = vld [vmem:[#allocation7 + $0x778] sm:$0xff]  ;;  %v12941_v61 = vpack.c.bf16 %v8736_v43, %v8735_v38 }
 0x67e   : > { %9393 = vmatmul.mubr.f32.vlgmr.msra.gmra.mrb[4].mxu0 %v8505_v6  ;;  %v8779_v6 = vld [vmem:[#allocation7 + $0x7d0] sm:$0xff]  ;;  %v12961_v8 = vpack.c.bf16 %v8762_v2, %v8761_v0  ;;  %v8802_v49 = vld [vmem:[#allocation7 + $0x888] sm:$0xff]  ;;  %v8284_v0 = vld [vmem:[#allocation2 + $0x98] sm:$0xff] }
 0x67f   : > { %12914 = vmatpush3.bf16.msra.mxu0 %v12913_v9  ;;  %9463 = vmatmul.mubr.f32.vlgmr.msra.gmra.mrb[4].mxu1 %v8507_v10  ;;  %v12931_v9 = vpack.c.bf16 %v8748_v5, %v8747_v4  ;;  %v8731_v10 = vld [vmem:[#allocation7 + $0x650] sm:$0xff]  ;;  %v12963_v15 = vpack.c.bf16 %v8780_v7, %v8779_v6  ;;  %v12975_v2 = vpack.c.bf16 %v8802_v49, %v8801_v48  ;;  %v8785_v4 = vld [vmem:[#allocation7 + $0x800] sm:$0xff]  ;;  %v8786_v5 = vld [vmem:[#allocation7 + $0x808] sm:$0xff] }
 0x680   : > { %12946 = vmatpush3.bf16.msra.mxu1 %v12945_v13  ;;  %12916 = vmatprep.subr.bf16.mxu0 %v12915_v14  ;;  %v8732_v13 = vld [vmem:[#allocation7 + $0x658] sm:$0xff]  ;;  %v8763_v14 = vld [vmem:[#allocation7 + $0x750] sm:$0xff]  ;;  %v8817_v6 = vld [vmem:[#allocation7 + $0x900] sm:$0xff] }
 0x681   : > { %12948 = vmatprep.subr.bf16.mxu1 %v12947_v21  ;;  %9532 = vmatprep.mubr.f32.mxu0 %v8510_v25  ;;  %v8750_v21 = vld [vmem:[#allocation7 + $0x6e8] sm:$0xff]  ;;  %v12933_v24 = vpack.c.bf16 %v8732_v13, %v8731_v10  ;;  %v12965_v25 = vpack.c.bf16 %v8764_v18, %v8763_v14  ;;  %v8509_v13 = vmax.f32 %v8477_v51, 0.0  ;;  %v8835_v14 = vld [vmem:[#allocation7 + $0x990] sm:$0xff]  ;;  %v8789_v38 = vld [vmem:[#allocation7 + $0x820] sm:$0xff] }
 0x682   : > { %9602 = vmatprep.mubr.f32.mxu1 %v8512_v27  ;;  %v12935_v54 = vpack.c.bf16 %v8750_v21, %v8749_v19  ;;  %v8734_v27 = vld [vmem:[#allocation7 + $0x668] sm:$0xff]  ;;  %v12977_v19 = vpack.c.bf16 %v8786_v5, %v8785_v4  ;;  %v8807_v43 = vld [vmem:[#allocation7 + $0x8b0] sm:$0xff]  ;;  %v8792_v51 = vld [vmem:[#allocation7 + $0x838] sm:$0xff] }
 0x683   : > { %12918 = vmatpush3.bf16.msra.mxu0 %v12917_v55  ;;  %v8765_v55 = vld [vmem:[#allocation7 + $0x760] sm:$0xff]  ;;  %v12937_v37 = vpack.c.bf16 %v8734_v27, %v8733_v26  ;;  %v8820_v27 = vld [vmem:[#allocation7 + $0x918] sm:$0xff]  ;;  %v8790_v39 = vld [vmem:[#allocation7 + $0x828] sm:$0xff] }
 0x684   : > { %12950 = vmatpush3.bf16.msra.mxu1 %v12949_v29  ;;  %12920 = vmatprep.subr.bf16.mxu0 %v12919_v30  ;;  %v12967_v29 = vpack.c.bf16 %v8782_v23, %v8781_v22  ;;  %v8766_v30 = vld [vmem:[#allocation7 + $0x768] sm:$0xff]  ;;  %v8793_v5 = vld [vmem:[#allocation7 + $0x840] sm:$0xff] }
 0x685   : > { %12952 = vmatprep.subr.bf16.mxu1 %v12951_v34  ;;  %v8784_v34 = vld [vmem:[#allocation7 + $0x7f8] sm:$0xff] }
 0x687   : > { %12922 = vmatpush3.bf16.msra.mxu0 %v12921_v40  ;;  %v8364_v40 = vrot.slane %v15462_v12, %v15456_v60  ;;  %v8384_v12 = vrot.slane %v15478_v36, %v15424_v58 }
 0x688   : > { %12954 = vmatpush3.bf16.msra.mxu1 %v12953_v41  ;;  %12924 = vmatprep.subr.bf16.mxu0 %v12923_v17  ;;  %v12969_v41 = vpack.c.bf16 %v8766_v30, %v8765_v55  ;;  %v12939_v17 = vpack.c.bf16 %v8752_v32, %v8751_v31  ;;  %v8805_v55 = vld [vmem:[#allocation7 + $0x8a0] sm:$0xff]  ;;  %v8838_v32 = vld [vmem:[#allocation7 + $0x9a8] sm:$0xff] }
 0x689   : > { %12956 = vmatprep.subr.bf16.mxu1 %v12955_v46  ;;  %v12971_v46 = vpack.c.bf16 %v8784_v34, %v8783_v33  ;;  %v8479_v62 = vadd.f32 %v8364_v40, %v8279_v45  ;;  %v8484_v18 = vadd.f32 %v8384_v12, %v8284_v0  ;;  %v8837_v31 = vld [vmem:[#allocation7 + $0x9a0] sm:$0xff]  ;;  %v8839_v45 = vld [vmem:[#allocation7 + $0x9b0] sm:$0xff]  ;;  %v8842_v0 = vld [vmem:[#allocation7 + $0x9c8] sm:$0xff] }
 0x68a   : > { %v8821_v40 = vld [vmem:[#allocation7 + $0x920] sm:$0xff] }
 0x68b   : > { %12926 = vmatpush3.bf16.msra.mxu0 %v12925_v52  ;;  %v8833_v52 = vld [vmem:[#allocation7 + $0x980] sm:$0xff]  ;;  %v8511_v21 = vmax.f32 %v8479_v62, 0.0  ;;  %v8516_v33 = vmax.f32 %v8484_v18, 0.0 }
 0x68c   : > { %12958 = vmatpush3.bf16.msra.mxu1 %v12957_v53  ;;  %12928 = vmatprep.subr.bf16.mxu0 %v12927_v56  ;;  %v8834_v53 = vld [vmem:[#allocation7 + $0x988] sm:$0xff]  ;;  %v8809_v12 = vld [vmem:[#allocation7 + $0x8c0] sm:$0xff] }
 0x68d   : > { %12960 = vmatprep.subr.bf16.mxu1 %v12959_v1  ;;  %v8282_v56 = vld [vmem:[#allocation2 + $0x88] sm:$0xff]  ;;  %v12973_v1 = vpack.c.bf16 %v8768_v47, %v8767_v44  ;;  %v13007_v7 = vpack.c.bf16 %v8834_v53, %v8833_v52  ;;  %v8808_v44 = vld [vmem:[#allocation7 + $0x8b8] sm:$0xff]  ;;  %v12985_v47 = vpack.c.bf16 %v8790_v39, %v8789_v38  ;;  %v8823_v52 = vld [vmem:[#allocation7 + $0x930] sm:$0xff] }
 0x68e   : > { %v8482_v10 = vadd.f32 %v8376_v50, %v8282_v56  ;;  %v12987_v49 = vpack.c.bf16 %v8808_v44, %v8807_v43  ;;  %v8791_v50 = vld [vmem:[#allocation7 + $0x830] sm:$0xff]  ;;  %v8824_v56 = vld [vmem:[#allocation7 + $0x938] sm:$0xff]  ;;  %v8841_v62 = vld [vmem:[#allocation7 + $0x9c0] sm:$0xff] }
 0x68f   : > { %12930 = vmatpush3.bf16.msra.mxu0 %v12929_v59  ;;  %v8818_v59 = vld [vmem:[#allocation7 + $0x908] sm:$0xff]  ;;  %v8815_v38 = vld [vmem:[#allocation7 + $0x8f0] sm:$0xff]  ;;  %v8816_v39 = vld [vmem:[#allocation7 + $0x8f8] sm:$0xff] }
 0x690   : > { %12962 = vmatpush3.bf16.msra.mxu1 %v12961_v8  ;;  %12932 = vmatprep.subr.bf16.mxu0 %v12931_v9  ;;  %v8803_v8 = vld [vmem:[#allocation7 + $0x890] sm:$0xff]  ;;  %v8804_v9 = vld [vmem:[#allocation7 + $0x898] sm:$0xff]  ;;  %v13009_v22 = vpack.c.bf16 %v8818_v59, %v8817_v6  ;;  %v8514_v30 = vmax.f32 %v8482_v10, 0.0  ;;  %v8794_v6 = vld [vmem:[#allocation7 + $0x848] sm:$0xff]  ;;  %v13023_v59 = vpack.c.bf16 %v8842_v0, %v8841_v62 }
 0x691   : > { %12964 = vmatprep.subr.bf16.mxu1 %v12963_v15  ;;  %v8836_v15 = vld [vmem:[#allocation7 + $0x998] sm:$0xff]  ;;  %v12979_v23 = vpack.c.bf16 %v8804_v9, %v8803_v8  ;;  %v8826_v8 = vld [vmem:[#allocation7 + $0x948] sm:$0xff]  ;;  %v8811_v9 = vld [vmem:[#allocation7 + $0x8d0] sm:$0xff] }
 0x692   : > { %v13011_v26 = vpack.c.bf16 %v8836_v15, %v8835_v14  ;;  %v8812_v10 = vld [vmem:[#allocation7 + $0x8d8] sm:$0xff]  ;;  %v12993_v15 = vpack.c.bf16 %v8794_v6, %v8793_v5  ;;  %v8799_v44 = vld [vmem:[#allocation7 + $0x870] sm:$0xff]  ;;  %v8897_v0 = vld [vmem:[#allocation7 + $0xb80] sm:$0xff] }
 0x693   : > { %12934 = vmatpush3.bf16.msra.mxu0 %v12933_v24  ;;  %v8787_v24 = vld [vmem:[#allocation7 + $0x810] sm:$0xff]  ;;  %v8844_v14 = vld [vmem:[#allocation7 + $0x9d8] sm:$0xff] }
 0x694   : > { %12966 = vmatpush3.bf16.msra.mxu1 %v12965_v25  ;;  %12936 = vmatprep.subr.bf16.mxu0 %v12935_v54  ;;  %v8788_v25 = vld [vmem:[#allocation7 + $0x818] sm:$0xff]  ;;  %v8819_v54 = vld [vmem:[#allocation7 + $0x910] sm:$0xff] }
 0x695   : > { %12968 = vmatprep.subr.bf16.mxu1 %v12967_v29  ;;  %v8806_v29 = vld [vmem:[#allocation7 + $0x8a8] sm:$0xff]  ;;  %v12981_v34 = vpack.c.bf16 %v8788_v25, %v8787_v24  ;;  %v13013_v35 = vpack.c.bf16 %v8820_v27, %v8819_v54  ;;  %v8828_v25 = vld [vmem:[#allocation7 + $0x958] sm:$0xff]  ;;  %v8813_v54 = vld [vmem:[#allocation7 + $0x8e0] sm:$0xff] }
 0x696   : > { %v8845_v27 = vld [vmem:[#allocation7 + $0x9e0] sm:$0xff] }
 0x697   : > { %12938 = vmatpush3.bf16.msra.mxu0 %v12937_v37  ;;  %v12983_v37 = vpack.c.bf16 %v8806_v29, %v8805_v55  ;;  %v8846_v55 = vld [vmem:[#allocation7 + $0x9e8] sm:$0xff] }
 0x698   : > { %12970 = vmatpush3.bf16.msra.mxu1 %v12969_v41  ;;  %12940 = vmatprep.subr.bf16.mxu0 %v12939_v17  ;;  %v13015_v41 = vpack.c.bf16 %v8838_v32, %v8837_v31  ;;  %v8822_v17 = vld [vmem:[#allocation7 + $0x928] sm:$0xff]  ;;  %v8797_v32 = vld [vmem:[#allocation7 + $0x860] sm:$0xff] }
 0x699   : > { %12972 = vmatprep.subr.bf16.mxu1 %v12971_v46  ;;  %v8840_v46 = vld [vmem:[#allocation7 + $0x9b8] sm:$0xff]  ;;  %v13017_v48 = vpack.c.bf16 %v8822_v17, %v8821_v40  ;;  %v8847_v40 = vld [vmem:[#allocation7 + $0x9f0] sm:$0xff]  ;;  %v8372_v17 = vrot.slane %v15478_v36, %v15427_v63 }
 0x69a   : > { %v13019_v53 = vpack.c.bf16 %v8840_v46, %v8839_v45  ;;  %v8281_v45 = vld [vmem:[#allocation2 + $0x80] sm:$0xff]  ;;  %v8380_v46 = vrot.slane %v15478_v36, %v15430_v3 }
 0x69b   : > { %12942 = vmatpush3.bf16.msra.mxu0 %v12941_v61  ;;  %v8810_v61 = vld [vmem:[#allocation7 + $0x8c8] sm:$0xff]  ;;  %v8481_v62 = vadd.f32 %v8372_v17, %v8281_v45 }
 0x69c   : > { %12974 = vmatpush3.bf16.msra.mxu1 %v12973_v1  ;;  %12976 = vmatprep.subr.bf16.mxu0 %v12975_v2  ;;  %v12989_v1 = vpack.c.bf16 %v8792_v51, %v8791_v50  ;;  %v13021_v2 = vpack.c.bf16 %v8824_v56, %v8823_v52  ;;  %v12991_v4 = vpack.c.bf16 %v8810_v61, %v8809_v12  ;;  %v8831_v50 = vld [vmem:[#allocation7 + $0x970] sm:$0xff]  ;;  %v8865_v56 = vld [vmem:[#allocation7 + $0xa80] sm:$0xff]  ;;  %v8866_v12 = vld [vmem:[#allocation7 + $0xa88] sm:$0xff] }
 0x69d   : > { %13008 = vmatprep.subr.bf16.mxu1 %v13007_v7  ;;  %v8825_v7 = vld [vmem:[#allocation7 + $0x940] sm:$0xff]  ;;  %v8283_v51 = vld [vmem:[#allocation2 + $0x90] sm:$0xff]  ;;  %v8392_v61 = vrot.slane %v15478_v36, %v15443_v11  ;;  %v8854_v45 = vld [vmem:[#allocation7 + $0xa28] sm:$0xff] }
 0x69e   : > { %9533 = vmatmul.mubr.f32.vlgmr.msra.gmra.mrb[6].mxu0 %v8509_v13  ;;  %v8843_v13 = vld [vmem:[#allocation7 + $0x9d0] sm:$0xff]  ;;  %v13025_v18 = vpack.c.bf16 %v8826_v8, %v8825_v7  ;;  %v8483_v6 = vadd.f32 %v8380_v46, %v8283_v51  ;;  %v8288_v7 = vld [vmem:[#allocation2 + $0xb8] sm:$0xff]  ;;  %v13039_v8 = vpack.c.bf16 %v8866_v12, %v8865_v56  ;;  %v8885_v46 = vld [vmem:[#allocation7 + $0xb20] sm:$0xff] }
 0x69f   : > { %12978 = vmatpush3.bf16.msra.mxu0 %v12977_v19  ;;  %9603 = vmatmul.mubr.f32.vlgmr.msra.gmra.mrb[6].mxu1 %v8511_v21  ;;  %v12995_v19 = vpack.c.bf16 %v8812_v10, %v8811_v9  ;;  %v8795_v21 = vld [vmem:[#allocation7 + $0x850] sm:$0xff]  ;;  %v13027_v24 = vpack.c.bf16 %v8844_v14, %v8843_v13  ;;  %v8849_v9 = vld [vmem:[#allocation7 + $0xa00] sm:$0xff]  ;;  %v8850_v10 = vld [vmem:[#allocation7 + $0xa08] sm:$0xff] }
 0x6a0   : > { %13010 = vmatpush3.bf16.msra.mxu1 %v13009_v22  ;;  %12980 = vmatprep.subr.bf16.mxu0 %v12979_v23  ;;  %v8796_v22 = vld [vmem:[#allocation7 + $0x858] sm:$0xff]  ;;  %v8827_v23 = vld [vmem:[#allocation7 + $0x950] sm:$0xff]  ;;  %v8881_v13 = vld [vmem:[#allocation7 + $0xb00] sm:$0xff] }
 0x6a1   : > { %13012 = vmatprep.subr.bf16.mxu1 %v13011_v26  ;;  %9672 = vmatprep.mubr.f32.mxu0 %v8514_v30  ;;  %v8814_v26 = vld [vmem:[#allocation7 + $0x8e8] sm:$0xff]  ;;  %v12997_v29 = vpack.c.bf16 %v8796_v22, %v8795_v21  ;;  %v13029_v30 = vpack.c.bf16 %v8828_v25, %v8827_v23  ;;  %v8513_v22 = vmax.f32 %v8481_v62, 0.0  ;;  %v8899_v23 = vld [vmem:[#allocation7 + $0xb90] sm:$0xff]  ;;  %v8856_v62 = vld [vmem:[#allocation7 + $0xa38] sm:$0xff] }
 0x6a2   : > { %9742 = vmatprep.mubr.f32.mxu1 %v8516_v33  ;;  %v12999_v31 = vpack.c.bf16 %v8814_v26, %v8813_v54  ;;  %v8798_v33 = vld [vmem:[#allocation7 + $0x868] sm:$0xff]  ;;  %v13041_v54 = vpack.c.bf16 %v8850_v10, %v8849_v9  ;;  %v8515_v26 = vmax.f32 %v8483_v6, 0.0  ;;  %v8903_v51 = vld [vmem:[#allocation7 + $0xbb0] sm:$0xff]  ;;  %v8905_v6 = vld [vmem:[#allocation7 + $0xbc0] sm:$0xff] }
 0x6a3   : > { %12982 = vmatpush3.bf16.msra.mxu0 %v12981_v34  ;;  %v8829_v34 = vld [vmem:[#allocation7 + $0x960] sm:$0xff]  ;;  %v13001_v43 = vpack.c.bf16 %v8798_v33, %v8797_v32  ;;  %v8884_v33 = vld [vmem:[#allocation7 + $0xb18] sm:$0xff] }
 0x6a4   : > { %13014 = vmatpush3.bf16.msra.mxu1 %v13013_v35  ;;  %12984 = vmatprep.subr.bf16.mxu0 %v12983_v37  ;;  %v13031_v35 = vpack.c.bf16 %v8846_v55, %v8845_v27  ;;  %v8830_v37 = vld [vmem:[#allocation7 + $0x968] sm:$0xff]  ;;  %v8857_v10 = vld [vmem:[#allocation7 + $0xa40] sm:$0xff] }
 0x6a5   : > { %13016 = vmatprep.subr.bf16.mxu1 %v13015_v41  ;;  %v8848_v41 = vld [vmem:[#allocation7 + $0x9f8] sm:$0xff] }
 0x6a6   : > { %v13035_v52 = vpack.c.bf16 %v8848_v41, %v8847_v40 }
 0x6a7   : > { %12986 = vmatpush3.bf16.msra.mxu0 %v12985_v47  ;;  %v13033_v47 = vpack.c.bf16 %v8830_v37, %v8829_v34  ;;  %v8869_v34 = vld [vmem:[#allocation7 + $0xaa0] sm:$0xff] }
 0x6a8   : > { %13018 = vmatpush3.bf16.msra.mxu1 %v13017_v48  ;;  %12988 = vmatprep.subr.bf16.mxu0 %v12987_v49  ;;  %v13003_v48 = vpack.c.bf16 %v8816_v39, %v8815_v38  ;;  %v8800_v49 = vld [vmem:[#allocation7 + $0x878] sm:$0xff]  ;;  %v8901_v38 = vld [vmem:[#allocation7 + $0xba0] sm:$0xff]  ;;  %v8902_v39 = vld [vmem:[#allocation7 + $0xba8] sm:$0xff] }
 0x6a9   : > { %13020 = vmatprep.subr.bf16.mxu1 %v13019_v53  ;;  %v8832_v53 = vld [vmem:[#allocation7 + $0x978] sm:$0xff]  ;;  %v13005_v5 = vpack.c.bf16 %v8800_v49, %v8799_v44  ;;  %v8853_v44 = vld [vmem:[#allocation7 + $0xa20] sm:$0xff]  ;;  %v8871_v49 = vld [vmem:[#allocation7 + $0xab0] sm:$0xff] }
 0x6ab   : > { %12990 = vmatpush3.bf16.msra.mxu0 %v12989_v1  ;;  %v8898_v1 = vld [vmem:[#allocation7 + $0xb88] sm:$0xff] }
 0x6ac   : > { %13022 = vmatpush3.bf16.msra.mxu1 %v13021_v2  ;;  %12992 = vmatprep.subr.bf16.mxu0 %v12991_v4  ;;  %v8286_v2 = vld [vmem:[#allocation2 + $0xa8] sm:$0xff]  ;;  %v8400_v4 = vrot.slane %v15478_v36, %v15446_v16  ;;  %v13071_v14 = vpack.c.bf16 %v8898_v1, %v8897_v0  ;;  %v8887_v0 = vld [vmem:[#allocation7 + $0xb30] sm:$0xff] }
 0x6ad   : > { %13024 = vmatprep.subr.bf16.mxu1 %v13023_v59  ;;  %v13037_v59 = vpack.c.bf16 %v8832_v53, %v8831_v50  ;;  %v8486_v21 = vadd.f32 %v8392_v61, %v8286_v2  ;;  %v8872_v50 = vld [vmem:[#allocation7 + $0xab8] sm:$0xff]  ;;  %v13049_v53 = vpack.c.bf16 %v8854_v45, %v8853_v44  ;;  %v8855_v61 = vld [vmem:[#allocation7 + $0xa30] sm:$0xff] }
 0x6ae   : > { %v8488_v25 = vadd.f32 %v8400_v4, %v8288_v7  ;;  %v13051_v12 = vpack.c.bf16 %v8872_v50, %v8871_v49  ;;  %v8888_v2 = vld [vmem:[#allocation7 + $0xb38] sm:$0xff]  ;;  %v8873_v4 = vld [vmem:[#allocation7 + $0xac0] sm:$0xff]  ;;  %v8906_v7 = vld [vmem:[#allocation7 + $0xbc8] sm:$0xff] }
 0x6af   : > { %12994 = vmatpush3.bf16.msra.mxu0 %v12993_v15  ;;  %v8882_v15 = vld [vmem:[#allocation7 + $0xb08] sm:$0xff]  ;;  %v8518_v37 = vmax.f32 %v8486_v21, 0.0  ;;  %v8876_v21 = vld [vmem:[#allocation7 + $0xad8] sm:$0xff]  ;;  %v8879_v44 = vld [vmem:[#allocation7 + $0xaf0] sm:$0xff] }
 0x6b0   : > { %13026 = vmatpush3.bf16.msra.mxu1 %v13025_v18  ;;  %12996 = vmatprep.subr.bf16.mxu0 %v12995_v19  ;;  %v8867_v18 = vld [vmem:[#allocation7 + $0xa90] sm:$0xff]  ;;  %v8868_v19 = vld [vmem:[#allocation7 + $0xa98] sm:$0xff]  ;;  %v13073_v27 = vpack.c.bf16 %v8882_v15, %v8881_v13  ;;  %v8520_v40 = vmax.f32 %v8488_v25, 0.0  ;;  %v8858_v13 = vld [vmem:[#allocation7 + $0xa48] sm:$0xff]  ;;  %v13087_v15 = vpack.c.bf16 %v8906_v7, %v8905_v6 }
 0x6b1   : > { %13028 = vmatprep.subr.bf16.mxu1 %v13027_v24  ;;  %v8900_v24 = vld [vmem:[#allocation7 + $0xb98] sm:$0xff]  ;;  %v13043_v55 = vpack.c.bf16 %v8868_v19, %v8867_v18  ;;  %v8890_v18 = vld [vmem:[#allocation7 + $0xb48] sm:$0xff]  ;;  %v8875_v19 = vld [vmem:[#allocation7 + $0xad0] sm:$0xff] }
 0x6b2   : > { %v13075_v32 = vpack.c.bf16 %v8900_v24, %v8899_v23  ;;  %v8908_v23 = vld [vmem:[#allocation7 + $0xbd8] sm:$0xff]  ;;  %v13057_v24 = vpack.c.bf16 %v8858_v13, %v8857_v10 }
 0x6b3   : > { %12998 = vmatpush3.bf16.msra.mxu0 %v12997_v29  ;;  %v8851_v29 = vld [vmem:[#allocation7 + $0xa10] sm:$0xff]  ;;  %v8880_v45 = vld [vmem:[#allocation7 + $0xaf8] sm:$0xff] }
 0x6b4   : > { %13030 = vmatpush3.bf16.msra.mxu1 %v13029_v30  ;;  %13000 = vmatprep.subr.bf16.mxu0 %v12999_v31  ;;  %v8852_v30 = vld [vmem:[#allocation7 + $0xa18] sm:$0xff]  ;;  %v8883_v31 = vld [vmem:[#allocation7 + $0xb10] sm:$0xff] }
 0x6b5   : > { %13032 = vmatprep.subr.bf16.mxu1 %v13031_v35  ;;  %v8870_v35 = vld [vmem:[#allocation7 + $0xaa8] sm:$0xff]  ;;  %v13045_v41 = vpack.c.bf16 %v8852_v30, %v8851_v29  ;;  %v13077_v17 = vpack.c.bf16 %v8884_v33, %v8883_v31  ;;  %v8892_v30 = vld [vmem:[#allocation7 + $0xb58] sm:$0xff]  ;;  %v8877_v31 = vld [vmem:[#allocation7 + $0xae0] sm:$0xff] }
 0x6b6   : > { %v8909_v33 = vld [vmem:[#allocation7 + $0xbe0] sm:$0xff]  ;;  %v15496_v49 = vld [vmem:[#allocation5 + $0x18] sm:$0xff] }
 0x6b7   : > { %13002 = vmatpush3.bf16.msra.mxu0 %v13001_v43  ;;  %v13047_v43 = vpack.c.bf16 %v8870_v35, %v8869_v34  ;;  %v8910_v34 = vld [vmem:[#allocation7 + $0xbe8] sm:$0xff]  ;;  %v8408_v6 = vrot.slane %v15496_v49, %v15421_v57 }
 0x6b8   : > { %13034 = vmatpush3.bf16.msra.mxu1 %v13033_v47  ;;  %13004 = vmatprep.subr.bf16.mxu0 %v13003_v48  ;;  %v13079_v47 = vpack.c.bf16 %v8902_v39, %v8901_v38  ;;  %v8886_v48 = vld [vmem:[#allocation7 + $0xb28] sm:$0xff]  ;;  %v8861_v39 = vld [vmem:[#allocation7 + $0xa60] sm:$0xff] }
 0x6b9   : > { %13036 = vmatprep.subr.bf16.mxu1 %v13035_v52  ;;  %v8904_v52 = vld [vmem:[#allocation7 + $0xbb8] sm:$0xff]  ;;  %v13081_v56 = vpack.c.bf16 %v8886_v48, %v8885_v46  ;;  %v8911_v46 = vld [vmem:[#allocation7 + $0xbf0] sm:$0xff]  ;;  %v8388_v48 = vrot.slane %v15478_v36, %v15453_v20 }
 0x6ba   : > { %v13083_v1 = vpack.c.bf16 %v8904_v52, %v8903_v51  ;;  %v8863_v51 = vld [vmem:[#allocation7 + $0xa70] sm:$0xff]  ;;  %v8285_v52 = vld [vmem:[#allocation2 + $0xa0] sm:$0xff] }
 0x6bb   : > { %13006 = vmatpush3.bf16.msra.mxu0 %v13005_v5  ;;  %v8874_v5 = vld [vmem:[#allocation7 + $0xac8] sm:$0xff]  ;;  %v8485_v7 = vadd.f32 %v8388_v48, %v8285_v52  ;;  %v8917_v48 = vld [vmem:[#allocation7 + $0xc20] sm:$0xff] }
 0x6bc   : > { %13038 = vmatpush3.bf16.msra.mxu1 %v13037_v59  ;;  %13040 = vmatprep.subr.bf16.mxu0 %v13039_v8  ;;  %v13053_v59 = vpack.c.bf16 %v8856_v62, %v8855_v61  ;;  %v13085_v8 = vpack.c.bf16 %v8888_v2, %v8887_v0  ;;  %v13055_v9 = vpack.c.bf16 %v8874_v5, %v8873_v4  ;;  %v8864_v61 = vld [vmem:[#allocation7 + $0xa78] sm:$0xff]  ;;  %v8895_v62 = vld [vmem:[#allocation7 + $0xb70] sm:$0xff]  ;;  %v8929_v4 = vld [vmem:[#allocation7 + $0xc80] sm:$0xff] }
 0x6bd   : > { %13072 = vmatprep.subr.bf16.mxu1 %v13071_v14  ;;  %v8889_v14 = vld [vmem:[#allocation7 + $0xb40] sm:$0xff]  ;;  %v8287_v0 = vld [vmem:[#allocation2 + $0xb0] sm:$0xff]  ;;  %v8896_v2 = vld [vmem:[#allocation7 + $0xb78] sm:$0xff]  ;;  %v13069_v10 = vpack.c.bf16 %v8864_v61, %v8863_v51 }
 0x6be   : > { %9673 = vmatmul.mubr.f32.vlgmr.msra.gmra.mrb[8].mxu0 %v8513_v22  ;;  %v8907_v22 = vld [vmem:[#allocation7 + $0xbd0] sm:$0xff]  ;;  %v13089_v25 = vpack.c.bf16 %v8890_v18, %v8889_v14  ;;  %v8930_v5 = vld [vmem:[#allocation7 + $0xc88] sm:$0xff]  ;;  %v8292_v14 = vld [vmem:[#allocation2 + $0xd8] sm:$0xff] }
 0x6bf   : > { %13042 = vmatpush3.bf16.msra.mxu0 %v13041_v54  ;;  %9743 = vmatmul.mubr.f32.vlgmr.msra.gmra.mrb[8].mxu1 %v8515_v26  ;;  %v13059_v54 = vpack.c.bf16 %v8876_v21, %v8875_v19  ;;  %v8859_v26 = vld [vmem:[#allocation7 + $0xa50] sm:$0xff]  ;;  %v13091_v29 = vpack.c.bf16 %v8908_v23, %v8907_v22  ;;  %v13103_v18 = vpack.c.bf16 %v8930_v5, %v8929_v4  ;;  %v8913_v19 = vld [vmem:[#allocation7 + $0xc00] sm:$0xff]  ;;  %v8914_v21 = vld [vmem:[#allocation7 + $0xc08] sm:$0xff] }
 0x6c0   : > { %13074 = vmatpush3.bf16.msra.mxu1 %v13073_v27  ;;  %13044 = vmatprep.subr.bf16.mxu0 %v13043_v55  ;;  %v8860_v27 = vld [vmem:[#allocation7 + $0xa58] sm:$0xff]  ;;  %v8891_v55 = vld [vmem:[#allocation7 + $0xb50] sm:$0xff]  ;;  %v8945_v22 = vld [vmem:[#allocation7 + $0xd00] sm:$0xff] }
 0x6c1   : > { %13076 = vmatprep.subr.bf16.mxu1 %v13075_v32  ;;  %9812 = vmatprep.mubr.f32.mxu0 %v8518_v37  ;;  %v8878_v32 = vld [vmem:[#allocation7 + $0xae8] sm:$0xff]  ;;  %v13061_v35 = vpack.c.bf16 %v8860_v27, %v8859_v26  ;;  %v13093_v37 = vpack.c.bf16 %v8892_v30, %v8891_v55  ;;  %v8517_v26 = vmax.f32 %v8485_v7, 0.0  ;;  %v8963_v27 = vld [vmem:[#allocation7 + $0xd90] sm:$0xff]  ;;  %v8949_v51 = vld [vmem:[#allocation7 + $0xd20] sm:$0xff] }
 0x6c2   : > { %9882 = vmatprep.mubr.f32.mxu1 %v8520_v40  ;;  %v13063_v38 = vpack.c.bf16 %v8878_v32, %v8877_v31  ;;  %v8862_v40 = vld [vmem:[#allocation7 + $0xa68] sm:$0xff]  ;;  %v8967_v61 = vld [vmem:[#allocation7 + $0xdb0] sm:$0xff]  ;;  %v8920_v5 = vld [vmem:[#allocation7 + $0xc38] sm:$0xff] }
 0x6c3   : > { %13046 = vmatpush3.bf16.msra.mxu0 %v13045_v41  ;;  %v8893_v41 = vld [vmem:[#allocation7 + $0xb60] sm:$0xff]  ;;  %v13065_v50 = vpack.c.bf16 %v8862_v40, %v8861_v39  ;;  %v8946_v23 = vld [vmem:[#allocation7 + $0xd08] sm:$0xff]  ;;  %v8919_v4 = vld [vmem:[#allocation7 + $0xc30] sm:$0xff] }
 0x6c4   : > { %13078 = vmatpush3.bf16.msra.mxu1 %v13077_v17  ;;  %13048 = vmatprep.subr.bf16.mxu0 %v13047_v43  ;;  %v13095_v17 = vpack.c.bf16 %v8910_v34, %v8909_v33  ;;  %v8894_v43 = vld [vmem:[#allocation7 + $0xb68] sm:$0xff]  ;;  %v13137_v31 = vpack.c.bf16 %v8946_v23, %v8945_v22  ;;  %v8915_v33 = vld [vmem:[#allocation7 + $0xc10] sm:$0xff]  ;;  %v8916_v34 = vld [vmem:[#allocation7 + $0xc18] sm:$0xff] }
 0x6c5   : > { %13080 = vmatprep.subr.bf16.mxu1 %v13079_v47  ;;  %v8912_v47 = vld [vmem:[#allocation7 + $0xbf8] sm:$0xff]  ;;  %v8933_v39 = vld [vmem:[#allocation7 + $0xca0] sm:$0xff]  ;;  %v8934_v40 = vld [vmem:[#allocation7 + $0xca8] sm:$0xff] }
 0x6c6   : > { %v8939_v23 = vld [vmem:[#allocation7 + $0xcd0] sm:$0xff] }
 0x6c7   : > { %13050 = vmatpush3.bf16.msra.mxu0 %v13049_v53  ;;  %v8396_v53 = vrot.slane %v15478_v36, %v15456_v60  ;;  %v8416_v36 = vrot.slane %v15496_v49, %v15424_v58  ;;  %v8964_v58 = vld [vmem:[#allocation7 + $0xd98] sm:$0xff] }
 0x6c8   : > { %13082 = vmatpush3.bf16.msra.mxu1 %v13081_v56  ;;  %13052 = vmatprep.subr.bf16.mxu0 %v13051_v12  ;;  %v13097_v56 = vpack.c.bf16 %v8894_v43, %v8893_v41  ;;  %v13067_v12 = vpack.c.bf16 %v8880_v45, %v8879_v44  ;;  %v8966_v43 = vld [vmem:[#allocation7 + $0xda8] sm:$0xff]  ;;  %v13109_v45 = vpack.c.bf16 %v8916_v34, %v8915_v33  ;;  %v8941_v33 = vld [vmem:[#allocation7 + $0xce0] sm:$0xff] }
 0x6c9   : > { %13084 = vmatprep.subr.bf16.mxu1 %v13083_v1  ;;  %v13099_v1 = vpack.c.bf16 %v8912_v47, %v8911_v46  ;;  %v8487_v13 = vadd.f32 %v8396_v53, %v8287_v0  ;;  %v8492_v55 = vadd.f32 %v8416_v36, %v8292_v14  ;;  %v13111_v47 = vpack.c.bf16 %v8934_v40, %v8933_v39  ;;  %v8950_v53 = vld [vmem:[#allocation7 + $0xd28] sm:$0xff]  ;;  %v8969_v36 = vld [vmem:[#allocation7 + $0xdc0] sm:$0xff] }
 0x6ca   : > { %v8942_v34 = vld [vmem:[#allocation7 + $0xce8] sm:$0xff] }
 0x6cb   : > { %13054 = vmatpush3.bf16.msra.mxu0 %v13053_v59  ;;  %v8961_v59 = vld [vmem:[#allocation7 + $0xd80] sm:$0xff]  ;;  %v8519_v30 = vmax.f32 %v8487_v13, 0.0  ;;  %v8524_v44 = vmax.f32 %v8492_v55, 0.0  ;;  %v13117_v13 = vpack.c.bf16 %v8920_v5, %v8919_v4  ;;  %v8923_v55 = vld [vmem:[#allocation7 + $0xc50] sm:$0xff]  ;;  %v13127_v40 = vpack.c.bf16 %v8942_v34, %v8941_v33  ;;  %v8960_v5 = vld [vmem:[#allocation7 + $0xd78] sm:$0xff] }
 0x6cc   : > { %13086 = vmatpush3.bf16.msra.mxu1 %v13085_v8  ;;  %13056 = vmatprep.subr.bf16.mxu0 %v13055_v9  ;;  %v8962_v8 = vld [vmem:[#allocation7 + $0xd88] sm:$0xff]  ;;  %v9011_v33 = vld [vmem:[#allocation7 + $0xf10] sm:$0xff] }
 0x6cd   : > { %13088 = vmatprep.subr.bf16.mxu1 %v13087_v15  ;;  %v8290_v9 = vld [vmem:[#allocation2 + $0xc8] sm:$0xff]  ;;  %v13101_v15 = vpack.c.bf16 %v8896_v2, %v8895_v62  ;;  %v13135_v57 = vpack.c.bf16 %v8962_v8, %v8961_v59  ;;  %v8968_v62 = vld [vmem:[#allocation7 + $0xdb8] sm:$0xff]  ;;  %v8937_v8 = vld [vmem:[#allocation7 + $0xcc0] sm:$0xff] }
 0x6ce   : > { %v13147_v7 = vpack.c.bf16 %v8968_v62, %v8967_v61  ;;  %v8952_v59 = vld [vmem:[#allocation7 + $0xd38] sm:$0xff] }
 0x6cf   : > { %13058 = vmatpush3.bf16.msra.mxu0 %v13057_v24  ;;  %v8931_v24 = vld [vmem:[#allocation7 + $0xc90] sm:$0xff] }
 0x6d0   : > { %13090 = vmatpush3.bf16.msra.mxu1 %v13089_v25  ;;  %13060 = vmatprep.subr.bf16.mxu0 %v13059_v54  ;;  %v8932_v25 = vld [vmem:[#allocation7 + $0xc98] sm:$0xff]  ;;  %v8490_v54 = vadd.f32 %v8408_v6, %v8290_v9  ;;  %v8951_v6 = vld [vmem:[#allocation7 + $0xd30] sm:$0xff]  ;;  %v8938_v9 = vld [vmem:[#allocation7 + $0xcc8] sm:$0xff] }
 0x6d1   : > { %13092 = vmatprep.subr.bf16.mxu1 %v13091_v29  ;;  %v13105_v29 = vpack.c.bf16 %v8914_v21, %v8913_v19  ;;  %v13107_v32 = vpack.c.bf16 %v8932_v25, %v8931_v24  ;;  %v13149_v14 = vpack.c.bf16 %v8952_v59, %v8951_v6  ;;  %v8922_v19 = vld [vmem:[#allocation7 + $0xc48] sm:$0xff]  ;;  %v8953_v21 = vld [vmem:[#allocation7 + $0xd40] sm:$0xff]  ;;  %v8940_v24 = vld [vmem:[#allocation7 + $0xcd8] sm:$0xff] }
 0x6d2   : > { %v8522_v41 = vmax.f32 %v8490_v54, 0.0  ;;  %v8971_v25 = vld [vmem:[#allocation7 + $0xdd0] sm:$0xff]  ;;  %v8972_v54 = vld [vmem:[#allocation7 + $0xdd8] sm:$0xff]  ;;  %v8993_v6 = vld [vmem:[#allocation7 + $0xe80] sm:$0xff] }
 0x6d3   : > { %13062 = vmatpush3.bf16.msra.mxu0 %v13061_v35  ;;  %v8947_v35 = vld [vmem:[#allocation7 + $0xd10] sm:$0xff] }
 0x6d4   : > { %13094 = vmatpush3.bf16.msra.mxu1 %v13093_v37  ;;  %13064 = vmatprep.subr.bf16.mxu0 %v13063_v38  ;;  %v13139_v37 = vpack.c.bf16 %v8964_v58, %v8963_v27  ;;  %v8948_v38 = vld [vmem:[#allocation7 + $0xd18] sm:$0xff]  ;;  %v13123_v58 = vpack.c.bf16 %v8940_v24, %v8939_v23  ;;  %v8995_v23 = vld [vmem:[#allocation7 + $0xe90] sm:$0xff] }
 0x6d5   : > { %13096 = vmatprep.subr.bf16.mxu1 %v13095_v17  ;;  %v8965_v17 = vld [vmem:[#allocation7 + $0xda0] sm:$0xff]  ;;  %v13141_v46 = vpack.c.bf16 %v8948_v38, %v8947_v35  ;;  %v8996_v24 = vld [vmem:[#allocation7 + $0xe98] sm:$0xff] }
 0x6d6   : > { %v13143_v52 = vpack.c.bf16 %v8966_v43, %v8965_v17  ;;  %v8973_v35 = vld [vmem:[#allocation7 + $0xde0] sm:$0xff]  ;;  %v8926_v17 = vld [vmem:[#allocation7 + $0xc68] sm:$0xff] }
 0x6d7   : > { %13066 = vmatpush3.bf16.msra.mxu0 %v13065_v50  ;;  %v8918_v50 = vld [vmem:[#allocation7 + $0xc28] sm:$0xff]  ;;  %v8957_v43 = vld [vmem:[#allocation7 + $0xd60] sm:$0xff] }
 0x6d8   : > { %13098 = vmatpush3.bf16.msra.mxu1 %v13097_v56  ;;  %13068 = vmatprep.subr.bf16.mxu0 %v13067_v12  ;;  %v8935_v56 = vld [vmem:[#allocation7 + $0xcb0] sm:$0xff]  ;;  %v8936_v12 = vld [vmem:[#allocation7 + $0xcb8] sm:$0xff]  ;;  %v13113_v0 = vpack.c.bf16 %v8918_v50, %v8917_v48 }
 0x6d9   : > { %13100 = vmatprep.subr.bf16.mxu1 %v13099_v1  ;;  %v13145_v1 = vpack.c.bf16 %v8950_v53, %v8949_v51  ;;  %v13115_v2 = vpack.c.bf16 %v8936_v12, %v8935_v56  ;;  %v8975_v48 = vld [vmem:[#allocation7 + $0xdf0] sm:$0xff]  ;;  %v8976_v50 = vld [vmem:[#allocation7 + $0xdf8] sm:$0xff]  ;;  %v8404_v51 = vrot.slane %v15496_v49, %v15427_v63  ;;  %v8289_v56 = vld [vmem:[#allocation2 + $0xc0] sm:$0xff]  ;;  %v8412_v12 = vrot.slane %v15496_v49, %v15430_v3 }
 0x6da   : > { %v8927_v53 = vld [vmem:[#allocation7 + $0xc70] sm:$0xff]  ;;  %v13163_v4 = vpack.c.bf16 %v8976_v50, %v8975_v48  ;;  %v8424_v63 = vrot.slane %v15496_v49, %v15443_v11  ;;  %v8432_v3 = vrot.slane %v15496_v49, %v15446_v16  ;;  %v9028_v16 = vld [vmem:[#allocation7 + $0xf98] sm:$0xff]  ;;  %v9013_v48 = vld [vmem:[#allocation7 + $0xf20] sm:$0xff] }
 0x6db   : > { %13070 = vmatpush3.bf16.msra.mxu0 %v13069_v10  ;;  %v8970_v10 = vld [vmem:[#allocation7 + $0xdc8] sm:$0xff]  ;;  %v8489_v59 = vadd.f32 %v8404_v51, %v8289_v56  ;;  %v9031_v56 = vld [vmem:[#allocation7 + $0xfb0] sm:$0xff] }
 0x6dc   : > { %13102 = vmatpush3.bf16.msra.mxu1 %v13101_v15  ;;  %13104 = vmatprep.subr.bf16.mxu0 %v13103_v18  ;;  %v13119_v15 = vpack.c.bf16 %v8938_v9, %v8937_v8  ;;  %v8921_v18 = vld [vmem:[#allocation7 + $0xc40] sm:$0xff]  ;;  %v13151_v22 = vpack.c.bf16 %v8970_v10, %v8969_v36  ;;  %v9026_v9 = vld [vmem:[#allocation7 + $0xf88] sm:$0xff] }
 0x6dd   : > { %13136 = vmatprep.subr.bf16.mxu1 %v13135_v57  ;;  %v8954_v57 = vld [vmem:[#allocation7 + $0xd48] sm:$0xff]  ;;  %v9025_v8 = vld [vmem:[#allocation7 + $0xf80] sm:$0xff] }
 0x6de   : > { %9813 = vmatmul.mubr.f32.vlgmr.msra.gmra.mrb[10].mxu0 %v8517_v26  ;;  %v13121_v26 = vpack.c.bf16 %v8922_v19, %v8921_v18  ;;  %v13153_v27 = vpack.c.bf16 %v8954_v57, %v8953_v21  ;;  %v8294_v36 = vld [vmem:[#allocation2 + $0xe8] sm:$0xff]  ;;  %v8977_v19 = vld [vmem:[#allocation7 + $0xe00] sm:$0xff]  ;;  %v13199_v11 = vpack.c.bf16 %v9026_v9, %v9025_v8 }
 0x6df   : > { %13106 = vmatpush3.bf16.msra.mxu0 %v13105_v29  ;;  %9883 = vmatmul.mubr.f32.vlgmr.msra.gmra.mrb[10].mxu1 %v8519_v30  ;;  %v8924_v29 = vld [vmem:[#allocation7 + $0xc58] sm:$0xff]  ;;  %v8955_v30 = vld [vmem:[#allocation7 + $0xd50] sm:$0xff]  ;;  %v8978_v21 = vld [vmem:[#allocation7 + $0xe08] sm:$0xff] }
 0x6e0   : > { %13138 = vmatpush3.bf16.msra.mxu1 %v13137_v31  ;;  %13108 = vmatprep.subr.bf16.mxu0 %v13107_v32  ;;  %v13155_v31 = vpack.c.bf16 %v8972_v54, %v8971_v25  ;;  %v8956_v32 = vld [vmem:[#allocation7 + $0xd58] sm:$0xff]  ;;  %v13125_v38 = vpack.c.bf16 %v8924_v29, %v8923_v55  ;;  %v9010_v57 = vld [vmem:[#allocation7 + $0xf08] sm:$0xff]  ;;  %v8494_v25 = vadd.f32 %v8424_v63, %v8294_v36  ;;  %v8521_v54 = vmax.f32 %v8489_v59, 0.0  ;;  %v9033_v59 = vld [vmem:[#allocation7 + $0xfc0] sm:$0xff] }
 0x6e1   : > { %13140 = vmatprep.subr.bf16.mxu1 %v13139_v37  ;;  %9952 = vmatprep.mubr.f32.mxu0 %v8522_v41  ;;  %v8974_v37 = vld [vmem:[#allocation7 + $0xde8] sm:$0xff]  ;;  %v13157_v39 = vpack.c.bf16 %v8956_v32, %v8955_v30  ;;  %v8925_v41 = vld [vmem:[#allocation7 + $0xc60] sm:$0xff]  ;;  %v13171_v30 = vpack.c.bf16 %v8996_v24, %v8995_v23  ;;  %v8980_v32 = vld [vmem:[#allocation7 + $0xe18] sm:$0xff] }
 0x6e2   : > { %10022 = vmatprep.mubr.f32.mxu1 %v8524_v44  ;;  %v13159_v44 = vpack.c.bf16 %v8974_v37, %v8973_v35  ;;  %v9012_v35 = vld [vmem:[#allocation7 + $0xf18] sm:$0xff]  ;;  %v8997_v37 = vld [vmem:[#allocation7 + $0xea0] sm:$0xff]  ;;  %v9014_v51 = vld [vmem:[#allocation7 + $0xf28] sm:$0xff] }
 0x6e3   : > { %13110 = vmatpush3.bf16.msra.mxu0 %v13109_v45  ;;  %v8958_v45 = vld [vmem:[#allocation7 + $0xd68] sm:$0xff] }
 0x6e4   : > { %13142 = vmatpush3.bf16.msra.mxu1 %v13141_v46  ;;  %13112 = vmatprep.subr.bf16.mxu0 %v13111_v47  ;;  %v8943_v46 = vld [vmem:[#allocation7 + $0xcf0] sm:$0xff]  ;;  %v8944_v47 = vld [vmem:[#allocation7 + $0xcf8] sm:$0xff]  ;;  %v13161_v61 = vpack.c.bf16 %v8958_v45, %v8957_v43  ;;  %v9002_v63 = vld [vmem:[#allocation7 + $0xec8] sm:$0xff] }
 0x6e5   : > { %13144 = vmatprep.subr.bf16.mxu1 %v13143_v52  ;;  %v13129_v52 = vpack.c.bf16 %v8926_v17, %v8925_v41  ;;  %v13131_v62 = vpack.c.bf16 %v8944_v47, %v8943_v46  ;;  %v9030_v41 = vld [vmem:[#allocation7 + $0xfa8] sm:$0xff]  ;;  %v8981_v46 = vld [vmem:[#allocation7 + $0xe20] sm:$0xff] }
 0x6e6   : > { %v8982_v47 = vld [vmem:[#allocation7 + $0xe28] sm:$0xff] }
 0x6e7   : > { %13114 = vmatpush3.bf16.msra.mxu0 %v13113_v0  ;;  %v8928_v0 = vld [vmem:[#allocation7 + $0xc78] sm:$0xff]  ;;  %v9034_v8 = vld [vmem:[#allocation7 + $0xfc8] sm:$0xff] }
 0x6e8   : > { %13146 = vmatpush3.bf16.msra.mxu1 %v13145_v1  ;;  %13116 = vmatprep.subr.bf16.mxu0 %v13115_v2  ;;  %v8959_v1 = vld [vmem:[#allocation7 + $0xd70] sm:$0xff]  ;;  %v13133_v10 = vpack.c.bf16 %v8928_v0, %v8927_v53  ;;  %v9000_v53 = vld [vmem:[#allocation7 + $0xeb8] sm:$0xff] }
 0x6e9   : > { %13148 = vmatprep.subr.bf16.mxu1 %v13147_v7  ;;  %v8291_v2 = vld [vmem:[#allocation2 + $0xd0] sm:$0xff]  ;;  %v8994_v7 = vld [vmem:[#allocation7 + $0xe88] sm:$0xff] }
 0x6ea   : > { %v13167_v18 = vpack.c.bf16 %v8994_v7, %v8993_v6  ;;  %v9016_v6 = vld [vmem:[#allocation7 + $0xf38] sm:$0xff]  ;;  %v9001_v7 = vld [vmem:[#allocation7 + $0xec0] sm:$0xff] }
 0x6eb   : > { %13118 = vmatpush3.bf16.msra.mxu0 %v13117_v13  ;;  %v8491_v13 = vadd.f32 %v8412_v12, %v8291_v2  ;;  %v9032_v12 = vld [vmem:[#allocation7 + $0xfb8] sm:$0xff] }
 0x6ec   : > { %13150 = vmatpush3.bf16.msra.mxu1 %v13149_v14  ;;  %13120 = vmatprep.subr.bf16.mxu0 %v13119_v15  ;;  %v8296_v14 = vld [vmem:[#allocation2 + $0xf8] sm:$0xff]  ;;  %v13165_v15 = vpack.c.bf16 %v8960_v5, %v8959_v1  ;;  %v8983_v1 = vld [vmem:[#allocation7 + $0xe30] sm:$0xff]  ;;  %v13211_v5 = vpack.c.bf16 %v9032_v12, %v9031_v56  ;;  %v8428_v56 = vrot.slane %v15496_v49, %v15456_v60 }
 0x6ed   : > { %13152 = vmatprep.subr.bf16.mxu1 %v13151_v22  ;;  %v9009_v22 = vld [vmem:[#allocation7 + $0xf00] sm:$0xff]  ;;  %v8523_v55 = vmax.f32 %v8491_v13, 0.0  ;;  %v8984_v2 = vld [vmem:[#allocation7 + $0xe38] sm:$0xff]  ;;  %v8986_v13 = vld [vmem:[#allocation7 + $0xe48] sm:$0xff] }
 0x6ee   : > { %v13201_v29 = vpack.c.bf16 %v9010_v57, %v9009_v22  ;;  %v13181_v9 = vpack.c.bf16 %v8984_v2, %v8983_v1  ;;  %v9035_v22 = vld [vmem:[#allocation7 + $0xfd0] sm:$0xff]  ;;  %v8992_v1 = vld [vmem:[#allocation7 + $0xe78] sm:$0xff] }
 0x6ef   : > { %13122 = vmatpush3.bf16.msra.mxu0 %v13121_v26  ;;  %v9027_v26 = vld [vmem:[#allocation7 + $0xf90] sm:$0xff] }
 0x6f0   : > { %13154 = vmatpush3.bf16.msra.mxu1 %v13153_v27  ;;  %13124 = vmatprep.subr.bf16.mxu0 %v13123_v58  ;;  %v8496_v27 = vadd.f32 %v8432_v3, %v8296_v14  ;;  %v13169_v58 = vpack.c.bf16 %v8978_v21, %v8977_v19  ;;  %v13203_v34 = vpack.c.bf16 %v9028_v16, %v9027_v26  ;;  %v9017_v14 = vld [vmem:[#allocation7 + $0xf40] sm:$0xff]  ;;  %v9003_v19 = vld [vmem:[#allocation7 + $0xed0] sm:$0xff]  ;;  %v9004_v21 = vld [vmem:[#allocation7 + $0xed8] sm:$0xff] }
 0x6f1   : > { %13156 = vmatprep.subr.bf16.mxu1 %v13155_v31  ;;  %v8979_v31 = vld [vmem:[#allocation7 + $0xe10] sm:$0xff]  ;;  %v13183_v3 = vpack.c.bf16 %v9002_v63, %v9001_v7  ;;  %v13187_v24 = vpack.c.bf16 %v9004_v21, %v9003_v19 }
 0x6f2   : > { %v8528_v17 = vmax.f32 %v8496_v27, 0.0  ;;  %v13173_v43 = vpack.c.bf16 %v8980_v32, %v8979_v31  ;;  %v9019_v26 = vld [vmem:[#allocation7 + $0xf50] sm:$0xff]  ;;  %v9020_v27 = vld [vmem:[#allocation7 + $0xf58] sm:$0xff] }
 0x6f3   : > { %13126 = vmatpush3.bf16.msra.mxu0 %v13125_v38  ;;  %v8998_v38 = vld [vmem:[#allocation7 + $0xea8] sm:$0xff]  ;;  %v13221_v32 = vpack.c.bf16 %v9020_v27, %v9019_v26  ;;  %v8295_v2 = vld [vmem:[#allocation2 + $0xf0] sm:$0xff] }
 0x6f4   : > { %13158 = vmatpush3.bf16.msra.mxu1 %v13157_v39  ;;  %13128 = vmatprep.subr.bf16.mxu0 %v13127_v40  ;;  %v8526_v39 = vmax.f32 %v8494_v25, 0.0  ;;  %v9029_v40 = vld [vmem:[#allocation7 + $0xfa0] sm:$0xff]  ;;  %v13175_v45 = vpack.c.bf16 %v8998_v38, %v8997_v37  ;;  %v8987_v25 = vld [vmem:[#allocation7 + $0xe50] sm:$0xff] }
 0x6f5   : > { %13160 = vmatprep.subr.bf16.mxu1 %v13159_v44  ;;  %v13205_v44 = vpack.c.bf16 %v9012_v35, %v9011_v33  ;;  %v13207_v50 = vpack.c.bf16 %v9030_v41, %v9029_v40  ;;  %v8990_v35 = vld [vmem:[#allocation7 + $0xe68] sm:$0xff]  ;;  %v9021_v37 = vld [vmem:[#allocation7 + $0xf60] sm:$0xff]  ;;  %v9007_v41 = vld [vmem:[#allocation7 + $0xef0] sm:$0xff] }
 0x6f6   : > { %v9022_v40 = vld [vmem:[#allocation7 + $0xf68] sm:$0xff] }
 0x6f7   : > { %13130 = vmatpush3.bf16.msra.mxu0 %v13129_v52  ;;  %v8999_v52 = vld [vmem:[#allocation7 + $0xeb0] sm:$0xff] }
 0x6f8   : > { %13162 = vmatpush3.bf16.msra.mxu1 %v13161_v61  ;;  %13132 = vmatprep.subr.bf16.mxu0 %v13131_v62  ;;  %v13177_v61 = vpack.c.bf16 %v8982_v47, %v8981_v46  ;;  %v13209_v62 = vpack.c.bf16 %v9014_v51, %v9013_v48  ;;  %v13179_v0 = vpack.c.bf16 %v9000_v53, %v8999_v52  ;;  %v9039_v46 = vld [vmem:[#allocation7 + $0xff0] sm:$0xff]  ;;  %v9040_v47 = vld [vmem:[#allocation7 + $0xff8] sm:$0xff]  ;;  %v8293_v53 = vld [vmem:[#allocation2 + $0xe0] sm:$0xff] }
 0x6f9   : > { %13164 = vmatprep.subr.bf16.mxu1 %v13163_v4  ;;  %v9015_v4 = vld [vmem:[#allocation7 + $0xf30] sm:$0xff]  ;;  %v8420_v48 = vrot.slane %v15496_v49, %v15453_v20  ;;  %v10169_v49 = vld [vmem:[#allocation10] sm:$0xff] }
 0x6fa   : > { %v13213_v36 = vpack.c.bf16 %v9016_v6, %v9015_v4  ;;  %v9023_v20 = vld [vmem:[#allocation7 + $0xf70] sm:$0xff]  ;;  %v9024_v6 = vld [vmem:[#allocation7 + $0xf78] sm:$0xff] }
 0x6fb   : > { %13134 = vmatpush3.bf16.msra.mxu0 %v13133_v10  ;;  %v8985_v10 = vld [vmem:[#allocation7 + $0xe40] sm:$0xff]  ;;  %v8493_v7 = vadd.f32 %v8420_v48, %v8293_v53  ;;  %v13229_v60 = vpack.c.bf16 %v9024_v6, %v9023_v20  ;;  %v10263_v53 = vld [vmem:[#allocation13 + $0x38] sm:$0xff] }
 0x6fc   : > { %13166 = vmatpush3.bf16.msra.mxu1 %v13165_v15  ;;  %13168 = vmatprep.subr.bf16.mxu0 %v13167_v18  ;;  %v13215_v15 = vpack.c.bf16 %v9034_v8, %v9033_v59  ;;  %v9018_v18 = vld [vmem:[#allocation7 + $0xf48] sm:$0xff]  ;;  %v13185_v57 = vpack.c.bf16 %v8986_v13, %v8985_v10  ;;  %v8495_v8 = vadd.f32 %v8428_v56, %v8295_v2  ;;  %v13865_v13 = vmov 0.0|0.0  }
 0x6fd   : > { %13200 = vmatprep.subr.bf16.mxu1 %v13199_v11  ;;  %v9036_v11 = vld [vmem:[#allocation7 + $0xfd8] sm:$0xff]  ;;  %v13217_v23 = vpack.c.bf16 %v9018_v18, %v9017_v14  ;;  %v10168_v14 = vld [vmem:[%s15738_s27] sm:$0xff]  ;;  %v10283_v20 = vld [vmem:[#allocation14 + $0x58] sm:$0xff] }
 0x6fe   : > { %9953 = vmatmul.mubr.f32.vlgmr.msra.gmra.mrb[12].mxu0 %v8521_v54  ;;  %v8988_v54 = vld [vmem:[#allocation7 + $0xe58] sm:$0xff]  ;;  %v13219_v16 = vpack.c.bf16 %v9036_v11, %v9035_v22  ;;  %v10266_v6 = vld [vmem:[#allocation13 + $0x50] sm:$0xff] }
 0x6ff   : > { %13170 = vmatpush3.bf16.msra.mxu0 %v13169_v58  ;;  %10023 = vmatmul.mubr.f32.vlgmr.msra.gmra.mrb[12].mxu1 %v8523_v55  ;;  %v9005_v58 = vld [vmem:[#allocation7 + $0xee0] sm:$0xff]  ;;  %v9006_v55 = vld [vmem:[#allocation7 + $0xee8] sm:$0xff]  ;;  %v13189_v31 = vpack.c.bf16 %v8988_v54, %v8987_v25 }
 0x700   : > { %13202 = vmatpush3.bf16.msra.mxu1 %v13201_v29  ;;  %13172 = vmatprep.subr.bf16.mxu0 %v13171_v30  ;;  %v9037_v29 = vld [vmem:[#allocation7 + $0xfe0] sm:$0xff]  ;;  %v9038_v30 = vld [vmem:[#allocation7 + $0xfe8] sm:$0xff]  ;;  %v13191_v33 = vpack.c.bf16 %v9006_v55, %v9005_v58 }
 0x701   : > { %13204 = vmatprep.subr.bf16.mxu1 %v13203_v34  ;;  %10092 = vmatprep.mubr.f32.mxu0 %v8526_v39  ;;  %v8989_v34 = vld [vmem:[#allocation7 + $0xe60] sm:$0xff]  ;;  %v13223_v39 = vpack.c.bf16 %v9038_v30, %v9037_v29  ;;  %v10272_v29 = vld [vmem:[#allocation14] sm:$0xff] }
 0x702   : > { %10162 = vmatprep.mubr.f32.mxu1 %v8528_v17  ;;  %v9008_v17 = vld [vmem:[#allocation7 + $0xef8] sm:$0xff]  ;;  %v13193_v52 = vpack.c.bf16 %v8990_v35, %v8989_v34  ;;  %v10274_v35 = vld [vmem:[#allocation14 + $0x10] sm:$0xff] }
 0x703   : > { %13174 = vmatpush3.bf16.msra.mxu0 %v13173_v43  ;;  %v11915_v43 = vld [vmem:[#allocation8] ss:$0 sm:$0xff] }
 0x704   : > { %13206 = vmatpush3.bf16.msra.mxu1 %v13205_v44  ;;  %13176 = vmatprep.subr.bf16.mxu0 %v13175_v45  ;;  %v10273_v30 = vld [vmem:[#allocation14 + $0x8] sm:$0xff] }
 0x705   : > { %13208 = vmatprep.subr.bf16.mxu1 %v13207_v50  ;;  %v10257_v34 = vld [vmem:[#allocation13 + $0x8] sm:$0xff] }
 0x707   : > { %13178 = vmatpush3.bf16.msra.mxu0 %v13177_v61  ;;  %v13225_v61 = vpack.c.bf16 %v9022_v40, %v9021_v37  ;;  %v10259_v40 = vld [vmem:[#allocation13 + $0x18] sm:$0xff] }
 0x708   : > { %13210 = vmatpush3.bf16.msra.mxu1 %v13209_v62  ;;  %13180 = vmatprep.subr.bf16.mxu0 %v13179_v0  ;;  %v13195_v62 = vpack.c.bf16 %v9008_v17, %v9007_v41  ;;  %v8991_v0 = vld [vmem:[#allocation7 + $0xe70] sm:$0xff] }
 0x709   : > { %13212 = vmatprep.subr.bf16.mxu1 %v13211_v5  ;;  %v13227_v5 = vpack.c.bf16 %v9040_v47, %v9039_v46  ;;  %v13197_v59 = vpack.c.bf16 %v8992_v1, %v8991_v0  ;;  %v10261_v46 = vld [vmem:[#allocation13 + $0x28] sm:$0xff]  ;;  %v10264_v0 = vld [vmem:[#allocation13 + $0x40] sm:$0xff] }
 0x70a   : > { %v10265_v1 = vld [vmem:[#allocation13 + $0x48] sm:$0xff] }
 0x70b   : > { %13182 = vmatpush3.bf16.msra.mxu0 %v13181_v9  ;;  %v10170_v9 = vld [vmem:[#allocation10 + $0x8] sm:$0xf] }
 0x70c   : > { %13214 = vmatpush3.bf16.msra.mxu1 %v13213_v36  ;;  %13184 = vmatprep.subr.bf16.mxu0 %v13183_v3  ;;  %v8525_v36 = vmax.f32 %v8493_v7, 0.0  ;;  %v8527_v3 = vmax.f32 %v8495_v8, 0.0  ;;  %v13232_v10 = vpack.c.bf16 %v10170_v9, %v10169_v49  ;;  %v10267_v7 = vld [vmem:[#allocation13 + $0x58] sm:$0xff]  ;;  %v10284_v8 = vld [vmem:[#allocation14 + $0x60] sm:$0xff] }
 0x70d   : > { %13216 = vmatprep.subr.bf16.mxu1 %v13215_v15  ;;  %v13868_v15 = vmov 0.0   ;;  %v10268_v9 = vld [vmem:[#allocation13 + $0x60] sm:$0xff] }
 0x70f   : > { %13186 = vmatpush3.bf16.msra.mxu0 %v13185_v57 }
 0x710   : > { %13218 = vmatpush3.bf16.msra.mxu1 %v13217_v23  ;;  %13188 = vmatprep.subr.bf16.mxu0 %v13187_v24 }
 0x711   : > { %v11973_v38 = vpop.f32.mrb[0].mxu0  ;;  %13220 = vmatprep.subr.bf16.mxu1 %v13219_v16 }
 0x712   : > { %v11974_v44 = vpop.f32.mrb[1].mxu0  ;;  %v12008_v45 = vpop.f32.mrb[0].mxu1 }
 0x713   : > { %v11975_v50 = vadd.f32 %v11974_v44, %v11973_v38  ;;  %13190 = vmatpush3.bf16.msra.mxu0 %v13189_v31  ;;  %v12009_v51 = vpop.f32.mrb[1].mxu1  ;;  %v10275_v38 = vld [vmem:[#allocation14 + $0x18] sm:$0xff]  ;;  %v10277_v44 = vld [vmem:[#allocation14 + $0x28] sm:$0xff] }
 0x714   : > { %v12010_v12 = vadd.f32 %v12009_v51, %v12008_v45  ;;  %13222 = vmatpush3.bf16.msra.mxu1 %v13221_v32  ;;  %13192 = vmatprep.subr.bf16.mxu0 %v13191_v33  ;;  %v13236_v32 = vpack.c.bf16 %v10273_v30, %v10272_v29  ;;  %v10256_v33 = vld [vmem:[#allocation13] sm:$0xff]  ;;  %v13239_v41 = vpack.c.bf16 %v10275_v38, %v10274_v35  ;;  %v10279_v51 = vld [vmem:[#allocation14 + $0x38] sm:$0xff] }
 0x715   : > { %v9115_v4 = vadd.f32 %v11975_v50, %v11915_v43  ;;  %13224 = vmatprep.subr.bf16.mxu1 %v13223_v39  ;;  %v13260_v37 = vpack.c.bf16 %v10257_v34, %v10256_v33  ;;  %v10258_v39 = vld [vmem:[#allocation13 + $0x10] sm:$0xff]  ;;  %v10276_v43 = vld [vmem:[#allocation14 + $0x20] sm:$0xff] }
 0x716   : > { %v13263_v17 = vpack.c.bf16 %v10259_v40, %v10258_v39  ;;  %v10260_v45 = vld [vmem:[#allocation13 + $0x20] sm:$0xff]  ;;  %v13242_v47 = vpack.c.bf16 %v10277_v44, %v10276_v43  ;;  %v10278_v50 = vld [vmem:[#allocation14 + $0x30] sm:$0xff] }
 0x717   : > { %v9185_v63 = vadd.f32 %v12010_v12, %v9115_v4  ;;  %13194 = vmatpush3.bf16.msra.mxu0 %v13193_v52  ;;  %v13266_v48 = vpack.c.bf16 %v10261_v46, %v10260_v45  ;;  %v10262_v52 = vld [vmem:[#allocation13 + $0x30] sm:$0xff]  ;;  %v13245_v56 = vpack.c.bf16 %v10279_v51, %v10278_v50  ;;  %v13272_v4 = vpack.c.bf16 %v10265_v1, %v10264_v0  ;;  %v11916_v1 = vld [vmem:[#allocation11] ss:$0 sm:$0xff] }
 0x718   : > { %13226 = vmatpush3.bf16.msra.mxu1 %v13225_v61  ;;  %13196 = vmatprep.subr.bf16.mxu0 %v13195_v62  ;;  %v13269_v12 = vpack.c.bf16 %v10263_v53, %v10262_v52  ;;  %v10280_v61 = vld [vmem:[#allocation14 + $0x40] sm:$0xff]  ;;  %v10281_v62 = vld [vmem:[#allocation14 + $0x48] sm:$0xff] }
 0x719   : > { %13228 = vmatprep.subr.bf16.mxu1 %v13227_v5  ;;  %v13248_v2 = vpack.c.bf16 %v10281_v62, %v10280_v61  ;;  %v10282_v5 = vld [vmem:[#allocation14 + $0x50] sm:$0xff] }
 0x71a   : > { %v10437_v61 = vld [vmem:[#allocation17 + $0x8] sm:$0xff] }
 0x71b   : > { %13198 = vmatpush3.bf16.msra.mxu0 %v13197_v59  ;;  %v13275_v59 = vpack.c.bf16 %v10267_v7, %v10266_v6 }
 0x71c   : > { %13230 = vmatpush3.bf16.msra.mxu1 %v13229_v60  ;;  %13231 = vmatprep.subr.bf16.mxu0 %v13865_v13  ;;  %v10285_v60 = vld [vmem:[#allocation14 + $0x68] sm:$0xff] }
 0x71d   : > { %13235 = vmatprep.subr.bf16.mxu1 %v13865_v13  ;;  %v13254_v49 = vpack.c.bf16 %v10285_v60, %v10284_v8 }
 0x71e   : > { %10093 = vmatmul.mubr.f32.vlgmr.msra.gmra.mrb[14].mxu0 %v8525_v36  ;;  %v10269_v36 = vld [vmem:[#allocation13 + $0x68] sm:$0xff] }
 0x71f   : > { %10163 = vmatmul.mubr.f32.vlgmr.msra.gmra.mrb[14].mxu1 %v8527_v3  ;;  %13234 = vmatpush3.bf16.msk.msra.mxu0 %vm13233_vm2, %v13232_v10  ;;  %v13278_v3 = vpack.c.bf16 %v10269_v36, %v10268_v9  ;;  %v10441_v9 = vld [vmem:[#allocation17 + $0x28] sm:$0xff] }
 0x720   : > { %12576 = vmatprep.mubr.msk.f32.mxu0 %vm13867_vm4, %v13868_v15  ;;  %13259 = vmatprep.subr.bf16.mxu0 %v13865_v13 }
 0x721   : > { %12611 = vmatprep.mubr.msk.f32.mxu1 %vm13867_vm4, %v13868_v15  ;;  %13237 = vmatpush3.bf16.msra.mxu1 %v13236_v32 }
 0x722   : > { %12577 = vmatmul.mubr.msk.f32.vlgmr.msra.gmra.mrb[16].mxu0 %vm10178_vm3, %v10168_v14  ;;  %13238 = vmatprep.subr.bf16.mxu1 %v13865_v13 }
 0x723   : > { %12646 = vmatprep.mubr.msk.f32.mxu0 %vm13867_vm4, %v13868_v15  ;;  %13261 = vmatpush3.bf16.msra.mxu0 %v13260_v37 }
 0x724   : > { %13262 = vmatprep.subr.bf16.mxu0 %v13865_v13 }
 0x725   : > { %13240 = vmatpush3.bf16.msra.mxu1 %v13239_v41 }
 0x726   : > { %13241 = vmatprep.subr.bf16.mxu1 %v13865_v13 }
 0x727   : > { %13264 = vmatpush3.bf16.msra.mxu0 %v13263_v17 }
 0x728   : > { %13265 = vmatprep.subr.bf16.mxu0 %v13865_v13 }
 0x729   : > { %13243 = vmatpush3.bf16.msra.mxu1 %v13242_v47 }
 0x72a   : > { %13244 = vmatprep.subr.bf16.mxu1 %v13865_v13 }
 0x72b   : > { %13267 = vmatpush3.bf16.msra.mxu0 %v13266_v48 }
 0x72c   : > { %13268 = vmatprep.subr.bf16.mxu0 %v13865_v13 }
 0x72d   : > { %13246 = vmatpush3.bf16.msra.mxu1 %v13245_v56 }
 0x72e   : > { %13247 = vmatprep.subr.bf16.mxu1 %v13865_v13 }
 0x72f   : > { %13270 = vmatpush3.bf16.msra.mxu0 %v13269_v12  ;;  %v10436_v12 = vld [vmem:[#allocation17] sm:$0xff] }
 0x730   : > { %13271 = vmatprep.subr.bf16.mxu0 %v13865_v13 }
 0x731   : > { %v12043_v18 = vpop.f32.mrb[2].mxu0  ;;  %13249 = vmatpush3.bf16.msra.mxu1 %v13248_v2 }
 0x732   : > { %v12044_v19 = vpop.f32.mrb[3].mxu0  ;;  %v12078_v21 = vpop.f32.mrb[2].mxu1  ;;  %13250 = vmatprep.subr.bf16.mxu1 %v13865_v13 }
 0x733   : > { %v12045_v22 = vadd.f32 %v12044_v19, %v12043_v18  ;;  %v12079_v11 = vpop.f32.mrb[3].mxu1  ;;  %13273 = vmatpush3.bf16.msra.mxu0 %v13272_v4  ;;  %v10286_v19 = vld [vmem:[#allocation14 + $0x70] sm:$0xff] }
 0x734   : > { %v12080_v57 = vadd.f32 %v12079_v11, %v12078_v21  ;;  %13274 = vmatprep.subr.bf16.mxu0 %v13865_v13  ;;  %v10287_v21 = vld [vmem:[#allocation14 + $0x78] sm:$0xff] }
 0x735   : > { %v9255_v23 = vadd.f32 %v12045_v22, %v9185_v63  ;;  %v13251_v63 = vpack.c.bf16 %v10283_v20, %v10282_v5  ;;  %v13284_v20 = vpack.c.bf16 %v10437_v61, %v10436_v12  ;;  %v10543_v61 = vadd.s32 96, %v15418_v42 }
 0x737   : > { %v9325_v24 = vadd.f32 %v12080_v57, %v9255_v23  ;;  %13252 = vmatpush3.bf16.msra.mxu1 %v13251_v63  ;;  %13276 = vmatpush3.bf16.msra.mxu0 %v13275_v59  ;;  %v13257_v57 = vpack.c.bf16 %v10287_v21, %v10286_v19  ;;  %v10270_v23 = vld [vmem:[#allocation13 + $0x70] sm:$0xff]  ;;  %v10439_v59 = vld [vmem:[#allocation17 + $0x18] sm:$0xff] }
 0x738   : > { %13253 = vmatprep.subr.bf16.mxu1 %v13865_v13  ;;  %13277 = vmatprep.subr.bf16.mxu0 %v13865_v13  ;;  %v10438_v63 = vld [vmem:[#allocation17 + $0x10] sm:$0xff]  ;;  %v10445_v19 = vld [vmem:[#allocation17 + $0x48] sm:$0xff] }
 0x739   : > { %v13287_v60 = vpack.c.bf16 %v10439_v59, %v10438_v63 }
 0x73b   : > { %13255 = vmatpush3.bf16.msra.mxu1 %v13254_v49  ;;  %13279 = vmatpush3.bf16.msra.mxu0 %v13278_v3  ;;  %v10440_v49 = vld [vmem:[#allocation17 + $0x20] sm:$0xff]  ;;  %v10442_v3 = vld [vmem:[#allocation17 + $0x30] sm:$0xff] }
 0x73c   : > { %13256 = vmatprep.subr.bf16.mxu1 %v13865_v13  ;;  %13280 = vmatprep.subr.bf16.mxu0 %v13865_v13  ;;  %v13290_v36 = vpack.c.bf16 %v10441_v9, %v10440_v49  ;;  %v10546_v49 = vadd.s32 120, %v15418_v42 }
 0x73f   : > { %13258 = vmatpush3.bf16.msra.mxu1 %v13257_v57  ;;  %v10448_v57 = vld [vmem:[#allocation17 + $0x60] sm:$0xff] }
 0x740   : > { %13283 = vmatprep.subr.bf16.mxu1 %v13865_v13 }
 0x751   : > { %v12113_v25 = vpop.f32.mrb[4].mxu0 }
 0x752   : > { %v12114_v54 = vpop.f32.mrb[5].mxu0  ;;  %v12148_v26 = vpop.f32.mrb[4].mxu1 }
 0x753   : > { %v12115_v16 = vadd.f32 %v12114_v54, %v12113_v25  ;;  %v12149_v27 = vpop.f32.mrb[5].mxu1 }
 0x754   : > { %v12150_v58 = vadd.f32 %v12149_v27, %v12148_v26 }
 0x755   : > { %v9395_v55 = vadd.f32 %v12115_v16, %v9325_v24  ;;  %v10271_v24 = vld [vmem:[#allocation13 + $0x78] sm:$0xff] }
 0x756   : > { %v13281_v54 = vpack.c.bf16 %v10271_v24, %v10270_v23  ;;  %v10449_v23 = vld [vmem:[#allocation17 + $0x68] sm:$0xff] }
 0x757   : > { %v15528_v31 = vadd.f32 %v12150_v58, %v9395_v55  ;;  %v13302_v24 = vpack.c.bf16 %v10449_v23, %v10448_v57 }
 0x758   : > { %13282 = vmatpush3.bf16.msra.mxu0 %v13281_v54  ;;  %v10451_v54 = vld [vmem:[#allocation17 + $0x78] sm:$0xff] }
 0x759   : > { %13307 = vmatprep.subr.bf16.mxu0 %v13865_v13 }
 0x771   : > { %v12183_v10 = vpop.f32.mrb[6].mxu0 }
 0x772   : > { %v12184_v14 = vpop.f32.mrb[7].mxu0  ;;  %v12218_v18 = vpop.f32.mrb[6].mxu1 }
 0x773   : > { %v12185_v22 = vadd.f32 %v12184_v14, %v12183_v10  ;;  %v12219_v11 = vpop.f32.mrb[7].mxu1  ;;  %v10443_v10 = vld [vmem:[#allocation17 + $0x38] sm:$0xff] }
 0x774   : > { %v12220_v25 = vadd.f32 %v12219_v11, %v12218_v18  ;;  %v13293_v14 = vpack.c.bf16 %v10443_v10, %v10442_v3  ;;  %v10444_v18 = vld [vmem:[#allocation17 + $0x40] sm:$0xff]  ;;  %v10447_v11 = vld [vmem:[#allocation17 + $0x58] sm:$0xff] }
 0x775   : > { %v9535_v26 = vadd.f32 %v12185_v22, %v15528_v31  ;;  %v13296_v21 = vpack.c.bf16 %v10445_v19, %v10444_v18  ;;  %v10446_v22 = vld [vmem:[#allocation17 + $0x50] sm:$0xff] }
 0x777   : > { %v9605_v16 = vadd.f32 %v12220_v25, %v9535_v26  ;;  %v10450_v25 = vld [vmem:[#allocation17 + $0x70] sm:$0xff] }
 0x778   : > { %v13305_v26 = vpack.c.bf16 %v10451_v54, %v10450_v25 }
 0x791   : > { %v12253_v27 = vpop.f32.mrb[8].mxu0 }
 0x792   : > { %v12254_v58 = vpop.f32.mrb[9].mxu0  ;;  %v12288_v55 = vpop.f32.mrb[8].mxu1 }
 0x793   : > { %v12255_v29 = vadd.f32 %v12254_v58, %v12253_v27  ;;  %v12289_v30 = vpop.f32.mrb[9].mxu1  ;;  %v15560_v27 = vand.u32 127, %v8305_v28  ;;  %v10565_v58 = vand.u32 1, %v15418_v42 }
 0x794   : > { %v12290_v32 = vadd.f32 %v12289_v30, %v12288_v55  ;;  %v10533_v55 = vadd.s32 16, %v15418_v42  ;;  %v10535_v30 = vadd.s32 32, %v15418_v42 }
 0x795   : > { %v9675_v33 = vadd.f32 %v12255_v29, %v9605_v16  ;;  %v10532_v16 = vadd.s32 8, %v15418_v42  ;;  %v10534_v29 = vadd.s32 24, %v15418_v42  ;;  %vm10549_vm5 = vcmp.le.s32.totalorder %v15418_v42, %v15560_v27 }
 0x796   : > { %v10567_v28 = vand.u32 1, %v10533_v55  ;;  %vm10551_vm9 = vcmp.le.s32.totalorder %v10533_v55, %v15560_v27  ;;  %vm10553_vm1 = vcmp.le.s32.totalorder %v10535_v30, %v15560_v27 }
 0x797   : > { %v9745_v34 = vadd.f32 %v12290_v32, %v9675_v33  ;;  %v10536_v32 = vadd.s32 40, %v15418_v42  ;;  %v10566_v33 = vand.u32 1, %v10532_v16  ;;  %vm10550_vm6 = vcmp.le.s32.totalorder %v10532_v16, %v15560_v27 }
 0x798   : > { %vm10552_vm11 = vcmp.le.s32.totalorder %v10534_v29, %v15560_v27 }
 0x7b1   : > { %v12323_v35 = vpop.f32.mrb[10].mxu0 }
 0x7b2   : > { %v12324_v37 = vpop.f32.mrb[11].mxu0  ;;  %v12358_v38 = vpop.f32.mrb[10].mxu1 }
 0x7b3   : > { %v12325_v39 = vadd.f32 %v12324_v37, %v12323_v35  ;;  %v12359_v31 = vpop.f32.mrb[11].mxu1  ;;  %v10568_v35 = vand.u32 1, %v10534_v29  ;;  %v10569_v37 = vand.u32 1, %v10535_v30 }
 0x7b4   : > { %v12360_v40 = vadd.f32 %v12359_v31, %v12358_v38  ;;  %v10570_v38 = vand.u32 1, %v10536_v32  ;;  %v10538_v31 = vadd.s32 56, %v15418_v42 }
 0x7b5   : > { %v9815_v41 = vadd.f32 %v12325_v39, %v9745_v34  ;;  %v15570_v34 = vand.u32 1, %v15560_v27  ;;  %v10537_v39 = vadd.s32 48, %v15418_v42 }
 0x7b7   : > { %v9885_v17 = vadd.f32 %v12360_v40, %v9815_v41  ;;  %vm10582_vm7 = vcmp.eq.s32.totalorder %v10565_v58, %v15570_v34  ;;  %vm10583_vm8 = vcmp.eq.s32.totalorder %v10566_v33, %v15570_v34  ;;  %vm10584_vm12 = vcmp.eq.s32.totalorder %v10567_v28, %v15570_v34 }
 0x7b8   : > { %vm10598_vm10 = vmand %vm10549_vm5, %vm10582_vm7  ;;  %vm10585_vm14 = vcmp.eq.s32.totalorder %v10568_v35, %v15570_v34  ;;  %v10539_v40 = vadd.s32 64, %v15418_v42  ;;  %v10540_v41 = vadd.s32 72, %v15418_v42  ;;  %vm10586_vm2 = vcmp.eq.s32.totalorder %v10569_v37, %v15570_v34 }
 0x7b9   : > { %vm10599_vm13 = vmand %vm10550_vm6, %vm10583_vm8  ;;  %vm10587_vm5 = vcmp.eq.s32.totalorder %v10570_v38, %v15570_v34  ;;  %vm10555_vm8 = vcmp.le.s32.totalorder %v10537_v39, %v15560_v27 }
 0x7ba   : > { %vm13308_vm15 = vmpackc.low %vm10599_vm13, %vm10598_vm10 }
 0x7bb   : > { %vm15586_vm0 = vmand %vm10551_vm9, %vm10584_vm12 }
 0x7bc   : > { %vm10601_vm3 = vmand %vm10552_vm11, %vm10585_vm14  ;;  %vm10556_vm11 = vcmp.le.s32.totalorder %v10538_v31, %v15560_v27 }
 0x7bd   : > { %vm13311_vm6 = vmpackc.low %vm10601_vm3, %vm15586_vm0 }
 0x7be   : > { %vm15601_vm7 = vmand %vm10553_vm1, %vm10586_vm2  ;;  %vm10558_vm2 = vcmp.le.s32.totalorder %v10540_v41, %v15560_v27 }
 0x7d1   : > { %v12393_v43 = vpop.f32.mrb[12].mxu0 }
 0x7d2   : > { %v12394_v44 = vpop.f32.mrb[13].mxu0  ;;  %v12428_v45 = vpop.f32.mrb[12].mxu1 }
 0x7d3   : > { %v12395_v46 = vadd.f32 %v12394_v44, %v12393_v43  ;;  %v12429_v47 = vpop.f32.mrb[13].mxu1  ;;  %v10571_v44 = vand.u32 1, %v10537_v39 }
 0x7d4   : > { %v12430_v48 = vadd.f32 %v12429_v47, %v12428_v45  ;;  %v10572_v45 = vand.u32 1, %v10538_v31  ;;  %v10573_v47 = vand.u32 1, %v10539_v40 }
 0x7d5   : > { %v9955_v50 = vadd.f32 %v12395_v46, %v9885_v17  ;;  %v13869_v17 = vmov 1.0|1.0   ;;  %v10541_v46 = vadd.s32 80, %v15418_v42  ;;  %vm10588_vm9 = vcmp.eq.s32.totalorder %v10571_v44, %v15570_v34 }
 0x7d6   : > { %vm10589_vm12 = vcmp.eq.s32.totalorder %v10572_v45, %v15570_v34  ;;  %vm15619_vm14 = vmand %vm10555_vm8, %vm10588_vm9  ;;  %vm10590_vm0 = vcmp.eq.s32.totalorder %v10573_v47, %v15570_v34 }
 0x7d7   : > { %v10025_v51 = vadd.f32 %v12430_v48, %v9955_v50  ;;  %v10542_v48 = vadd.s32 88, %v15418_v42  ;;  %vm15626_vm1 = vmand %vm10556_vm11, %vm10589_vm12 }
 0x7d9   : > { %v10576_v12 = vand.u32 1, %v10542_v48  ;;  %vm10560_vm9 = vcmp.le.s32.totalorder %v10542_v48, %v15560_v27 }
 0x7f1   : > { %v12463_v52 = vpop.f32.mrb[14].mxu0 }
 0x7f2   : > { %v12464_v53 = vpop.f32.mrb[15].mxu0  ;;  %v12498_v56 = vpop.f32.mrb[14].mxu1 }
 0x7f3   : > { %v12465_v62 = vadd.f32 %v12464_v53, %v12463_v52  ;;  %v12499_v0 = vpop.f32.mrb[15].mxu1  ;;  %v10575_v53 = vand.u32 1, %v10541_v46 }
 0x7f4   : > { %v12500_v2 = vadd.f32 %v12499_v0, %v12498_v56  ;;  %v10544_v0 = vadd.s32 104, %v15418_v42 }
 0x7f5   : > { %v10095_v4 = vadd.f32 %v12465_v62, %v10025_v51  ;;  %v10252_v5 = vpop.f32.mrb[16].mxu0  ;;  %v10574_v51 = vand.u32 1, %v10540_v41 }
 0x7f6   : > { %v10253_v6 = vadd.f32 %v11916_v1, %v10252_v5  ;;  %v12578_v7 = vpop.f32.mrb[17].mxu0 }
 0x7f7   : > { %v10165_v8 = vadd.f32 %v12500_v2, %v10095_v4  ;;  %vm10591_vm3 = vcmp.eq.s32.totalorder %v10574_v51, %v15570_v34  ;;  %v10577_v2 = vand.u32 1, %v10543_v61  ;;  %v10578_v4 = vand.u32 1, %v10544_v0  ;;  %v11919_v7 = vld [vmem:[#allocation16] ss:$0 sm:$0xff] }
 0x7f8   : > { %12612 = vmatmul.mubr.f32.vlgmr.msra.gmra.mrb[16].mxu1 %v10253_v6  ;;  %vm10607_vm8 = vmand %vm10558_vm2, %vm10591_vm3 }
 0x7f9   : > { %12647 = vmatmul.mubr.f32.vlgmr.msra.gmra.mrb[18].mxu0 %v10165_v8  ;;  %13285 = vmatpush3.bf16.msra.mxu1 %v13284_v20 }
 0x7fa   : > { %13286 = vmatprep.subr.bf16.mxu1 %v13865_v13  ;;  %12681 = vmatprep.mubr.msk.f32.mxu1 %vm13867_vm4, %v13868_v15 }
 0x7fb   : > { %12716 = vmatprep.mubr.msk.f32.mxu0 %vm13867_vm4, %v13868_v15  ;;  %v13299_v15 = vpack.c.bf16 %v10447_v11, %v10446_v22  ;;  %13309 = vmatpush3.bf16.msk.msra.mxu0 %vm13308_vm15, %v13869_v17  ;;  %vm10554_vm4 = vcmp.le.s32.totalorder %v10536_v32, %v15560_v27  ;;  %vm10557_vm15 = vcmp.le.s32.totalorder %v10539_v40, %v15560_v27 }
 0x7fc   : > { %13310 = vmatprep.subr.bf16.mxu0 %v13865_v13  ;;  %vm15608_vm10 = vmand %vm10554_vm4, %vm10587_vm5 }
 0x7fd   : > { %13288 = vmatpush3.bf16.msra.mxu1 %v13287_v60  ;;  %vm13314_vm13 = vmpackc.low %vm15608_vm10, %vm15601_vm7  ;;  %vm10592_vm7 = vcmp.eq.s32.totalorder %v10575_v53, %v15570_v34  ;;  %vm10593_vm10 = vcmp.eq.s32.totalorder %v10576_v12, %v15570_v34  ;;  %v10545_v60 = vadd.s32 112, %v15418_v42  ;;  %v10630_v42 = vld [vmem:[%s15752_s18] sm:$0xff] }
 0x7fe   : > { %13289 = vmatprep.subr.bf16.mxu1 %v13865_v13  ;;  %vm13317_vm4 = vmpackc.low %vm15626_vm1, %vm15619_vm14  ;;  %vm10561_vm14 = vcmp.le.s32.totalorder %v10543_v61, %v15560_v27  ;;  %vm10595_vm1 = vcmp.eq.s32.totalorder %v10578_v4, %v15570_v34 }
 0x7ff   : > { %13312 = vmatpush3.bf16.msk.msra.mxu0 %vm13311_vm6, %v13869_v17  ;;  %vm15639_vm5 = vmand %vm10557_vm15, %vm10590_vm0  ;;  %vm10559_vm6 = vcmp.le.s32.totalorder %v10541_v46, %v15560_v27  ;;  %vm10594_vm15 = vcmp.eq.s32.totalorder %v10577_v2, %v15570_v34  ;;  %vm10562_vm0 = vcmp.le.s32.totalorder %v10544_v0, %v15560_v27  ;;  %v10579_v9 = vand.u32 1, %v10545_v60 }
 0x800   : > { %13313 = vmatprep.subr.bf16.mxu0 %v13865_v13  ;;  %vm13320_vm11 = vmpackc.low %vm10607_vm8, %vm15639_vm5 }
 0x801   : > { %13291 = vmatpush3.bf16.msra.mxu1 %v13290_v36  ;;  %vm10608_vm12 = vmand %vm10559_vm6, %vm10592_vm7  ;;  %v10580_v36 = vand.u32 1, %v10546_v49  ;;  %vm10563_vm6 = vcmp.le.s32.totalorder %v10545_v60, %v15560_v27  ;;  %vm10564_vm7 = vcmp.le.s32.totalorder %v10546_v49, %v15560_v27  ;;  %vm10596_vm8 = vcmp.eq.s32.totalorder %v10579_v9, %v15570_v34 }
 0x802   : > { %13292 = vmatprep.subr.bf16.mxu1 %v13865_v13  ;;  %vm10610_vm3 = vmand %vm10561_vm14, %vm10594_vm15 }
 0x803   : > { %13315 = vmatpush3.bf16.msk.msra.mxu0 %vm13314_vm13, %v13869_v17  ;;  %vm10609_vm13 = vmand %vm10560_vm9, %vm10593_vm10  ;;  %vm10597_vm9 = vcmp.eq.s32.totalorder %v10580_v36, %v15570_v34 }
 0x804   : > { %13316 = vmatprep.subr.bf16.mxu0 %v13865_v13  ;;  %vm13323_vm2 = vmpackc.low %vm10609_vm13, %vm10608_vm12 }
 0x805   : > { %13294 = vmatpush3.bf16.msra.mxu1 %v13293_v14  ;;  %vm10611_vm5 = vmand %vm10562_vm0, %vm10595_vm1 }
 0x806   : > { %13295 = vmatprep.subr.bf16.mxu1 %v13865_v13  ;;  %vm10612_vm10 = vmand %vm10563_vm6, %vm10596_vm8 }
 0x807   : > { %13318 = vmatpush3.bf16.msk.msra.mxu0 %vm13317_vm4, %v13869_v17  ;;  %vm13326_vm4 = vmpackc.low %vm10611_vm5, %vm10610_vm3 }
 0x808   : > { %13319 = vmatprep.subr.bf16.mxu0 %v13865_v13 }
 0x809   : > { %13297 = vmatpush3.bf16.msra.mxu1 %v13296_v21 }
 0x80a   : > { %13298 = vmatprep.subr.bf16.mxu1 %v13865_v13 }
 0x80b   : > { %13321 = vmatpush3.bf16.msk.msra.mxu0 %vm13320_vm11, %v13869_v17  ;;  %vm10613_vm11 = vmand %vm10564_vm7, %vm10597_vm9 }
 0x80c   : > { %13322 = vmatprep.subr.bf16.mxu0 %v13865_v13  ;;  %vm13329_vm12 = vmpackc.low %vm10613_vm11, %vm10612_vm10 }
 0x80d   : > { %13300 = vmatpush3.bf16.msra.mxu1 %v13299_v15 }
 0x80e   : > { %13301 = vmatprep.subr.bf16.mxu1 %v13865_v13 }
 0x80f   : > { %13324 = vmatpush3.bf16.msk.msra.mxu0 %vm13323_vm2, %v13869_v17 }
 0x810   : > { %13325 = vmatprep.subr.bf16.mxu0 %v13865_v13 }
 0x811   : > { %13303 = vmatpush3.bf16.msra.mxu1 %v13302_v24 }
 0x812   : > { %13304 = vmatprep.subr.bf16.mxu1 %v13865_v13 }
 0x813   : > { %13327 = vmatpush3.bf16.msk.msra.mxu0 %vm13326_vm4, %v13869_v17 }
 0x814   : > { %13328 = vmatprep.subr.bf16.mxu0 %v13865_v13  ;;  %v11920_v13 = vld [vmem:[#allocation19] ss:$0 sm:$0xff] }
 0x815   : > { %13306 = vmatpush3.bf16.msra.mxu1 %v13305_v26 }
 0x817   : > { %13330 = vmatpush3.bf16.msk.msra.mxu0 %vm13329_vm12, %v13869_v17 }
 0x8cb   : > { %v10354_v5 = vpop.f32.mrb[16].mxu1 }
 0x8cc   : > { %v12613_v20 = vpop.f32.mrb[17].mxu1  ;;  %v10424_v6 = vpop.f32.mrb[18].mxu0 }
 0x8cd   : > { %v10425_v63 = vadd.f32 %v10424_v6, %v10354_v5  ;;  %v12648_v59 = vpop.f32.mrb[19].mxu0 }
 0x8cf   : > { %v10435_v8 = vadd.f32 %v11919_v7, %v10425_v63 }
 0x8d1   : > { %12682 = vmatmul.mubr.f32.vlgmr.msra.gmra.mrb[18].mxu1 %v10435_v8 }
 0x9a4   : > { %v10525_v3 = vpop.f32.mrb[18].mxu1 }
 0x9a5   : > { %v10526_v10 = vadd.f32 %v11920_v13, %v10525_v3  ;;  %v12683_v14 = vpop.f32.mrb[19].mxu1 }
 0x9a7   : > { %10529 = vst [vmem:[%s15751_s1] sm:$0xff] %v10526_v10  ;;  %12717 = vmatmul.mubr.f32.vlgmr.msra.gmra.mrb[20].mxu0 %v10526_v10 }
 0xa7a   : > { %v10697_v18 = vpop.f32.mrb[20].mxu0 }
 0xa7b   : > { %v10698_v19 = vadd.f32 %v10697_v18, %v10630_v42  ;;  %v12718_v21 = vpop.f32.mrb[21].mxu0 }
 0xa7d   : > { %10701 = vst [vmem:[%s15753_s8] sm:$0xff] %v10698_v19 }
 0xa7e PF: > { %p31_p13 = scmp.ge.s32.totalorder %s14207_s26, 4   ;;  %s15754_s18 = smov %s13840_s19 }
 0xa7f   : > { %s15755_s19 = smov %s13844_s20  ;;  %s15756_s20 = smov %s14219_s22 }
 0xa80   : > { %s15757_s21 = smov %s14207_s26  ;;  %33 = sbr.rel (!%p31_p13) target bundleno = 17 (0x11), region = 171 }
 0xa87   :  { %10719 = vsyncpa [#allocation4], 1 }
 0xa88   :  { %10721 = vsyncpa [#allocation4 + $0x1], 1 }
 0xa89   :  { %10722 = vsyncpa [#allocation6], 1 }
 0xa8a   :  { %10723 = vsyncpa [#allocation9], 1 }
 0xa8b   :  { %10724 = vsyncpa [#allocation12], 1 }
 0xa8c   :  { %10725 = vsyncpa [#allocation15], 1 }
 0xa8d   :  { %10726 = vsyncpa [#allocation18], 1 }

</bundles_post_ra>
